<compile_context>
chip_gen: v7x
topology: tpu7x:2x2x1
jax: 0.10.0
libtpu: 0.0.40
codegen_flags: <defaults>
</compile_context>

<pallas_src>
import jax
import jax.numpy as jnp
from jax import lax
from jax.experimental import pallas as pl
from jax.experimental.pallas import tpu as pltpu

C1, C2, C3 = 64, 256, 512      # GraphConv output widths (1 -> 64 -> 256 -> 512)
EPS = 1e-5                     # torch.nn.LayerNorm default eps


def _layernorm(x, gamma, beta):
    # one-pass statistics: E[x], E[x^2]
    mu = jnp.mean(x, axis=-1, keepdims=True)
    ex2 = jnp.mean(x * x, axis=-1, keepdims=True)
    var = jnp.maximum(ex2 - mu * mu, 0.0)
    return (x - mu) * lax.rsqrt(var + EPS) * gamma + beta


def _rows_to_merged(h_rows, gb, fr):
    """(Gb*F, N, C) row layout (rows ordered (g, f)) -> (Gb, N, F*C) merged-lane.

    Only static leading indexing + lane concatenation of 128-aligned pieces:
    Mosaic lowers these as aligned tile copies (no unsupported reshapes)."""
    per_g = []
    for g in range(gb):
        frames = [h_rows[g * fr + f] for f in range(fr)]            # each (N, C)
        per_g.append(jnp.concatenate(frames, axis=-1)[None])         # (1, N, F*C)
    return jnp.concatenate(per_g, axis=0)                            # (Gb, N, F*C)


def _merged_to_rows(h_merged, gb, fr, c):
    """(Gb, N, F*C) merged-lane layout -> (Gb*F, N, C) row layout."""
    blocks = []
    for g in range(gb):
        for f in range(fr):
            blocks.append(h_merged[g, :, f * c:(f + 1) * c][None])   # (1, N, C)
    return jnp.concatenate(blocks, axis=0)                           # (Gb*F, N, C)


# ---------------------------------------------------------------------------
# Fused kernel: per-graph-block GCN stack over all frames + running max,
# with the dense head executed on the final grid step.
# ---------------------------------------------------------------------------
def _gconv_frames_fused_kernel(
        adj_ref, feat_ref,
        w1_ref, p1_ref, w2_ref, p2_ref, w3_ref, p3_ref,
        wd1_ref, pd1_ref, wd2_ref, pd2_ref, wd3_ref, pd3_ref,
        wd4_ref, bd4_ref,
        out_ref, acc_ref):
    step = pl.program_id(0)

    @pl.when(step == 0)
    def _init():
        acc_ref[...] = jnp.full(acc_ref.shape, -jnp.inf, dtype=acc_ref.dtype)

    gb, n, fr = feat_ref.shape
    adj = adj_ref[...]                       # (Gb, N, N)  bf16, pre-normalized
    feat = feat_ref[...]                     # (Gb, N, F)  bf16

    # ---- GraphConv(1 -> C1) + SiLU + LayerNorm, all graphs/frames ----------
    # A (x W1) == (A x) W1 : the aggregation is one tiny (F,N) matmul per graph
    # (layer-1 input is a single channel per frame).
    ah_parts = []
    for g in range(gb):
        # ahT[f, m] = sum_k feat[k, f] * adj[m, k]
        ahT = lax.dot_general(feat[g], adj[g],
                              dimension_numbers=(((0,), (1,)), ((), ())),
                              preferred_element_type=jnp.float32)    # (F, N)
        ah_parts.append(ahT[None])                                    # (1, F, N)
    ah = jnp.concatenate(ah_parts, axis=0).reshape(gb * fr, n)        # (Gb*F, N)

    p1 = p1_ref[...]                                                  # (3, C1)
    h = jax.nn.silu(ah[:, :, None] * w1_ref[...] + p1[0:1])           # (Gb*F, N, C1)
    h = _layernorm(h, p1[1:2], p1[2:3])

    # ---- GraphConv(cin -> cout) + SiLU + LayerNorm, shared-adjacency form --
    def gcn_layer(h_rows, w_ref, p_ref):
        rows, _, cin = h_rows.shape
        cout = w_ref.shape[1]
        # weight matmul on M = Gb*F*N rows (leading-collapse reshape only)
        hw = jnp.dot(h_rows.reshape(rows * n, cin).astype(jnp.bfloat16),
                     w_ref[...],
                     preferred_element_type=jnp.float32)              # (M, cout)
        hw_rows = hw.reshape(rows, n, cout).astype(jnp.bfloat16)      # (Gb*F, N, cout)
        # node-major merged-lane layout for the aggregation
        hw_m = _rows_to_merged(hw_rows, gb, fr)                       # (Gb, N, F*cout)
        # one adjacency matmul per graph with an F*cout-wide free dim
        ah_m = lax.dot_general(adj, hw_m,
                               dimension_numbers=(((2,), (1,)), ((0,), (0,))),
                               preferred_element_type=jnp.float32)    # (Gb, N, F*cout)
        ah_rows = _merged_to_rows(ah_m, gb, fr, cout)                 # (Gb*F, N, cout)
        p = p_ref[...]                                                # (3, cout)
        return _layernorm(jax.nn.silu(ah_rows + p[0:1]), p[1:2], p[2:3])

    h = gcn_layer(h, w2_ref, p2_ref)         # (Gb*F, N, C2)
    h = gcn_layer(h, w3_ref, p3_ref)         # (Gb*F, N, C3)

    # running max over (graph, frame, node)
    blk_max = jnp.max(jnp.max(h, axis=0), axis=0, keepdims=True)      # (1, C3)
    acc_ref[...] = jnp.maximum(acc_ref[...], blk_max)

    # ---- fused dense head on the last grid step -----------------------------
    # NOTE: the reference applies SiLU after EVERY dense_layers entry
    # (Linear AND LayerNorm), then sigmoid.
    @pl.when(step == pl.num_programs(0) - 1)
    def _head():
        act = jax.nn.silu

        def dense(x, w_ref, b):
            return jnp.dot(x.astype(jnp.bfloat16), w_ref[...],
                           preferred_element_type=jnp.float32) + b

        x = acc_ref[...]                                              # (1, C3)
        pd1 = pd1_ref[...]
        pd2 = pd2_ref[...]
        pd3 = pd3_ref[...]
        x = act(dense(x, wd1_ref, pd1[0:1]))
        x = act(_layernorm(x, pd1[1:2], pd1[2:3]))
        x = act(dense(x, wd2_ref, pd2[0:1]))
        x = act(_layernorm(x, pd2[1:2], pd2[2:3]))
        x = act(dense(x, wd3_ref, pd3[0:1]))
        x = act(_layernorm(x, pd3[1:2], pd3[2:3]))
        x = act(dense(x, wd4_ref, bd4_ref[...]))
        out_ref[...] = jax.nn.sigmoid(x)                              # (1, 4)


# ---------------------------------------------------------------------------
# Wrapper: layout plumbing (bf16 pre-cast, param packing, graph padding)
# ---------------------------------------------------------------------------
def gconvnet_frames_forward(adj_norm, feats, params, *, graphs_per_step=8):
    """adj_norm: (G, N, N) normalized adjacency; feats: (G, N, F) node features."""
    G, N, F = feats.shape
    Gb = min(graphs_per_step, G)
    G_pad = ((G + Gb - 1) // Gb) * Gb
    if G_pad != G:
        # pad by replicating graph 0: max over duplicates leaves the result unchanged
        pad = G_pad - G
        adj_norm = jnp.concatenate(
            [adj_norm, jnp.broadcast_to(adj_norm[:1], (pad, N, N))], axis=0)
        feats = jnp.concatenate(
            [feats, jnp.broadcast_to(feats[:1], (pad, N, F))], axis=0)

    bf = jnp.bfloat16
    p = params
    pack = lambda b, g, be: jnp.concatenate([b, g, be], axis=0)       # (3, C)

    args = [adj_norm.astype(bf), feats.astype(bf),
            p['w1'],             pack(p['b1'],  p['g1'],  p['be1']),
            p['w2'].astype(bf),  pack(p['b2'],  p['g2'],  p['be2']),
            p['w3'].astype(bf),  pack(p['b3'],  p['g3'],  p['be3']),
            p['wd1'].astype(bf), pack(p['bd1'], p['gl1'], p['bl1']),
            p['wd2'].astype(bf), pack(p['bd2'], p['gl2'], p['bl2']),
            p['wd3'].astype(bf), pack(p['bd3'], p['gl3'], p['bl3']),
            p['wd4'].astype(bf), p['bd4']]

    def resident(a):                     # VMEM-resident parameter (constant block)
        nd = a.ndim
        return pl.BlockSpec(a.shape, lambda i, _nd=nd: (0,) * _nd)

    in_specs = [pl.BlockSpec((Gb, N, N), lambda i: (i, 0, 0)),        # adjacency block
                pl.BlockSpec((Gb, N, F), lambda i: (i, 0, 0))]        # feature block
    in_specs += [resident(a) for a in args[2:]]

    out = pl.pallas_call(
        _gconv_frames_fused_kernel,
        out_shape=jax.ShapeDtypeStruct((1, 4), jnp.float32),
        grid=(G_pad // Gb,),
        in_specs=in_specs,
        out_specs=pl.BlockSpec((1, 4), lambda i: (0, 0)),
        scratch_shapes=[pltpu.VMEM((1, C3), jnp.float32)],            # running max
        compiler_params=pltpu.CompilerParams(
            dimension_semantics=("arbitrary",)),                      # accumulator + fused head
    )(*args)
    return out


def init_params(key):
    ks = jax.random.split(key, 7)

    def lin(k, fan_in, fan_out):
        s = 1.0 / (fan_in ** 0.5)
        return jax.random.uniform(k, (fan_in, fan_out), jnp.float32, -s, s)

    z = lambda c: jnp.zeros((1, c), jnp.float32)
    o = lambda c: jnp.ones((1, c), jnp.float32)
    return dict(
        # GraphConv weights (stored (in, out)), biases, LayerNorm gamma/beta
        w1=lin(ks[0], 1, C1),    b1=z(C1),   g1=o(C1),   be1=z(C1),
        w2=lin(ks[1], C1, C2),   b2=z(C2),   g2=o(C2),   be2=z(C2),
        w3=lin(ks[2], C2, C3),   b3=z(C3),   g3=o(C3),   be3=z(C3),
        # Dense head: Linear(512,128), LN(128), Linear(128,64), LN(64),
        #             Linear(64,16), LN(16), Linear(16,4)
        wd1=lin(ks[3], 512, 128), bd1=z(128), gl1=o(128), bl1=z(128),
        wd2=lin(ks[4], 128, 64),  bd2=z(64),  gl2=o(64),  bl2=z(64),
        wd3=lin(ks[5], 64, 16),   bd3=z(16),  gl3=o(16),  bl3=z(16),
        wd4=lin(ks[6], 16, 4),    bd4=z(4),
    )


if __name__ == "__main__":
    key = jax.random.PRNGKey(0)
    G, N, F = 2, 16, 8   # graphs, nodes per graph, frames per node
    k_adj, k_feat, k_par = jax.random.split(key, 3)

    # Deterministic random symmetric adjacency (no self-loops) + DGL 'both' norm.
    logits = jax.random.uniform(k_adj, (G, N, N))
    a = (logits + jnp.swapaxes(logits, 1, 2)) * 0.5
    adj = (a > 0.6).astype(jnp.float32) * (1.0 - jnp.eye(N)[None])
    deg = jnp.clip(adj.sum(-1), 1.0, None)            # degs.clamp(min=1)
    dinv = 1.0 / jnp.sqrt(deg)
    adj_norm = adj * dinv[:, :, None] * dinv[:, None, :]

    feats = jax.random.normal(k_feat, (G, N, F), jnp.float32)
    params = init_params(k_par)

    out = jax.block_until_ready(gconvnet_frames_forward(adj_norm, feats, params))
    assert out.shape == (1, 4), out.shape
    assert bool(jnp.all(jnp.isfinite(out)))
    print("KERNEL_OK")
</pallas_src>

<mosaic_0001>
module attributes {stable_mosaic.version = 11 : i64} {
  func.func @_gconv_frames_fused_kernel(%arg0: i32, %arg1: memref<2x16x16xbf16, #tpu.memory_space<vmem>>, %arg2: memref<2x16x8xbf16, #tpu.memory_space<vmem>>, %arg3: memref<1x64xf32, #tpu.memory_space<vmem>>, %arg4: memref<3x64xf32, #tpu.memory_space<vmem>>, %arg5: memref<64x256xbf16, #tpu.memory_space<vmem>>, %arg6: memref<3x256xf32, #tpu.memory_space<vmem>>, %arg7: memref<256x512xbf16, #tpu.memory_space<vmem>>, %arg8: memref<3x512xf32, #tpu.memory_space<vmem>>, %arg9: memref<512x128xbf16, #tpu.memory_space<vmem>>, %arg10: memref<3x128xf32, #tpu.memory_space<vmem>>, %arg11: memref<128x64xbf16, #tpu.memory_space<vmem>>, %arg12: memref<3x64xf32, #tpu.memory_space<vmem>>, %arg13: memref<64x16xbf16, #tpu.memory_space<vmem>>, %arg14: memref<3x16xf32, #tpu.memory_space<vmem>>, %arg15: memref<16x4xbf16, #tpu.memory_space<vmem>>, %arg16: memref<1x4xf32, #tpu.memory_space<vmem>>, %arg17: memref<1x4xf32, #tpu.memory_space<vmem>>, %arg18: memref<1x512xf32, #tpu.memory_space<vmem>>) attributes {dimension_semantics = [#tpu.dimension_semantics<arbitrary>], iteration_bounds = array<i64: 1>, scalar_prefetch = 0 : i64, scratch_operands = 1 : i64, tpu.core_type = #tpu.core_type<tc>, window_params = [{transform_indices = @transform_0, window_bounds = array<i64: 2, 16, 16>}, {transform_indices = @transform_1, window_bounds = array<i64: 2, 16, 8>}, {pipeline_mode = #tpu.pipeline_mode<synchronous>, transform_indices = @transform_2, window_bounds = array<i64: 1, 64>}, {pipeline_mode = #tpu.pipeline_mode<synchronous>, transform_indices = @transform_3, window_bounds = array<i64: 3, 64>}, {pipeline_mode = #tpu.pipeline_mode<synchronous>, transform_indices = @transform_4, window_bounds = array<i64: 64, 256>}, {pipeline_mode = #tpu.pipeline_mode<synchronous>, transform_indices = @transform_5, window_bounds = array<i64: 3, 256>}, {pipeline_mode = #tpu.pipeline_mode<synchronous>, transform_indices = @transform_6, window_bounds = array<i64: 256, 512>}, {pipeline_mode = #tpu.pipeline_mode<synchronous>, transform_indices = @transform_7, window_bounds = array<i64: 3, 512>}, {pipeline_mode = #tpu.pipeline_mode<synchronous>, transform_indices = @transform_8, window_bounds = array<i64: 512, 128>}, {pipeline_mode = #tpu.pipeline_mode<synchronous>, transform_indices = @transform_9, window_bounds = array<i64: 3, 128>}, {pipeline_mode = #tpu.pipeline_mode<synchronous>, transform_indices = @transform_10, window_bounds = array<i64: 128, 64>}, {pipeline_mode = #tpu.pipeline_mode<synchronous>, transform_indices = @transform_11, window_bounds = array<i64: 3, 64>}, {pipeline_mode = #tpu.pipeline_mode<synchronous>, transform_indices = @transform_12, window_bounds = array<i64: 64, 16>}, {pipeline_mode = #tpu.pipeline_mode<synchronous>, transform_indices = @transform_13, window_bounds = array<i64: 3, 16>}, {pipeline_mode = #tpu.pipeline_mode<synchronous>, transform_indices = @transform_14, window_bounds = array<i64: 16, 4>}, {pipeline_mode = #tpu.pipeline_mode<synchronous>, transform_indices = @transform_15, window_bounds = array<i64: 1, 4>}, {pipeline_mode = #tpu.pipeline_mode<synchronous>, transform_indices = @transform_16, window_bounds = array<i64: 1, 4>}]} {
    %c0_i32 = arith.constant 0 : i32
    %0 = arith.cmpi eq, %arg0, %c0_i32 : i32
    %1 = arith.extui %0 : i1 to i32
    %c0_i32_0 = arith.constant 0 : i32
    %2 = arith.cmpi ne, %1, %c0_i32_0 : i32
    scf.if %2 {
      %cst_52 = arith.constant 0xFF800000 : f32
      %337 = vector.broadcast %cst_52 : f32 to vector<1x512xf32>
      %c0_53 = arith.constant 0 : index
      %c0_54 = arith.constant 0 : index
      %338 = vector.load %arg18[%c0_53, %c0_54] : memref<1x512xf32, #tpu.memory_space<vmem>>, vector<1x512xf32>
      tpu.vector_store %arg18[%c0_53, %c0_54], %337 {strides = array<i32>} : memref<1x512xf32, #tpu.memory_space<vmem>>, vector<1x512xf32>,
    } else {
    }
    %c0 = arith.constant 0 : index
    %c0_1 = arith.constant 0 : index
    %c0_2 = arith.constant 0 : index
    %3 = vector.load %arg1[%c0, %c0_1, %c0_2] : memref<2x16x16xbf16, #tpu.memory_space<vmem>>, vector<2x16x16xbf16>
    %c0_3 = arith.constant 0 : index
    %c0_4 = arith.constant 0 : index
    %c0_5 = arith.constant 0 : index
    %4 = vector.load %arg2[%c0_3, %c0_4, %c0_5] : memref<2x16x8xbf16, #tpu.memory_space<vmem>>, vector<2x16x8xbf16>
    %5 = vector.extract_strided_slice %4 {offsets = [0, 0, 0], sizes = [1, 16, 8], strides = [1, 1, 1]} : vector<2x16x8xbf16> to vector<1x16x8xbf16>
    %6 = vector.shape_cast %5 : vector<1x16x8xbf16> to vector<16x8xbf16>
    %7 = vector.extract_strided_slice %3 {offsets = [0, 0, 0], sizes = [1, 16, 16], strides = [1, 1, 1]} : vector<2x16x16xbf16> to vector<1x16x16xbf16>
    %8 = vector.shape_cast %7 : vector<1x16x16xbf16> to vector<16x16xbf16>
    %cst = arith.constant dense<0.000000e+00> : vector<8x16xf32>
    %9 = tpu.matmul %6, %8, %cst {dimension_numbers = #tpu.dot_dimension_numbers<[0], [1], [1], [0], [0, 1, 1, 0], [], []>} : vector<16x8xbf16>, vector<16x16xbf16>, vector<8x16xf32> -> vector<8x16xf32>
    %10 = vector.shape_cast %9 : vector<8x16xf32> to vector<1x8x16xf32>
    %11 = vector.extract_strided_slice %4 {offsets = [1, 0, 0], sizes = [1, 16, 8], strides = [1, 1, 1]} : vector<2x16x8xbf16> to vector<1x16x8xbf16>
    %12 = vector.shape_cast %11 : vector<1x16x8xbf16> to vector<16x8xbf16>
    %13 = vector.extract_strided_slice %3 {offsets = [1, 0, 0], sizes = [1, 16, 16], strides = [1, 1, 1]} : vector<2x16x16xbf16> to vector<1x16x16xbf16>
    %14 = vector.shape_cast %13 : vector<1x16x16xbf16> to vector<16x16xbf16>
    %cst_6 = arith.constant dense<0.000000e+00> : vector<8x16xf32>
    %15 = tpu.matmul %12, %14, %cst_6 {dimension_numbers = #tpu.dot_dimension_numbers<[0], [1], [1], [0], [0, 1, 1, 0], [], []>} : vector<16x8xbf16>, vector<16x16xbf16>, vector<8x16xf32> -> vector<8x16xf32>
    %16 = vector.shape_cast %15 : vector<8x16xf32> to vector<1x8x16xf32>
    %17 = tpu.concatenate %10, %16 in 0 : vector<1x8x16xf32>, vector<1x8x16xf32> -> vector<2x8x16xf32>
    %18 = vector.shape_cast %17 : vector<2x8x16xf32> to vector<16x16xf32>
    %c0_7 = arith.constant 0 : index
    %c0_8 = arith.constant 0 : index
    %19 = vector.load %arg4[%c0_7, %c0_8] : memref<3x64xf32, #tpu.memory_space<vmem>>, vector<3x64xf32>
    %20 = vector.shape_cast %18 : vector<16x16xf32> to vector<16x16x1xf32>
    %c0_9 = arith.constant 0 : index
    %c0_10 = arith.constant 0 : index
    %21 = vector.load %arg3[%c0_9, %c0_10] : memref<1x64xf32, #tpu.memory_space<vmem>>, vector<1x64xf32>
    %22 = vector.shape_cast %21 : vector<1x64xf32> to vector<1x1x64xf32>
    %23 = vector.broadcast %20 : vector<16x16x1xf32> to vector<16x16x64xf32>
    %24 = vector.broadcast %22 : vector<1x1x64xf32> to vector<16x16x64xf32>
    %25 = arith.mulf %23, %24 : vector<16x16x64xf32>
    %26 = vector.extract_strided_slice %19 {offsets = [0, 0], sizes = [1, 64], strides = [1, 1]} : vector<3x64xf32> to vector<1x64xf32>
    %27 = vector.shape_cast %26 : vector<1x64xf32> to vector<1x1x64xf32>
    %28 = vector.broadcast %27 : vector<1x1x64xf32> to vector<16x16x64xf32>
    %29 = arith.addf %25, %28 : vector<16x16x64xf32>
    %30 = arith.negf %29 : vector<16x16x64xf32>
    %31 = math.exp %30 : vector<16x16x64xf32>
    %cst_11 = arith.constant 1.000000e+00 : f32
    %32 = vector.broadcast %cst_11 : f32 to vector<16x16x64xf32>
    %33 = arith.addf %32, %31 : vector<16x16x64xf32>
    %34 = arith.divf %32, %33 : vector<16x16x64xf32>
    %35 = arith.mulf %29, %34 : vector<16x16x64xf32>
    %36 = vector.extract_strided_slice %19 {offsets = [1, 0], sizes = [1, 64], strides = [1, 1]} : vector<3x64xf32> to vector<1x64xf32>
    %37 = vector.extract_strided_slice %19 {offsets = [2, 0], sizes = [1, 64], strides = [1, 1]} : vector<3x64xf32> to vector<1x64xf32>
    %cst_12 = arith.constant dense<0.000000e+00> : vector<16x16xf32>
    %38 = vector.multi_reduction <add>, %35, %cst_12 [2] : vector<16x16x64xf32> to vector<16x16xf32>
    %39 = vector.shape_cast %38 : vector<16x16xf32> to vector<16x16x1xf32>
    %cst_13 = arith.constant 6.400000e+01 : f32
    %40 = vector.broadcast %cst_13 : f32 to vector<16x16x1xf32>
    %41 = arith.divf %39, %40 : vector<16x16x1xf32>
    %42 = arith.mulf %35, %35 : vector<16x16x64xf32>
    %cst_14 = arith.constant dense<0.000000e+00> : vector<16x16xf32>
    %43 = vector.multi_reduction <add>, %42, %cst_14 [2] : vector<16x16x64xf32> to vector<16x16xf32>
    %44 = vector.shape_cast %43 : vector<16x16xf32> to vector<16x16x1xf32>
    %cst_15 = arith.constant 6.400000e+01 : f32
    %45 = vector.broadcast %cst_15 : f32 to vector<16x16x1xf32>
    %46 = arith.divf %44, %45 : vector<16x16x1xf32>
    %47 = arith.mulf %41, %41 : vector<16x16x1xf32>
    %48 = arith.subf %46, %47 : vector<16x16x1xf32>
    %cst_16 = arith.constant 0.000000e+00 : f32
    %49 = vector.broadcast %cst_16 : f32 to vector<16x16x1xf32>
    %50 = arith.maximumf %48, %49 : vector<16x16x1xf32>
    %51 = vector.broadcast %41 : vector<16x16x1xf32> to vector<16x16x64xf32>
    %52 = arith.subf %35, %51 : vector<16x16x64xf32>
    %cst_17 = arith.constant 9.99999974E-6 : f32
    %53 = vector.broadcast %cst_17 : f32 to vector<16x16x1xf32>
    %54 = arith.addf %50, %53 : vector<16x16x1xf32>
    %55 = math.rsqrt %54 : vector<16x16x1xf32>
    %56 = vector.broadcast %55 : vector<16x16x1xf32> to vector<16x16x64xf32>
    %57 = arith.mulf %52, %56 : vector<16x16x64xf32>
    %58 = vector.shape_cast %36 : vector<1x64xf32> to vector<1x1x64xf32>
    %59 = vector.broadcast %58 : vector<1x1x64xf32> to vector<16x16x64xf32>
    %60 = arith.mulf %57, %59 : vector<16x16x64xf32>
    %61 = vector.shape_cast %37 : vector<1x64xf32> to vector<1x1x64xf32>
    %62 = vector.broadcast %61 : vector<1x1x64xf32> to vector<16x16x64xf32>
    %63 = arith.addf %60, %62 : vector<16x16x64xf32>
    %64 = vector.shape_cast %63 : vector<16x16x64xf32> to vector<256x64xf32>
    %65 = arith.truncf %64 : vector<256x64xf32> to vector<256x64xbf16>
    %c0_18 = arith.constant 0 : index
    %c0_19 = arith.constant 0 : index
    %66 = vector.load %arg5[%c0_18, %c0_19] : memref<64x256xbf16, #tpu.memory_space<vmem>>, vector<64x256xbf16>
    %cst_20 = arith.constant dense<0.000000e+00> : vector<256x256xf32>
    %67 = tpu.matmul %65, %66, %cst_20 {dimension_numbers = #tpu.dot_dimension_numbers<[1], [0], [0], [1], [0, 0, 1, 1], [], []>} : vector<256x64xbf16>, vector<64x256xbf16>, vector<256x256xf32> -> vector<256x256xf32>
    %68 = vector.shape_cast %67 : vector<256x256xf32> to vector<16x16x256xf32>
    %69 = arith.truncf %68 : vector<16x16x256xf32> to vector<16x16x256xbf16>
    %70 = vector.extract_strided_slice %69 {offsets = [0, 0, 0], sizes = [1, 16, 256], strides = [1, 1, 1]} : vector<16x16x256xbf16> to vector<1x16x256xbf16>
    %71 = vector.shape_cast %70 : vector<1x16x256xbf16> to vector<16x256xbf16>
    %72 = vector.extract_strided_slice %69 {offsets = [1, 0, 0], sizes = [1, 16, 256], strides = [1, 1, 1]} : vector<16x16x256xbf16> to vector<1x16x256xbf16>
    %73 = vector.shape_cast %72 : vector<1x16x256xbf16> to vector<16x256xbf16>
    %74 = vector.extract_strided_slice %69 {offsets = [2, 0, 0], sizes = [1, 16, 256], strides = [1, 1, 1]} : vector<16x16x256xbf16> to vector<1x16x256xbf16>
    %75 = vector.shape_cast %74 : vector<1x16x256xbf16> to vector<16x256xbf16>
    %76 = vector.extract_strided_slice %69 {offsets = [3, 0, 0], sizes = [1, 16, 256], strides = [1, 1, 1]} : vector<16x16x256xbf16> to vector<1x16x256xbf16>
    %77 = vector.shape_cast %76 : vector<1x16x256xbf16> to vector<16x256xbf16>
    %78 = vector.extract_strided_slice %69 {offsets = [4, 0, 0], sizes = [1, 16, 256], strides = [1, 1, 1]} : vector<16x16x256xbf16> to vector<1x16x256xbf16>
    %79 = vector.shape_cast %78 : vector<1x16x256xbf16> to vector<16x256xbf16>
    %80 = vector.extract_strided_slice %69 {offsets = [5, 0, 0], sizes = [1, 16, 256], strides = [1, 1, 1]} : vector<16x16x256xbf16> to vector<1x16x256xbf16>
    %81 = vector.shape_cast %80 : vector<1x16x256xbf16> to vector<16x256xbf16>
    %82 = vector.extract_strided_slice %69 {offsets = [6, 0, 0], sizes = [1, 16, 256], strides = [1, 1, 1]} : vector<16x16x256xbf16> to vector<1x16x256xbf16>
    %83 = vector.shape_cast %82 : vector<1x16x256xbf16> to vector<16x256xbf16>
    %84 = vector.extract_strided_slice %69 {offsets = [7, 0, 0], sizes = [1, 16, 256], strides = [1, 1, 1]} : vector<16x16x256xbf16> to vector<1x16x256xbf16>
    %85 = vector.shape_cast %84 : vector<1x16x256xbf16> to vector<16x256xbf16>
    %86 = tpu.concatenate %71, %73, %75, %77, %79, %81, %83, %85 in 1 : vector<16x256xbf16>, vector<16x256xbf16>, vector<16x256xbf16>, vector<16x256xbf16>, vector<16x256xbf16>, vector<16x256xbf16>, vector<16x256xbf16>, vector<16x256xbf16> -> vector<16x2048xbf16>
    %87 = vector.shape_cast %86 : vector<16x2048xbf16> to vector<1x16x2048xbf16>
    %88 = vector.extract_strided_slice %69 {offsets = [8, 0, 0], sizes = [1, 16, 256], strides = [1, 1, 1]} : vector<16x16x256xbf16> to vector<1x16x256xbf16>
    %89 = vector.shape_cast %88 : vector<1x16x256xbf16> to vector<16x256xbf16>
    %90 = vector.extract_strided_slice %69 {offsets = [9, 0, 0], sizes = [1, 16, 256], strides = [1, 1, 1]} : vector<16x16x256xbf16> to vector<1x16x256xbf16>
    %91 = vector.shape_cast %90 : vector<1x16x256xbf16> to vector<16x256xbf16>
    %92 = vector.extract_strided_slice %69 {offsets = [10, 0, 0], sizes = [1, 16, 256], strides = [1, 1, 1]} : vector<16x16x256xbf16> to vector<1x16x256xbf16>
    %93 = vector.shape_cast %92 : vector<1x16x256xbf16> to vector<16x256xbf16>
    %94 = vector.extract_strided_slice %69 {offsets = [11, 0, 0], sizes = [1, 16, 256], strides = [1, 1, 1]} : vector<16x16x256xbf16> to vector<1x16x256xbf16>
    %95 = vector.shape_cast %94 : vector<1x16x256xbf16> to vector<16x256xbf16>
    %96 = vector.extract_strided_slice %69 {offsets = [12, 0, 0], sizes = [1, 16, 256], strides = [1, 1, 1]} : vector<16x16x256xbf16> to vector<1x16x256xbf16>
    %97 = vector.shape_cast %96 : vector<1x16x256xbf16> to vector<16x256xbf16>
    %98 = vector.extract_strided_slice %69 {offsets = [13, 0, 0], sizes = [1, 16, 256], strides = [1, 1, 1]} : vector<16x16x256xbf16> to vector<1x16x256xbf16>
    %99 = vector.shape_cast %98 : vector<1x16x256xbf16> to vector<16x256xbf16>
    %100 = vector.extract_strided_slice %69 {offsets = [14, 0, 0], sizes = [1, 16, 256], strides = [1, 1, 1]} : vector<16x16x256xbf16> to vector<1x16x256xbf16>
    %101 = vector.shape_cast %100 : vector<1x16x256xbf16> to vector<16x256xbf16>
    %102 = vector.extract_strided_slice %69 {offsets = [15, 0, 0], sizes = [1, 16, 256], strides = [1, 1, 1]} : vector<16x16x256xbf16> to vector<1x16x256xbf16>
    %103 = vector.shape_cast %102 : vector<1x16x256xbf16> to vector<16x256xbf16>
    %104 = tpu.concatenate %89, %91, %93, %95, %97, %99, %101, %103 in 1 : vector<16x256xbf16>, vector<16x256xbf16>, vector<16x256xbf16>, vector<16x256xbf16>, vector<16x256xbf16>, vector<16x256xbf16>, vector<16x256xbf16>, vector<16x256xbf16> -> vector<16x2048xbf16>
    %105 = vector.shape_cast %104 : vector<16x2048xbf16> to vector<1x16x2048xbf16>
    %106 = tpu.concatenate %87, %105 in 0 : vector<1x16x2048xbf16>, vector<1x16x2048xbf16> -> vector<2x16x2048xbf16>
    %cst_21 = arith.constant dense<0.000000e+00> : vector<2x16x2048xf32>
    %107 = tpu.matmul %3, %106, %cst_21 {dimension_numbers = #tpu.dot_dimension_numbers<[2], [1], [1], [2], [0, 0, 0, 1, 1, 2], [0], [0]>} : vector<2x16x16xbf16>, vector<2x16x2048xbf16>, vector<2x16x2048xf32> -> vector<2x16x2048xf32>
    %108 = vector.extract_strided_slice %107 {offsets = [0, 0, 0], sizes = [1, 16, 256], strides = [1, 1, 1]} : vector<2x16x2048xf32> to vector<1x16x256xf32>
    %109 = vector.shape_cast %108 : vector<1x16x256xf32> to vector<16x256xf32>
    %110 = vector.shape_cast %109 : vector<16x256xf32> to vector<1x16x256xf32>
    %111 = vector.extract_strided_slice %107 {offsets = [0, 0, 256], sizes = [1, 16, 256], strides = [1, 1, 1]} : vector<2x16x2048xf32> to vector<1x16x256xf32>
    %112 = vector.shape_cast %111 : vector<1x16x256xf32> to vector<16x256xf32>
    %113 = vector.shape_cast %112 : vector<16x256xf32> to vector<1x16x256xf32>
    %114 = vector.extract_strided_slice %107 {offsets = [0, 0, 512], sizes = [1, 16, 256], strides = [1, 1, 1]} : vector<2x16x2048xf32> to vector<1x16x256xf32>
    %115 = vector.shape_cast %114 : vector<1x16x256xf32> to vector<16x256xf32>
    %116 = vector.shape_cast %115 : vector<16x256xf32> to vector<1x16x256xf32>
    %117 = vector.extract_strided_slice %107 {offsets = [0, 0, 768], sizes = [1, 16, 256], strides = [1, 1, 1]} : vector<2x16x2048xf32> to vector<1x16x256xf32>
    %118 = vector.shape_cast %117 : vector<1x16x256xf32> to vector<16x256xf32>
    %119 = vector.shape_cast %118 : vector<16x256xf32> to vector<1x16x256xf32>
    %120 = vector.extract_strided_slice %107 {offsets = [0, 0, 1024], sizes = [1, 16, 256], strides = [1, 1, 1]} : vector<2x16x2048xf32> to vector<1x16x256xf32>
    %121 = vector.shape_cast %120 : vector<1x16x256xf32> to vector<16x256xf32>
    %122 = vector.shape_cast %121 : vector<16x256xf32> to vector<1x16x256xf32>
    %123 = vector.extract_strided_slice %107 {offsets = [0, 0, 1280], sizes = [1, 16, 256], strides = [1, 1, 1]} : vector<2x16x2048xf32> to vector<1x16x256xf32>
    %124 = vector.shape_cast %123 : vector<1x16x256xf32> to vector<16x256xf32>
    %125 = vector.shape_cast %124 : vector<16x256xf32> to vector<1x16x256xf32>
    %126 = vector.extract_strided_slice %107 {offsets = [0, 0, 1536], sizes = [1, 16, 256], strides = [1, 1, 1]} : vector<2x16x2048xf32> to vector<1x16x256xf32>
    %127 = vector.shape_cast %126 : vector<1x16x256xf32> to vector<16x256xf32>
    %128 = vector.shape_cast %127 : vector<16x256xf32> to vector<1x16x256xf32>
    %129 = vector.extract_strided_slice %107 {offsets = [0, 0, 1792], sizes = [1, 16, 256], strides = [1, 1, 1]} : vector<2x16x2048xf32> to vector<1x16x256xf32>
    %130 = vector.shape_cast %129 : vector<1x16x256xf32> to vector<16x256xf32>
    %131 = vector.shape_cast %130 : vector<16x256xf32> to vector<1x16x256xf32>
    %132 = vector.extract_strided_slice %107 {offsets = [1, 0, 0], sizes = [1, 16, 256], strides = [1, 1, 1]} : vector<2x16x2048xf32> to vector<1x16x256xf32>
    %133 = vector.shape_cast %132 : vector<1x16x256xf32> to vector<16x256xf32>
    %134 = vector.shape_cast %133 : vector<16x256xf32> to vector<1x16x256xf32>
    %135 = vector.extract_strided_slice %107 {offsets = [1, 0, 256], sizes = [1, 16, 256], strides = [1, 1, 1]} : vector<2x16x2048xf32> to vector<1x16x256xf32>
    %136 = vector.shape_cast %135 : vector<1x16x256xf32> to vector<16x256xf32>
    %137 = vector.shape_cast %136 : vector<16x256xf32> to vector<1x16x256xf32>
    %138 = vector.extract_strided_slice %107 {offsets = [1, 0, 512], sizes = [1, 16, 256], strides = [1, 1, 1]} : vector<2x16x2048xf32> to vector<1x16x256xf32>
    %139 = vector.shape_cast %138 : vector<1x16x256xf32> to vector<16x256xf32>
    %140 = vector.shape_cast %139 : vector<16x256xf32> to vector<1x16x256xf32>
    %141 = vector.extract_strided_slice %107 {offsets = [1, 0, 768], sizes = [1, 16, 256], strides = [1, 1, 1]} : vector<2x16x2048xf32> to vector<1x16x256xf32>
    %142 = vector.shape_cast %141 : vector<1x16x256xf32> to vector<16x256xf32>
    %143 = vector.shape_cast %142 : vector<16x256xf32> to vector<1x16x256xf32>
    %144 = vector.extract_strided_slice %107 {offsets = [1, 0, 1024], sizes = [1, 16, 256], strides = [1, 1, 1]} : vector<2x16x2048xf32> to vector<1x16x256xf32>
    %145 = vector.shape_cast %144 : vector<1x16x256xf32> to vector<16x256xf32>
    %146 = vector.shape_cast %145 : vector<16x256xf32> to vector<1x16x256xf32>
    %147 = vector.extract_strided_slice %107 {offsets = [1, 0, 1280], sizes = [1, 16, 256], strides = [1, 1, 1]} : vector<2x16x2048xf32> to vector<1x16x256xf32>
    %148 = vector.shape_cast %147 : vector<1x16x256xf32> to vector<16x256xf32>
    %149 = vector.shape_cast %148 : vector<16x256xf32> to vector<1x16x256xf32>
    %150 = vector.extract_strided_slice %107 {offsets = [1, 0, 1536], sizes = [1, 16, 256], strides = [1, 1, 1]} : vector<2x16x2048xf32> to vector<1x16x256xf32>
    %151 = vector.shape_cast %150 : vector<1x16x256xf32> to vector<16x256xf32>
    %152 = vector.shape_cast %151 : vector<16x256xf32> to vector<1x16x256xf32>
    %153 = vector.extract_strided_slice %107 {offsets = [1, 0, 1792], sizes = [1, 16, 256], strides = [1, 1, 1]} : vector<2x16x2048xf32> to vector<1x16x256xf32>
    %154 = vector.shape_cast %153 : vector<1x16x256xf32> to vector<16x256xf32>
    %155 = vector.shape_cast %154 : vector<16x256xf32> to vector<1x16x256xf32>
    %156 = tpu.concatenate %110, %113, %116, %119, %122, %125, %128, %131, %134, %137, %140, %143, %146, %149, %152, %155 in 0 : vector<1x16x256xf32>, vector<1x16x256xf32>, vector<1x16x256xf32>, vector<1x16x256xf32>, vector<1x16x256xf32>, vector<1x16x256xf32>, vector<1x16x256xf32>, vector<1x16x256xf32>, vector<1x16x256xf32>, vector<1x16x256xf32>, vector<1x16x256xf32>, vector<1x16x256xf32>, vector<1x16x256xf32>, vector<1x16x256xf32>, vector<1x16x256xf32>, vector<1x16x256xf32> -> vector<16x16x256xf32>
    %c0_22 = arith.constant 0 : index
    %c0_23 = arith.constant 0 : index
    %157 = vector.load %arg6[%c0_22, %c0_23] : memref<3x256xf32, #tpu.memory_space<vmem>>, vector<3x256xf32>
    %158 = vector.extract_strided_slice %157 {offsets = [0, 0], sizes = [1, 256], strides = [1, 1]} : vector<3x256xf32> to vector<1x256xf32>
    %159 = vector.shape_cast %158 : vector<1x256xf32> to vector<1x1x256xf32>
    %160 = vector.broadcast %159 : vector<1x1x256xf32> to vector<16x16x256xf32>
    %161 = arith.addf %156, %160 : vector<16x16x256xf32>
    %162 = arith.negf %161 : vector<16x16x256xf32>
    %163 = math.exp %162 : vector<16x16x256xf32>
    %cst_24 = arith.constant 1.000000e+00 : f32
    %164 = vector.broadcast %cst_24 : f32 to vector<16x16x256xf32>
    %165 = arith.addf %164, %163 : vector<16x16x256xf32>
    %166 = arith.divf %164, %165 : vector<16x16x256xf32>
    %167 = arith.mulf %161, %166 : vector<16x16x256xf32>
    %168 = vector.extract_strided_slice %157 {offsets = [1, 0], sizes = [1, 256], strides = [1, 1]} : vector<3x256xf32> to vector<1x256xf32>
    %169 = vector.extract_strided_slice %157 {offsets = [2, 0], sizes = [1, 256], strides = [1, 1]} : vector<3x256xf32> to vector<1x256xf32>
    %cst_25 = arith.constant dense<0.000000e+00> : vector<16x16xf32>
    %170 = vector.multi_reduction <add>, %167, %cst_25 [2] : vector<16x16x256xf32> to vector<16x16xf32>
    %171 = vector.shape_cast %170 : vector<16x16xf32> to vector<16x16x1xf32>
    %cst_26 = arith.constant 2.560000e+02 : f32
    %172 = vector.broadcast %cst_26 : f32 to vector<16x16x1xf32>
    %173 = arith.divf %171, %172 : vector<16x16x1xf32>
    %174 = arith.mulf %167, %167 : vector<16x16x256xf32>
    %cst_27 = arith.constant dense<0.000000e+00> : vector<16x16xf32>
    %175 = vector.multi_reduction <add>, %174, %cst_27 [2] : vector<16x16x256xf32> to vector<16x16xf32>
    %176 = vector.shape_cast %175 : vector<16x16xf32> to vector<16x16x1xf32>
    %cst_28 = arith.constant 2.560000e+02 : f32
    %177 = vector.broadcast %cst_28 : f32 to vector<16x16x1xf32>
    %178 = arith.divf %176, %177 : vector<16x16x1xf32>
    %179 = arith.mulf %173, %173 : vector<16x16x1xf32>
    %180 = arith.subf %178, %179 : vector<16x16x1xf32>
    %cst_29 = arith.constant 0.000000e+00 : f32
    %181 = vector.broadcast %cst_29 : f32 to vector<16x16x1xf32>
    %182 = arith.maximumf %180, %181 : vector<16x16x1xf32>
    %183 = vector.broadcast %173 : vector<16x16x1xf32> to vector<16x16x256xf32>
    %184 = arith.subf %167, %183 : vector<16x16x256xf32>
    %cst_30 = arith.constant 9.99999974E-6 : f32
    %185 = vector.broadcast %cst_30 : f32 to vector<16x16x1xf32>
    %186 = arith.addf %182, %185 : vector<16x16x1xf32>
    %187 = math.rsqrt %186 : vector<16x16x1xf32>
    %188 = vector.broadcast %187 : vector<16x16x1xf32> to vector<16x16x256xf32>
    %189 = arith.mulf %184, %188 : vector<16x16x256xf32>
    %190 = vector.shape_cast %168 : vector<1x256xf32> to vector<1x1x256xf32>
    %191 = vector.broadcast %190 : vector<1x1x256xf32> to vector<16x16x256xf32>
    %192 = arith.mulf %189, %191 : vector<16x16x256xf32>
    %193 = vector.shape_cast %169 : vector<1x256xf32> to vector<1x1x256xf32>
    %194 = vector.broadcast %193 : vector<1x1x256xf32> to vector<16x16x256xf32>
    %195 = arith.addf %192, %194 : vector<16x16x256xf32>
    %196 = vector.shape_cast %195 : vector<16x16x256xf32> to vector<256x256xf32>
    %197 = arith.truncf %196 : vector<256x256xf32> to vector<256x256xbf16>
    %c0_31 = arith.constant 0 : index
    %c0_32 = arith.constant 0 : index
    %198 = vector.load %arg7[%c0_31, %c0_32] : memref<256x512xbf16, #tpu.memory_space<vmem>>, vector<256x512xbf16>
    %cst_33 = arith.constant dense<0.000000e+00> : vector<256x512xf32>
    %199 = tpu.matmul %197, %198, %cst_33 {dimension_numbers = #tpu.dot_dimension_numbers<[1], [0], [0], [1], [0, 0, 1, 1], [], []>} : vector<256x256xbf16>, vector<256x512xbf16>, vector<256x512xf32> -> vector<256x512xf32>
    %200 = vector.shape_cast %199 : vector<256x512xf32> to vector<16x16x512xf32>
    %201 = arith.truncf %200 : vector<16x16x512xf32> to vector<16x16x512xbf16>
    %202 = vector.extract_strided_slice %201 {offsets = [0, 0, 0], sizes = [1, 16, 512], strides = [1, 1, 1]} : vector<16x16x512xbf16> to vector<1x16x512xbf16>
    %203 = vector.shape_cast %202 : vector<1x16x512xbf16> to vector<16x512xbf16>
    %204 = vector.extract_strided_slice %201 {offsets = [1, 0, 0], sizes = [1, 16, 512], strides = [1, 1, 1]} : vector<16x16x512xbf16> to vector<1x16x512xbf16>
    %205 = vector.shape_cast %204 : vector<1x16x512xbf16> to vector<16x512xbf16>
    %206 = vector.extract_strided_slice %201 {offsets = [2, 0, 0], sizes = [1, 16, 512], strides = [1, 1, 1]} : vector<16x16x512xbf16> to vector<1x16x512xbf16>
    %207 = vector.shape_cast %206 : vector<1x16x512xbf16> to vector<16x512xbf16>
    %208 = vector.extract_strided_slice %201 {offsets = [3, 0, 0], sizes = [1, 16, 512], strides = [1, 1, 1]} : vector<16x16x512xbf16> to vector<1x16x512xbf16>
    %209 = vector.shape_cast %208 : vector<1x16x512xbf16> to vector<16x512xbf16>
    %210 = vector.extract_strided_slice %201 {offsets = [4, 0, 0], sizes = [1, 16, 512], strides = [1, 1, 1]} : vector<16x16x512xbf16> to vector<1x16x512xbf16>
    %211 = vector.shape_cast %210 : vector<1x16x512xbf16> to vector<16x512xbf16>
    %212 = vector.extract_strided_slice %201 {offsets = [5, 0, 0], sizes = [1, 16, 512], strides = [1, 1, 1]} : vector<16x16x512xbf16> to vector<1x16x512xbf16>
    %213 = vector.shape_cast %212 : vector<1x16x512xbf16> to vector<16x512xbf16>
    %214 = vector.extract_strided_slice %201 {offsets = [6, 0, 0], sizes = [1, 16, 512], strides = [1, 1, 1]} : vector<16x16x512xbf16> to vector<1x16x512xbf16>
    %215 = vector.shape_cast %214 : vector<1x16x512xbf16> to vector<16x512xbf16>
    %216 = vector.extract_strided_slice %201 {offsets = [7, 0, 0], sizes = [1, 16, 512], strides = [1, 1, 1]} : vector<16x16x512xbf16> to vector<1x16x512xbf16>
    %217 = vector.shape_cast %216 : vector<1x16x512xbf16> to vector<16x512xbf16>
    %218 = tpu.concatenate %203, %205, %207, %209, %211, %213, %215, %217 in 1 : vector<16x512xbf16>, vector<16x512xbf16>, vector<16x512xbf16>, vector<16x512xbf16>, vector<16x512xbf16>, vector<16x512xbf16>, vector<16x512xbf16>, vector<16x512xbf16> -> vector<16x4096xbf16>
    %219 = vector.shape_cast %218 : vector<16x4096xbf16> to vector<1x16x4096xbf16>
    %220 = vector.extract_strided_slice %201 {offsets = [8, 0, 0], sizes = [1, 16, 512], strides = [1, 1, 1]} : vector<16x16x512xbf16> to vector<1x16x512xbf16>
    %221 = vector.shape_cast %220 : vector<1x16x512xbf16> to vector<16x512xbf16>
    %222 = vector.extract_strided_slice %201 {offsets = [9, 0, 0], sizes = [1, 16, 512], strides = [1, 1, 1]} : vector<16x16x512xbf16> to vector<1x16x512xbf16>
    %223 = vector.shape_cast %222 : vector<1x16x512xbf16> to vector<16x512xbf16>
    %224 = vector.extract_strided_slice %201 {offsets = [10, 0, 0], sizes = [1, 16, 512], strides = [1, 1, 1]} : vector<16x16x512xbf16> to vector<1x16x512xbf16>
    %225 = vector.shape_cast %224 : vector<1x16x512xbf16> to vector<16x512xbf16>
    %226 = vector.extract_strided_slice %201 {offsets = [11, 0, 0], sizes = [1, 16, 512], strides = [1, 1, 1]} : vector<16x16x512xbf16> to vector<1x16x512xbf16>
    %227 = vector.shape_cast %226 : vector<1x16x512xbf16> to vector<16x512xbf16>
    %228 = vector.extract_strided_slice %201 {offsets = [12, 0, 0], sizes = [1, 16, 512], strides = [1, 1, 1]} : vector<16x16x512xbf16> to vector<1x16x512xbf16>
    %229 = vector.shape_cast %228 : vector<1x16x512xbf16> to vector<16x512xbf16>
    %230 = vector.extract_strided_slice %201 {offsets = [13, 0, 0], sizes = [1, 16, 512], strides = [1, 1, 1]} : vector<16x16x512xbf16> to vector<1x16x512xbf16>
    %231 = vector.shape_cast %230 : vector<1x16x512xbf16> to vector<16x512xbf16>
    %232 = vector.extract_strided_slice %201 {offsets = [14, 0, 0], sizes = [1, 16, 512], strides = [1, 1, 1]} : vector<16x16x512xbf16> to vector<1x16x512xbf16>
    %233 = vector.shape_cast %232 : vector<1x16x512xbf16> to vector<16x512xbf16>
    %234 = vector.extract_strided_slice %201 {offsets = [15, 0, 0], sizes = [1, 16, 512], strides = [1, 1, 1]} : vector<16x16x512xbf16> to vector<1x16x512xbf16>
    %235 = vector.shape_cast %234 : vector<1x16x512xbf16> to vector<16x512xbf16>
    %236 = tpu.concatenate %221, %223, %225, %227, %229, %231, %233, %235 in 1 : vector<16x512xbf16>, vector<16x512xbf16>, vector<16x512xbf16>, vector<16x512xbf16>, vector<16x512xbf16>, vector<16x512xbf16>, vector<16x512xbf16>, vector<16x512xbf16> -> vector<16x4096xbf16>
    %237 = vector.shape_cast %236 : vector<16x4096xbf16> to vector<1x16x4096xbf16>
    %238 = tpu.concatenate %219, %237 in 0 : vector<1x16x4096xbf16>, vector<1x16x4096xbf16> -> vector<2x16x4096xbf16>
    %cst_34 = arith.constant dense<0.000000e+00> : vector<2x16x4096xf32>
    %239 = tpu.matmul %3, %238, %cst_34 {dimension_numbers = #tpu.dot_dimension_numbers<[2], [1], [1], [2], [0, 0, 0, 1, 1, 2], [0], [0]>} : vector<2x16x16xbf16>, vector<2x16x4096xbf16>, vector<2x16x4096xf32> -> vector<2x16x4096xf32>
    %240 = vector.extract_strided_slice %239 {offsets = [0, 0, 0], sizes = [1, 16, 512], strides = [1, 1, 1]} : vector<2x16x4096xf32> to vector<1x16x512xf32>
    %241 = vector.shape_cast %240 : vector<1x16x512xf32> to vector<16x512xf32>
    %242 = vector.shape_cast %241 : vector<16x512xf32> to vector<1x16x512xf32>
    %243 = vector.extract_strided_slice %239 {offsets = [0, 0, 512], sizes = [1, 16, 512], strides = [1, 1, 1]} : vector<2x16x4096xf32> to vector<1x16x512xf32>
    %244 = vector.shape_cast %243 : vector<1x16x512xf32> to vector<16x512xf32>
    %245 = vector.shape_cast %244 : vector<16x512xf32> to vector<1x16x512xf32>
    %246 = vector.extract_strided_slice %239 {offsets = [0, 0, 1024], sizes = [1, 16, 512], strides = [1, 1, 1]} : vector<2x16x4096xf32> to vector<1x16x512xf32>
    %247 = vector.shape_cast %246 : vector<1x16x512xf32> to vector<16x512xf32>
    %248 = vector.shape_cast %247 : vector<16x512xf32> to vector<1x16x512xf32>
    %249 = vector.extract_strided_slice %239 {offsets = [0, 0, 1536], sizes = [1, 16, 512], strides = [1, 1, 1]} : vector<2x16x4096xf32> to vector<1x16x512xf32>
    %250 = vector.shape_cast %249 : vector<1x16x512xf32> to vector<16x512xf32>
    %251 = vector.shape_cast %250 : vector<16x512xf32> to vector<1x16x512xf32>
    %252 = vector.extract_strided_slice %239 {offsets = [0, 0, 2048], sizes = [1, 16, 512], strides = [1, 1, 1]} : vector<2x16x4096xf32> to vector<1x16x512xf32>
    %253 = vector.shape_cast %252 : vector<1x16x512xf32> to vector<16x512xf32>
    %254 = vector.shape_cast %253 : vector<16x512xf32> to vector<1x16x512xf32>
    %255 = vector.extract_strided_slice %239 {offsets = [0, 0, 2560], sizes = [1, 16, 512], strides = [1, 1, 1]} : vector<2x16x4096xf32> to vector<1x16x512xf32>
    %256 = vector.shape_cast %255 : vector<1x16x512xf32> to vector<16x512xf32>
    %257 = vector.shape_cast %256 : vector<16x512xf32> to vector<1x16x512xf32>
    %258 = vector.extract_strided_slice %239 {offsets = [0, 0, 3072], sizes = [1, 16, 512], strides = [1, 1, 1]} : vector<2x16x4096xf32> to vector<1x16x512xf32>
    %259 = vector.shape_cast %258 : vector<1x16x512xf32> to vector<16x512xf32>
    %260 = vector.shape_cast %259 : vector<16x512xf32> to vector<1x16x512xf32>
    %261 = vector.extract_strided_slice %239 {offsets = [0, 0, 3584], sizes = [1, 16, 512], strides = [1, 1, 1]} : vector<2x16x4096xf32> to vector<1x16x512xf32>
    %262 = vector.shape_cast %261 : vector<1x16x512xf32> to vector<16x512xf32>
    %263 = vector.shape_cast %262 : vector<16x512xf32> to vector<1x16x512xf32>
    %264 = vector.extract_strided_slice %239 {offsets = [1, 0, 0], sizes = [1, 16, 512], strides = [1, 1, 1]} : vector<2x16x4096xf32> to vector<1x16x512xf32>
    %265 = vector.shape_cast %264 : vector<1x16x512xf32> to vector<16x512xf32>
    %266 = vector.shape_cast %265 : vector<16x512xf32> to vector<1x16x512xf32>
    %267 = vector.extract_strided_slice %239 {offsets = [1, 0, 512], sizes = [1, 16, 512], strides = [1, 1, 1]} : vector<2x16x4096xf32> to vector<1x16x512xf32>
    %268 = vector.shape_cast %267 : vector<1x16x512xf32> to vector<16x512xf32>
    %269 = vector.shape_cast %268 : vector<16x512xf32> to vector<1x16x512xf32>
    %270 = vector.extract_strided_slice %239 {offsets = [1, 0, 1024], sizes = [1, 16, 512], strides = [1, 1, 1]} : vector<2x16x4096xf32> to vector<1x16x512xf32>
    %271 = vector.shape_cast %270 : vector<1x16x512xf32> to vector<16x512xf32>
    %272 = vector.shape_cast %271 : vector<16x512xf32> to vector<1x16x512xf32>
    %273 = vector.extract_strided_slice %239 {offsets = [1, 0, 1536], sizes = [1, 16, 512], strides = [1, 1, 1]} : vector<2x16x4096xf32> to vector<1x16x512xf32>
    %274 = vector.shape_cast %273 : vector<1x16x512xf32> to vector<16x512xf32>
    %275 = vector.shape_cast %274 : vector<16x512xf32> to vector<1x16x512xf32>
    %276 = vector.extract_strided_slice %239 {offsets = [1, 0, 2048], sizes = [1, 16, 512], strides = [1, 1, 1]} : vector<2x16x4096xf32> to vector<1x16x512xf32>
    %277 = vector.shape_cast %276 : vector<1x16x512xf32> to vector<16x512xf32>
    %278 = vector.shape_cast %277 : vector<16x512xf32> to vector<1x16x512xf32>
    %279 = vector.extract_strided_slice %239 {offsets = [1, 0, 2560], sizes = [1, 16, 512], strides = [1, 1, 1]} : vector<2x16x4096xf32> to vector<1x16x512xf32>
    %280 = vector.shape_cast %279 : vector<1x16x512xf32> to vector<16x512xf32>
    %281 = vector.shape_cast %280 : vector<16x512xf32> to vector<1x16x512xf32>
    %282 = vector.extract_strided_slice %239 {offsets = [1, 0, 3072], sizes = [1, 16, 512], strides = [1, 1, 1]} : vector<2x16x4096xf32> to vector<1x16x512xf32>
    %283 = vector.shape_cast %282 : vector<1x16x512xf32> to vector<16x512xf32>
    %284 = vector.shape_cast %283 : vector<16x512xf32> to vector<1x16x512xf32>
    %285 = vector.extract_strided_slice %239 {offsets = [1, 0, 3584], sizes = [1, 16, 512], strides = [1, 1, 1]} : vector<2x16x4096xf32> to vector<1x16x512xf32>
    %286 = vector.shape_cast %285 : vector<1x16x512xf32> to vector<16x512xf32>
    %287 = vector.shape_cast %286 : vector<16x512xf32> to vector<1x16x512xf32>
    %288 = tpu.concatenate %242, %245, %248, %251, %254, %257, %260, %263, %266, %269, %272, %275, %278, %281, %284, %287 in 0 : vector<1x16x512xf32>, vector<1x16x512xf32>, vector<1x16x512xf32>, vector<1x16x512xf32>, vector<1x16x512xf32>, vector<1x16x512xf32>, vector<1x16x512xf32>, vector<1x16x512xf32>, vector<1x16x512xf32>, vector<1x16x512xf32>, vector<1x16x512xf32>, vector<1x16x512xf32>, vector<1x16x512xf32>, vector<1x16x512xf32>, vector<1x16x512xf32>, vector<1x16x512xf32> -> vector<16x16x512xf32>
    %c0_35 = arith.constant 0 : index
    %c0_36 = arith.constant 0 : index
    %289 = vector.load %arg8[%c0_35, %c0_36] : memref<3x512xf32, #tpu.memory_space<vmem>>, vector<3x512xf32>
    %290 = vector.extract_strided_slice %289 {offsets = [0, 0], sizes = [1, 512], strides = [1, 1]} : vector<3x512xf32> to vector<1x512xf32>
    %291 = vector.shape_cast %290 : vector<1x512xf32> to vector<1x1x512xf32>
    %292 = vector.broadcast %291 : vector<1x1x512xf32> to vector<16x16x512xf32>
    %293 = arith.addf %288, %292 : vector<16x16x512xf32>
    %294 = arith.negf %293 : vector<16x16x512xf32>
    %295 = math.exp %294 : vector<16x16x512xf32>
    %cst_37 = arith.constant 1.000000e+00 : f32
    %296 = vector.broadcast %cst_37 : f32 to vector<16x16x512xf32>
    %297 = arith.addf %296, %295 : vector<16x16x512xf32>
    %298 = arith.divf %296, %297 : vector<16x16x512xf32>
    %299 = arith.mulf %293, %298 : vector<16x16x512xf32>
    %300 = vector.extract_strided_slice %289 {offsets = [1, 0], sizes = [1, 512], strides = [1, 1]} : vector<3x512xf32> to vector<1x512xf32>
    %301 = vector.extract_strided_slice %289 {offsets = [2, 0], sizes = [1, 512], strides = [1, 1]} : vector<3x512xf32> to vector<1x512xf32>
    %cst_38 = arith.constant dense<0.000000e+00> : vector<16x16xf32>
    %302 = vector.multi_reduction <add>, %299, %cst_38 [2] : vector<16x16x512xf32> to vector<16x16xf32>
    %303 = vector.shape_cast %302 : vector<16x16xf32> to vector<16x16x1xf32>
    %cst_39 = arith.constant 5.120000e+02 : f32
    %304 = vector.broadcast %cst_39 : f32 to vector<16x16x1xf32>
    %305 = arith.divf %303, %304 : vector<16x16x1xf32>
    %306 = arith.mulf %299, %299 : vector<16x16x512xf32>
    %cst_40 = arith.constant dense<0.000000e+00> : vector<16x16xf32>
    %307 = vector.multi_reduction <add>, %306, %cst_40 [2] : vector<16x16x512xf32> to vector<16x16xf32>
    %308 = vector.shape_cast %307 : vector<16x16xf32> to vector<16x16x1xf32>
    %cst_41 = arith.constant 5.120000e+02 : f32
    %309 = vector.broadcast %cst_41 : f32 to vector<16x16x1xf32>
    %310 = arith.divf %308, %309 : vector<16x16x1xf32>
    %311 = arith.mulf %305, %305 : vector<16x16x1xf32>
    %312 = arith.subf %310, %311 : vector<16x16x1xf32>
    %cst_42 = arith.constant 0.000000e+00 : f32
    %313 = vector.broadcast %cst_42 : f32 to vector<16x16x1xf32>
    %314 = arith.maximumf %312, %313 : vector<16x16x1xf32>
    %315 = vector.broadcast %305 : vector<16x16x1xf32> to vector<16x16x512xf32>
    %316 = arith.subf %299, %315 : vector<16x16x512xf32>
    %cst_43 = arith.constant 9.99999974E-6 : f32
    %317 = vector.broadcast %cst_43 : f32 to vector<16x16x1xf32>
    %318 = arith.addf %314, %317 : vector<16x16x1xf32>
    %319 = math.rsqrt %318 : vector<16x16x1xf32>
    %320 = vector.broadcast %319 : vector<16x16x1xf32> to vector<16x16x512xf32>
    %321 = arith.mulf %316, %320 : vector<16x16x512xf32>
    %322 = vector.shape_cast %300 : vector<1x512xf32> to vector<1x1x512xf32>
    %323 = vector.broadcast %322 : vector<1x1x512xf32> to vector<16x16x512xf32>
    %324 = arith.mulf %321, %323 : vector<16x16x512xf32>
    %325 = vector.shape_cast %301 : vector<1x512xf32> to vector<1x1x512xf32>
    %326 = vector.broadcast %325 : vector<1x1x512xf32> to vector<16x16x512xf32>
    %327 = arith.addf %324, %326 : vector<16x16x512xf32>
    %cst_44 = arith.constant dense<0xFF800000> : vector<16x512xf32>
    %328 = vector.multi_reduction <maximumf>, %327, %cst_44 [0] : vector<16x16x512xf32> to vector<16x512xf32>
    %cst_45 = arith.constant dense<0xFF800000> : vector<512xf32>
    %329 = vector.multi_reduction <maximumf>, %328, %cst_45 [0] : vector<16x512xf32> to vector<512xf32>
    %330 = vector.shape_cast %329 : vector<512xf32> to vector<1x512xf32>
    %c0_46 = arith.constant 0 : index
    %c0_47 = arith.constant 0 : index
    %331 = vector.load %arg18[%c0_46, %c0_47] : memref<1x512xf32, #tpu.memory_space<vmem>>, vector<1x512xf32>
    %332 = arith.maximumf %331, %330 : vector<1x512xf32>
    %c0_48 = arith.constant 0 : index
    %c0_49 = arith.constant 0 : index
    %333 = vector.load %arg18[%c0_48, %c0_49] : memref<1x512xf32, #tpu.memory_space<vmem>>, vector<1x512xf32>
    tpu.vector_store %arg18[%c0_48, %c0_49], %332 {strides = array<i32>} : memref<1x512xf32, #tpu.memory_space<vmem>>, vector<1x512xf32>,
    %c0_i32_50 = arith.constant 0 : i32
    %334 = arith.cmpi eq, %arg0, %c0_i32_50 : i32
    %335 = arith.extui %334 : i1 to i32
    %c0_i32_51 = arith.constant 0 : i32
    %336 = arith.cmpi ne, %335, %c0_i32_51 : i32
    scf.if %336 {
      %c0_52 = arith.constant 0 : index
      %c0_53 = arith.constant 0 : index
      %337 = vector.load %arg18[%c0_52, %c0_53] : memref<1x512xf32, #tpu.memory_space<vmem>>, vector<1x512xf32>
      %c0_54 = arith.constant 0 : index
      %c0_55 = arith.constant 0 : index
      %338 = vector.load %arg10[%c0_54, %c0_55] : memref<3x128xf32, #tpu.memory_space<vmem>>, vector<3x128xf32>
      %c0_56 = arith.constant 0 : index
      %c0_57 = arith.constant 0 : index
      %339 = vector.load %arg12[%c0_56, %c0_57] : memref<3x64xf32, #tpu.memory_space<vmem>>, vector<3x64xf32>
      %c0_58 = arith.constant 0 : index
      %c0_59 = arith.constant 0 : index
      %340 = vector.load %arg14[%c0_58, %c0_59] : memref<3x16xf32, #tpu.memory_space<vmem>>, vector<3x16xf32>
      %341 = vector.extract_strided_slice %338 {offsets = [0, 0], sizes = [1, 128], strides = [1, 1]} : vector<3x128xf32> to vector<1x128xf32>
      %342 = arith.truncf %337 : vector<1x512xf32> to vector<1x512xbf16>
      %c0_60 = arith.constant 0 : index
      %c0_61 = arith.constant 0 : index
      %343 = vector.load %arg9[%c0_60, %c0_61] : memref<512x128xbf16, #tpu.memory_space<vmem>>, vector<512x128xbf16>
      %cst_62 = arith.constant dense<0.000000e+00> : vector<1x128xf32>
      %344 = tpu.matmul %342, %343, %cst_62 {dimension_numbers = #tpu.dot_dimension_numbers<[1], [0], [0], [1], [0, 0, 1, 1], [], []>} : vector<1x512xbf16>, vector<512x128xbf16>, vector<1x128xf32> -> vector<1x128xf32>
      %345 = arith.addf %344, %341 : vector<1x128xf32>
      %346 = arith.negf %345 : vector<1x128xf32>
      %347 = math.exp %346 : vector<1x128xf32>
      %cst_63 = arith.constant 1.000000e+00 : f32
      %348 = vector.broadcast %cst_63 : f32 to vector<1x128xf32>
      %349 = arith.addf %348, %347 : vector<1x128xf32>
      %350 = arith.divf %348, %349 : vector<1x128xf32>
      %351 = arith.mulf %345, %350 : vector<1x128xf32>
      %352 = vector.extract_strided_slice %338 {offsets = [1, 0], sizes = [1, 128], strides = [1, 1]} : vector<3x128xf32> to vector<1x128xf32>
      %353 = vector.extract_strided_slice %338 {offsets = [2, 0], sizes = [1, 128], strides = [1, 1]} : vector<3x128xf32> to vector<1x128xf32>
      %cst_64 = arith.constant dense<0.000000e+00> : vector<1xf32>
      %354 = vector.multi_reduction <add>, %351, %cst_64 [1] : vector<1x128xf32> to vector<1xf32>
      %355 = vector.shape_cast %354 : vector<1xf32> to vector<1x1xf32>
      %cst_65 = arith.constant 1.280000e+02 : f32
      %356 = vector.broadcast %cst_65 : f32 to vector<1x1xf32>
      %357 = arith.divf %355, %356 : vector<1x1xf32>
      %358 = arith.mulf %351, %351 : vector<1x128xf32>
      %cst_66 = arith.constant dense<0.000000e+00> : vector<1xf32>
      %359 = vector.multi_reduction <add>, %358, %cst_66 [1] : vector<1x128xf32> to vector<1xf32>
      %360 = vector.shape_cast %359 : vector<1xf32> to vector<1x1xf32>
      %cst_67 = arith.constant 1.280000e+02 : f32
      %361 = vector.broadcast %cst_67 : f32 to vector<1x1xf32>
      %362 = arith.divf %360, %361 : vector<1x1xf32>
      %363 = arith.mulf %357, %357 : vector<1x1xf32>
      %364 = arith.subf %362, %363 : vector<1x1xf32>
      %cst_68 = arith.constant 0.000000e+00 : f32
      %365 = vector.broadcast %cst_68 : f32 to vector<1x1xf32>
      %366 = arith.maximumf %364, %365 : vector<1x1xf32>
      %367 = vector.broadcast %357 : vector<1x1xf32> to vector<1x128xf32>
      %368 = arith.subf %351, %367 : vector<1x128xf32>
      %cst_69 = arith.constant 9.99999974E-6 : f32
      %369 = vector.broadcast %cst_69 : f32 to vector<1x1xf32>
      %370 = arith.addf %366, %369 : vector<1x1xf32>
      %371 = math.rsqrt %370 : vector<1x1xf32>
      %372 = vector.broadcast %371 : vector<1x1xf32> to vector<1x128xf32>
      %373 = arith.mulf %368, %372 : vector<1x128xf32>
      %374 = arith.mulf %373, %352 : vector<1x128xf32>
      %375 = arith.addf %374, %353 : vector<1x128xf32>
      %376 = arith.negf %375 : vector<1x128xf32>
      %377 = math.exp %376 : vector<1x128xf32>
      %cst_70 = arith.constant 1.000000e+00 : f32
      %378 = vector.broadcast %cst_70 : f32 to vector<1x128xf32>
      %379 = arith.addf %378, %377 : vector<1x128xf32>
      %380 = arith.divf %378, %379 : vector<1x128xf32>
      %381 = arith.mulf %375, %380 : vector<1x128xf32>
      %382 = vector.extract_strided_slice %339 {offsets = [0, 0], sizes = [1, 64], strides = [1, 1]} : vector<3x64xf32> to vector<1x64xf32>
      %383 = arith.truncf %381 : vector<1x128xf32> to vector<1x128xbf16>
      %c0_71 = arith.constant 0 : index
      %c0_72 = arith.constant 0 : index
      %384 = vector.load %arg11[%c0_71, %c0_72] : memref<128x64xbf16, #tpu.memory_space<vmem>>, vector<128x64xbf16>
      %cst_73 = arith.constant dense<0.000000e+00> : vector<1x64xf32>
      %385 = tpu.matmul %383, %384, %cst_73 {dimension_numbers = #tpu.dot_dimension_numbers<[1], [0], [0], [1], [0, 0, 1, 1], [], []>} : vector<1x128xbf16>, vector<128x64xbf16>, vector<1x64xf32> -> vector<1x64xf32>
      %386 = arith.addf %385, %382 : vector<1x64xf32>
      %387 = arith.negf %386 : vector<1x64xf32>
      %388 = math.exp %387 : vector<1x64xf32>
      %cst_74 = arith.constant 1.000000e+00 : f32
      %389 = vector.broadcast %cst_74 : f32 to vector<1x64xf32>
      %390 = arith.addf %389, %388 : vector<1x64xf32>
      %391 = arith.divf %389, %390 : vector<1x64xf32>
      %392 = arith.mulf %386, %391 : vector<1x64xf32>
      %393 = vector.extract_strided_slice %339 {offsets = [1, 0], sizes = [1, 64], strides = [1, 1]} : vector<3x64xf32> to vector<1x64xf32>
      %394 = vector.extract_strided_slice %339 {offsets = [2, 0], sizes = [1, 64], strides = [1, 1]} : vector<3x64xf32> to vector<1x64xf32>
      %cst_75 = arith.constant dense<0.000000e+00> : vector<1xf32>
      %395 = vector.multi_reduction <add>, %392, %cst_75 [1] : vector<1x64xf32> to vector<1xf32>
      %396 = vector.shape_cast %395 : vector<1xf32> to vector<1x1xf32>
      %cst_76 = arith.constant 6.400000e+01 : f32
      %397 = vector.broadcast %cst_76 : f32 to vector<1x1xf32>
      %398 = arith.divf %396, %397 : vector<1x1xf32>
      %399 = arith.mulf %392, %392 : vector<1x64xf32>
      %cst_77 = arith.constant dense<0.000000e+00> : vector<1xf32>
      %400 = vector.multi_reduction <add>, %399, %cst_77 [1] : vector<1x64xf32> to vector<1xf32>
      %401 = vector.shape_cast %400 : vector<1xf32> to vector<1x1xf32>
      %cst_78 = arith.constant 6.400000e+01 : f32
      %402 = vector.broadcast %cst_78 : f32 to vector<1x1xf32>
      %403 = arith.divf %401, %402 : vector<1x1xf32>
      %404 = arith.mulf %398, %398 : vector<1x1xf32>
      %405 = arith.subf %403, %404 : vector<1x1xf32>
      %cst_79 = arith.constant 0.000000e+00 : f32
      %406 = vector.broadcast %cst_79 : f32 to vector<1x1xf32>
      %407 = arith.maximumf %405, %406 : vector<1x1xf32>
      %408 = vector.broadcast %398 : vector<1x1xf32> to vector<1x64xf32>
      %409 = arith.subf %392, %408 : vector<1x64xf32>
      %cst_80 = arith.constant 9.99999974E-6 : f32
      %410 = vector.broadcast %cst_80 : f32 to vector<1x1xf32>
      %411 = arith.addf %407, %410 : vector<1x1xf32>
      %412 = math.rsqrt %411 : vector<1x1xf32>
      %413 = vector.broadcast %412 : vector<1x1xf32> to vector<1x64xf32>
      %414 = arith.mulf %409, %413 : vector<1x64xf32>
      %415 = arith.mulf %414, %393 : vector<1x64xf32>
      %416 = arith.addf %415, %394 : vector<1x64xf32>
      %417 = arith.negf %416 : vector<1x64xf32>
      %418 = math.exp %417 : vector<1x64xf32>
      %cst_81 = arith.constant 1.000000e+00 : f32
      %419 = vector.broadcast %cst_81 : f32 to vector<1x64xf32>
      %420 = arith.addf %419, %418 : vector<1x64xf32>
      %421 = arith.divf %419, %420 : vector<1x64xf32>
      %422 = arith.mulf %416, %421 : vector<1x64xf32>
      %423 = vector.extract_strided_slice %340 {offsets = [0, 0], sizes = [1, 16], strides = [1, 1]} : vector<3x16xf32> to vector<1x16xf32>
      %424 = arith.truncf %422 : vector<1x64xf32> to vector<1x64xbf16>
      %c0_82 = arith.constant 0 : index
      %c0_83 = arith.constant 0 : index
      %425 = vector.load %arg13[%c0_82, %c0_83] : memref<64x16xbf16, #tpu.memory_space<vmem>>, vector<64x16xbf16>
      %cst_84 = arith.constant dense<0.000000e+00> : vector<1x16xf32>
      %426 = tpu.matmul %424, %425, %cst_84 {dimension_numbers = #tpu.dot_dimension_numbers<[1], [0], [0], [1], [0, 0, 1, 1], [], []>} : vector<1x64xbf16>, vector<64x16xbf16>, vector<1x16xf32> -> vector<1x16xf32>
      %427 = arith.addf %426, %423 : vector<1x16xf32>
      %428 = arith.negf %427 : vector<1x16xf32>
      %429 = math.exp %428 : vector<1x16xf32>
      %cst_85 = arith.constant 1.000000e+00 : f32
      %430 = vector.broadcast %cst_85 : f32 to vector<1x16xf32>
      %431 = arith.addf %430, %429 : vector<1x16xf32>
      %432 = arith.divf %430, %431 : vector<1x16xf32>
      %433 = arith.mulf %427, %432 : vector<1x16xf32>
      %434 = vector.extract_strided_slice %340 {offsets = [1, 0], sizes = [1, 16], strides = [1, 1]} : vector<3x16xf32> to vector<1x16xf32>
      %435 = vector.extract_strided_slice %340 {offsets = [2, 0], sizes = [1, 16], strides = [1, 1]} : vector<3x16xf32> to vector<1x16xf32>
      %cst_86 = arith.constant dense<0.000000e+00> : vector<1xf32>
      %436 = vector.multi_reduction <add>, %433, %cst_86 [1] : vector<1x16xf32> to vector<1xf32>
      %437 = vector.shape_cast %436 : vector<1xf32> to vector<1x1xf32>
      %cst_87 = arith.constant 1.600000e+01 : f32
      %438 = vector.broadcast %cst_87 : f32 to vector<1x1xf32>
      %439 = arith.divf %437, %438 : vector<1x1xf32>
      %440 = arith.mulf %433, %433 : vector<1x16xf32>
      %cst_88 = arith.constant dense<0.000000e+00> : vector<1xf32>
      %441 = vector.multi_reduction <add>, %440, %cst_88 [1] : vector<1x16xf32> to vector<1xf32>
      %442 = vector.shape_cast %441 : vector<1xf32> to vector<1x1xf32>
      %cst_89 = arith.constant 1.600000e+01 : f32
      %443 = vector.broadcast %cst_89 : f32 to vector<1x1xf32>
      %444 = arith.divf %442, %443 : vector<1x1xf32>
      %445 = arith.mulf %439, %439 : vector<1x1xf32>
      %446 = arith.subf %444, %445 : vector<1x1xf32>
      %cst_90 = arith.constant 0.000000e+00 : f32
      %447 = vector.broadcast %cst_90 : f32 to vector<1x1xf32>
      %448 = arith.maximumf %446, %447 : vector<1x1xf32>
      %449 = vector.broadcast %439 : vector<1x1xf32> to vector<1x16xf32>
      %450 = arith.subf %433, %449 : vector<1x16xf32>
      %cst_91 = arith.constant 9.99999974E-6 : f32
      %451 = vector.broadcast %cst_91 : f32 to vector<1x1xf32>
      %452 = arith.addf %448, %451 : vector<1x1xf32>
      %453 = math.rsqrt %452 : vector<1x1xf32>
      %454 = vector.broadcast %453 : vector<1x1xf32> to vector<1x16xf32>
      %455 = arith.mulf %450, %454 : vector<1x16xf32>
      %456 = arith.mulf %455, %434 : vector<1x16xf32>
      %457 = arith.addf %456, %435 : vector<1x16xf32>
      %458 = arith.negf %457 : vector<1x16xf32>
      %459 = math.exp %458 : vector<1x16xf32>
      %cst_92 = arith.constant 1.000000e+00 : f32
      %460 = vector.broadcast %cst_92 : f32 to vector<1x16xf32>
      %461 = arith.addf %460, %459 : vector<1x16xf32>
      %462 = arith.divf %460, %461 : vector<1x16xf32>
      %463 = arith.mulf %457, %462 : vector<1x16xf32>
      %c0_93 = arith.constant 0 : index
      %c0_94 = arith.constant 0 : index
      %464 = vector.load %arg16[%c0_93, %c0_94] : memref<1x4xf32, #tpu.memory_space<vmem>>, vector<1x4xf32>
      %465 = arith.truncf %463 : vector<1x16xf32> to vector<1x16xbf16>
      %c0_95 = arith.constant 0 : index
      %c0_96 = arith.constant 0 : index
      %466 = vector.load %arg15[%c0_95, %c0_96] : memref<16x4xbf16, #tpu.memory_space<vmem>>, vector<16x4xbf16>
      %cst_97 = arith.constant dense<0.000000e+00> : vector<1x4xf32>
      %467 = tpu.matmul %465, %466, %cst_97 {dimension_numbers = #tpu.dot_dimension_numbers<[1], [0], [0], [1], [0, 0, 1, 1], [], []>} : vector<1x16xbf16>, vector<16x4xbf16>, vector<1x4xf32> -> vector<1x4xf32>
      %468 = arith.addf %467, %464 : vector<1x4xf32>
      %469 = arith.negf %468 : vector<1x4xf32>
      %470 = math.exp %469 : vector<1x4xf32>
      %cst_98 = arith.constant 1.000000e+00 : f32
      %471 = vector.broadcast %cst_98 : f32 to vector<1x4xf32>
      %472 = arith.addf %471, %470 : vector<1x4xf32>
      %473 = arith.divf %471, %472 : vector<1x4xf32>
      %474 = arith.mulf %468, %473 : vector<1x4xf32>
      %475 = arith.negf %474 : vector<1x4xf32>
      %476 = math.exp %475 : vector<1x4xf32>
      %cst_99 = arith.constant 1.000000e+00 : f32
      %477 = vector.broadcast %cst_99 : f32 to vector<1x4xf32>
      %478 = arith.addf %477, %476 : vector<1x4xf32>
      %479 = arith.divf %477, %478 : vector<1x4xf32>
      %c0_100 = arith.constant 0 : index
      %c0_101 = arith.constant 0 : index
      %480 = vector.load %arg17[%c0_100, %c0_101] : memref<1x4xf32, #tpu.memory_space<vmem>>, vector<1x4xf32>
      tpu.vector_store %arg17[%c0_100, %c0_101], %479 {strides = array<i32>} : memref<1x4xf32, #tpu.memory_space<vmem>>, vector<1x4xf32>,
    } else {
    }
    return
  }
  func.func @transform_0(%arg0: i32) -> (i32, i32, i32) {
    %c0_i32 = arith.constant 0 : i32
    %c0_i32_0 = arith.constant 0 : i32
    %c0_i32_1 = arith.constant 0 : i32
    return %arg0, %c0_i32, %c0_i32_0 : i32, i32, i32
  }
  func.func @transform_1(%arg0: i32) -> (i32, i32, i32) {
    %c0_i32 = arith.constant 0 : i32
    %c0_i32_0 = arith.constant 0 : i32
    %c0_i32_1 = arith.constant 0 : i32
    return %arg0, %c0_i32, %c0_i32_0 : i32, i32, i32
  }
  func.func @transform_2(%arg0: i32) -> (i32, i32) {
    %c0_i32 = arith.constant 0 : i32
    %c0_i32_0 = arith.constant 0 : i32
    %c0_i32_1 = arith.constant 0 : i32
    return %c0_i32, %c0_i32_0 : i32, i32
  }
  func.func @transform_3(%arg0: i32) -> (i32, i32) {
    %c0_i32 = arith.constant 0 : i32
    %c0_i32_0 = arith.constant 0 : i32
    %c0_i32_1 = arith.constant 0 : i32
    return %c0_i32, %c0_i32_0 : i32, i32
  }
  func.func @transform_4(%arg0: i32) -> (i32, i32) {
    %c0_i32 = arith.constant 0 : i32
    %c0_i32_0 = arith.constant 0 : i32
    %c0_i32_1 = arith.constant 0 : i32
    return %c0_i32, %c0_i32_0 : i32, i32
  }
  func.func @transform_5(%arg0: i32) -> (i32, i32) {
    %c0_i32 = arith.constant 0 : i32
    %c0_i32_0 = arith.constant 0 : i32
    %c0_i32_1 = arith.constant 0 : i32
    return %c0_i32, %c0_i32_0 : i32, i32
  }
  func.func @transform_6(%arg0: i32) -> (i32, i32) {
    %c0_i32 = arith.constant 0 : i32
    %c0_i32_0 = arith.constant 0 : i32
    %c0_i32_1 = arith.constant 0 : i32
    return %c0_i32, %c0_i32_0 : i32, i32
  }
  func.func @transform_7(%arg0: i32) -> (i32, i32) {
    %c0_i32 = arith.constant 0 : i32
    %c0_i32_0 = arith.constant 0 : i32
    %c0_i32_1 = arith.constant 0 : i32
    return %c0_i32, %c0_i32_0 : i32, i32
  }
  func.func @transform_8(%arg0: i32) -> (i32, i32) {
    %c0_i32 = arith.constant 0 : i32
    %c0_i32_0 = arith.constant 0 : i32
    %c0_i32_1 = arith.constant 0 : i32
    return %c0_i32, %c0_i32_0 : i32, i32
  }
  func.func @transform_9(%arg0: i32) -> (i32, i32) {
    %c0_i32 = arith.constant 0 : i32
    %c0_i32_0 = arith.constant 0 : i32
    %c0_i32_1 = arith.constant 0 : i32
    return %c0_i32, %c0_i32_0 : i32, i32
  }
  func.func @transform_10(%arg0: i32) -> (i32, i32) {
    %c0_i32 = arith.constant 0 : i32
    %c0_i32_0 = arith.constant 0 : i32
    %c0_i32_1 = arith.constant 0 : i32
    return %c0_i32, %c0_i32_0 : i32, i32
  }
  func.func @transform_11(%arg0: i32) -> (i32, i32) {
    %c0_i32 = arith.constant 0 : i32
    %c0_i32_0 = arith.constant 0 : i32
    %c0_i32_1 = arith.constant 0 : i32
    return %c0_i32, %c0_i32_0 : i32, i32
  }
  func.func @transform_12(%arg0: i32) -> (i32, i32) {
    %c0_i32 = arith.constant 0 : i32
    %c0_i32_0 = arith.constant 0 : i32
    %c0_i32_1 = arith.constant 0 : i32
    return %c0_i32, %c0_i32_0 : i32, i32
  }
  func.func @transform_13(%arg0: i32) -> (i32, i32) {
    %c0_i32 = arith.constant 0 : i32
    %c0_i32_0 = arith.constant 0 : i32
    %c0_i32_1 = arith.constant 0 : i32
    return %c0_i32, %c0_i32_0 : i32, i32
  }
  func.func @transform_14(%arg0: i32) -> (i32, i32) {
    %c0_i32 = arith.constant 0 : i32
    %c0_i32_0 = arith.constant 0 : i32
    %c0_i32_1 = arith.constant 0 : i32
    return %c0_i32, %c0_i32_0 : i32, i32
  }
  func.func @transform_15(%arg0: i32) -> (i32, i32) {
    %c0_i32 = arith.constant 0 : i32
    %c0_i32_0 = arith.constant 0 : i32
    %c0_i32_1 = arith.constant 0 : i32
    return %c0_i32, %c0_i32_0 : i32, i32
  }
  func.func @transform_16(%arg0: i32) -> (i32, i32) {
    %c0_i32 = arith.constant 0 : i32
    %c0_i32_0 = arith.constant 0 : i32
    %c0_i32_1 = arith.constant 0 : i32
    return %c0_i32, %c0_i32_0 : i32, i32
  }
}

</mosaic_0001>

<bundles_post_ra>
// kernel: tpu_custom_call.1
= control target key start
LH: loop header
LB: loop body
LE: loop exit
PB: predicated region body
PF: predicated region fallthrough
CT: control target
= control target key end

     0   :  { %s16298_s0 = inlined_call_operand.vmem [shape: bf16[2,16,16], index: 0, kind: input, shape index: {}]   ;;  %s16299_s1 = inlined_call_operand.vmem [shape: bf16[2,16,8], index: 1, kind: input, shape index: {}]   ;;  %s16300_s2 = inlined_call_operand.vmem [shape: f32[1,64], index: 2, kind: input, shape index: {}]   ;;  %s16301_s3 = inlined_call_operand.vmem [shape: f32[3,64], index: 3, kind: input, shape index: {}]   ;;  %s16302_s4 = inlined_call_operand.vmem [shape: bf16[64,256], index: 4, kind: input, shape index: {}]   ;;  %s16303_s5 = inlined_call_operand.vmem [shape: f32[3,256], index: 5, kind: input, shape index: {}]   ;;  %s16304_s6 = inlined_call_operand.hbm [shape: bf16[256,512], index: 6, kind: input, shape index: {}]   ;;  %s16305_s7 = inlined_call_operand.vmem [shape: f32[3,512], index: 7, kind: input, shape index: {}]   ;;  %s16306_s8 = inlined_call_operand.hbm [shape: bf16[512,128], index: 8, kind: input, shape index: {}]   ;;  %s16307_s9 = inlined_call_operand.vmem [shape: f32[3,128], index: 9, kind: input, shape index: {}]   ;;  %s16308_s10 = inlined_call_operand.vmem [shape: bf16[128,64], index: 10, kind: input, shape index: {}]   ;;  %s16309_s11 = inlined_call_operand.vmem [shape: f32[3,64], index: 11, kind: input, shape index: {}]   ;;  %s16310_s12 = inlined_call_operand.vmem [shape: bf16[64,16], index: 12, kind: input, shape index: {}]   ;;  %s16311_s13 = inlined_call_operand.vmem [shape: f32[3,16], index: 13, kind: input, shape index: {}]   ;;  %s16312_s14 = inlined_call_operand.vmem [shape: bf16[16,4], index: 14, kind: input, shape index: {}]   ;;  %s16313_s15 = inlined_call_operand.vmem [shape: f32[1,4], index: 15, kind: input, shape index: {}]   ;;  %s16314_s16 = inlined_call_operand.hbm [shape: f32[1,4], index: 16, kind: output, shape index: {}]  }
   0x1   :  { %16592 = sst [smem:[#allocation151_spill]] %s16298_s0 }
   0x2   :  { %21 = vsyncpa [#allocation4], 0 }
   0x3   :  { %22 = vsyncpa [#allocation7], 0 }
   0x4   :  { %23 = vsyncpa [#allocation5], 0  ;;  %s11045_s21 = smov [#allocation3]   ;;  %s10973_s25 = scalar_lea.hbm %s16304_s6, 8192 }
   0x5   :  { %s41_s22 = sshll.u32 %s11045_s21, 4  ;;  %p10974_p0 = scmp.ne.s32.totalorder %s16304_s6, %s10973_s25  ;;  %s42_s22 = int_to_ptr.vmem [resolvable:$true] %s41_s22 }
   0x6   :  { %p10977_p1 = scmp.lt.u32.totalorder %s10973_s25, %s16304_s6 }
   0x8   :  { %p10979_p2 = pnand %p10977_p1, %p10974_p0 }
   0xa   :  { %10982 = shalt.err (!%p10979_p2)
}
   0xb   :  { %s10983_s30 = scalar_lea.vmem %s42_s22, 8192  ;;  %p10988_p4 = scmp.lt.s32.totalorder %s42_s22, %s42_s22 }
   0xc   :  { %p10984_p3 = scmp.ne.s32.totalorder %s42_s22, %s10983_s30  ;;  %p10989_p5 = scmp.lt.s32.totalorder %s10983_s30, %s10983_s30 }
   0xe   :  { %p10990_p6 = por %p10989_p5, %p10988_p4 }
  0x10   :  { %p10991_p7 = pnand %p10990_p6, %p10984_p3 }
  0x12   :  { %10994 = shalt.err (!%p10991_p7)
}
  0x13   :  { %s11046_s0 = smov 256   ;;  %s11047_s17 = smov 16  }
  0x14   :  { %47 = dma.hbm_to_vmem [thread:$0]  %s16304_s6, 8192, %s42_s22, [#allocation4], %s11046_s0, %s11046_s0, %s11047_s17  }
  0x15   :  { %s11048_s20 = smov [#allocation6]   ;;  %s10995_s25 = scalar_lea.hbm %s16306_s8, 4096 }
  0x16   :  { %s55_s21 = sshll.u32 %s11048_s20, 4  ;;  %p10996_p8 = scmp.ne.s32.totalorder %s16306_s8, %s10995_s25  ;;  %s56_s21 = int_to_ptr.vmem [resolvable:$true] %s55_s21 }
  0x17   :  { %p10999_p9 = scmp.lt.u32.totalorder %s10995_s25, %s16306_s8 }
  0x19   :  { %p11001_p10 = pnand %p10999_p9, %p10996_p8 }
  0x1b   :  { %11004 = shalt.err (!%p11001_p10)
}
  0x1c   :  { %s11005_s30 = scalar_lea.vmem %s56_s21, 4096  ;;  %p11010_p12 = scmp.lt.s32.totalorder %s56_s21, %s56_s21 }
  0x1d   :  { %p11006_p11 = scmp.ne.s32.totalorder %s56_s21, %s11005_s30  ;;  %p11011_p13 = scmp.lt.s32.totalorder %s11005_s30, %s11005_s30 }
  0x1f   :  { %p11012_p0 = por %p11011_p13, %p11010_p12 }
  0x21   :  { %p11013_p1 = pnand %p11012_p0, %p11006_p11 }
  0x23   :  { %11016 = shalt.err (!%p11013_p1)
}
  0x24   :  { %s11049_s6 = smov 64   ;;  %s11050_s22 = smov 4  }
  0x25   :  { %61 = dma.hbm_to_vmem [thread:$0]  %s16306_s8, 4096, %s56_s21, [#allocation7], %s11049_s6, %s11049_s6, %s11050_s22  }
  0x26   :  { %11039 = dma.done.wait [#allocation4], 8192  }
  0x27   :  { %11040 = vsyncadd [#allocation4], 4294959104 }
  0x28   :  { %11041 = dma.done.wait [#allocation7], 4096  }
  0x29   :  { %11042 = vsyncadd [#allocation7], 4294963200  ;;  %v16317_v0 = vmov 0.0   ;;  %vm11052_vm0 = vmmov 0   ;;  %v9683_v1 = vld [vmem:[%s16299_s1] sm:$0xff]   ;;  %v9684_v2 = vld [vmem:[%s16299_s1 + $0x8] sm:$0xff]   ;;  %v16316_v9 = vlaneseq }
  0x2a   :  { %9621 = vmatprep.subr.bf16.mxu0 %v16317_v0  ;;  %9623 = vmatprep.mubr.msk.bf16.mxu0 %vm11052_vm0, %v16317_v0  ;;  %vm127_vm1 = vcmask 130048   ;;  %s16593_s24 = sld [smem:[#allocation151_spill]]  ;;  %v247_v43 = vld [vmem:[%s16301_s3] sm:$0x7]  ;;  %vm723_vm2 = vcmask 523264   ;;  %vm8761_vm4 = vcmask 1040384  }
  0x2b   :  { %9627 = vmatprep.subr.bf16.mxu1 %v16317_v0  ;;  %9629 = vmatprep.mubr.msk.bf16.mxu1 %vm11052_vm0, %v16317_v0  ;;  %v11189_v10 = vshrl.u32 %v16316_v9, 7  ;;  %v11235_v44 = vld [vmem:[%s16300_s2] ss:$0 sm:$0xff]  ;;  %vm8905_vm5 = vcmask 516096   ;;  %vm9019_vm6 = vcmask 122880   ;;  %s11056_s29 = smov [#allocation8]  }
  0x2c   :  { %106 = vxpose.xlu0.c.b16.start.end [1/1] (short) (narrow) %v9683_v1, 16  ;;  %vm9117_vm7 = vcmask 24576  }
  0x2d   :  { %16594 = vst [vmem:[#allocation12_spill] sm:$0xff] %v11189_v10  ;;  %v11192_v11 = vsub.s32 1, %v11189_v10  ;;  %v11195_v12 = vsub.s32 0, %v11189_v10  ;;  %v11200_v17 = vsub.s32 3, %v11189_v10  ;;  %v327_v20 = vsub.s32 7, %v11189_v10 }
  0x2e   :  { %v11205_v23 = vsub.s32 4, %v11189_v10  ;;  %v11210_v28 = vsub.s32 2, %v11189_v10  ;;  %v11214_v30 = vsub.s32 5, %v11189_v10  ;;  %v11219_v33 = vsub.s32 6, %v11189_v10 }
  0x2f   :  { %16595 = vst [vmem:[#allocation13_spill] sm:$0xff] %v11192_v11  ;;  %16596 = vst [vmem:[#allocation14_spill] sm:$0xff] %v11195_v12  ;;  %v11238_v45 = vrot.slane %v247_v43, %v11195_v12 }
  0x30   :  { %v9685_v3 = vld [vmem:[%s16593_s24] sm:$0xff]   ;;  %v9686_v4 = vld [vmem:[%s16593_s24 + $0x8] sm:$0xff]   ;;  %180 = vxpose.xlu0.c.b16.start.end [1/1] (short) (narrow) %v9684_v2, 16  ;;  %16597 = vst [vmem:[#allocation15_spill] sm:$0xff] %v11200_v17  ;;  %16598 = vst [vmem:[#allocation16_spill] sm:$0xff] %v11205_v23 }
  0x31   :  { %v132_v5 = vsel %vm127_vm1, %v9685_v3, 0  ;;  %v205_v6 = vsel %vm127_vm1, %v9686_v4, 0  ;;  %16599 = vst [vmem:[#allocation17_spill] sm:$0xff] %v11210_v28  ;;  %16600 = vst [vmem:[#allocation18_spill] sm:$0xff] %v11214_v30 }
  0x32   :  { %9622 = vmatpush3.bf16.xpose.msra.mxu0 %v132_v5  ;;  %9628 = vmatpush3.bf16.xpose.msra.mxu1 %v205_v6  ;;  %16601 = vst [vmem:[#allocation19_spill] sm:$0xff] %v11219_v33 }
  0x92   :  { %v114_v7 = vpop.trf.xlu0 }
  0x93   :  { %9624 = vmatmul.mubr.msk.bf16.vlgmr.msra.gmra.mrb[0].mxu0 %vm127_vm1, %v114_v7 }
  0x96   :  { %v188_v8 = vpop.trf.xlu0 }
  0x97   :  { %9630 = vmatmul.mubr.msk.bf16.vlgmr.msra.gmra.mrb[0].mxu1 %vm127_vm1, %v188_v8 }
 0x166   :  { %v168_v13 = vpop.f32.mrb[0].mxu0 }
 0x167   :  { %v9625_v14 = vpop.f32.mrb[1].mxu0  ;;  %v262_v15 = vrot.slane %v168_v13, %v11192_v11  ;;  %v251_v16 = vrot.slane %v168_v13, %v11195_v12  ;;  %v284_v22 = vrot.slane %v168_v13, %v11200_v17  ;;  %v295_v29 = vrot.slane %v168_v13, %v11205_v23 }
 0x168   :  { %v171_v18 = vpop.f32.mrb[2].mxu0  ;;  %v306_v31 = vrot.slane %v168_v13, %v11214_v30  ;;  %v273_v32 = vrot.slane %v168_v13, %v11210_v28  ;;  %v317_v34 = vrot.slane %v168_v13, %v11219_v33  ;;  %v328_v35 = vrot.slane %v168_v13, %v327_v20 }
 0x169   :  { %264 = vbcast.lane.b32.xlu0 %v262_v15, 256  ;;  %253 = vbcast.lane.b32.xlu1 %v251_v16, 256  ;;  %v9626_v19 = vpop.f32.mrb[3].mxu0 }
 0x16a   :  { %v241_v21 = vpop.f32.mrb[0].mxu1 }
 0x16b   :  { %v9631_v24 = vpop.f32.mrb[1].mxu1  ;;  %v11207_v26 = vrot.slane %v241_v21, %v327_v20  ;;  %v339_v36 = vrot.slane %v241_v21, %v11195_v12  ;;  %v350_v37 = vrot.slane %v241_v21, %v11192_v11  ;;  %v372_v38 = vrot.slane %v241_v21, %v11200_v17 }
 0x16c   :  { %v244_v25 = vpop.f32.mrb[2].mxu1  ;;  %v394_v39 = vrot.slane %v241_v21, %v11214_v30  ;;  %v361_v40 = vrot.slane %v241_v21, %v11210_v28  ;;  %v383_v41 = vrot.slane %v241_v21, %v11205_v23  ;;  %v405_v42 = vrot.slane %v241_v21, %v11219_v33 }
 0x16d   :  { %286 = vbcast.lane.b32.xlu0 %v284_v22, 256  ;;  %257 = vbcast.lane.b32.xlu1 %v251_v16, 264  ;;  %v9632_v27 = vpop.f32.mrb[3].mxu1 }
 0x171   :  { %297 = vbcast.lane.b32.xlu0 %v295_v29, 256  ;;  %268 = vbcast.lane.b32.xlu1 %v262_v15, 264 }
 0x175   :  { %308 = vbcast.lane.b32.xlu0 %v306_v31, 256  ;;  %275 = vbcast.lane.b32.xlu1 %v273_v32, 256 }
 0x179   :  { %319 = vbcast.lane.b32.xlu0 %v317_v34, 256  ;;  %279 = vbcast.lane.b32.xlu1 %v273_v32, 264 }
 0x17d   :  { %330 = vbcast.lane.b32.xlu0 %v328_v35, 256  ;;  %290 = vbcast.lane.b32.xlu1 %v284_v22, 264 }
 0x181   :  { %301 = vbcast.lane.b32.xlu1 %v295_v29, 264  ;;  %341 = vbcast.lane.b32.xlu0 %v339_v36, 256 }
 0x185   :  { %312 = vbcast.lane.b32.xlu1 %v306_v31, 264  ;;  %352 = vbcast.lane.b32.xlu0 %v350_v37, 256 }
 0x189   :  { %323 = vbcast.lane.b32.xlu1 %v317_v34, 264  ;;  %374 = vbcast.lane.b32.xlu0 %v372_v38, 256 }
 0x18d   :  { %334 = vbcast.lane.b32.xlu1 %v328_v35, 264  ;;  %396 = vbcast.lane.b32.xlu0 %v394_v39, 256 }
 0x191   :  { %345 = vbcast.lane.b32.xlu1 %v339_v36, 264 }
 0x195   :  { %356 = vbcast.lane.b32.xlu1 %v350_v37, 264 }
 0x199   :  { %363 = vbcast.lane.b32.xlu1 %v361_v40, 256 }
 0x19d   :  { %367 = vbcast.lane.b32.xlu1 %v361_v40, 264 }
 0x1a1   :  { %378 = vbcast.lane.b32.xlu1 %v372_v38, 264 }
 0x1a5   :  { %385 = vbcast.lane.b32.xlu1 %v383_v41, 256 }
 0x1a9   :  { %389 = vbcast.lane.b32.xlu1 %v383_v41, 264 }
 0x1ad   :  { %400 = vbcast.lane.b32.xlu1 %v394_v39, 264 }
 0x1b1   :  { %407 = vbcast.lane.b32.xlu1 %v405_v42, 256 }
 0x1b5   :  { %411 = vbcast.lane.b32.xlu1 %v405_v42, 264 }
 0x1db   :  { %v265_v46 = vpop.permute.xlu0 %264  ;;  %v254_v47 = vpop.permute.xlu1 %253 }
 0x1dc   :  { %v433_v48 = vmul.f32 %v11235_v44, %v265_v46  ;;  %v431_v49 = vmul.f32 %v11235_v44, %v254_v47 }
 0x1de   :  { %v469_v50 = vadd.f32 %v11238_v45, %v433_v48  ;;  %v467_v51 = vadd.f32 %v11238_v45, %v431_v49 }
 0x1df   :  { %v287_v52 = vpop.permute.xlu0 %286  ;;  %v258_v53 = vpop.permute.xlu1 %257 }
 0x1e0   :  { %v9144_v54 = vmul.f32 -1.442695, %v469_v50  ;;  %v9142_v55 = vmul.f32 -1.442695, %v467_v51  ;;  %v437_v56 = vmul.f32 %v11235_v44, %v287_v52  ;;  %v432_v57 = vmul.f32 %v11235_v44, %v258_v53 }
 0x1e2   :  { %9840 = vpow2.f32 %v9144_v54  ;;  %v468_v58 = vadd.f32 %v11238_v45, %v432_v57  ;;  %v11248_v60 = vadd.f32 %v11238_v45, %v437_v56 }
 0x1e3   :  { %9842 = vpow2.f32 %v9142_v55  ;;  %v269_v59 = vpop.permute.xlu1 %268 }
 0x1e4   :  { %v9143_v61 = vmul.f32 -1.442695, %v468_v58  ;;  %v434_v62 = vmul.f32 %v11235_v44, %v269_v59  ;;  %v9148_v2 = vmul.f32 -1.442695, %v11248_v60 }
 0x1e6   :  { %v470_v63 = vadd.f32 %v11238_v45, %v434_v62  ;;  %9844 = vpow2.f32 %v9143_v61 }
 0x1e7   :  { %v276_v1 = vpop.permute.xlu1 %275 }
 0x1e8   :  { %v9145_v3 = vmul.f32 -1.442695, %v470_v63  ;;  %v435_v4 = vmul.f32 %v11235_v44, %v276_v1 }
 0x1ea   :  { %v471_v5 = vadd.f32 %v11238_v45, %v435_v4  ;;  %9846 = vpow2.f32 %v9145_v3 }
 0x1eb   :  { %v280_v6 = vpop.permute.xlu1 %279  ;;  %9848 = vpow2.f32 %v9148_v2 }
 0x1ec   :  { %v9841_v7 = vpop.eup %9840  ;;  %v436_v8 = vmul.f32 %v11235_v44, %v280_v6  ;;  %v9146_v15 = vmul.f32 -1.442695, %v471_v5 }
 0x1ed   :  { %v9843_v13 = vpop.eup %9842  ;;  %v597_v14 = vadd.f32 1.0, %v9841_v7  ;;  %v298_v7 = vpop.permute.xlu0 %297 }
 0x1ee   :  { %v595_v16 = vadd.f32 1.0, %v9843_v13  ;;  %v472_v18 = vadd.f32 %v11238_v45, %v436_v8 }
 0x1ef   :  { %9850 = vrcp.f32 %v597_v14  ;;  %v291_v19 = vpop.permute.xlu1 %290 }
 0x1f0   :  { %9852 = vrcp.f32 %v595_v16  ;;  %v9845_v20 = vpop.eup %9844  ;;  %v9147_v21 = vmul.f32 -1.442695, %v472_v18  ;;  %v438_v22 = vmul.f32 %v11235_v44, %v291_v19 }
 0x1f1   :  { %9854 = vpow2.f32 %v9146_v15  ;;  %v596_v24 = vadd.f32 1.0, %v9845_v20  ;;  %v439_v15 = vmul.f32 %v11235_v44, %v298_v7 }
 0x1f2   :  { %v474_v25 = vadd.f32 %v11238_v45, %v438_v22 }
 0x1f3   :  { %9856 = vrcp.f32 %v596_v24  ;;  %v302_v8 = vpop.permute.xlu1 %301  ;;  %v11306_v20 = vadd.f32 %v11238_v45, %v439_v15  ;;  %v9693_v15 = vld [vmem:[%s16302_s4 + $0x20] ss:$8 sps:$4 sm:$0xff]  }
 0x1f4   :  { %v9847_v27 = vpop.eup %9846  ;;  %9858 = vpow2.f32 %v9147_v21  ;;  %v9149_v29 = vmul.f32 -1.442695, %v474_v25  ;;  %v440_v16 = vmul.f32 %v11235_v44, %v302_v8  ;;  %v9695_v8 = vld [vmem:[%s16302_s4 + $0x24] ss:$8 sps:$4 sm:$0xff]  }
 0x1f5   :  { %v9849_v31 = vpop.eup %9848  ;;  %v598_v32 = vadd.f32 1.0, %v9847_v27  ;;  %v9150_v27 = vmul.f32 -1.442695, %v11306_v20 }
 0x1f6   :  { %v601_v35 = vadd.f32 1.0, %v9849_v31  ;;  %v11309_v21 = vadd.f32 %v11238_v45, %v440_v16 }
 0x1f7   :  { %9860 = vrcp.f32 %v598_v32  ;;  %v313_v22 = vpop.permute.xlu1 %312 }
 0x1f8   :  { %9862 = vpow2.f32 %v9149_v29  ;;  %v9151_v29 = vmul.f32 -1.442695, %v11309_v21  ;;  %v442_v31 = vmul.f32 %v11235_v44, %v313_v22  ;;  %v9698_v22 = vld [vmem:[%s16302_s4 + $0x34] ss:$8 sps:$4 sm:$0xff]  }
 0x1f9   :  { %v9851_v34 = vpop.eup %9850  ;;  %9864 = vrcp.f32 %v601_v35 }
 0x1fa   :  { %v9853_v36 = vpop.eup %9852  ;;  %v11263_v41 = vmul.f32 %v9851_v34, %v469_v50  ;;  %v11322_v35 = vadd.f32 %v11238_v45, %v442_v31 }
 0x1fb   :  { %v9855_v37 = vpop.eup %9854  ;;  %v11259_v38 = vmul.f32 %v9853_v36, %v467_v51  ;;  %v324_v36 = vpop.permute.xlu1 %323 }
 0x1fc   :  { %v599_v39 = vadd.f32 1.0, %v9855_v37  ;;  %v730_v48 = vsel %vm723_vm2, %v11263_v41, 0.0  ;;  %v855_v14 = vmul.f32 %v11263_v41, %v11263_v41 }
 0x1fd   :  { %v724_v40 = vsel %vm723_vm2, %v11259_v38, 0.0  ;;  %v9857_v42 = vpop.eup %9856  ;;  %v853_v2 = vmul.f32 %v11259_v38, %v11259_v38 }
 0x1fe   :  { %9866 = vrcp.f32 %v599_v39  ;;  %725 = vadd.xlane.f32.xlu0 %v724_v40  ;;  %v9859_v43 = vpop.eup %9858  ;;  %v11265_v46 = vmul.f32 %v9857_v42, %v468_v58  ;;  %v9153_v39 = vmul.f32 -1.442695, %v11322_v35  ;;  %v444_v40 = vmul.f32 %v11235_v44, %v324_v36 }
 0x1ff   :  { %v600_v47 = vadd.f32 1.0, %v9859_v43  ;;  %v335_v42 = vpop.permute.xlu1 %334 }
 0x200   :  { %v727_v49 = vsel %vm723_vm2, %v11265_v46, 0.0  ;;  %v854_v6 = vmul.f32 %v11265_v46, %v11265_v46 }
 0x201   :  { %v9861_v51 = vpop.eup %9860  ;;  %9868 = vrcp.f32 %v600_v47  ;;  %728 = vadd.xlane.f32.xlu1 %v727_v49  ;;  %v11328_v47 = vadd.f32 %v11238_v45, %v444_v40 }
 0x202   :  { %731 = vadd.xlane.f32.xlu0 %v730_v48  ;;  %v9863_v52 = vpop.eup %9862  ;;  %v11271_v50 = vmul.f32 %v9861_v51, %v470_v63  ;;  %v888_v13 = vsel %vm723_vm2, %v854_v6, 0.0 }
 0x203   :  { %v602_v53 = vadd.f32 1.0, %v9863_v52  ;;  %v9865_v55 = vpop.eup %9864  ;;  %v346_v51 = vpop.permute.xlu1 %345  ;;  %v9155_v52 = vmul.f32 -1.442695, %v11328_v47 }
 0x204   :  { %v733_v54 = vsel %vm723_vm2, %v11271_v50, 0.0  ;;  %v11280_v59 = vmul.f32 %v9865_v55, %v11248_v60  ;;  %v885_v60 = vsel %vm723_vm2, %v853_v2, 0.0  ;;  %v856_v19 = vmul.f32 %v11271_v50, %v11271_v50  ;;  %v9689_v55 = vld [vmem:[%s16302_s4 + $0x4] ss:$8 sps:$4 sm:$0xff]  }
 0x205   :  { %9870 = vrcp.f32 %v602_v53  ;;  %734 = vadd.xlane.f32.xlu1 %v733_v54  ;;  %v446_v53 = vmul.f32 %v11235_v44, %v335_v42  ;;  %1421 = vmatprep.subr.bf16.mxu0 %v9689_v55  ;;  %v16319_v42 = vmov 0  }
 0x206   :  { %v742_v63 = vsel %vm723_vm2, %v11280_v59, 0.0  ;;  %v894_v24 = vsel %vm723_vm2, %v856_v19, 0.0  ;;  %9872 = vpow2.f32 %v9150_v27  ;;  %v9696_v27 = vld [vmem:[%s16302_s4 + $0x30] ss:$8 sps:$4 sm:$0xff]   ;;  %1453 = vmatprep.mubr.bf16.mxu0 %v16319_v42  ;;  %1678 = vmatprep.mubr.bf16.mxu1 %v16319_v42 }
 0x207   :  { %9874 = vpow2.f32 %v9151_v29 }
 0x208   :  { %v9867_v56 = vpop.eup %9866  ;;  %9876 = vpow2.f32 %v9153_v39 }
 0x209   :  { %v11275_v57 = vmul.f32 %v9867_v56, %v471_v5  ;;  %v11336_v56 = vadd.f32 %v11238_v45, %v446_v53 }
 0x20b   :  { %v736_v58 = vsel %vm723_vm2, %v11275_v57, 0.0  ;;  %v9869_v61 = vpop.eup %9868  ;;  %v9157_v2 = vmul.f32 -1.442695, %v11336_v56 }
 0x20c   :  { %737 = vadd.xlane.f32.xlu0 %v736_v58  ;;  %v11282_v62 = vmul.f32 %v9869_v61, %v472_v18  ;;  %v891_v18 = vsel %vm723_vm2, %v855_v14, 0.0  ;;  %v9687_v58 = vld [vmem:[%s16302_s4] ss:$8 sps:$4 sm:$0xff]   ;;  %v357_v61 = vpop.permute.xlu1 %356 }
 0x20d   :  { %1422 = vmatpush1.bf16.msra.mxu0 %v9687_v58 }
 0x20e   :  { %v739_v1 = vsel %vm723_vm2, %v11282_v62, 0.0  ;;  %v858_v34 = vmul.f32 %v11282_v62, %v11282_v62 }
 0x20f   :  { %v9871_v3 = vpop.eup %9870  ;;  %740 = vadd.xlane.f32.xlu1 %v739_v1  ;;  %v9692_v1 = vld [vmem:[%s16302_s4 + $0x14] ss:$8 sps:$4 sm:$0xff]  }
 0x210   :  { %743 = vadd.xlane.f32.xlu0 %v742_v63  ;;  %v11290_v4 = vmul.f32 %v9871_v3, %v474_v25  ;;  %v857_v25 = vmul.f32 %v11275_v57, %v11275_v57  ;;  %v900_v37 = vsel %vm723_vm2, %v858_v34, 0.0  ;;  %v9873_v43 = vpop.eup %9872  ;;  %v448_v3 = vmul.f32 %v11235_v44, %v346_v51  ;;  %1423 = vmatprep.subr.bf16.mxu0 %v9692_v1  ;;  %v11349_v7 = vpop.permute.xlu1 %363 }
 0x211   :  { %v9875_v48 = vpop.eup %9874  ;;  %v603_v49 = vadd.f32 1.0, %v9873_v43 }
 0x212   :  { %v745_v5 = vsel %vm723_vm2, %v11290_v4, 0.0  ;;  %v897_v32 = vsel %vm723_vm2, %v857_v25, 0.0  ;;  %v604_v54 = vadd.f32 1.0, %v9875_v48  ;;  %v9877_v63 = vpop.eup %9876  ;;  %v11356_v14 = vadd.f32 %v11238_v45, %v448_v3 }
 0x213   :  { %746 = vadd.xlane.f32.xlu1 %v745_v5  ;;  %9878 = vrcp.f32 %v603_v49  ;;  %v309_v5 = vpop.permute.xlu0 %308  ;;  %v606_v6 = vadd.f32 1.0, %v9877_v63 }
 0x214   :  { %886 = vadd.xlane.f32.xlu0 %v885_v60  ;;  %9880 = vpow2.f32 %v9155_v52  ;;  %v9690_v60 = vld [vmem:[%s16302_s4 + $0x10] ss:$8 sps:$4 sm:$0xff]   ;;  %v9159_v25 = vmul.f32 -1.442695, %v11356_v14 }
 0x215   :  { %9882 = vrcp.f32 %v604_v54  ;;  %1424 = vmatpush1.bf16.msra.mxu0 %v9690_v60 }
 0x216   :  { %9884 = vpow2.f32 %v9157_v2  ;;  %1425 = vmatprep.subr.bf16.mxu0 %v9695_v8 }
 0x217   :  { %9886 = vrcp.f32 %v606_v6  ;;  %v320_v29 = vpop.permute.xlu0 %319 }
 0x218   :  { %889 = vadd.xlane.f32.xlu0 %v888_v13  ;;  %v441_v13 = vmul.f32 %v11235_v44, %v309_v5  ;;  %v443_v39 = vmul.f32 %v11235_v44, %v320_v29  ;;  %9888 = vpow2.f32 %v9159_v25 }
 0x219   :  { %1426 = vmatpush1.bf16.msra.mxu0 %v9693_v15 }
 0x21a   :  { %1427 = vmatprep.subr.bf16.mxu0 %v9698_v22  ;;  %v11391_v51 = vadd.f32 %v11238_v45, %v443_v39 }
 0x21b   :  { %v331_v54 = vpop.permute.xlu0 %330 }
 0x21c   :  { %892 = vadd.xlane.f32.xlu0 %v891_v18  ;;  %v9154_v63 = vmul.f32 -1.442695, %v11391_v51  ;;  %v445_v1 = vmul.f32 %v11235_v44, %v331_v54 }
 0x21d   :  { %v9879_v16 = vpop.eup %9878  ;;  %1428 = vmatpush1.bf16.msra.mxu0 %v9696_v27 }
 0x21e   :  { %v9881_v18 = vpop.eup %9880  ;;  %v11377_v36 = vmul.f32 %v9879_v16, %v11306_v20  ;;  %v11411_v8 = vadd.f32 %v11238_v45, %v445_v1 }
 0x21f   :  { %v9883_v19 = vpop.eup %9882  ;;  %v608_v31 = vadd.f32 1.0, %v9881_v18  ;;  %v342_v25 = vpop.permute.xlu0 %341 }
 0x220   :  { %895 = vadd.xlane.f32.xlu0 %v894_v24  ;;  %v11366_v24 = vadd.f32 %v11238_v45, %v441_v13  ;;  %v11374_v34 = vmul.f32 %v9883_v19, %v11309_v21  ;;  %v9885_v21 = vpop.eup %9884  ;;  %v748_v20 = vsel %vm723_vm2, %v11377_v36, 0.0  ;;  %v9156_v27 = vmul.f32 -1.442695, %v11411_v8 }
 0x221   :  { %9890 = vrcp.f32 %v608_v31  ;;  %v9887_v48 = vpop.eup %9886  ;;  %v610_v55 = vadd.f32 1.0, %v9885_v21  ;;  %v447_v31 = vmul.f32 %v11235_v44, %v342_v25 }
 0x222   :  { %v862_v43 = vmul.f32 %v11374_v34, %v11374_v34  ;;  %v9889_v60 = vpop.eup %9888 }
 0x223   :  { %v612_v16 = vadd.f32 1.0, %v9889_v60  ;;  %v353_v60 = vpop.permute.xlu0 %352 }
 0x224   :  { %898 = vadd.xlane.f32.xlu0 %v897_v32  ;;  %422 = vbcast.lane.b32.xlu1 %v11207_v26, 264  ;;  %v368_v32 = vpop.permute.xlu1 %367  ;;  %v912_v58 = vsel %vm723_vm2, %v862_v43, 0.0 }
 0x225   :  { %v452_v53 = vmul.f32 %v11235_v44, %v368_v32 }
 0x227   :  { %v11402_v2 = vadd.f32 %v11238_v45, %v452_v53 }
 0x228   :  { %901 = vadd.xlane.f32.xlu0 %v900_v37  ;;  %v9152_v37 = vmul.f32 -1.442695, %v11366_v24  ;;  %v379_v49 = vpop.permute.xlu1 %378 }
 0x229   :  { %v9163_v13 = vmul.f32 -1.442695, %v11402_v2  ;;  %v454_v15 = vmul.f32 %v11235_v44, %v379_v49 }
 0x22a   :  { %9892 = vpow2.f32 %v9152_v37 }
 0x22b   :  { %v9891_v6 = vpop.eup %9890  ;;  %v11421_v29 = vadd.f32 %v11238_v45, %v454_v15 }
 0x22c   :  { %v11404_v3 = vpop.permute.xlu1 %385  ;;  %v11417_v22 = vmul.f32 %v9891_v6, %v11328_v47  ;;  %v859_v47 = vmul.f32 %v11280_v59, %v11280_v59  ;;  %v449_v6 = vmul.f32 %v11235_v44, %v353_v60 }
 0x22d   :  { %v9165_v43 = vmul.f32 -1.442695, %v11421_v29 }
 0x22e   :  { %v763_v39 = vsel %vm723_vm2, %v11417_v22, 0.0  ;;  %v866_v21 = vmul.f32 %v11417_v22, %v11417_v22 }
 0x234   :  { %v9893_v18 = vpop.eup %9892 }
 0x235   :  { %v605_v32 = vadd.f32 1.0, %v9893_v18 }
 0x23e   :  { %418 = vbcast.lane.b32.xlu0 %v11207_v26, 256  ;;  %v450_v26 = vmul.f32 %v11235_v44, %v357_v61  ;;  %v11397_v61 = vmul.f32 %v9887_v48, %v11322_v35  ;;  %v11432_v48 = vadd.f32 %v11238_v45, %v447_v31 }
 0x240   :  { %v11382_v40 = vadd.f32 %v11238_v45, %v450_v26  ;;  %v757_v5 = vsel %vm723_vm2, %v11397_v61, 0.0  ;;  %v864_v35 = vmul.f32 %v11397_v61, %v11397_v61  ;;  %v390_v26 = vpop.permute.xlu1 %389 }
 0x241   :  { %v456_v49 = vmul.f32 %v11235_v44, %v390_v26 }
 0x242   :  { %v9161_v52 = vmul.f32 -1.442695, %v11382_v40  ;;  %v918_v19 = vsel %vm723_vm2, %v864_v35, 0.0 }
 0x243   :  { %v11444_v35 = vadd.f32 %v11238_v45, %v456_v49  ;;  %v451_v49 = vmul.f32 %v11235_v44, %v11349_v7 }
 0x244   :  { %9894 = vpow2.f32 %v9161_v52  ;;  %v401_v53 = vpop.permute.xlu1 %400 }
 0x245   :  { %9896 = vrcp.f32 %v610_v55  ;;  %v903_v55 = vsel %vm723_vm2, %v859_v47, 0.0  ;;  %v9167_v26 = vmul.f32 -1.442695, %v11444_v35  ;;  %v458_v31 = vmul.f32 %v11235_v44, %v401_v53 }
 0x246   :  { %9898 = vpow2.f32 %v9154_v63  ;;  %v860_v63 = vmul.f32 %v11290_v4, %v11290_v4 }
 0x247   :  { %9900 = vpow2.f32 %v9163_v13  ;;  %v11471_v53 = vadd.f32 %v11238_v45, %v458_v31 }
 0x248   :  { %749 = vadd.xlane.f32.xlu1 %v748_v20  ;;  %9902 = vrcp.f32 %v612_v16  ;;  %v906_v16 = vsel %vm723_vm2, %v860_v63, 0.0  ;;  %v11452_v25 = vpop.permute.xlu1 %407 }
 0x249   :  { %9904 = vpow2.f32 %v9156_v27  ;;  %v11456_v27 = vadd.f32 %v11238_v45, %v449_v6  ;;  %v11482_v6 = vadd.f32 %v11238_v45, %v451_v49 }
 0x24a   :  { %9906 = vrcp.f32 %v605_v32 }
 0x24b   :  { %9908 = vpow2.f32 %v9165_v43 }
 0x24c   :  { %913 = vadd.xlane.f32.xlu1 %v912_v58  ;;  %v924_v58 = vsel %vm723_vm2, %v866_v21, 0.0  ;;  %v861_v21 = vmul.f32 %v11377_v36, %v11377_v36 }
 0x24e   :  { %v9895_v37 = vpop.eup %9894  ;;  %v909_v63 = vsel %vm723_vm2, %v861_v21, 0.0 }
 0x24f   :  { %v9897_v20 = vpop.eup %9896  ;;  %v614_v52 = vadd.f32 1.0, %v9895_v37 }
 0x250   :  { %758 = vadd.xlane.f32.xlu1 %v757_v5  ;;  %v9899_v54 = vpop.eup %9898  ;;  %v11440_v1 = vmul.f32 %v9897_v20, %v11336_v56  ;;  %v9158_v5 = vmul.f32 -1.442695, %v11432_v48 }
 0x251   :  { %v607_v13 = vadd.f32 1.0, %v9899_v54  ;;  %9910 = vrcp.f32 %v614_v52  ;;  %v9901_v15 = vpop.eup %9900  ;;  %v9160_v52 = vmul.f32 -1.442695, %v11456_v27 }
 0x252   :  { %v769_v56 = vsel %vm723_vm2, %v11440_v1, 0.0  ;;  %v868_v18 = vmul.f32 %v11440_v1, %v11440_v1  ;;  %9912 = vpow2.f32 %v9158_v5  ;;  %v616_v32 = vadd.f32 1.0, %v9901_v15 }
 0x253   :  { %9914 = vrcp.f32 %v607_v13  ;;  %v9169_v13 = vmul.f32 -1.442695, %v11471_v53 }
 0x254   :  { %919 = vadd.xlane.f32.xlu1 %v918_v19  ;;  %v9903_v19 = vpop.eup %9902  ;;  %v930_v47 = vsel %vm723_vm2, %v868_v18, 0.0  ;;  %9916 = vpow2.f32 %v9167_v26 }
 0x255   :  { %v9905_v37 = vpop.eup %9904  ;;  %v11465_v20 = vmul.f32 %v9903_v19, %v11356_v14  ;;  %9918 = vrcp.f32 %v616_v32  ;;  %v375_v32 = vpop.permute.xlu0 %374 }
 0x256   :  { %v9907_v43 = vpop.eup %9906  ;;  %v609_v54 = vadd.f32 1.0, %v9905_v37  ;;  %9920 = vpow2.f32 %v9160_v52  ;;  %v9162_v37 = vmul.f32 -1.442695, %v11482_v6 }
 0x257   :  { %v775_v14 = vsel %vm723_vm2, %v11465_v20, 0.0  ;;  %v11477_v60 = vmul.f32 %v9907_v43, %v11366_v24  ;;  %v870_v7 = vmul.f32 %v11465_v20, %v11465_v20 }
 0x258   :  { %764 = vadd.xlane.f32.xlu1 %v763_v39  ;;  %v751_v39 = vsel %vm723_vm2, %v11374_v34, 0.0  ;;  %9922 = vrcp.f32 %v609_v54 }
 0x259   :  { %v754_v24 = vsel %vm723_vm2, %v11477_v60, 0.0  ;;  %v936_v18 = vsel %vm723_vm2, %v870_v7, 0.0  ;;  %v863_v19 = vmul.f32 %v11477_v60, %v11477_v60  ;;  %9924 = vpow2.f32 %v9169_v13 }
 0x25b   :  { %v915_v49 = vsel %vm723_vm2, %v863_v19, 0.0 }
 0x25c   :  { %925 = vadd.xlane.f32.xlu1 %v924_v58  ;;  %v9909_v58 = vpop.eup %9908 }
 0x25d   :  { %904 = vadd.xlane.f32.xlu0 %v903_v55  ;;  %v412_v55 = vpop.permute.xlu1 %411  ;;  %v9911_v5 = vpop.eup %9910 }
 0x25e   :  { %v460_v15 = vmul.f32 %v11235_v44, %v412_v55  ;;  %v11492_v26 = vmul.f32 %v9911_v5, %v11382_v40 }
 0x260   :  { %770 = vadd.xlane.f32.xlu1 %v769_v56  ;;  %v9913_v56 = vpop.eup %9912  ;;  %v781_v40 = vsel %vm723_vm2, %v11492_v26, 0.0  ;;  %v872_v54 = vmul.f32 %v11492_v26, %v11492_v26 }
 0x261   :  { %907 = vadd.xlane.f32.xlu0 %v906_v16  ;;  %v618_v16 = vadd.f32 1.0, %v9909_v58  ;;  %v9915_v31 = vpop.eup %9914  ;;  %v611_v21 = vadd.f32 1.0, %v9913_v56  ;;  %v455_v56 = vmul.f32 %v11235_v44, %v11404_v3 }
 0x262   :  { %v9917_v43 = vpop.eup %9916  ;;  %v11503_v52 = vmul.f32 %v9915_v31, %v11391_v51  ;;  %v942_v51 = vsel %vm723_vm2, %v872_v54, 0.0 }
 0x263   :  { %9926 = vrcp.f32 %v618_v16  ;;  %v9919_v55 = vpop.eup %9918  ;;  %v11531_v3 = vadd.f32 %v11238_v45, %v455_v56 }
 0x264   :  { %931 = vadd.xlane.f32.xlu1 %v930_v47  ;;  %v11497_v47 = vadd.f32 %v11238_v45, %v460_v15  ;;  %9928 = vpow2.f32 %v9162_v37  ;;  %v9921_v7 = vpop.eup %9920  ;;  %v760_v5 = vsel %vm723_vm2, %v11503_v52, 0.0  ;;  %v865_v13 = vmul.f32 %v11503_v52, %v11503_v52 }
 0x265   :  { %752 = vadd.xlane.f32.xlu0 %v751_v39  ;;  %v453_v39 = vmul.f32 %v11235_v44, %v375_v32  ;;  %9930 = vrcp.f32 %v611_v21  ;;  %v11517_v15 = vmul.f32 %v9919_v55, %v11402_v2  ;;  %v9923_v16 = vpop.eup %9922  ;;  %v397_v21 = vpop.permute.xlu0 %396 }
 0x266   :  { %v9925_v19 = vpop.eup %9924  ;;  %v921_v31 = vsel %vm723_vm2, %v865_v13, 0.0  ;;  %v11526_v2 = vmul.f32 %v9923_v16, %v11411_v8 }
 0x267   :  { %v11508_v58 = vadd.f32 %v11238_v45, %v453_v39  ;;  %v787_v32 = vsel %vm723_vm2, %v11517_v15, 0.0  ;;  %v874_v37 = vmul.f32 %v11517_v15, %v11517_v15 }
 0x268   :  { %776 = vadd.xlane.f32.xlu1 %v775_v14  ;;  %v620_v14 = vadd.f32 1.0, %v9917_v43  ;;  %v622_v43 = vadd.f32 1.0, %v9925_v19  ;;  %v867_v54 = vmul.f32 %v11526_v2, %v11526_v2 }
 0x269   :  { %910 = vadd.xlane.f32.xlu0 %v909_v63  ;;  %v9171_v63 = vmul.f32 -1.442695, %v11497_v47  ;;  %v948_v8 = vsel %vm723_vm2, %v874_v37, 0.0 }
 0x26a   :  { %v927_v13 = vsel %vm723_vm2, %v867_v54, 0.0 }
 0x26b   :  { %9932 = vpow2.f32 %v9171_v63 }
 0x26c   :  { %937 = vadd.xlane.f32.xlu1 %v936_v18  ;;  %9934 = vrcp.f32 %v620_v14  ;;  %v613_v18 = vadd.f32 1.0, %v9921_v7  ;;  %v457_v14 = vmul.f32 %v11235_v44, %v397_v21  ;;  %v9166_v7 = vmul.f32 -1.442695, %v11531_v3 }
 0x26d   :  { %755 = vadd.xlane.f32.xlu0 %v754_v24  ;;  %v9164_v24 = vmul.f32 -1.442695, %v11508_v58  ;;  %v9927_v39 = vpop.eup %9926 }
 0x26e   :  { %v11539_v55 = vmul.f32 %v9927_v39, %v11421_v29 }
 0x26f   :  { %9936 = vpow2.f32 %v9164_v24 }
 0x270   :  { %782 = vadd.xlane.f32.xlu1 %v781_v40  ;;  %9938 = vrcp.f32 %v613_v18  ;;  %v766_v40 = vsel %vm723_vm2, %v11526_v2, 0.0  ;;  %v793_v16 = vsel %vm723_vm2, %v11539_v55, 0.0  ;;  %v876_v29 = vmul.f32 %v11539_v55, %v11539_v55 }
 0x271   :  { %916 = vadd.xlane.f32.xlu0 %v915_v49  ;;  %v9929_v49 = vpop.eup %9928  ;;  %9940 = vrcp.f32 %v622_v43  ;;  %v11552_v18 = vadd.f32 %v11238_v45, %v457_v14 }
 0x272   :  { %v9931_v63 = vpop.eup %9930  ;;  %9942 = vpow2.f32 %v9166_v7  ;;  %v954_v37 = vsel %vm723_vm2, %v876_v29, 0.0 }
 0x273   :  { %v11547_v56 = vmul.f32 %v9931_v63, %v11432_v48  ;;  %v9168_v43 = vmul.f32 -1.442695, %v11552_v18 }
 0x274   :  { %943 = vadd.xlane.f32.xlu1 %v942_v51 }
 0x275   :  { %761 = vadd.xlane.f32.xlu0 %v760_v5  ;;  %v615_v5 = vadd.f32 1.0, %v9929_v49  ;;  %v9933_v51 = vpop.eup %9932  ;;  %v869_v48 = vmul.f32 %v11547_v56, %v11547_v56  ;;  %v459_v49 = vmul.f32 %v11235_v44, %v11452_v25 }
 0x276   :  { %v9935_v24 = vpop.eup %9934  ;;  %v624_v19 = vadd.f32 1.0, %v9933_v51 }
 0x277   :  { %9944 = vrcp.f32 %v615_v5  ;;  %v11560_v39 = vmul.f32 %v9935_v24, %v11444_v35  ;;  %v11574_v7 = vadd.f32 %v11238_v45, %v459_v49 }
 0x278   :  { %788 = vadd.xlane.f32.xlu1 %v787_v32  ;;  %v772_v32 = vsel %vm723_vm2, %v11547_v56, 0.0  ;;  %9946 = vrcp.f32 %v624_v19 }
 0x279   :  { %922 = vadd.xlane.f32.xlu0 %v921_v31  ;;  %v9937_v31 = vpop.eup %9936  ;;  %v799_v54 = vsel %vm723_vm2, %v11560_v39, 0.0  ;;  %v878_v35 = vmul.f32 %v11560_v39, %v11560_v39  ;;  %9948 = vpow2.f32 %v9168_v43  ;;  %v9170_v29 = vmul.f32 -1.442695, %v11574_v7 }
 0x27a   :  { %v9939_v21 = vpop.eup %9938 }
 0x27b   :  { %v11569_v63 = vmul.f32 %v9939_v21, %v11456_v27  ;;  %v9941_v14 = vpop.eup %9940  ;;  %v960_v51 = vsel %vm723_vm2, %v878_v35, 0.0 }
 0x27c   :  { %949 = vadd.xlane.f32.xlu1 %v948_v8  ;;  %v933_v8 = vsel %vm723_vm2, %v869_v48, 0.0  ;;  %v9943_v25 = vpop.eup %9942 }
 0x27d   :  { %767 = vadd.xlane.f32.xlu0 %v766_v40  ;;  %v617_v40 = vadd.f32 1.0, %v9937_v31  ;;  %v778_v5 = vsel %vm723_vm2, %v11569_v63, 0.0  ;;  %v871_v27 = vmul.f32 %v11569_v63, %v11569_v63  ;;  %v619_v24 = vadd.f32 1.0, %v9943_v25 }
 0x27f   :  { %9950 = vrcp.f32 %v617_v40  ;;  %v939_v31 = vsel %vm723_vm2, %v871_v27, 0.0 }
 0x280   :  { %794 = vadd.xlane.f32.xlu1 %v793_v16  ;;  %9952 = vpow2.f32 %v9170_v29 }
 0x281   :  { %928 = vadd.xlane.f32.xlu0 %v927_v13  ;;  %v11582_v13 = vmul.f32 %v9941_v14, %v11471_v53  ;;  %v9945_v16 = vpop.eup %9944  ;;  %9954 = vrcp.f32 %v619_v24 }
 0x282   :  { %v9947_v53 = vpop.eup %9946 }
 0x283   :  { %v880_v48 = vmul.f32 %v11582_v13, %v11582_v13  ;;  %v9949_v21 = vpop.eup %9948 }
 0x284   :  { %955 = vadd.xlane.f32.xlu1 %v954_v37  ;;  %v11589_v37 = vmul.f32 %v9945_v16, %v11482_v6  ;;  %v11599_v6 = vmul.f32 %v9947_v53, %v11497_v47  ;;  %v621_v14 = vadd.f32 1.0, %v9949_v21 }
 0x285   :  { %773 = vadd.xlane.f32.xlu0 %v772_v32  ;;  %v805_v32 = vsel %vm723_vm2, %v11582_v13, 0.0  ;;  %v966_v40 = vsel %vm723_vm2, %v880_v48, 0.0 }
 0x286   :  { %v784_v49 = vsel %vm723_vm2, %v11589_v37, 0.0  ;;  %v882_v27 = vmul.f32 %v11599_v6, %v11599_v6  ;;  %9956 = vrcp.f32 %v621_v14 }
 0x288   :  { %800 = vadd.xlane.f32.xlu1 %v799_v54 }
 0x289   :  { %934 = vadd.xlane.f32.xlu0 %v933_v8  ;;  %v873_v8 = vmul.f32 %v11589_v37, %v11589_v37  ;;  %v9951_v54 = vpop.eup %9950 }
 0x28a   :  { %v9953_v47 = vpop.eup %9952 }
 0x28b   :  { %v726_v19 = vpop.xlane.xlu0 %725  ;;  %v945_v25 = vsel %vm723_vm2, %v873_v8, 0.0  ;;  %v9955_v48 = vpop.eup %9954 }
 0x28c   :  { %961 = vadd.xlane.f32.xlu1 %v960_v51  ;;  %v11605_v51 = vmul.f32 %v9951_v54, %v11508_v58  ;;  %v11616_v21 = vmul.f32 0.015625, %v726_v19  ;;  %v11620_v8 = vmul.f32 %v9955_v48, %v11531_v3 }
 0x28d   :  { %779 = vadd.xlane.f32.xlu0 %v778_v5  ;;  %v811_v5 = vsel %vm723_vm2, %v11599_v6, 0.0 }
 0x28e   :  { %v729_v43 = vpop.xlane.xlu1 %728  ;;  %v790_v24 = vsel %vm723_vm2, %v11605_v51, 0.0  ;;  %v877_v3 = vmul.f32 %v11620_v8, %v11620_v8 }
 0x28f   :  { %v732_v35 = vpop.xlane.xlu0 %731 }
 0x290   :  { %806 = vadd.xlane.f32.xlu1 %v805_v32  ;;  %v875_v32 = vmul.f32 %v11605_v51, %v11605_v51 }
 0x291   :  { %940 = vadd.xlane.f32.xlu0 %v939_v31  ;;  %v972_v31 = vsel %vm723_vm2, %v882_v27, 0.0 }
 0x292   :  { %v735_v16 = vpop.xlane.xlu1 %734 }
 0x293   :  { %v11646_v42 = vmul.f32 0.015625, %v735_v16 }
 0x294   :  { %967 = vadd.xlane.f32.xlu1 %v966_v40  ;;  %v951_v40 = vsel %vm723_vm2, %v875_v32, 0.0 }
 0x295   :  { %785 = vadd.xlane.f32.xlu0 %v784_v49  ;;  %v623_v49 = vadd.f32 1.0, %v9953_v47  ;;  %v796_v47 = vsel %vm723_vm2, %v11620_v8, 0.0 }
 0x297   :  { %9958 = vrcp.f32 %v623_v49 }
 0x298   :  { %812 = vadd.xlane.f32.xlu1 %v811_v5  ;;  %v11626_v5 = vmul.f32 0.015625, %v729_v43 }
 0x299   :  { %v738_v29 = vpop.xlane.xlu0 %737  ;;  %946 = vadd.xlane.f32.xlu0 %v945_v25  ;;  %v1013_v25 = vmul.f32 %v11616_v21, %v11616_v21 }
 0x29c   :  { %973 = vadd.xlane.f32.xlu1 %v972_v31  ;;  %v741_v53 = vpop.xlane.xlu1 %740  ;;  %v11632_v31 = vmul.f32 0.015625, %v732_v35  ;;  %v957_v35 = vsel %vm723_vm2, %v877_v3, 0.0 }
 0x29d   :  { %v11614_v58 = vpop.xlane.xlu0 %743  ;;  %791 = vadd.xlane.f32.xlu0 %v790_v24  ;;  %v9957_v24 = vpop.eup %9956 }
 0x2a0   :  { %v11622_v14 = vpop.xlane.xlu1 %746 }
 0x2a1   :  { %v887_v54 = vpop.xlane.xlu0 %886  ;;  %952 = vadd.xlane.f32.xlu0 %v951_v40  ;;  %v1014_v40 = vmul.f32 %v11626_v5, %v11626_v5 }
 0x2a2   :  { %v981_v27 = vmul.f32 0.015625, %v887_v54  ;;  %v11638_v54 = vmul.f32 %v9957_v24, %v11552_v18 }
 0x2a4   :  { %v1045_v19 = vsub.f32 %v981_v27, %v1013_v25  ;;  %v423_v48 = vpop.permute.xlu1 %422  ;;  %v879_v3 = vmul.f32 %v11638_v54, %v11638_v54 }
 0x2a5   :  { %v890_v32 = vpop.xlane.xlu0 %889  ;;  %797 = vadd.xlane.f32.xlu0 %v796_v47  ;;  %v462_v49 = vmul.f32 %v11235_v44, %v423_v48  ;;  %v1015_v47 = vmul.f32 %v11632_v31, %v11632_v31  ;;  %v9959_v48 = vpop.eup %9958 }
 0x2a6   :  { %v1077_v43 = vmax.f32 %v1045_v19, 0.0  ;;  %v982_v9 = vmul.f32 0.015625, %v890_v32 }
 0x2a7   :  { %v11641_v0 = vadd.f32 %v11238_v45, %v462_v49 }
 0x2a8   :  { %v1141_v25 = vadd.f32 1e-05, %v1077_v43  ;;  %v1046_v27 = vsub.f32 %v982_v9, %v1014_v40  ;;  %v802_v9 = vsel %vm723_vm2, %v11638_v54, 0.0  ;;  %v11653_v40 = vmul.f32 0.015625, %v738_v29 }
 0x2a9   :  { %v893_v17 = vpop.xlane.xlu0 %892  ;;  %958 = vadd.xlane.f32.xlu0 %v957_v35  ;;  %v9173_v44 = vmul.f32 -1.442695, %v11641_v0  ;;  %v1016_v43 = vmul.f32 %v11646_v42, %v11646_v42  ;;  %v963_v35 = vsel %vm723_vm2, %v879_v3, 0.0 }
 0x2aa   :  { %9960 = vrsqrt.f32 %v1141_v25  ;;  %v1078_v19 = vmax.f32 %v1046_v27, 0.0  ;;  %v983_v18 = vmul.f32 0.015625, %v893_v17 }
 0x2ab   :  { %9962 = vpow2.f32 %v9173_v44  ;;  %v11663_v44 = vmul.f32 0.015625, %v741_v53  ;;  %v10966_v53 = vld [vmem:[%s16301_s3] sm:$0x7]  ;;  %s9125_s3 = sshll.u32 %s11056_s29, 4  ;;  %s9126_s3 = int_to_ptr.vmem [resolvable:$true] %s9125_s3 }
 0x2ac   :  { %v1142_v24 = vadd.f32 1e-05, %v1078_v19  ;;  %v1047_v32 = vsub.f32 %v983_v18, %v1015_v47  ;;  %v11659_v47 = vmul.f32 %v9959_v48, %v11574_v7  ;;  %v1017_v19 = vmul.f32 %v11653_v40, %v11653_v40  ;;  %s11021_s30 = scalar_lea.vmem %s9126_s3, 32  ;;  %p11022_p3 = scmp.lt.s32.totalorder %s9126_s3, %s9126_s3 }
 0x2ad   :  { %v896_v16 = vpop.xlane.xlu0 %895  ;;  %803 = vadd.xlane.f32.xlu0 %v802_v9  ;;  %v11675_v48 = vrot.slane %v10966_v53, %v11192_v11 }
 0x2ae   :  { %9964 = vrsqrt.f32 %v1142_v24  ;;  %v1079_v49 = vmax.f32 %v1047_v32, 0.0  ;;  %v984_v17 = vmul.f32 0.015625, %v896_v16  ;;  %v1109_v24 = vsub.f32 %v11259_v38, %v11616_v21 }
 0x2af   :  { %v808_v7 = vsel %vm723_vm2, %v11659_v47, 0.0  ;;  %v881_v3 = vmul.f32 %v11659_v47, %v11659_v47  ;;  %v1018_v21 = vmul.f32 %v11663_v44, %v11663_v44 }
 0x2b0   :  { %v1143_v25 = vadd.f32 1e-05, %v1079_v49  ;;  %v1048_v27 = vsub.f32 %v984_v17, %v1016_v43 }
 0x2b1   :  { %v899_v29 = vpop.xlane.xlu0 %898  ;;  %964 = vadd.xlane.f32.xlu0 %v963_v35  ;;  %v1110_v35 = vsub.f32 %v11265_v46, %v11626_v5  ;;  %v969_v10 = vsel %vm723_vm2, %v881_v3, 0.0  ;;  %v10967_v46 = vld [vmem:[%s16300_s2] ss:$0 sm:$0xff] }
 0x2b2   :  { %9966 = vrsqrt.f32 %v1143_v25  ;;  %v1080_v18 = vmax.f32 %v1048_v27, 0.0  ;;  %v985_v9 = vmul.f32 0.015625, %v899_v29 }
 0x2b4   :  { %v9961_v32 = vpop.eup %9960  ;;  %v1144_v16 = vadd.f32 1e-05, %v1080_v18  ;;  %v1049_v43 = vsub.f32 %v985_v9, %v1017_v19 }
 0x2b5   :  { %v1205_v49 = vmul.f32 %v9961_v32, %v1109_v24  ;;  %v902_v17 = vpop.xlane.xlu0 %901  ;;  %809 = vadd.xlane.f32.xlu0 %v808_v7  ;;  %v9963_v38 = vpop.eup %9962  ;;  %v11683_v24 = vrot.slane %v10966_v53, %v11210_v28 }
 0x2b6   :  { %9968 = vrsqrt.f32 %v1144_v16  ;;  %v1081_v25 = vmax.f32 %v1049_v43, 0.0  ;;  %v986_v27 = vmul.f32 0.015625, %v902_v17  ;;  %v626_v19 = vadd.f32 1.0, %v9963_v38 }
 0x2b7   :  { %v1241_v16 = vmul.f32 %v11675_v48, %v1205_v49  ;;  %v1111_v17 = vsub.f32 %v11263_v41, %v11632_v31 }
 0x2b8   :  { %v9965_v29 = vpop.eup %9964  ;;  %v1145_v18 = vadd.f32 1e-05, %v1081_v25  ;;  %v1050_v9 = vsub.f32 %v986_v27, %v1018_v21  ;;  %9970 = vrcp.f32 %v626_v19 }
 0x2b9   :  { %v1206_v32 = vmul.f32 %v9965_v29, %v1110_v35  ;;  %v419_v7 = vpop.permute.xlu0 %418  ;;  %970 = vadd.xlane.f32.xlu0 %v969_v10  ;;  %v1277_v10 = vadd.f32 %v11683_v24, %v1241_v16  ;;  %v1112_v35 = vsub.f32 %v11271_v50, %v11646_v42 }
 0x2ba   :  { %9972 = vrsqrt.f32 %v1145_v18  ;;  %v1082_v43 = vmax.f32 %v1050_v9, 0.0  ;;  %v461_v5 = vmul.f32 %v10967_v46, %v419_v7  ;;  %v16602_v18 = vmov 0  }
 0x2bb   :  { %v1242_v3 = vmul.f32 %v11675_v48, %v1206_v32  ;;  %v1113_v9 = vsub.f32 %v11275_v57, %v11653_v40  ;;  %v1114_v57 = vsub.f32 %v11282_v62, %v11663_v44 }
 0x2bc   :  { %v9967_v53 = vpop.eup %9966  ;;  %v1146_v38 = vadd.f32 1e-05, %v1082_v43  ;;  %v497_v21 = vadd.f32 %v11238_v45, %v461_v5 }
 0x2bd   :  { %v1278_v49 = vadd.f32 %v11683_v24, %v1242_v3  ;;  %v1207_v25 = vmul.f32 %v9967_v53, %v1111_v17 }
 0x2be   :  { %9974 = vrsqrt.f32 %v1146_v38  ;;  %v9172_v27 = vmul.f32 -1.442695, %v497_v21 }
 0x2bf   :  { %v1309_v19 = vpack.c.bf16 %v1278_v49, %v1277_v10  ;;  %v1243_v31 = vmul.f32 %v11675_v48, %v1207_v25 }
 0x2c0   :  { %v9969_v29 = vpop.eup %9968  ;;  %9976 = vpow2.f32 %v9172_v27 }
 0x2c1   :  { %9182 = vmatmul.mubr.msk.bf16.vlgmr.msra.gmra.mrb[4].mxu0 %vm723_vm2, %v1309_v19  ;;  %v1208_v41 = vmul.f32 %v9969_v29, %v1112_v35  ;;  %v1279_v50 = vadd.f32 %v11683_v24, %v1243_v31 }
 0x2c2   :  { %1463 = vmatprep.mubr.bf16.mxu0 %v16602_v18  ;;  %v9971_v45 = vpop.eup %9970 }
 0x2c3   :  { %v1244_v32 = vmul.f32 %v11675_v48, %v1208_v41  ;;  %v11704_v16 = vmul.f32 %v9971_v45, %v11641_v0 }
 0x2c4   :  { %v9973_v7 = vpop.eup %9972 }
 0x2c5   :  { %v1280_v42 = vadd.f32 %v11683_v24, %v1244_v32  ;;  %v1209_v43 = vmul.f32 %v9973_v7, %v1113_v9  ;;  %v817_v46 = vsel %vm723_vm2, %v11704_v16, 0.0  ;;  %v884_v5 = vmul.f32 %v11704_v16, %v11704_v16 }
 0x2c6   :  { %818 = vadd.xlane.f32.xlu1 %v817_v46  ;;  %v828_v46 = vmul.f32 0.015625, %v11622_v14 }
 0x2c7   :  { %v1310_v40 = vpack.c.bf16 %v1280_v42, %v1279_v50  ;;  %v1245_v3 = vmul.f32 %v11675_v48, %v1209_v43  ;;  %v978_v38 = vsel %vm723_vm2, %v884_v5, 0.0  ;;  %v827_v50 = vmul.f32 0.015625, %v11614_v58 }
 0x2c8   :  { %v9975_v17 = vpop.eup %9974 }
 0x2c9   :  { %9183 = vmatmul.mubr.msk.bf16.gmra.mrb[8].mxu0 %vm723_vm2, %v1310_v40  ;;  %v1210_v0 = vmul.f32 %v9975_v17, %v1114_v57  ;;  %v1281_v62 = vadd.f32 %v11683_v24, %v1245_v3  ;;  %v1115_v33 = vsub.f32 %v11280_v59, %v827_v50 }
 0x2ca   :  { %v9977_v53 = vpop.eup %9976  ;;  %1473 = vmatprep.mubr.bf16.mxu0 %v16602_v18  ;;  %979 = vadd.xlane.f32.xlu1 %v978_v38 }
 0x2cb   :  { %v625_v10 = vadd.f32 1.0, %v9977_v53  ;;  %v1246_v49 = vmul.f32 %v11675_v48, %v1210_v0  ;;  %v1020_v0 = vmul.f32 %v828_v46, %v828_v46 }
 0x2cd   :  { %9978 = vrcp.f32 %v625_v10  ;;  %v1282_v44 = vadd.f32 %v11683_v24, %v1246_v49 }
 0x2cf   :  { %v1311_v25 = vpack.c.bf16 %v1282_v44, %v1281_v62 }
 0x2d1   :  { %9184 = vmatmul.mubr.msk.bf16.gmra.mrb[12].mxu0 %vm723_vm2, %v1311_v25 }
 0x2d2   :  { %1483 = vmatprep.mubr.bf16.mxu0 %v16602_v18 }
 0x2d5   :  { %v750_v27 = vpop.xlane.xlu1 %749 }
 0x2d6   :  { %v11734_v44 = vmul.f32 0.015625, %v750_v27 }
 0x2d7   :  { %v9979_v35 = vpop.eup %9978 }
 0x2d8   :  { %v11723_v19 = vmul.f32 %v9979_v35, %v497_v21  ;;  %v1019_v21 = vmul.f32 %v827_v50, %v827_v50 }
 0x2d9   :  { %v914_v29 = vpop.xlane.xlu1 %913 }
 0x2da   :  { %v814_v41 = vsel %vm723_vm2, %v11723_v19, 0.0  ;;  %v883_v31 = vmul.f32 %v11723_v19, %v11723_v19 }
 0x2db   :  { %815 = vadd.xlane.f32.xlu0 %v814_v41 }
 0x2dc   :  { %v975_v9 = vsel %vm723_vm2, %v883_v31, 0.0  ;;  %v990_v31 = vmul.f32 0.015625, %v914_v29 }
 0x2dd   :  { %v759_v45 = vpop.xlane.xlu1 %758 }
 0x2de   :  { %v11732_v3 = vmul.f32 0.015625, %v759_v45 }
 0x2df   :  { %976 = vadd.xlane.f32.xlu0 %v975_v9 }
 0x2e0   :  { %v1024_v35 = vmul.f32 %v11732_v3, %v11732_v3 }
 0x2e1   :  { %v920_v32 = vpop.xlane.xlu1 %919 }
 0x2e2   :  { %v992_v10 = vmul.f32 0.015625, %v920_v32  ;;  %v1021_v32 = vmul.f32 %v11734_v44, %v11734_v44 }
 0x2e4   :  { %v1056_v9 = vsub.f32 %v992_v10, %v1024_v35 }
 0x2e5   :  { %v765_v7 = vpop.xlane.xlu1 %764 }
 0x2e9   :  { %v926_v43 = vpop.xlane.xlu1 %925 }
 0x2ea   :  { %v905_v42 = vpop.xlane.xlu0 %904 }
 0x2eb   :  { %v987_v5 = vmul.f32 0.015625, %v905_v42 }
 0x2ed   :  { %v1051_v57 = vsub.f32 %v987_v5, %v1019_v21  ;;  %v771_v17 = vpop.xlane.xlu1 %770  ;;  %v11744_v5 = vmul.f32 0.015625, %v765_v7 }
 0x2ee   :  { %v908_v40 = vpop.xlane.xlu0 %907 }
 0x2ef   :  { %v1083_v53 = vmax.f32 %v1051_v57, 0.0  ;;  %v988_v38 = vmul.f32 0.015625, %v908_v40 }
 0x2f1   :  { %v1147_v49 = vadd.f32 1e-05, %v1083_v53  ;;  %v1052_v62 = vsub.f32 %v988_v38, %v1020_v0  ;;  %v932_v25 = vpop.xlane.xlu1 %931  ;;  %v1088_v0 = vmax.f32 %v1056_v9, 0.0  ;;  %v994_v53 = vmul.f32 0.015625, %v926_v43 }
 0x2f2   :  { %v753_v58 = vpop.xlane.xlu0 %752  ;;  %v996_v50 = vmul.f32 0.015625, %v932_v25 }
 0x2f3   :  { %9980 = vrsqrt.f32 %v1147_v49  ;;  %v1084_v14 = vmax.f32 %v1052_v62, 0.0  ;;  %v11738_v41 = vmul.f32 0.015625, %v753_v58  ;;  %v1026_v62 = vmul.f32 %v11744_v5, %v11744_v5 }
 0x2f4   :  { %v1152_v30 = vadd.f32 1e-05, %v1088_v0 }
 0x2f5   :  { %v1148_v45 = vadd.f32 1e-05, %v1084_v14  ;;  %v1022_v42 = vmul.f32 %v11738_v41, %v11738_v41  ;;  %v777_v21 = vpop.xlane.xlu1 %776 }
 0x2f6   :  { %v911_v27 = vpop.xlane.xlu0 %910 }
 0x2f7   :  { %9982 = vrsqrt.f32 %v1148_v45  ;;  %v1054_v57 = vsub.f32 %v990_v31, %v1022_v42  ;;  %v989_v40 = vmul.f32 0.015625, %v911_v27  ;;  %v1058_v45 = vsub.f32 %v994_v53, %v1026_v62 }
 0x2f9   :  { %v1086_v38 = vmax.f32 %v1054_v57, 0.0  ;;  %v1053_v49 = vsub.f32 %v989_v40, %v1021_v32  ;;  %v938_v10 = vpop.xlane.xlu1 %937  ;;  %v11751_v32 = vmul.f32 0.015625, %v771_v17  ;;  %v1116_v40 = vsub.f32 %v11290_v4, %v828_v46 }
 0x2fa   :  { %v756_v29 = vpop.xlane.xlu0 %755  ;;  %v1090_v59 = vmax.f32 %v1058_v45, 0.0 }
 0x2fb   :  { %v1150_v58 = vadd.f32 1e-05, %v1086_v38  ;;  %v1085_v35 = vmax.f32 %v1053_v49, 0.0  ;;  %v11748_v14 = vmul.f32 0.015625, %v756_v29 }
 0x2fd   :  { %v9981_v7 = vpop.eup %9980  ;;  %9984 = vrsqrt.f32 %v1150_v58  ;;  %v1149_v31 = vadd.f32 1e-05, %v1085_v35  ;;  %v783_v43 = vpop.xlane.xlu1 %782  ;;  %v1023_v27 = vmul.f32 %v11748_v14, %v11748_v14 }
 0x2fe   :  { %v917_v9 = vpop.xlane.xlu0 %916  ;;  %v1211_v42 = vmul.f32 %v9981_v7, %v1115_v33  ;;  %v1028_v33 = vmul.f32 %v11751_v32, %v11751_v32  ;;  %v1154_v7 = vadd.f32 1e-05, %v1090_v59 }
 0x2ff   :  { %9986 = vrsqrt.f32 %v1149_v31  ;;  %v991_v57 = vmul.f32 0.015625, %v917_v9 }
 0x300   :  { %9988 = vrsqrt.f32 %v1152_v30  ;;  %v1247_v62 = vmul.f32 %v11675_v48, %v1211_v42  ;;  %v1060_v4 = vsub.f32 %v996_v50, %v1028_v33  ;;  %v1118_v30 = vsub.f32 %v11374_v34, %v11738_v41 }
 0x301   :  { %v9983_v38 = vpop.eup %9982  ;;  %v1055_v0 = vsub.f32 %v991_v57, %v1023_v27  ;;  %v944_v49 = vpop.xlane.xlu1 %943  ;;  %v11768_v27 = vmul.f32 0.015625, %v777_v21 }
 0x302   :  { %v762_v53 = vpop.xlane.xlu0 %761  ;;  %v1212_v29 = vmul.f32 %v9983_v38, %v1116_v40  ;;  %v1283_v31 = vadd.f32 %v11683_v24, %v1247_v62  ;;  %v1117_v38 = vsub.f32 %v11377_v36, %v11734_v44  ;;  %v1092_v50 = vmax.f32 %v1060_v4, 0.0 }
 0x303   :  { %v1087_v17 = vmax.f32 %v1055_v0, 0.0  ;;  %v11759_v58 = vmul.f32 0.015625, %v762_v53  ;;  %v998_v0 = vmul.f32 0.015625, %v938_v10  ;;  %v1120_v44 = vsub.f32 %v11397_v61, %v11732_v3 }
 0x304   :  { %v1248_v35 = vmul.f32 %v11675_v48, %v1212_v29  ;;  %v1119_v3 = vsub.f32 %v11477_v60, %v11748_v14  ;;  %v1122_v60 = vsub.f32 %v11417_v22, %v11744_v5 }
 0x305   :  { %v1151_v46 = vadd.f32 1e-05, %v1087_v17  ;;  %v11764_v45 = vpop.xlane.xlu1 %788  ;;  %v1025_v57 = vmul.f32 %v11759_v58, %v11759_v58  ;;  %v1121_v22 = vsub.f32 %v11503_v52, %v11759_v58  ;;  %v1124_v52 = vsub.f32 %v11440_v1, %v11751_v32 }
 0x306   :  { %v923_v25 = vpop.xlane.xlu0 %922  ;;  %v1284_v9 = vadd.f32 %v11683_v24, %v1248_v35  ;;  %v1030_v35 = vmul.f32 %v11768_v27, %v11768_v27 }
 0x307   :  { %v9985_v42 = vpop.eup %9984  ;;  %9990 = vrsqrt.f32 %v1151_v46  ;;  %v993_v40 = vmul.f32 0.015625, %v923_v25 }
 0x308   :  { %v1214_v59 = vmul.f32 %v9985_v42, %v1118_v30  ;;  %v1312_v34 = vpack.c.bf16 %v1284_v9, %v1283_v31  ;;  %9992 = vrsqrt.f32 %v1154_v7  ;;  %v1156_v7 = vadd.f32 1e-05, %v1092_v50 }
 0x309   :  { %v9987_v41 = vpop.eup %9986  ;;  %v1057_v53 = vsub.f32 %v993_v40, %v1025_v57  ;;  %v950_v21 = vpop.xlane.xlu1 %949  ;;  %v1062_v4 = vsub.f32 %v998_v0, %v1030_v35  ;;  %v11788_v40 = vmul.f32 0.015625, %v783_v43  ;;  %v1000_v50 = vmul.f32 0.015625, %v944_v49 }
 0x30a   :  { %v1250_v29 = vmul.f32 %v11675_v48, %v1214_v59  ;;  %v768_v62 = vpop.xlane.xlu0 %767  ;;  %9185 = vmatmul.mubr.msk.bf16.gmra.mrb[16].mxu0 %vm723_vm2, %v1312_v34  ;;  %v1213_v33 = vmul.f32 %v9987_v41, %v1117_v38  ;;  %v9989_v17 = vpop.eup %9988 }
 0x30b   :  { %v1089_v46 = vmax.f32 %v1057_v53, 0.0  ;;  %v11778_v36 = vmul.f32 0.015625, %v768_v62  ;;  %1493 = vmatprep.mubr.bf16.mxu0 %v16602_v18  ;;  %v1216_v57 = vmul.f32 %v9989_v17, %v1120_v44  ;;  %v1094_v41 = vmax.f32 %v1062_v4, 0.0 }
 0x30c   :  { %v1249_v10 = vmul.f32 %v11675_v48, %v1213_v33  ;;  %v1286_v42 = vadd.f32 %v11683_v24, %v1250_v29  ;;  %v1032_v17 = vmul.f32 %v11788_v40, %v11788_v40 }
 0x30d   :  { %v1153_v30 = vadd.f32 1e-05, %v1089_v46  ;;  %v11784_v31 = vpop.xlane.xlu1 %794  ;;  %v1027_v38 = vmul.f32 %v11778_v36, %v11778_v36  ;;  %v1252_v62 = vmul.f32 %v11675_v48, %v1216_v57  ;;  %v1158_v49 = vadd.f32 1e-05, %v1094_v41 }
 0x30e   :  { %v929_v25 = vpop.xlane.xlu0 %928  ;;  %v1285_v9 = vadd.f32 %v11683_v24, %v1249_v10  ;;  %v1064_v44 = vsub.f32 %v1000_v50, %v1032_v17  ;;  %v1123_v32 = vsub.f32 %v11526_v2, %v11778_v36  ;;  %v1126_v2 = vsub.f32 %v11465_v20, %v11768_v27 }
 0x30f   :  { %9994 = vrsqrt.f32 %v1153_v30  ;;  %v995_v61 = vmul.f32 0.015625, %v929_v25  ;;  %v1288_v30 = vadd.f32 %v11683_v24, %v1252_v62 }
 0x310   :  { %v1313_v59 = vpack.c.bf16 %v1286_v42, %v1285_v9  ;;  %9996 = vrsqrt.f32 %v1156_v7  ;;  %v11807_v9 = vmul.f32 0.015625, %v11764_v45 }
 0x311   :  { %v9991_v34 = vpop.eup %9990  ;;  %v1059_v0 = vsub.f32 %v995_v61, %v1027_v38  ;;  %v956_v29 = vpop.xlane.xlu1 %955 }
 0x312   :  { %v774_v53 = vpop.xlane.xlu0 %773  ;;  %9186 = vmatmul.mubr.msk.bf16.gmra.mrb[20].mxu0 %vm723_vm2, %v1313_v59  ;;  %v1215_v43 = vmul.f32 %v9991_v34, %v1119_v3  ;;  %v9993_v33 = vpop.eup %9992  ;;  %v1096_v3 = vmax.f32 %v1064_v44, 0.0  ;;  %v1002_v59 = vmul.f32 0.015625, %v950_v21 }
 0x313   :  { %v1091_v35 = vmax.f32 %v1059_v0, 0.0  ;;  %v11798_v46 = vmul.f32 0.015625, %v774_v53  ;;  %1503 = vmatprep.mubr.bf16.mxu0 %v16602_v18  ;;  %v1218_v25 = vmul.f32 %v9993_v33, %v1122_v60  ;;  %v1034_v53 = vmul.f32 %v11807_v9, %v11807_v9 }
 0x314   :  { %v1251_v14 = vmul.f32 %v11675_v48, %v1215_v43  ;;  %v1160_v21 = vadd.f32 1e-05, %v1096_v3 }
 0x315   :  { %v1155_v10 = vadd.f32 1e-05, %v1091_v35  ;;  %v1029_v42 = vmul.f32 %v11798_v46, %v11798_v46  ;;  %v801_v5 = vpop.xlane.xlu1 %800  ;;  %v1254_v50 = vmul.f32 %v11675_v48, %v1218_v25  ;;  %v1066_v33 = vsub.f32 %v1002_v59, %v1034_v53 }
 0x316   :  { %v935_v7 = vpop.xlane.xlu0 %934  ;;  %v1287_v4 = vadd.f32 %v11683_v24, %v1251_v14  ;;  %v1125_v20 = vsub.f32 %v11547_v56, %v11798_v46  ;;  %v1128_v56 = vsub.f32 %v11492_v26, %v11788_v40 }
 0x317   :  { %9998 = vrsqrt.f32 %v1155_v10  ;;  %v997_v57 = vmul.f32 0.015625, %v935_v7  ;;  %v11826_v10 = vmul.f32 0.015625, %v11784_v31  ;;  %v1098_v25 = vmax.f32 %v1066_v33, 0.0 }
 0x318   :  { %v1314_v38 = vpack.c.bf16 %v1288_v30, %v1287_v4  ;;  %10000 = vrsqrt.f32 %v1158_v49  ;;  %v1290_v49 = vadd.f32 %v11683_v24, %v1254_v50 }
 0x319   :  { %v9995_v61 = vpop.eup %9994  ;;  %v1061_v34 = vsub.f32 %v997_v57, %v1029_v42  ;;  %v962_v35 = vpop.xlane.xlu1 %961  ;;  %v1004_v42 = vmul.f32 0.015625, %v956_v29  ;;  %v1036_v3 = vmul.f32 %v11826_v10, %v11826_v10 }
 0x31a   :  { %v780_v41 = vpop.xlane.xlu0 %779  ;;  %9187 = vmatmul.mubr.msk.bf16.gmra.mrb[24].mxu0 %vm723_vm2, %v1314_v38  ;;  %v1217_v45 = vmul.f32 %v9995_v61, %v1121_v22  ;;  %v9997_v0 = vpop.eup %9996 }
 0x31b   :  { %v1093_v43 = vmax.f32 %v1061_v34, 0.0  ;;  %v11817_v62 = vmul.f32 0.015625, %v780_v41  ;;  %1513 = vmatprep.mubr.bf16.mxu0 %v16602_v18  ;;  %v1220_v44 = vmul.f32 %v9997_v0, %v1124_v52  ;;  %v1162_v41 = vadd.f32 1e-05, %v1098_v25 }
 0x31c   :  { %v1253_v58 = vmul.f32 %v11675_v48, %v1217_v45  ;;  %v1068_v45 = vsub.f32 %v1004_v42, %v1036_v3 }
 0x31d   :  { %v1157_v17 = vadd.f32 1e-05, %v1093_v43  ;;  %v1031_v7 = vmul.f32 %v11817_v62, %v11817_v62  ;;  %v1256_v31 = vmul.f32 %v11675_v48, %v1220_v44  ;;  %v807_v36 = vpop.xlane.xlu1 %806  ;;  %v1127_v26 = vsub.f32 %v11569_v63, %v11817_v62 }
 0x31e   :  { %v941_v60 = vpop.xlane.xlu0 %940  ;;  %v1289_v14 = vadd.f32 %v11683_v24, %v1253_v58  ;;  %v11844_v58 = vmul.f32 0.015625, %v801_v5  ;;  %v11862_v3 = vmul.f32 0.015625, %v807_v36  ;;  %v1130_v63 = vsub.f32 %v11517_v15, %v11807_v9 }
 0x31f   :  { %10002 = vrsqrt.f32 %v1157_v17  ;;  %v999_v1 = vmul.f32 0.015625, %v941_v60  ;;  %v1292_v43 = vadd.f32 %v11683_v24, %v1256_v31  ;;  %v1100_v60 = vmax.f32 %v1068_v45, 0.0 }
 0x320   :  { %v1315_v4 = vpack.c.bf16 %v1290_v49, %v1289_v14  ;;  %10004 = vrsqrt.f32 %v1160_v21  ;;  %v1006_v14 = vmul.f32 0.015625, %v962_v35 }
 0x321   :  { %v9999_v30 = vpop.eup %9998  ;;  %v1063_v57 = vsub.f32 %v999_v1, %v1031_v7  ;;  %v968_v44 = vpop.xlane.xlu1 %967  ;;  %v1164_v35 = vadd.f32 1e-05, %v1100_v60 }
 0x322   :  { %v786_v22 = vpop.xlane.xlu0 %785  ;;  %9188 = vmatmul.mubr.msk.bf16.gmra.mrb[28].mxu0 %vm723_vm2, %v1315_v4  ;;  %v1219_v38 = vmul.f32 %v9999_v30, %v1123_v32  ;;  %v10001_v61 = vpop.eup %10000  ;;  %v1038_v4 = vmul.f32 %v11844_v58, %v11844_v58 }
 0x323   :  { %v1095_v59 = vmax.f32 %v1063_v57, 0.0  ;;  %v11836_v34 = vmul.f32 0.015625, %v786_v22  ;;  %1523 = vmatprep.mubr.bf16.mxu0 %v16602_v18  ;;  %v1222_v52 = vmul.f32 %v10001_v61, %v1126_v2 }
 0x324   :  { %v1255_v29 = vmul.f32 %v11675_v48, %v1219_v38  ;;  %v1070_v42 = vsub.f32 %v1006_v14, %v1038_v4 }
 0x325   :  { %v1159_v50 = vadd.f32 1e-05, %v1095_v59  ;;  %v1033_v21 = vmul.f32 %v11836_v34, %v11836_v34  ;;  %v1258_v1 = vmul.f32 %v11675_v48, %v1222_v52  ;;  %v813_v40 = vpop.xlane.xlu1 %812  ;;  %v1129_v15 = vsub.f32 %v11589_v37, %v11836_v34 }
 0x326   :  { %v947_v0 = vpop.xlane.xlu0 %946  ;;  %v1291_v53 = vadd.f32 %v11683_v24, %v1255_v29  ;;  %v1102_v45 = vmax.f32 %v1070_v42, 0.0  ;;  %v1132_v37 = vsub.f32 %v11539_v55, %v11826_v10 }
 0x327   :  { %10006 = vrsqrt.f32 %v1159_v50  ;;  %v1001_v33 = vmul.f32 0.015625, %v947_v0  ;;  %v1294_v31 = vadd.f32 %v11683_v24, %v1258_v1  ;;  %v1008_v50 = vmul.f32 0.015625, %v968_v44 }
 0x328   :  { %v1316_v27 = vpack.c.bf16 %v1292_v43, %v1291_v53  ;;  %10008 = vrsqrt.f32 %v1162_v41  ;;  %v11880_v1 = vmul.f32 0.015625, %v813_v40 }
 0x329   :  { %v10003_v17 = vpop.eup %10002  ;;  %v1065_v49 = vsub.f32 %v1001_v33, %v1033_v21  ;;  %v1040_v21 = vmul.f32 %v11862_v3, %v11862_v3  ;;  %v974_v14 = vpop.xlane.xlu1 %973 }
 0x32a   :  { %v792_v7 = vpop.xlane.xlu0 %791  ;;  %9189 = vmatmul.mubr.msk.bf16.gmra.mrb[32].mxu0 %vm723_vm2, %v1316_v27  ;;  %v1221_v5 = vmul.f32 %v10003_v17, %v1125_v20  ;;  %v10005_v32 = vpop.eup %10004  ;;  %v1166_v27 = vadd.f32 1e-05, %v1102_v45 }
 0x32b   :  { %v1097_v30 = vmax.f32 %v1065_v49, 0.0  ;;  %v11854_v25 = vmul.f32 0.015625, %v792_v7  ;;  %1533 = vmatprep.mubr.bf16.mxu0 %v16602_v18  ;;  %v1224_v61 = vmul.f32 %v10005_v32, %v1128_v56  ;;  %v1072_v17 = vsub.f32 %v1008_v50, %v1040_v21 }
 0x32c   :  { %v1257_v46 = vmul.f32 %v11675_v48, %v1221_v5 }
 0x32d   :  { %v1161_v57 = vadd.f32 1e-05, %v1097_v30  ;;  %v1035_v59 = vmul.f32 %v11854_v25, %v11854_v25  ;;  %v1260_v43 = vmul.f32 %v11675_v48, %v1224_v61  ;;  %v1104_v56 = vmax.f32 %v1072_v17, 0.0 }
 0x32e   :  { %v953_v22 = vpop.xlane.xlu0 %952  ;;  %v1293_v38 = vadd.f32 %v11683_v24, %v1257_v46  ;;  %v1010_v46 = vmul.f32 0.015625, %v974_v14 }
 0x32f   :  { %10010 = vrsqrt.f32 %v1161_v57  ;;  %v1003_v2 = vmul.f32 0.015625, %v953_v22  ;;  %v1296_v7 = vadd.f32 %v11683_v24, %v1260_v43 }
 0x330   :  { %v1317_v29 = vpack.c.bf16 %v1294_v31, %v1293_v38  ;;  %10012 = vrsqrt.f32 %v1164_v35  ;;  %v1042_v31 = vmul.f32 %v11880_v1, %v11880_v1 }
 0x331   :  { %v10007_v41 = vpop.eup %10006  ;;  %v1067_v0 = vsub.f32 %v1003_v2, %v1035_v59  ;;  %v1168_v2 = vadd.f32 1e-05, %v1104_v56 }
 0x332   :  { %v798_v53 = vpop.xlane.xlu0 %797  ;;  %9190 = vmatmul.mubr.msk.bf16.gmra.mrb[36].mxu0 %vm723_vm2, %v1317_v29  ;;  %v1223_v36 = vmul.f32 %v10007_v41, %v1127_v26  ;;  %v10009_v52 = vpop.eup %10008  ;;  %v1074_v26 = vsub.f32 %v1010_v46, %v1042_v31 }
 0x333   :  { %v1099_v33 = vmax.f32 %v1067_v0, 0.0  ;;  %v11872_v20 = vmul.f32 0.015625, %v798_v53  ;;  %1543 = vmatprep.mubr.bf16.mxu0 %v16602_v18  ;;  %v1226_v5 = vmul.f32 %v10009_v52, %v1130_v63 }
 0x334   :  { %v1259_v62 = vmul.f32 %v11675_v48, %v1223_v36  ;;  %v1131_v36 = vsub.f32 %v11605_v51, %v11854_v25  ;;  %v1106_v55 = vmax.f32 %v1074_v26, 0.0 }
 0x335   :  { %v1163_v60 = vadd.f32 1e-05, %v1099_v33  ;;  %v1037_v32 = vmul.f32 %v11872_v20, %v11872_v20  ;;  %v1262_v22 = vmul.f32 %v11675_v48, %v1226_v5 }
 0x336   :  { %v959_v49 = vpop.xlane.xlu0 %958  ;;  %v1295_v44 = vadd.f32 %v11683_v24, %v1259_v62  ;;  %v1170_v25 = vadd.f32 1e-05, %v1106_v55 }
 0x337   :  { %10014 = vrsqrt.f32 %v1163_v60  ;;  %v1005_v4 = vmul.f32 0.015625, %v959_v49  ;;  %v1298_v45 = vadd.f32 %v11683_v24, %v1262_v22  ;;  %v1134_v60 = vsub.f32 %v11560_v39, %v11844_v58 }
 0x338   :  { %v1318_v9 = vpack.c.bf16 %v1296_v7, %v1295_v44  ;;  %10016 = vrsqrt.f32 %v1166_v27 }
 0x339   :  { %v10011_v30 = vpop.eup %10010  ;;  %v1069_v35 = vsub.f32 %v1005_v4, %v1037_v32 }
 0x33a   :  { %v804_v42 = vpop.xlane.xlu0 %803  ;;  %9191 = vmatmul.mubr.msk.bf16.gmra.mrb[40].mxu0 %vm723_vm2, %v1318_v9  ;;  %v1225_v57 = vmul.f32 %v10011_v30, %v1129_v15  ;;  %v10013_v38 = vpop.eup %10012  ;;  %v1133_v15 = vsub.f32 %v11620_v8, %v11872_v20 }
 0x33b   :  { %v1101_v61 = vmax.f32 %v1069_v35, 0.0  ;;  %v847_v59 = vmul.f32 0.015625, %v804_v42  ;;  %1553 = vmatprep.mubr.bf16.mxu0 %v16602_v18  ;;  %v1228_v50 = vmul.f32 %v10013_v38, %v1132_v37  ;;  %v1136_v42 = vsub.f32 %v11582_v13, %v11862_v3 }
 0x33c   :  { %v1261_v34 = vmul.f32 %v11675_v48, %v1225_v57  ;;  %v1138_v13 = vsub.f32 %v11599_v6, %v11880_v1 }
 0x33d   :  { %v1165_v40 = vadd.f32 1e-05, %v1101_v61  ;;  %v1039_v0 = vmul.f32 %v847_v59, %v847_v59  ;;  %v1264_v63 = vmul.f32 %v11675_v48, %v1228_v50  ;;  %v1135_v31 = vsub.f32 %v11638_v54, %v847_v59 }
 0x33e   :  { %v965_v29 = vpop.xlane.xlu0 %964  ;;  %v1297_v41 = vadd.f32 %v11683_v24, %v1261_v34 }
 0x33f   :  { %10018 = vrsqrt.f32 %v1165_v40  ;;  %v1007_v53 = vmul.f32 0.015625, %v965_v29  ;;  %v1300_v7 = vadd.f32 %v11683_v24, %v1264_v63 }
 0x340   :  { %v1319_v43 = vpack.c.bf16 %v1298_v45, %v1297_v41  ;;  %10020 = vrsqrt.f32 %v1168_v2 }
 0x341   :  { %v10015_v52 = vpop.eup %10014  ;;  %v1071_v10 = vsub.f32 %v1007_v53, %v1039_v0 }
 0x342   :  { %v810_v21 = vpop.xlane.xlu0 %809  ;;  %9192 = vmatmul.mubr.msk.bf16.gmra.mrb[44].mxu0 %vm723_vm2, %v1319_v43  ;;  %v1227_v33 = vmul.f32 %v10015_v52, %v1131_v36  ;;  %v10017_v62 = vpop.eup %10016 }
 0x343   :  { %v1103_v27 = vmax.f32 %v1071_v10, 0.0  ;;  %v849_v17 = vmul.f32 0.015625, %v810_v21  ;;  %1563 = vmatprep.mubr.bf16.mxu0 %v16602_v18  ;;  %v1230_v5 = vmul.f32 %v10017_v62, %v1134_v60 }
 0x344   :  { %v1263_v51 = vmul.f32 %v11675_v48, %v1227_v33 }
 0x345   :  { %v1167_v14 = vadd.f32 1e-05, %v1103_v27  ;;  %v1041_v32 = vmul.f32 %v849_v17, %v849_v17  ;;  %v1266_v56 = vmul.f32 %v11675_v48, %v1230_v5  ;;  %v1137_v41 = vsub.f32 %v11659_v47, %v849_v17 }
 0x346   :  { %v971_v49 = vpop.xlane.xlu0 %970  ;;  %v1299_v44 = vadd.f32 %v11683_v24, %v1263_v51 }
 0x347   :  { %10022 = vrsqrt.f32 %v1167_v14  ;;  %v1009_v4 = vmul.f32 0.015625, %v971_v49  ;;  %v1302_v20 = vadd.f32 %v11683_v24, %v1266_v56 }
 0x348   :  { %v1320_v9 = vpack.c.bf16 %v1300_v7, %v1299_v44  ;;  %10024 = vrsqrt.f32 %v1170_v25 }
 0x349   :  { %v10019_v30 = vpop.eup %10018  ;;  %v1073_v39 = vsub.f32 %v1009_v4, %v1041_v32 }
 0x34a   :  { %9193 = vmatmul.mubr.msk.bf16.gmra.mrb[48].mxu0 %vm723_vm2, %v1320_v9  ;;  %v1229_v58 = vmul.f32 %v10019_v30, %v1133_v15  ;;  %v10021_v46 = vpop.eup %10020 }
 0x34b   :  { %v1105_v35 = vmax.f32 %v1073_v39, 0.0  ;;  %1573 = vmatprep.mubr.bf16.mxu0 %v16602_v18  ;;  %v1232_v38 = vmul.f32 %v10021_v46, %v1136_v42 }
 0x34c   :  { %v1265_v57 = vmul.f32 %v11675_v48, %v1229_v58 }
 0x34d   :  { %v1169_v22 = vadd.f32 1e-05, %v1105_v35  ;;  %v1268_v2 = vmul.f32 %v11675_v48, %v1232_v38 }
 0x34e   :  { %v1301_v8 = vadd.f32 %v11683_v24, %v1265_v57 }
 0x34f   :  { %10026 = vrsqrt.f32 %v1169_v22  ;;  %v1304_v54 = vadd.f32 %v11683_v24, %v1268_v2 }
 0x350   :  { %v1321_v61 = vpack.c.bf16 %v1302_v20, %v1301_v8 }
 0x351   :  { %v10023_v37 = vpop.eup %10022 }
 0x352   :  { %9194 = vmatmul.mubr.msk.bf16.gmra.mrb[52].mxu0 %vm723_vm2, %v1321_v61  ;;  %v1231_v34 = vmul.f32 %v10023_v37, %v1135_v31  ;;  %v10025_v26 = vpop.eup %10024 }
 0x353   :  { %1583 = vmatprep.mubr.bf16.mxu0 %v16602_v18  ;;  %v819_v40 = vpop.xlane.xlu1 %818  ;;  %v1234_v59 = vmul.f32 %v10025_v26, %v1138_v13 }
 0x354   :  { %v1267_v3 = vmul.f32 %v11675_v48, %v1231_v34  ;;  %v852_v36 = vmul.f32 0.015625, %v819_v40 }
 0x355   :  { %v1270_v53 = vmul.f32 %v11675_v48, %v1234_v59 }
 0x356   :  { %v1303_v29 = vadd.f32 %v11683_v24, %v1267_v3  ;;  %v1044_v47 = vmul.f32 %v852_v36, %v852_v36  ;;  %v1140_v7 = vsub.f32 %v11704_v16, %v852_v36 }
 0x357   :  { %v980_v6 = vpop.xlane.xlu1 %979  ;;  %v1306_v52 = vadd.f32 %v11683_v24, %v1270_v53 }
 0x358   :  { %v1322_v45 = vpack.c.bf16 %v1304_v54, %v1303_v29  ;;  %v1012_v55 = vmul.f32 0.015625, %v980_v6 }
 0x359   :  { %v10027_v50 = vpop.eup %10026 }
 0x35a   :  { %9195 = vmatmul.mubr.msk.bf16.gmra.mrb[56].mxu0 %vm723_vm2, %v1322_v45  ;;  %v1233_v0 = vmul.f32 %v10027_v50, %v1137_v41  ;;  %v1076_v21 = vsub.f32 %v1012_v55, %v1044_v47 }
 0x35b   :  { %1593 = vmatprep.mubr.bf16.mxu0 %v16602_v18 }
 0x35c   :  { %v1269_v1 = vmul.f32 %v11675_v48, %v1233_v0  ;;  %v1108_v33 = vmax.f32 %v1076_v21, 0.0 }
 0x35e   :  { %v1305_v43 = vadd.f32 %v11683_v24, %v1269_v1  ;;  %v1172_v27 = vadd.f32 1e-05, %v1108_v33 }
 0x360   :  { %v1323_v10 = vpack.c.bf16 %v1306_v52, %v1305_v43  ;;  %10028 = vrsqrt.f32 %v1172_v27 }
 0x362   :  { %9196 = vmatmul.mubr.msk.bf16.gmra.mrb[60].mxu0 %vm723_vm2, %v1323_v10 }
 0x363   :  { %1603 = vmatprep.mubr.bf16.mxu0 %v16602_v18 }
 0x368   :  { %v816_v63 = vpop.xlane.xlu0 %815 }
 0x369   :  { %v851_v62 = vmul.f32 0.015625, %v816_v63 }
 0x36a   :  { %v10029_v44 = vpop.eup %10028 }
 0x36b   :  { %v1043_v60 = vmul.f32 %v851_v62, %v851_v62  ;;  %v1236_v5 = vmul.f32 %v10029_v44, %v1140_v7  ;;  %v1139_v32 = vsub.f32 %v11723_v19, %v851_v62 }
 0x36c   :  { %v977_v17 = vpop.xlane.xlu0 %976 }
 0x36d   :  { %v1011_v51 = vmul.f32 0.015625, %v977_v17  ;;  %v1272_v9 = vmul.f32 %v11675_v48, %v1236_v5 }
 0x36f   :  { %v1075_v25 = vsub.f32 %v1011_v51, %v1043_v60  ;;  %v1308_v58 = vadd.f32 %v11683_v24, %v1272_v9 }
 0x371   :  { %v1107_v14 = vmax.f32 %v1075_v25, 0.0 }
 0x373   :  { %v1171_v49 = vadd.f32 1e-05, %v1107_v14 }
 0x375   :  { %10030 = vrsqrt.f32 %v1171_v49 }
 0x37f   :  { %v10031_v4 = vpop.eup %10030 }
 0x380   :  { %v1235_v15 = vmul.f32 %v10031_v4, %v1139_v32 }
 0x382   :  { %v1271_v30 = vmul.f32 %v11675_v48, %v1235_v15  ;;  %v11944_v48 = vld [vmem:[%s16593_s24] sm:$0xff]  }
 0x384   :  { %v1307_v39 = vadd.f32 %v11683_v24, %v1271_v30 }
 0x386   :  { %v1324_v56 = vpack.c.bf16 %v1308_v58, %v1307_v39 }
 0x388   :  { %9197 = vmatmul.mubr.msk.bf16.gmra.mrb[64].mxu0 %vm723_vm2, %v1324_v56  ;;  %v11973_v56 = vld [vmem:[%s16593_s24 + $0x8] sm:$0xff]  }
 0x394   :  { %v1455_v46 = vpop.f32.mrb[4].mxu0 }
 0x395   :  { %v1457_v35 = vpop.f32.mrb[5].mxu0 }
 0x396   :  { %v1459_v42 = vpop.f32.mrb[6].mxu0 }
 0x397   :  { %v1614_v16 = vpack.c.bf16 %v1459_v42, %v1455_v46  ;;  %v1461_v57 = vpop.f32.mrb[7].mxu0 }
 0x398   :  { %v1615_v22 = vpack.c.bf16 %v1461_v57, %v1457_v35 }
 0x39a   :  { %1646 = vmatprep.subr.bf16.mxu1 %v1615_v22 }
 0x39b   :  { %1647 = vmatpush1.bf16.msra.mxu1 %v1614_v16 }
 0x39c   :  { %v1465_v19 = vpop.f32.mrb[8].mxu0 }
 0x39d   :  { %v1467_v8 = vpop.f32.mrb[9].mxu0 }
 0x39e   :  { %v1469_v20 = vpop.f32.mrb[10].mxu0  ;;  %9198 = vmatmul.mubr.msk.bf16.vlgmr.msra.gmra.mrb[4].mxu1 %vm127_vm1, %v11944_v48 }
 0x39f   :  { %v1616_v24 = vpack.c.bf16 %v1469_v20, %v1465_v19  ;;  %v1471_v38 = vpop.f32.mrb[11].mxu0  ;;  %1721 = vmatprep.mubr.bf16.mxu1 %v16602_v18 }
 0x3a0   :  { %v1617_v31 = vpack.c.bf16 %v1471_v38, %v1467_v8 }
 0x3a2   :  { %1689 = vmatprep.subr.bf16.mxu1 %v1617_v31 }
 0x3a3   :  { %1690 = vmatpush1.bf16.msra.mxu1 %v1616_v24 }
 0x3a4   :  { %v1475_v61 = vpop.f32.mrb[12].mxu0 }
 0x3a5   :  { %v1477_v37 = vpop.f32.mrb[13].mxu0 }
 0x3a6   :  { %v1479_v34 = vpop.f32.mrb[14].mxu0  ;;  %9199 = vmatmul.mubr.msk.bf16.vlgmr.msra.gmra.mrb[8].mxu1 %vm127_vm1, %v11944_v48 }
 0x3a7   :  { %v1618_v2 = vpack.c.bf16 %v1479_v34, %v1475_v61  ;;  %v1481_v26 = vpop.f32.mrb[15].mxu0  ;;  %1764 = vmatprep.mubr.bf16.mxu1 %v16602_v18 }
 0x3a8   :  { %v1619_v13 = vpack.c.bf16 %v1481_v26, %v1477_v37 }
 0x3aa   :  { %1732 = vmatprep.subr.bf16.mxu1 %v1619_v13 }
 0x3ab   :  { %1733 = vmatpush1.bf16.msra.mxu1 %v1618_v2 }
 0x3ae   :  { %9200 = vmatmul.mubr.msk.bf16.vlgmr.msra.gmra.mrb[12].mxu1 %vm127_vm1, %v11944_v48 }
 0x3af   :  { %1807 = vmatprep.mubr.bf16.mxu1 %v16602_v18 }
 0x3dd   :  { %v1485_v3 = vpop.f32.mrb[16].mxu0 }
 0x3de   :  { %v1487_v40 = vpop.f32.mrb[17].mxu0 }
 0x3df   :  { %v1489_v29 = vpop.f32.mrb[18].mxu0 }
 0x3e0   :  { %v1620_v54 = vpack.c.bf16 %v1489_v29, %v1485_v3  ;;  %v1491_v59 = vpop.f32.mrb[19].mxu0 }
 0x3e1   :  { %v1621_v41 = vpack.c.bf16 %v1491_v59, %v1487_v40 }
 0x3e3   :  { %1775 = vmatprep.subr.bf16.mxu1 %v1621_v41 }
 0x3e4   :  { %1776 = vmatpush1.bf16.msra.mxu1 %v1620_v54 }
 0x3e5   :  { %v1495_v45 = vpop.f32.mrb[20].mxu0 }
 0x3e6   :  { %v1497_v50 = vpop.f32.mrb[21].mxu0 }
 0x3e7   :  { %v1499_v0 = vpop.f32.mrb[22].mxu0  ;;  %9201 = vmatmul.mubr.msk.bf16.vlgmr.msra.gmra.mrb[16].mxu1 %vm127_vm1, %v11944_v48 }
 0x3e8   :  { %v1622_v53 = vpack.c.bf16 %v1499_v0, %v1495_v45  ;;  %v1501_v6 = vpop.f32.mrb[23].mxu0  ;;  %1850 = vmatprep.mubr.bf16.mxu1 %v16602_v18 }
 0x3e9   :  { %v1623_v1 = vpack.c.bf16 %v1501_v6, %v1497_v50 }
 0x3eb   :  { %1818 = vmatprep.subr.bf16.mxu1 %v1623_v1 }
 0x3ec   :  { %1819 = vmatpush1.bf16.msra.mxu1 %v1622_v53 }
 0x3ed   :  { %v1505_v36 = vpop.f32.mrb[24].mxu0 }
 0x3ee   :  { %v1507_v43 = vpop.f32.mrb[25].mxu0 }
 0x3ef   :  { %v1509_v52 = vpop.f32.mrb[26].mxu0  ;;  %9202 = vmatmul.mubr.msk.bf16.vlgmr.msra.gmra.mrb[20].mxu1 %vm127_vm1, %v11944_v48 }
 0x3f0   :  { %v1624_v55 = vpack.c.bf16 %v1509_v52, %v1505_v36  ;;  %v1511_v10 = vpop.f32.mrb[27].mxu0  ;;  %1893 = vmatprep.mubr.bf16.mxu1 %v16602_v18 }
 0x3f1   :  { %v1625_v47 = vpack.c.bf16 %v1511_v10, %v1507_v43 }
 0x3f3   :  { %1861 = vmatprep.subr.bf16.mxu1 %v1625_v47 }
 0x3f4   :  { %1862 = vmatpush1.bf16.msra.mxu1 %v1624_v55 }
 0x3f5   :  { %v1515_v21 = vpop.f32.mrb[28].mxu0 }
 0x3f6   :  { %v1517_v33 = vpop.f32.mrb[29].mxu0 }
 0x3f7   :  { %v1519_v63 = vpop.f32.mrb[30].mxu0  ;;  %9203 = vmatmul.mubr.msk.bf16.vlgmr.msra.gmra.mrb[24].mxu1 %vm127_vm1, %v11944_v48 }
 0x3f8   :  { %v1626_v62 = vpack.c.bf16 %v1519_v63, %v1515_v21  ;;  %v1521_v27 = vpop.f32.mrb[31].mxu0  ;;  %1936 = vmatprep.mubr.bf16.mxu1 %v16602_v18  ;;  %v2334_v63 = vld [vmem:[%s16303_s5] sm:$0x77] }
 0x3f9   :  { %v1627_v17 = vpack.c.bf16 %v1521_v27, %v1517_v33  ;;  %v2343_v27 = vrot.slane %v2334_v63, %v11205_v23 }
 0x3fb   :  { %1904 = vmatprep.subr.bf16.mxu1 %v1627_v17 }
 0x3fc   :  { %1905 = vmatpush1.bf16.msra.mxu1 %v1626_v62  ;;  %v2339_v62 = vrot.slane %v2334_v63, %v11195_v12 }
 0x3fd   :  { %v1525_v60 = vpop.f32.mrb[32].mxu0 }
 0x3fe   :  { %v1527_v51 = vpop.f32.mrb[33].mxu0  ;;  %v12004_v17 = vrot.slane %v2339_v62, %v11195_v12  ;;  %v9707_v62 = vld [vmem:[#allocation3 + $0x24] ss:$16 sps:$4 sm:$0xff]  }
 0x3ff   :  { %v1529_v25 = vpop.f32.mrb[34].mxu0  ;;  %9204 = vmatmul.mubr.msk.bf16.vlgmr.msra.gmra.mrb[28].mxu1 %vm127_vm1, %v11944_v48 }
 0x400   :  { %v1628_v14 = vpack.c.bf16 %v1529_v25, %v1525_v60  ;;  %v1531_v49 = vpop.f32.mrb[35].mxu0  ;;  %1979 = vmatprep.mubr.bf16.mxu1 %v16602_v18  ;;  %v12007_v60 = vrot.slane %v2343_v27, %v11195_v12  ;;  %v9710_v27 = vld [vmem:[#allocation3 + $0x2c] ss:$16 sps:$4 sm:$0xff]  }
 0x401   :  { %v1629_v44 = vpack.c.bf16 %v1531_v49, %v1527_v51 }
 0x403   :  { %1947 = vmatprep.subr.bf16.mxu1 %v1629_v44 }
 0x404   :  { %1948 = vmatpush1.bf16.msra.mxu1 %v1628_v14 }
 0x405   :  { %v1535_v7 = vpop.f32.mrb[36].mxu0 }
 0x406   :  { %v1537_v5 = vpop.f32.mrb[37].mxu0 }
 0x407   :  { %v1539_v32 = vpop.f32.mrb[38].mxu0  ;;  %9205 = vmatmul.mubr.msk.bf16.vlgmr.msra.gmra.mrb[32].mxu1 %vm127_vm1, %v11944_v48 }
 0x408   :  { %v1630_v4 = vpack.c.bf16 %v1539_v32, %v1535_v7  ;;  %v1541_v15 = vpop.f32.mrb[39].mxu0  ;;  %2022 = vmatprep.mubr.bf16.mxu1 %v16602_v18 }
 0x409   :  { %v1631_v9 = vpack.c.bf16 %v1541_v15, %v1537_v5 }
 0x40b   :  { %1990 = vmatprep.subr.bf16.mxu1 %v1631_v9 }
 0x40c   :  { %1991 = vmatpush1.bf16.msra.mxu1 %v1630_v4 }
 0x40d   :  { %v1545_v30 = vpop.f32.mrb[40].mxu0 }
 0x40e   :  { %v1547_v39 = vpop.f32.mrb[41].mxu0 }
 0x40f   :  { %v1549_v58 = vpop.f32.mrb[42].mxu0  ;;  %9206 = vmatmul.mubr.msk.bf16.vlgmr.msra.gmra.mrb[36].mxu1 %vm127_vm1, %v11973_v56 }
 0x410   :  { %v1632_v46 = vpack.c.bf16 %v1549_v58, %v1545_v30  ;;  %v1551_v35 = vpop.f32.mrb[43].mxu0  ;;  %2065 = vmatprep.mubr.bf16.mxu1 %v16602_v18 }
 0x411   :  { %v1633_v42 = vpack.c.bf16 %v1551_v35, %v1547_v39 }
 0x413   :  { %2033 = vmatprep.subr.bf16.mxu1 %v1633_v42 }
 0x414   :  { %2034 = vmatpush1.bf16.msra.mxu1 %v1632_v46 }
 0x415   :  { %v1555_v16 = vpop.f32.mrb[44].mxu0 }
 0x416   :  { %v1557_v57 = vpop.f32.mrb[45].mxu0 }
 0x417   :  { %v1559_v22 = vpop.f32.mrb[46].mxu0  ;;  %9207 = vmatmul.mubr.msk.bf16.vlgmr.msra.gmra.mrb[40].mxu1 %vm127_vm1, %v11973_v56 }
 0x418   :  { %v1634_v19 = vpack.c.bf16 %v1559_v22, %v1555_v16  ;;  %v1561_v8 = vpop.f32.mrb[47].mxu0  ;;  %2108 = vmatprep.mubr.bf16.mxu1 %v16602_v18 }
 0x419   :  { %v1635_v20 = vpack.c.bf16 %v1561_v8, %v1557_v57 }
 0x41b   :  { %2076 = vmatprep.subr.bf16.mxu1 %v1635_v20 }
 0x41c   :  { %2077 = vmatpush1.bf16.msra.mxu1 %v1634_v19 }
 0x41d   :  { %v1565_v48 = vpop.f32.mrb[48].mxu0 }
 0x41e   :  { %v1567_v24 = vpop.f32.mrb[49].mxu0 }
 0x41f   :  { %v1569_v38 = vpop.f32.mrb[50].mxu0  ;;  %9208 = vmatmul.mubr.msk.bf16.vlgmr.msra.gmra.mrb[44].mxu1 %vm127_vm1, %v11973_v56 }
 0x420   :  { %v1636_v31 = vpack.c.bf16 %v1569_v38, %v1565_v48  ;;  %v1571_v61 = vpop.f32.mrb[51].mxu0  ;;  %2151 = vmatprep.mubr.bf16.mxu1 %v16602_v18 }
 0x421   :  { %v1637_v37 = vpack.c.bf16 %v1571_v61, %v1567_v24 }
 0x423   :  { %2119 = vmatprep.subr.bf16.mxu1 %v1637_v37 }
 0x424   :  { %2120 = vmatpush1.bf16.msra.mxu1 %v1636_v31 }
 0x425   :  { %v1575_v34 = vpop.f32.mrb[52].mxu0 }
 0x426   :  { %v1577_v2 = vpop.f32.mrb[53].mxu0 }
 0x427   :  { %v1579_v26 = vpop.f32.mrb[54].mxu0  ;;  %9209 = vmatmul.mubr.msk.bf16.vlgmr.msra.gmra.mrb[48].mxu1 %vm127_vm1, %v11973_v56 }
 0x428   :  { %v1638_v13 = vpack.c.bf16 %v1579_v26, %v1575_v34  ;;  %v1581_v3 = vpop.f32.mrb[55].mxu0  ;;  %2194 = vmatprep.mubr.bf16.mxu1 %v16602_v18 }
 0x429   :  { %v1639_v40 = vpack.c.bf16 %v1581_v3, %v1577_v2 }
 0x42b   :  { %2162 = vmatprep.subr.bf16.mxu1 %v1639_v40 }
 0x42c   :  { %2163 = vmatpush1.bf16.msra.mxu1 %v1638_v13 }
 0x42d   :  { %v1585_v29 = vpop.f32.mrb[56].mxu0 }
 0x42e   :  { %v1587_v54 = vpop.f32.mrb[57].mxu0 }
 0x42f   :  { %v1589_v59 = vpop.f32.mrb[58].mxu0  ;;  %9210 = vmatmul.mubr.msk.bf16.vlgmr.msra.gmra.mrb[52].mxu1 %vm127_vm1, %v11973_v56 }
 0x430   :  { %v1640_v41 = vpack.c.bf16 %v1589_v59, %v1585_v29  ;;  %v1591_v45 = vpop.f32.mrb[59].mxu0  ;;  %2237 = vmatprep.mubr.bf16.mxu1 %v16602_v18 }
 0x431   :  { %v1641_v50 = vpack.c.bf16 %v1591_v45, %v1587_v54 }
 0x433   :  { %2205 = vmatprep.subr.bf16.mxu1 %v1641_v50 }
 0x434   :  { %2206 = vmatpush1.bf16.msra.mxu1 %v1640_v41 }
 0x435   :  { %v1595_v0 = vpop.f32.mrb[60].mxu0 }
 0x436   :  { %v1597_v53 = vpop.f32.mrb[61].mxu0 }
 0x437   :  { %v1599_v6 = vpop.f32.mrb[62].mxu0  ;;  %9211 = vmatmul.mubr.msk.bf16.vlgmr.msra.gmra.mrb[56].mxu1 %vm127_vm1, %v11973_v56 }
 0x438   :  { %v1642_v1 = vpack.c.bf16 %v1599_v6, %v1595_v0  ;;  %v1601_v36 = vpop.f32.mrb[63].mxu0  ;;  %2280 = vmatprep.mubr.bf16.mxu1 %v16602_v18  ;;  %v9701_v6 = vld [vmem:[#allocation3 + $0x4] ss:$16 sps:$4 sm:$0xff]  }
 0x439   :  { %v1643_v43 = vpack.c.bf16 %v1601_v36, %v1597_v53  ;;  %4055 = vmatprep.subr.bf16.mxu0 %v9701_v6 }
 0x43b   :  { %2248 = vmatprep.subr.bf16.mxu1 %v1643_v43  ;;  %v9699_v43 = vld [vmem:[#allocation3] ss:$16 sps:$4 sm:$0xff]  }
 0x43c   :  { %2249 = vmatpush1.bf16.msra.mxu1 %v1642_v1  ;;  %v9704_v1 = vld [vmem:[#allocation3 + $0xc] ss:$16 sps:$4 sm:$0xff]   ;;  %4056 = vmatpush1.bf16.msra.mxu0 %v9699_v43 }
 0x43d   :  { %4057 = vmatprep.subr.bf16.mxu0 %v9707_v62 }
 0x43f   :  { %9212 = vmatmul.mubr.msk.bf16.vlgmr.msra.gmra.mrb[60].mxu1 %vm127_vm1, %v11973_v56 }
 0x440   :  { %2323 = vmatprep.mubr.bf16.mxu1 %v16602_v18 }
 0x45b   :  { %v1605_v52 = vpop.f32.mrb[64].mxu0 }
 0x45c   :  { %v1607_v55 = vpop.f32.mrb[65].mxu0 }
 0x45d   :  { %v1609_v10 = vpop.f32.mrb[66].mxu0 }
 0x45e   :  { %v1644_v47 = vpack.c.bf16 %v1609_v10, %v1605_v52  ;;  %v1611_v21 = vpop.f32.mrb[67].mxu0  ;;  %v9702_v52 = vld [vmem:[#allocation3 + $0x8] ss:$16 sps:$4 sm:$0xff]  }
 0x45f   :  { %v1645_v33 = vpack.c.bf16 %v1611_v21, %v1607_v55 }
 0x461   :  { %2291 = vmatprep.subr.bf16.mxu1 %v1645_v33 }
 0x462   :  { %2292 = vmatpush1.bf16.msra.mxu1 %v1644_v47 }
 0x463   :  { %4248 = vmatprep.subr.bf16.mxu1 %v9704_v1 }
 0x465   :  { %9213 = vmatmul.mubr.msk.bf16.vlgmr.msra.gmra.mrb[64].mxu1 %vm127_vm1, %v11973_v56 }
 0x466   :  { %4249 = vmatpush1.bf16.msra.mxu1 %v9702_v52  ;;  %v9725_v52 = vld [vmem:[#allocation3 + $0x84] ss:$16 sps:$4 sm:$0xff]  }
 0x467   :  { %4250 = vmatprep.subr.bf16.mxu1 %v9710_v27 }
 0x471   :  { %v1680_v51 = vpop.f32.mrb[4].mxu1 }
 0x472   :  { %v12010_v25 = vadd.f32 %v12004_v17, %v1680_v51  ;;  %v1682_v14 = vpop.f32.mrb[5].mxu1 }
 0x473   :  { %v12013_v49 = vadd.f32 %v12007_v60, %v1682_v14  ;;  %v1684_v44 = vpop.f32.mrb[6].mxu1  ;;  %v9705_v14 = vld [vmem:[#allocation3 + $0x20] ss:$16 sps:$4 sm:$0xff]  }
 0x474   :  { %v9214_v7 = vmul.f32 -1.442695, %v12010_v25  ;;  %v12017_v5 = vadd.f32 %v12004_v17, %v1684_v44  ;;  %v1686_v32 = vpop.f32.mrb[7].mxu1  ;;  %v9708_v44 = vld [vmem:[#allocation3 + $0x28] ss:$16 sps:$4 sm:$0xff]   ;;  %4058 = vmatpush1.bf16.msra.mxu0 %v9705_v14 }
 0x475   :  { %v9215_v4 = vmul.f32 -1.442695, %v12013_v49  ;;  %v12021_v15 = vadd.f32 %v12007_v60, %v1686_v32  ;;  %4251 = vmatpush1.bf16.msra.mxu1 %v9708_v44  ;;  %v9731_v14 = vld [vmem:[#allocation3 + $0xa4] ss:$16 sps:$4 sm:$0xff]   ;;  %v9734_v44 = vld [vmem:[#allocation3 + $0xac] ss:$16 sps:$4 sm:$0xff]  }
 0x476   :  { %10032 = vpow2.f32 %v9214_v7  ;;  %v9216_v9 = vmul.f32 -1.442695, %v12017_v5 }
 0x477   :  { %10034 = vpow2.f32 %v9215_v4  ;;  %v9217_v30 = vmul.f32 -1.442695, %v12021_v15 }
 0x478   :  { %10036 = vpow2.f32 %v9216_v9 }
 0x479   :  { %10038 = vpow2.f32 %v9217_v30  ;;  %v1723_v39 = vpop.f32.mrb[8].mxu1 }
 0x47a   :  { %v12026_v58 = vadd.f32 %v12004_v17, %v1723_v39  ;;  %v1725_v56 = vpop.f32.mrb[9].mxu1  ;;  %v9713_v39 = vld [vmem:[#allocation3 + $0x44] ss:$16 sps:$4 sm:$0xff]  }
 0x47b   :  { %v12029_v46 = vadd.f32 %v12007_v60, %v1725_v56  ;;  %v1727_v35 = vpop.f32.mrb[10].mxu1  ;;  %v9716_v56 = vld [vmem:[#allocation3 + $0x4c] ss:$16 sps:$4 sm:$0xff]   ;;  %4059 = vmatprep.subr.bf16.mxu0 %v9713_v39 }
 0x47c   :  { %v9218_v42 = vmul.f32 -1.442695, %v12026_v58  ;;  %v12033_v16 = vadd.f32 %v12004_v17, %v1727_v35  ;;  %v1729_v57 = vpop.f32.mrb[11].mxu1  ;;  %4252 = vmatprep.subr.bf16.mxu1 %v9716_v56 }
 0x47d   :  { %v9219_v22 = vmul.f32 -1.442695, %v12029_v46  ;;  %v12037_v19 = vadd.f32 %v12007_v60, %v1729_v57 }
 0x47e   :  { %10040 = vpow2.f32 %v9218_v42  ;;  %v9220_v8 = vmul.f32 -1.442695, %v12033_v16 }
 0x47f   :  { %10042 = vpow2.f32 %v9219_v22  ;;  %v9221_v20 = vmul.f32 -1.442695, %v12037_v19  ;;  %v9711_v22 = vld [vmem:[#allocation3 + $0x40] ss:$16 sps:$4 sm:$0xff]  }
 0x480   :  { %v10033_v48 = vpop.eup %10032  ;;  %10044 = vpow2.f32 %v9220_v8  ;;  %v9714_v8 = vld [vmem:[#allocation3 + $0x48] ss:$16 sps:$4 sm:$0xff]   ;;  %4060 = vmatpush1.bf16.msra.mxu0 %v9711_v22  ;;  %v9740_v22 = vld [vmem:[#allocation3 + $0xcc] ss:$16 sps:$4 sm:$0xff]  }
 0x481   :  { %v10035_v24 = vpop.eup %10034  ;;  %v2610_v38 = vadd.f32 1.0, %v10033_v48  ;;  %10046 = vpow2.f32 %v9221_v20  ;;  %v1766_v31 = vpop.f32.mrb[12].mxu1  ;;  %4253 = vmatpush1.bf16.msra.mxu1 %v9714_v8 }
 0x482   :  { %v10037_v61 = vpop.eup %10036  ;;  %v2611_v37 = vadd.f32 1.0, %v10035_v24  ;;  %v12042_v34 = vadd.f32 %v12004_v17, %v1766_v31  ;;  %v1768_v2 = vpop.f32.mrb[13].mxu1 }
 0x483   :  { %v10039_v26 = vpop.eup %10038  ;;  %10048 = vrcp.f32 %v2610_v38  ;;  %v2612_v13 = vadd.f32 1.0, %v10037_v61  ;;  %v12045_v3 = vadd.f32 %v12007_v60, %v1768_v2  ;;  %v1770_v40 = vpop.f32.mrb[14].mxu1 }
 0x484   :  { %10050 = vrcp.f32 %v2611_v37  ;;  %v2613_v29 = vadd.f32 1.0, %v10039_v26  ;;  %v9222_v54 = vmul.f32 -1.442695, %v12042_v34  ;;  %v12049_v59 = vadd.f32 %v12004_v17, %v1770_v40  ;;  %v1772_v41 = vpop.f32.mrb[15].mxu1  ;;  %v9719_v26 = vld [vmem:[#allocation3 + $0x64] ss:$16 sps:$4 sm:$0xff]  }
 0x485   :  { %10052 = vrcp.f32 %v2612_v13  ;;  %v9223_v45 = vmul.f32 -1.442695, %v12045_v3  ;;  %v12053_v50 = vadd.f32 %v12007_v60, %v1772_v41  ;;  %v9722_v13 = vld [vmem:[#allocation3 + $0x6c] ss:$16 sps:$4 sm:$0xff]   ;;  %v9720_v41 = vld [vmem:[#allocation3 + $0x68] ss:$16 sps:$4 sm:$0xff]   ;;  %4061 = vmatprep.subr.bf16.mxu0 %v9719_v26 }
 0x486   :  { %10054 = vrcp.f32 %v2613_v29  ;;  %v9224_v0 = vmul.f32 -1.442695, %v12049_v59  ;;  %4254 = vmatprep.subr.bf16.mxu1 %v9722_v13  ;;  %v9741_v26 = vld [vmem:[#allocation3 + $0xe0] ss:$16 sps:$4 sm:$0xff]   ;;  %v9744_v13 = vld [vmem:[#allocation3 + $0xe8] ss:$16 sps:$4 sm:$0xff]  }
 0x487   :  { %10056 = vpow2.f32 %v9222_v54  ;;  %v9225_v53 = vmul.f32 -1.442695, %v12053_v50  ;;  %v9717_v54 = vld [vmem:[#allocation3 + $0x60] ss:$16 sps:$4 sm:$0xff]   ;;  %4255 = vmatpush1.bf16.msra.mxu1 %v9720_v41 }
 0x488   :  { %v10041_v36 = vpop.eup %10040  ;;  %10058 = vpow2.f32 %v9223_v45  ;;  %4062 = vmatpush1.bf16.msra.mxu0 %v9717_v54  ;;  %v9752_v54 = vld [vmem:[#allocation3 + $0x10c] ss:$16 sps:$4 sm:$0xff]   ;;  %v9747_v41 = vld [vmem:[#allocation3 + $0x100] ss:$16 sps:$4 sm:$0xff]  }
 0x489   :  { %v10043_v55 = vpop.eup %10042  ;;  %v2614_v10 = vadd.f32 1.0, %v10041_v36  ;;  %10060 = vpow2.f32 %v9224_v0  ;;  %4063 = vmatprep.subr.bf16.mxu0 %v9725_v52  ;;  %v9761_v52 = vld [vmem:[#allocation3 + $0x144] ss:$16 sps:$4 sm:$0xff]  }
 0x48a   :  { %v10045_v47 = vpop.eup %10044  ;;  %v2615_v21 = vadd.f32 1.0, %v10043_v55  ;;  %10062 = vpow2.f32 %v9225_v53  ;;  %v9728_v55 = vld [vmem:[#allocation3 + $0x8c] ss:$16 sps:$4 sm:$0xff]  }
 0x48b   :  { %v10047_v33 = vpop.eup %10046  ;;  %10064 = vrcp.f32 %v2614_v10  ;;  %v2616_v63 = vadd.f32 1.0, %v10045_v47  ;;  %4256 = vmatprep.subr.bf16.mxu1 %v9728_v55  ;;  %v9764_v55 = vld [vmem:[#allocation3 + $0x14c] ss:$16 sps:$4 sm:$0xff]  }
 0x48c   :  { %10066 = vrcp.f32 %v2615_v21  ;;  %v2617_v51 = vadd.f32 1.0, %v10047_v33  ;;  %v9723_v21 = vld [vmem:[#allocation3 + $0x80] ss:$16 sps:$4 sm:$0xff]   ;;  %v9726_v33 = vld [vmem:[#allocation3 + $0x88] ss:$16 sps:$4 sm:$0xff]  }
 0x48d   :  { %v10049_v7 = vpop.eup %10048  ;;  %10068 = vrcp.f32 %v2616_v63  ;;  %4064 = vmatpush1.bf16.msra.mxu0 %v9723_v21  ;;  %4257 = vmatpush1.bf16.msra.mxu1 %v9726_v33  ;;  %v9767_v21 = vld [vmem:[#allocation3 + $0x164] ss:$16 sps:$4 sm:$0xff]   ;;  %v9770_v33 = vld [vmem:[#allocation3 + $0x16c] ss:$16 sps:$4 sm:$0xff]  }
 0x48e   :  { %v10051_v32 = vpop.eup %10050  ;;  %v12058_v4 = vmul.f32 %v10049_v7, %v12010_v25  ;;  %10070 = vrcp.f32 %v2617_v51  ;;  %v9729_v7 = vld [vmem:[#allocation3 + $0xa0] ss:$16 sps:$4 sm:$0xff]   ;;  %4065 = vmatprep.subr.bf16.mxu0 %v9731_v14  ;;  %4258 = vmatprep.subr.bf16.mxu1 %v9734_v44  ;;  %v9774_v44 = vld [vmem:[#allocation3 + $0x188] ss:$16 sps:$4 sm:$0xff]  }
 0x48f   :  { %v10053_v9 = vpop.eup %10052  ;;  %v12061_v30 = vmul.f32 %v10051_v32, %v12013_v49  ;;  %v9732_v32 = vld [vmem:[#allocation3 + $0xa8] ss:$16 sps:$4 sm:$0xff]  }
 0x490   :  { %v10055_v35 = vpop.eup %10054  ;;  %v12064_v42 = vmul.f32 %v10053_v9, %v12017_v5  ;;  %v2995_v57 = vmul.f32 %v12058_v4, %v12058_v4 }
 0x491   :  { %v10057_v25 = vpop.eup %10056  ;;  %v12069_v20 = vmul.f32 %v10055_v35, %v12021_v15  ;;  %v2866_v48 = vadd.f32 %v12061_v30, %v12058_v4  ;;  %v2996_v49 = vmul.f32 %v12061_v30, %v12061_v30  ;;  %4066 = vmatpush1.bf16.msra.mxu0 %v9729_v7  ;;  %4259 = vmatpush1.bf16.msra.mxu1 %v9732_v32  ;;  %v9776_v7 = vld [vmem:[#allocation3 + $0x18c] ss:$16 sps:$4 sm:$0xff]  }
 0x492   :  { %v10059_v24 = vpop.eup %10058  ;;  %v2618_v5 = vadd.f32 1.0, %v10057_v25  ;;  %v2997_v38 = vmul.f32 %v12064_v42, %v12064_v42  ;;  %4260 = vmatprep.subr.bf16.mxu1 %v9740_v22 }
 0x493   :  { %v10061_v31 = vpop.eup %10060  ;;  %v2619_v61 = vadd.f32 1.0, %v10059_v24  ;;  %2867 = vadd.xlane.f32.xlu0 %v2866_v48  ;;  %v2869_v15 = vadd.f32 %v12069_v20, %v12064_v42  ;;  %v3059_v37 = vadd.f32 %v2996_v49, %v2995_v57  ;;  %v2998_v2 = vmul.f32 %v12069_v20, %v12069_v20  ;;  %v9737_v57 = vld [vmem:[#allocation3 + $0xc4] ss:$16 sps:$4 sm:$0xff]   ;;  %v9735_v48 = vld [vmem:[#allocation3 + $0xc0] ss:$16 sps:$4 sm:$0xff]  }
 0x494   :  { %v10063_v40 = vpop.eup %10062  ;;  %10072 = vrcp.f32 %v2618_v5  ;;  %v2620_v29 = vadd.f32 1.0, %v10061_v31  ;;  %v9738_v49 = vld [vmem:[#allocation3 + $0xc8] ss:$16 sps:$4 sm:$0xff]   ;;  %4067 = vmatprep.subr.bf16.mxu0 %v9737_v57 }
 0x495   :  { %v10065_v45 = vpop.eup %10064  ;;  %10074 = vrcp.f32 %v2619_v61  ;;  %v2621_v0 = vadd.f32 1.0, %v10063_v40  ;;  %2870 = vadd.xlane.f32.xlu1 %v2869_v15  ;;  %v3062_v53 = vadd.f32 %v2998_v2, %v2997_v38  ;;  %4068 = vmatpush1.bf16.msra.mxu0 %v9735_v48  ;;  %v9743_v61 = vld [vmem:[#allocation3 + $0xe4] ss:$16 sps:$4 sm:$0xff]   ;;  %v9746_v15 = vld [vmem:[#allocation3 + $0xec] ss:$16 sps:$4 sm:$0xff]  }
 0x496   :  { %v10067_v6 = vpop.eup %10066  ;;  %v12082_v1 = vmul.f32 %v10065_v45, %v12026_v58  ;;  %10076 = vrcp.f32 %v2620_v29  ;;  %4261 = vmatpush1.bf16.msra.mxu1 %v9738_v49  ;;  %4069 = vmatprep.subr.bf16.mxu0 %v9743_v61  ;;  %v9749_v29 = vld [vmem:[#allocation3 + $0x104] ss:$16 sps:$4 sm:$0xff]   ;;  %v9750_v45 = vld [vmem:[#allocation3 + $0x108] ss:$16 sps:$4 sm:$0xff]   ;;  %v9782_v49 = vld [vmem:[#allocation3 + $0x1ac] ss:$16 sps:$4 sm:$0xff]  }
 0x497   :  { %v10069_v36 = vpop.eup %10068  ;;  %v12085_v43 = vmul.f32 %v10067_v6, %v12029_v46  ;;  %10078 = vrcp.f32 %v2621_v0  ;;  %3060 = vadd.xlane.f32.xlu0 %v3059_v37  ;;  %4262 = vmatprep.subr.bf16.mxu1 %v9746_v15  ;;  %v9755_v0 = vld [vmem:[#allocation3 + $0x124] ss:$16 sps:$4 sm:$0xff]   ;;  %v9753_v6 = vld [vmem:[#allocation3 + $0x120] ss:$16 sps:$4 sm:$0xff]   ;;  %v9788_v15 = vld [vmem:[#allocation3 + $0x1cc] ss:$16 sps:$4 sm:$0xff]  }
 0x498   :  { %v10071_v10 = vpop.eup %10070  ;;  %v12088_v47 = vmul.f32 %v10069_v36, %v12033_v16  ;;  %v2999_v58 = vmul.f32 %v12082_v1, %v12082_v1  ;;  %v9756_v36 = vld [vmem:[#allocation3 + $0x128] ss:$16 sps:$4 sm:$0xff]   ;;  %v9779_v48 = vld [vmem:[#allocation3 + $0x1a4] ss:$16 sps:$4 sm:$0xff]  }
 0x499   :  { %v12093_v63 = vmul.f32 %v10071_v10, %v12037_v19  ;;  %3063 = vadd.xlane.f32.xlu1 %v3062_v53  ;;  %v2872_v46 = vadd.f32 %v12085_v43, %v12082_v1  ;;  %v3000_v62 = vmul.f32 %v12085_v43, %v12085_v43  ;;  %4070 = vmatpush1.bf16.msra.mxu0 %v9741_v26  ;;  %v9758_v53 = vld [vmem:[#allocation3 + $0x12c] ss:$16 sps:$4 sm:$0xff]   ;;  %v9759_v10 = vld [vmem:[#allocation3 + $0x140] ss:$16 sps:$4 sm:$0xff]   ;;  %v9785_v61 = vld [vmem:[#allocation3 + $0x1c4] ss:$16 sps:$4 sm:$0xff]  }
 0x49a   :  { %v3001_v16 = vmul.f32 %v12088_v47, %v12088_v47  ;;  %4263 = vmatpush1.bf16.msra.mxu1 %v9744_v13  ;;  %4071 = vmatprep.subr.bf16.mxu0 %v9749_v29  ;;  %v9786_v26 = vld [vmem:[#allocation3 + $0x1c8] ss:$16 sps:$4 sm:$0xff]  }
 0x49b   :  { %2873 = vadd.xlane.f32.xlu0 %v2872_v46  ;;  %v2875_v27 = vadd.f32 %v12093_v63, %v12088_v47  ;;  %v3065_v51 = vadd.f32 %v3000_v62, %v2999_v58  ;;  %v3002_v19 = vmul.f32 %v12093_v63, %v12093_v63  ;;  %4264 = vmatprep.subr.bf16.mxu1 %v9752_v54  ;;  %v9762_v58 = vld [vmem:[#allocation3 + $0x148] ss:$16 sps:$4 sm:$0xff]   ;;  %v9765_v46 = vld [vmem:[#allocation3 + $0x160] ss:$16 sps:$4 sm:$0xff]  }
 0x49c   :  { %v9768_v62 = vld [vmem:[#allocation3 + $0x168] ss:$16 sps:$4 sm:$0xff]  }
 0x49d   :  { %2876 = vadd.xlane.f32.xlu1 %v2875_v27  ;;  %v3068_v9 = vadd.f32 %v3002_v19, %v3001_v16  ;;  %4072 = vmatpush1.bf16.msra.mxu0 %v9747_v41  ;;  %v9771_v27 = vld [vmem:[#allocation3 + $0x180] ss:$16 sps:$4 sm:$0xff]  }
 0x49e   :  { %v10073_v39 = vpop.eup %10072  ;;  %4265 = vmatpush1.bf16.msra.mxu1 %v9750_v45  ;;  %4073 = vmatprep.subr.bf16.mxu0 %v9755_v0 }
 0x49f   :  { %v10075_v56 = vpop.eup %10074  ;;  %v12106_v35 = vmul.f32 %v10073_v39, %v12042_v34  ;;  %3066 = vadd.xlane.f32.xlu0 %v3065_v51  ;;  %4266 = vmatprep.subr.bf16.mxu1 %v9758_v53  ;;  %v9773_v51 = vld [vmem:[#allocation3 + $0x184] ss:$16 sps:$4 sm:$0xff]  }
 0x4a0   :  { %v10077_v8 = vpop.eup %10076  ;;  %v12109_v25 = vmul.f32 %v10075_v56, %v12045_v3  ;;  %v9791_v53 = vld [vmem:[#allocation3 + $0x1e4] ss:$16 sps:$4 sm:$0xff]  }
 0x4a1   :  { %v10079_v24 = vpop.eup %10078  ;;  %v12112_v5 = vmul.f32 %v10077_v8, %v12049_v59  ;;  %3069 = vadd.xlane.f32.xlu1 %v3068_v9  ;;  %v3003_v38 = vmul.f32 %v12106_v35, %v12106_v35  ;;  %4074 = vmatpush1.bf16.msra.mxu0 %v9753_v6  ;;  %v9794_v6 = vld [vmem:[#allocation3 + $0x1ec] ss:$16 sps:$4 sm:$0xff]  }
 0x4a2   :  { %v12117_v34 = vmul.f32 %v10079_v24, %v12053_v50  ;;  %v2878_v31 = vadd.f32 %v12109_v25, %v12106_v35  ;;  %v3004_v3 = vmul.f32 %v12109_v25, %v12109_v25  ;;  %4267 = vmatpush1.bf16.msra.mxu1 %v9756_v36  ;;  %4075 = vmatprep.subr.bf16.mxu0 %v9761_v52  ;;  %v9789_v52 = vld [vmem:[#allocation3 + $0x1e0] ss:$16 sps:$4 sm:$0xff]  }
 0x4a3   :  { %v3005_v59 = vmul.f32 %v12112_v5, %v12112_v5  ;;  %4268 = vmatprep.subr.bf16.mxu1 %v9764_v55  ;;  %v9792_v55 = vld [vmem:[#allocation3 + $0x1e8] ss:$16 sps:$4 sm:$0xff]  }
 0x4a4   :  { %2879 = vadd.xlane.f32.xlu0 %v2878_v31  ;;  %v2881_v37 = vadd.f32 %v12117_v34, %v12112_v5  ;;  %v3071_v50 = vadd.f32 %v3004_v3, %v3003_v38  ;;  %v3006_v2 = vmul.f32 %v12117_v34, %v12117_v34  ;;  %v9777_v38 = vld [vmem:[#allocation3 + $0x1a0] ss:$16 sps:$4 sm:$0xff]   ;;  %v9780_v31 = vld [vmem:[#allocation3 + $0x1a8] ss:$16 sps:$4 sm:$0xff]  }
 0x4a5   :  { %4076 = vmatpush1.bf16.msra.mxu0 %v9759_v10 }
 0x4a6   :  { %2882 = vadd.xlane.f32.xlu1 %v2881_v37  ;;  %v3074_v40 = vadd.f32 %v3006_v2, %v3005_v59  ;;  %4269 = vmatpush1.bf16.msra.mxu1 %v9762_v58  ;;  %v9783_v2 = vld [vmem:[#allocation3 + $0x1c0] ss:$16 sps:$4 sm:$0xff]  }
 0x4a7   :  { %4077 = vmatprep.subr.bf16.mxu0 %v9767_v21  ;;  %4270 = vmatprep.subr.bf16.mxu1 %v9770_v33 }
 0x4a8   :  { %3072 = vadd.xlane.f32.xlu0 %v3071_v50 }
 0x4a9   :  { %4078 = vmatpush1.bf16.msra.mxu0 %v9765_v46 }
 0x4aa   :  { %3075 = vadd.xlane.f32.xlu1 %v3074_v40  ;;  %4271 = vmatpush1.bf16.msra.mxu1 %v9768_v62 }
 0x4ab   :  { %4079 = vmatprep.subr.bf16.mxu0 %v9773_v51  ;;  %4272 = vmatprep.subr.bf16.mxu1 %v9776_v7 }
 0x4ad   :  { %4080 = vmatpush1.bf16.msra.mxu0 %v9771_v27 }
 0x4ae   :  { %4273 = vmatpush1.bf16.msra.mxu1 %v9774_v44  ;;  %4081 = vmatprep.subr.bf16.mxu0 %v9779_v48 }
 0x4af   :  { %4274 = vmatprep.subr.bf16.mxu1 %v9782_v49 }
 0x4b1   :  { %4082 = vmatpush1.bf16.msra.mxu0 %v9777_v38 }
 0x4b2   :  { %4275 = vmatpush1.bf16.msra.mxu1 %v9780_v31  ;;  %4083 = vmatprep.subr.bf16.mxu0 %v9785_v61 }
 0x4b3   :  { %4276 = vmatprep.subr.bf16.mxu1 %v9788_v15 }
 0x4b5   :  { %4084 = vmatpush1.bf16.msra.mxu0 %v9783_v2 }
 0x4b6   :  { %4277 = vmatpush1.bf16.msra.mxu1 %v9786_v26  ;;  %4085 = vmatprep.subr.bf16.mxu0 %v9791_v53 }
 0x4b7   :  { %4278 = vmatprep.subr.bf16.mxu1 %v9794_v6 }
 0x4b9   :  { %4086 = vmatpush1.bf16.msra.mxu0 %v9789_v52 }
 0x4ba   :  { %v1809_v16 = vpop.f32.mrb[16].mxu1  ;;  %4279 = vmatpush1.bf16.msra.mxu1 %v9792_v55 }
 0x4bb   :  { %v12130_v19 = vadd.f32 %v12004_v17, %v1809_v16  ;;  %v1811_v14 = vpop.f32.mrb[17].mxu1 }
 0x4bc   :  { %v12133_v32 = vadd.f32 %v12007_v60, %v1811_v14  ;;  %v1813_v9 = vpop.f32.mrb[18].mxu1 }
 0x4bd   :  { %v9226_v39 = vmul.f32 -1.442695, %v12130_v19  ;;  %v12137_v56 = vadd.f32 %v12004_v17, %v1813_v9  ;;  %v1815_v57 = vpop.f32.mrb[19].mxu1 }
 0x4be   :  { %v9227_v22 = vmul.f32 -1.442695, %v12133_v32  ;;  %v12141_v8 = vadd.f32 %v12007_v60, %v1815_v57 }
 0x4bf   :  { %10080 = vpow2.f32 %v9226_v39  ;;  %v9228_v24 = vmul.f32 -1.442695, %v12137_v56 }
 0x4c0   :  { %10082 = vpow2.f32 %v9227_v22  ;;  %v9229_v3 = vmul.f32 -1.442695, %v12141_v8 }
 0x4c1   :  { %10084 = vpow2.f32 %v9228_v24 }
 0x4c2   :  { %10086 = vpow2.f32 %v9229_v3  ;;  %v1852_v59 = vpop.f32.mrb[20].mxu1 }
 0x4c3   :  { %v12146_v37 = vadd.f32 %v12004_v17, %v1852_v59  ;;  %v1854_v50 = vpop.f32.mrb[21].mxu1 }
 0x4c4   :  { %v12149_v13 = vadd.f32 %v12007_v60, %v1854_v50  ;;  %v1856_v40 = vpop.f32.mrb[22].mxu1 }
 0x4c5   :  { %v9230_v29 = vmul.f32 -1.442695, %v12146_v37  ;;  %v12153_v54 = vadd.f32 %v12004_v17, %v1856_v40  ;;  %v1858_v41 = vpop.f32.mrb[23].mxu1 }
 0x4c6   :  { %v9231_v45 = vmul.f32 -1.442695, %v12149_v13  ;;  %v12157_v0 = vadd.f32 %v12007_v60, %v1858_v41 }
 0x4c7   :  { %10088 = vpow2.f32 %v9230_v29  ;;  %v9232_v36 = vmul.f32 -1.442695, %v12153_v54 }
 0x4c8   :  { %10090 = vpow2.f32 %v9231_v45  ;;  %v9233_v10 = vmul.f32 -1.442695, %v12157_v0 }
 0x4c9   :  { %v10081_v58 = vpop.eup %10080  ;;  %10092 = vpow2.f32 %v9232_v36 }
 0x4ca   :  { %v10083_v21 = vpop.eup %10082  ;;  %v2622_v33 = vadd.f32 1.0, %v10081_v58  ;;  %10094 = vpow2.f32 %v9233_v10  ;;  %v1895_v46 = vpop.f32.mrb[24].mxu1 }
 0x4cb   :  { %v10085_v62 = vpop.eup %10084  ;;  %v2623_v16 = vadd.f32 1.0, %v10083_v21  ;;  %v12162_v27 = vadd.f32 %v12004_v17, %v1895_v46  ;;  %v1897_v51 = vpop.f32.mrb[25].mxu1 }
 0x4cc   :  { %v10087_v14 = vpop.eup %10086  ;;  %10096 = vrcp.f32 %v2622_v33  ;;  %v2624_v44 = vadd.f32 1.0, %v10085_v62  ;;  %v12165_v7 = vadd.f32 %v12007_v60, %v1897_v51  ;;  %v1899_v9 = vpop.f32.mrb[26].mxu1 }
 0x4cd   :  { %10098 = vrcp.f32 %v2623_v16  ;;  %v2625_v39 = vadd.f32 1.0, %v10087_v14  ;;  %v9234_v57 = vmul.f32 -1.442695, %v12162_v27  ;;  %v12169_v22 = vadd.f32 %v12004_v17, %v1899_v9  ;;  %v1901_v48 = vpop.f32.mrb[27].mxu1 }
 0x4ce   :  { %10100 = vrcp.f32 %v2624_v44  ;;  %v9235_v49 = vmul.f32 -1.442695, %v12165_v7  ;;  %v12173_v24 = vadd.f32 %v12007_v60, %v1901_v48 }
 0x4cf   :  { %10102 = vrcp.f32 %v2625_v39  ;;  %v9236_v38 = vmul.f32 -1.442695, %v12169_v22 }
 0x4d0   :  { %10104 = vpow2.f32 %v9234_v57  ;;  %v9237_v31 = vmul.f32 -1.442695, %v12173_v24 }
 0x4d1   :  { %v10089_v3 = vpop.eup %10088  ;;  %10106 = vpow2.f32 %v9235_v49 }
 0x4d2   :  { %v10091_v59 = vpop.eup %10090  ;;  %v2626_v61 = vadd.f32 1.0, %v10089_v3  ;;  %10108 = vpow2.f32 %v9236_v38  ;;  %v1938_v15 = vpop.f32.mrb[28].mxu1 }
 0x4d3   :  { %v10093_v50 = vpop.eup %10092  ;;  %v2627_v2 = vadd.f32 1.0, %v10091_v59  ;;  %10110 = vpow2.f32 %v9237_v31  ;;  %v12178_v26 = vadd.f32 %v12004_v17, %v1938_v15  ;;  %v1940_v40 = vpop.f32.mrb[29].mxu1 }
 0x4d4   :  { %v10095_v29 = vpop.eup %10094  ;;  %10112 = vrcp.f32 %v2626_v61  ;;  %v2628_v41 = vadd.f32 1.0, %v10093_v50  ;;  %v12181_v45 = vadd.f32 %v12007_v60, %v1940_v40  ;;  %v1942_v53 = vpop.f32.mrb[30].mxu1 }
 0x4d5   :  { %10114 = vrcp.f32 %v2627_v2  ;;  %v2629_v6 = vadd.f32 1.0, %v10095_v29  ;;  %v9238_v36 = vmul.f32 -1.442695, %v12178_v26  ;;  %v12185_v52 = vadd.f32 %v12004_v17, %v1942_v53  ;;  %v1944_v55 = vpop.f32.mrb[31].mxu1 }
 0x4d6   :  { %v10097_v10 = vpop.eup %10096  ;;  %10116 = vrcp.f32 %v2628_v41  ;;  %v9239_v58 = vmul.f32 -1.442695, %v12181_v45  ;;  %v12189_v21 = vadd.f32 %v12007_v60, %v1944_v55 }
 0x4d7   :  { %v10099_v33 = vpop.eup %10098  ;;  %v12192_v46 = vmul.f32 %v10097_v10, %v12130_v19  ;;  %10118 = vrcp.f32 %v2629_v6  ;;  %v9240_v62 = vmul.f32 -1.442695, %v12185_v52 }
 0x4d8   :  { %v10101_v16 = vpop.eup %10100  ;;  %v12196_v51 = vmul.f32 %v10099_v33, %v12133_v32  ;;  %10120 = vpow2.f32 %v9238_v36  ;;  %v9241_v14 = vmul.f32 -1.442695, %v12189_v21 }
 0x4d9   :  { %v10103_v44 = vpop.eup %10102  ;;  %v12200_v9 = vmul.f32 %v10101_v16, %v12137_v56  ;;  %10122 = vpow2.f32 %v9239_v58  ;;  %v3007_v39 = vmul.f32 %v12192_v46, %v12192_v46 }
 0x4da   :  { %v10105_v19 = vpop.eup %10104  ;;  %v12205_v57 = vmul.f32 %v10103_v44, %v12141_v8  ;;  %10124 = vpow2.f32 %v9240_v62  ;;  %v1981_v48 = vpop.f32.mrb[32].mxu1  ;;  %v2884_v32 = vadd.f32 %v12196_v51, %v12192_v46  ;;  %v3008_v49 = vmul.f32 %v12196_v51, %v12196_v51 }
 0x4db   :  { %v10107_v38 = vpop.eup %10106  ;;  %v2630_v31 = vadd.f32 1.0, %v10105_v19  ;;  %10126 = vpow2.f32 %v9241_v14  ;;  %v12212_v56 = vadd.f32 %v12004_v17, %v1981_v48  ;;  %v1983_v3 = vpop.f32.mrb[33].mxu1  ;;  %v3009_v59 = vmul.f32 %v12200_v9, %v12200_v9 }
 0x4dc   :  { %v10109_v8 = vpop.eup %10108  ;;  %v2631_v61 = vadd.f32 1.0, %v10107_v38  ;;  %v12217_v15 = vadd.f32 %v12007_v60, %v1983_v3  ;;  %2885 = vadd.xlane.f32.xlu0 %v2884_v32  ;;  %v1985_v50 = vpop.f32.mrb[34].mxu1  ;;  %v2887_v2 = vadd.f32 %v12205_v57, %v12200_v9  ;;  %v3077_v40 = vadd.f32 %v3008_v49, %v3007_v39 }
 0x4dd   :  { %v10111_v29 = vpop.eup %10110  ;;  %10128 = vrcp.f32 %v2630_v31  ;;  %v2632_v41 = vadd.f32 1.0, %v10109_v8  ;;  %v9242_v53 = vmul.f32 -1.442695, %v12212_v56  ;;  %v12223_v6 = vadd.f32 %v12004_v17, %v1985_v50  ;;  %v1987_v36 = vpop.f32.mrb[35].mxu1 }
 0x4de   :  { %v10113_v55 = vpop.eup %10112  ;;  %10130 = vrcp.f32 %v2631_v61  ;;  %v2633_v10 = vadd.f32 1.0, %v10111_v29  ;;  %v9243_v58 = vmul.f32 -1.442695, %v12217_v15  ;;  %v12227_v33 = vadd.f32 %v12007_v60, %v1987_v36  ;;  %2888 = vadd.xlane.f32.xlu1 %v2887_v2 }
 0x4df   :  { %v10115_v62 = vpop.eup %10114  ;;  %v12230_v16 = vmul.f32 %v10113_v55, %v12146_v37  ;;  %10132 = vrcp.f32 %v2632_v41  ;;  %v9244_v14 = vmul.f32 -1.442695, %v12223_v6  ;;  %v3010_v44 = vmul.f32 %v12205_v57, %v12205_v57 }
 0x4e0   :  { %v10117_v39 = vpop.eup %10116  ;;  %v12236_v19 = vmul.f32 %v10115_v62, %v12149_v13  ;;  %10134 = vrcp.f32 %v2633_v10  ;;  %v9245_v48 = vmul.f32 -1.442695, %v12227_v33  ;;  %3078 = vadd.xlane.f32.xlu0 %v3077_v40 }
 0x4e1   :  { %v10119_v32 = vpop.eup %10118  ;;  %v12240_v49 = vmul.f32 %v10117_v39, %v12153_v54  ;;  %10136 = vpow2.f32 %v9242_v53  ;;  %v3080_v37 = vadd.f32 %v3010_v44, %v3009_v59  ;;  %v3011_v38 = vmul.f32 %v12230_v16, %v12230_v16 }
 0x4e2   :  { %v10121_v31 = vpop.eup %10120  ;;  %v12245_v3 = vmul.f32 %v10119_v32, %v12157_v0  ;;  %10138 = vpow2.f32 %v9243_v58  ;;  %v2024_v13 = vpop.f32.mrb[36].mxu1  ;;  %v2890_v8 = vadd.f32 %v12236_v19, %v12230_v16  ;;  %v3012_v61 = vmul.f32 %v12236_v19, %v12236_v19 }
 0x4e3   :  { %v10123_v50 = vpop.eup %10122  ;;  %v2634_v54 = vadd.f32 1.0, %v10121_v31  ;;  %10140 = vpow2.f32 %v9244_v14  ;;  %3081 = vadd.xlane.f32.xlu1 %v3080_v37  ;;  %v12252_v59 = vadd.f32 %v12004_v17, %v2024_v13  ;;  %v2026_v2 = vpop.f32.mrb[37].mxu1  ;;  %v3013_v0 = vmul.f32 %v12240_v49, %v12240_v49 }
 0x4e4   :  { %v10125_v40 = vpop.eup %10124  ;;  %v2635_v29 = vadd.f32 1.0, %v10123_v50  ;;  %10142 = vpow2.f32 %v9245_v48  ;;  %v12257_v41 = vadd.f32 %v12007_v60, %v2026_v2  ;;  %2891 = vadd.xlane.f32.xlu0 %v2890_v8  ;;  %v2028_v53 = vpop.f32.mrb[38].mxu1  ;;  %v2893_v36 = vadd.f32 %v12245_v3, %v12240_v49 }
 0x4e5   :  { %v10127_v55 = vpop.eup %10126  ;;  %10144 = vrcp.f32 %v2634_v54  ;;  %v2636_v10 = vadd.f32 1.0, %v10125_v40  ;;  %v9246_v58 = vmul.f32 -1.442695, %v12252_v59  ;;  %v12263_v62 = vadd.f32 %v12004_v17, %v2028_v53  ;;  %v2030_v14 = vpop.f32.mrb[39].mxu1 }
 0x4e6   :  { %10146 = vrcp.f32 %v2635_v29  ;;  %v2637_v44 = vadd.f32 1.0, %v10127_v55  ;;  %v9247_v39 = vmul.f32 -1.442695, %v12257_v41  ;;  %v12267_v48 = vadd.f32 %v12007_v60, %v2030_v14 }
 0x4e7   :  { %v10129_v32 = vpop.eup %10128  ;;  %10148 = vrcp.f32 %v2636_v10  ;;  %v9248_v37 = vmul.f32 -1.442695, %v12263_v62  ;;  %2894 = vadd.xlane.f32.xlu1 %v2893_v36  ;;  %v3083_v31 = vadd.f32 %v3012_v61, %v3011_v38  ;;  %v3014_v13 = vmul.f32 %v12245_v3, %v12245_v3 }
 0x4e8   :  { %v10131_v8 = vpop.eup %10130  ;;  %v12273_v50 = vmul.f32 %v10129_v32, %v12162_v27  ;;  %10150 = vrcp.f32 %v2637_v44  ;;  %v9249_v54 = vmul.f32 -1.442695, %v12267_v48 }
 0x4e9   :  { %v10133_v2 = vpop.eup %10132  ;;  %v12277_v40 = vmul.f32 %v10131_v8, %v12165_v7  ;;  %10152 = vpow2.f32 %v9246_v58  ;;  %3084 = vadd.xlane.f32.xlu0 %v3083_v31  ;;  %v3086_v29 = vadd.f32 %v3014_v13, %v3013_v0 }
 0x4ea   :  { %v10135_v53 = vpop.eup %10134  ;;  %v12280_v38 = vmul.f32 %v10133_v2, %v12169_v22  ;;  %10154 = vpow2.f32 %v9247_v39  ;;  %v2067_v61 = vpop.f32.mrb[40].mxu1  ;;  %v3015_v27 = vmul.f32 %v12273_v50, %v12273_v50 }
 0x4eb   :  { %16603 = vst [vmem:[#allocation20_spill] sm:$0xff] %v12277_v40  ;;  %v10137_v36 = vpop.eup %10136  ;;  %v12285_v55 = vmul.f32 %v10135_v53, %v12173_v24  ;;  %10156 = vpow2.f32 %v9248_v37  ;;  %3087 = vadd.xlane.f32.xlu1 %v3086_v29  ;;  %v12288_v7 = vadd.f32 %v12004_v17, %v2067_v61  ;;  %v2069_v10 = vpop.f32.mrb[41].mxu1  ;;  %v2896_v0 = vadd.f32 %v12277_v40, %v12273_v50 }
 0x4ec   :  { %16604 = vst [vmem:[#allocation21_spill] sm:$0xff] %v12280_v38  ;;  %v10139_v22 = vpop.eup %10138  ;;  %v2638_v58 = vadd.f32 1.0, %v10137_v36  ;;  %10158 = vpow2.f32 %v9249_v54  ;;  %v12293_v14 = vadd.f32 %v12007_v60, %v2069_v10  ;;  %v2071_v44 = vpop.f32.mrb[42].mxu1  ;;  %v3016_v24 = vmul.f32 %v12277_v40, %v12277_v40 }
 0x4ed   :  { %16605 = vst [vmem:[#allocation22_spill] sm:$0xff] %v12285_v55  ;;  %v10141_v39 = vpop.eup %10140  ;;  %v2639_v32 = vadd.f32 1.0, %v10139_v22  ;;  %2897 = vadd.xlane.f32.xlu0 %v2896_v0  ;;  %v12298_v37 = vadd.f32 %v12004_v17, %v2071_v44  ;;  %v2073_v31 = vpop.f32.mrb[43].mxu1  ;;  %v2899_v13 = vadd.f32 %v12285_v55, %v12280_v38  ;;  %v9250_v2 = vmul.f32 -1.442695, %v12288_v7 }
 0x4ee   :  { %v10143_v8 = vpop.eup %10142  ;;  %10160 = vrcp.f32 %v2638_v58  ;;  %v2640_v54 = vadd.f32 1.0, %v10141_v39  ;;  %v12304_v29 = vadd.f32 %v12007_v60, %v2073_v31  ;;  %v9251_v36 = vmul.f32 -1.442695, %v12293_v14 }
 0x4ef   :  { %v10145_v53 = vpop.eup %10144  ;;  %10162 = vrcp.f32 %v2639_v32  ;;  %v2641_v61 = vadd.f32 1.0, %v10143_v8  ;;  %2900 = vadd.xlane.f32.xlu1 %v2899_v13  ;;  %v3089_v10 = vadd.f32 %v3016_v24, %v3015_v27  ;;  %v9252_v58 = vmul.f32 -1.442695, %v12298_v37 }
 0x4f0   :  { %v10147_v0 = vpop.eup %10146  ;;  %v12308_v22 = vmul.f32 %v10145_v53, %v12178_v26  ;;  %10164 = vrcp.f32 %v2640_v54  ;;  %v3017_v44 = vmul.f32 %v12280_v38, %v12280_v38  ;;  %v9253_v32 = vmul.f32 -1.442695, %v12304_v29 }
 0x4f1   :  { %v10149_v39 = vpop.eup %10148  ;;  %v12314_v31 = vmul.f32 %v10147_v0, %v12181_v45  ;;  %10166 = vrcp.f32 %v2641_v61  ;;  %3090 = vadd.xlane.f32.xlu0 %v3089_v10  ;;  %v3018_v27 = vmul.f32 %v12285_v55, %v12285_v55 }
 0x4f2   :  { %16606 = vst [vmem:[#allocation23_spill] sm:$0xff] %v12308_v22  ;;  %v10151_v24 = vpop.eup %10150  ;;  %v12320_v26 = vmul.f32 %v10149_v39, %v12185_v52  ;;  %10168 = vpow2.f32 %v9250_v2  ;;  %v2110_v13 = vpop.f32.mrb[44].mxu1 }
 0x4f3   :  { %16607 = vst [vmem:[#allocation24_spill] sm:$0xff] %v12314_v31  ;;  %v10153_v8 = vpop.eup %10152  ;;  %v12323_v54 = vmul.f32 %v10151_v24, %v12189_v21  ;;  %10170 = vpow2.f32 %v9251_v36  ;;  %v3092_v45 = vadd.f32 %v3018_v27, %v3017_v44  ;;  %v12326_v53 = vadd.f32 %v12004_v17, %v2110_v13  ;;  %v2112_v61 = vpop.f32.mrb[45].mxu1 }
 0x4f4   :  { %16608 = vst [vmem:[#allocation25_spill] sm:$0xff] %v12320_v26  ;;  %v10155_v10 = vpop.eup %10154  ;;  %v2642_v0 = vadd.f32 1.0, %v10153_v8  ;;  %10172 = vpow2.f32 %v9252_v58  ;;  %v12329_v23 = vadd.f32 %v12007_v60, %v2112_v61  ;;  %v2902_v52 = vadd.f32 %v12314_v31, %v12308_v22  ;;  %v2114_v2 = vpop.f32.mrb[46].mxu1 }
 0x4f5   :  { %16609 = vst [vmem:[#allocation26_spill] sm:$0xff] %v12323_v54  ;;  %v10157_v39 = vpop.eup %10156  ;;  %v2643_v12 = vadd.f32 1.0, %v10155_v10  ;;  %10174 = vpow2.f32 %v9253_v32  ;;  %3093 = vadd.xlane.f32.xlu1 %v3092_v45  ;;  %v12334_v21 = vadd.f32 %v12004_v17, %v2114_v2  ;;  %v2116_v36 = vpop.f32.mrb[47].mxu1  ;;  %v3019_v44 = vmul.f32 %v12308_v22, %v12308_v22 }
 0x4f6   :  { %v10159_v27 = vpop.eup %10158  ;;  %10176 = vrcp.f32 %v2642_v0  ;;  %v2644_v58 = vadd.f32 1.0, %v10157_v39  ;;  %v9254_v24 = vmul.f32 -1.442695, %v12326_v53  ;;  %2903 = vadd.xlane.f32.xlu0 %v2902_v52  ;;  %v12340_v13 = vadd.f32 %v12007_v60, %v2116_v36 }
 0x4f7   :  { %10178 = vrcp.f32 %v2643_v12  ;;  %v2645_v8 = vadd.f32 1.0, %v10159_v27  ;;  %v9255_v32 = vmul.f32 -1.442695, %v12329_v23  ;;  %v2905_v45 = vadd.f32 %v12323_v54, %v12320_v26 }
 0x4f8   :  { %v10161_v61 = vpop.eup %10160  ;;  %10180 = vrcp.f32 %v2644_v58  ;;  %v9256_v10 = vmul.f32 -1.442695, %v12334_v21  ;;  %v3020_v0 = vmul.f32 %v12314_v31, %v12314_v31  ;;  %v3021_v52 = vmul.f32 %v12320_v26, %v12320_v26 }
 0x4f9   :  { %v10163_v2 = vpop.eup %10162  ;;  %v12351_v39 = vmul.f32 %v10161_v61, %v12212_v56  ;;  %10182 = vrcp.f32 %v2645_v8  ;;  %v9257_v12 = vmul.f32 -1.442695, %v12340_v13  ;;  %2906 = vadd.xlane.f32.xlu1 %v2905_v45  ;;  %v3022_v36 = vmul.f32 %v12323_v54, %v12323_v54 }
 0x4fa   :  { %v10165_v27 = vpop.eup %10164  ;;  %v12357_v58 = vmul.f32 %v10163_v2, %v12217_v15  ;;  %10184 = vpow2.f32 %v9254_v24  ;;  %v3095_v18 = vadd.f32 %v3020_v0, %v3019_v44  ;;  %v2153_v31 = vpop.f32.mrb[48].mxu1 }
 0x4fb   :  { %16610 = vst [vmem:[#allocation27_spill] sm:$0xff] %v12351_v39  ;;  %v10167_v22 = vpop.eup %10166  ;;  %v12360_v26 = vmul.f32 %v10165_v27, %v12223_v6  ;;  %10186 = vpow2.f32 %v9255_v32  ;;  %v3098_v56 = vadd.f32 %v3022_v36, %v3021_v52  ;;  %v12363_v8 = vadd.f32 %v12004_v17, %v2153_v31  ;;  %v2155_v45 = vpop.f32.mrb[49].mxu1 }
 0x4fc   :  { %16611 = vst [vmem:[#allocation28_spill] sm:$0xff] %v12357_v58  ;;  %v10169_v61 = vpop.eup %10168  ;;  %v12366_v54 = vmul.f32 %v10167_v22, %v12227_v33  ;;  %10188 = vpow2.f32 %v9256_v10  ;;  %3096 = vadd.xlane.f32.xlu0 %v3095_v18  ;;  %v12369_v15 = vadd.f32 %v12007_v60, %v2155_v45  ;;  %v2908_v44 = vadd.f32 %v12357_v58, %v12351_v39  ;;  %v2157_v6 = vpop.f32.mrb[50].mxu1 }
 0x4fd   :  { %16612 = vst [vmem:[#allocation29_spill] sm:$0xff] %v12360_v26  ;;  %v10171_v24 = vpop.eup %10170  ;;  %v2646_v32 = vadd.f32 1.0, %v10169_v61  ;;  %10190 = vpow2.f32 %v9257_v12  ;;  %3099 = vadd.xlane.f32.xlu1 %v3098_v56  ;;  %v12374_v31 = vadd.f32 %v12004_v17, %v2157_v6  ;;  %v2159_v0 = vpop.f32.mrb[51].mxu1  ;;  %v9258_v22 = vmul.f32 -1.442695, %v12363_v8 }
 0x4fe   :  { %16613 = vst [vmem:[#allocation30_spill] sm:$0xff] %v12366_v54  ;;  %v10173_v52 = vpop.eup %10172  ;;  %v2647_v33 = vadd.f32 1.0, %v10171_v24  ;;  %v12378_v18 = vadd.f32 %v12007_v60, %v2159_v0  ;;  %v2911_v10 = vadd.f32 %v12366_v54, %v12360_v26  ;;  %v9259_v12 = vmul.f32 -1.442695, %v12369_v15 }
 0x4ff   :  { %v10175_v2 = vpop.eup %10174  ;;  %10192 = vrcp.f32 %v2646_v32  ;;  %v2648_v36 = vadd.f32 1.0, %v10173_v52  ;;  %v3023_v27 = vmul.f32 %v12351_v39, %v12351_v39  ;;  %v9260_v61 = vmul.f32 -1.442695, %v12374_v31 }
 0x500   :  { %v10177_v56 = vpop.eup %10176  ;;  %10194 = vrcp.f32 %v2647_v33  ;;  %v2649_v45 = vadd.f32 1.0, %v10175_v2  ;;  %2909 = vadd.xlane.f32.xlu0 %v2908_v44  ;;  %v3024_v6 = vmul.f32 %v12357_v58, %v12357_v58  ;;  %v3025_v32 = vmul.f32 %v12360_v26, %v12360_v26 }
 0x501   :  { %v10179_v24 = vpop.eup %10178  ;;  %v12389_v0 = vmul.f32 %v10177_v56, %v12252_v59  ;;  %10196 = vrcp.f32 %v2648_v36  ;;  %2912 = vadd.xlane.f32.xlu1 %v2911_v10  ;;  %v3026_v52 = vmul.f32 %v12366_v54, %v12366_v54  ;;  %v9261_v2 = vmul.f32 -1.442695, %v12378_v18 }
 0x502   :  { %v10181_v33 = vpop.eup %10180  ;;  %v12396_v44 = vmul.f32 %v10179_v24, %v12257_v41  ;;  %10198 = vrcp.f32 %v2649_v45  ;;  %v3101_v58 = vadd.f32 %v3024_v6, %v3023_v27  ;;  %v2196_v39 = vpop.f32.mrb[52].mxu1 }
 0x503   :  { %16614 = vst [vmem:[#allocation31_spill] sm:$0xff] %v12389_v0  ;;  %v10183_v55 = vpop.eup %10182  ;;  %v12400_v59 = vmul.f32 %v10181_v33, %v12263_v62  ;;  %10200 = vpow2.f32 %v9258_v22  ;;  %v3104_v10 = vadd.f32 %v3026_v52, %v3025_v32  ;;  %v12403_v36 = vadd.f32 %v12004_v17, %v2196_v39  ;;  %v2198_v56 = vpop.f32.mrb[53].mxu1 }
 0x504   :  { %16615 = vst [vmem:[#allocation32_spill] sm:$0xff] %v12396_v44  ;;  %v10185_v54 = vpop.eup %10184  ;;  %v12406_v26 = vmul.f32 %v10183_v55, %v12267_v48  ;;  %10202 = vpow2.f32 %v9259_v12  ;;  %3102 = vadd.xlane.f32.xlu0 %v3101_v58  ;;  %v12409_v41 = vadd.f32 %v12007_v60, %v2198_v56  ;;  %v2914_v27 = vadd.f32 %v12396_v44, %v12389_v0  ;;  %v2200_v62 = vpop.f32.mrb[54].mxu1 }
 0x505   :  { %16616 = vst [vmem:[#allocation33_spill] sm:$0xff] %v12400_v59  ;;  %v10187_v45 = vpop.eup %10186  ;;  %v2650_v22 = vadd.f32 1.0, %v10185_v54  ;;  %10204 = vpow2.f32 %v9260_v61  ;;  %3105 = vadd.xlane.f32.xlu1 %v3104_v10  ;;  %v12414_v39 = vadd.f32 %v12004_v17, %v2200_v62  ;;  %v2202_v6 = vpop.f32.mrb[55].mxu1  ;;  %v9262_v55 = vmul.f32 -1.442695, %v12403_v36 }
 0x506   :  { %16617 = vst [vmem:[#allocation34_spill] sm:$0xff] %v12406_v26  ;;  %v10189_v24 = vpop.eup %10188  ;;  %v2651_v48 = vadd.f32 1.0, %v10187_v45  ;;  %10206 = vpow2.f32 %v9261_v2  ;;  %v12418_v58 = vadd.f32 %v12007_v60, %v2202_v6  ;;  %v9263_v52 = vmul.f32 -1.442695, %v12409_v41 }
 0x507   :  { %v10191_v12 = vpop.eup %10190  ;;  %10208 = vrcp.f32 %v2650_v22  ;;  %v2652_v32 = vadd.f32 1.0, %v10189_v24  ;;  %v2917_v54 = vadd.f32 %v12406_v26, %v12400_v59  ;;  %v9264_v33 = vmul.f32 -1.442695, %v12414_v39 }
 0x508   :  { %10210 = vrcp.f32 %v2651_v48  ;;  %v2653_v61 = vadd.f32 1.0, %v10191_v12  ;;  %2915 = vadd.xlane.f32.xlu0 %v2914_v27  ;;  %v3027_v2 = vmul.f32 %v12389_v0, %v12389_v0  ;;  %v3028_v56 = vmul.f32 %v12396_v44, %v12396_v44 }
 0x509   :  { %v10193_v10 = vpop.eup %10192  ;;  %10212 = vrcp.f32 %v2652_v32  ;;  %2918 = vadd.xlane.f32.xlu1 %v2917_v54  ;;  %v3029_v62 = vmul.f32 %v12400_v59, %v12400_v59  ;;  %v3030_v45 = vmul.f32 %v12406_v26, %v12406_v26  ;;  %v9265_v6 = vmul.f32 -1.442695, %v12418_v58 }
 0x50a   :  { %v10195_v22 = vpop.eup %10194  ;;  %v12433_v27 = vmul.f32 %v10193_v10, %v12288_v7  ;;  %10214 = vrcp.f32 %v2653_v61  ;;  %v2239_v24 = vpop.f32.mrb[56].mxu1  ;;  %v3107_v32 = vadd.f32 %v3028_v56, %v3027_v2 }
 0x50b   :  { %v10197_v48 = vpop.eup %10196  ;;  %v12437_v12 = vmul.f32 %v10195_v22, %v12293_v14  ;;  %10216 = vpow2.f32 %v9262_v55  ;;  %v3110_v54 = vadd.f32 %v3030_v45, %v3029_v62  ;;  %v2241_v44 = vpop.f32.mrb[57].mxu1  ;;  %v12443_v7 = vadd.f32 %v12004_v17, %v2239_v24 }
 0x50c   :  { %16618 = vst [vmem:[#allocation35_spill] sm:$0xff] %v12433_v27  ;;  %v10199_v59 = vpop.eup %10198  ;;  %v12440_v0 = vmul.f32 %v10197_v48, %v12298_v37  ;;  %10218 = vpow2.f32 %v9263_v52  ;;  %v12446_v61 = vadd.f32 %v12007_v60, %v2241_v44  ;;  %v2243_v10 = vpop.f32.mrb[58].mxu1  ;;  %3108 = vadd.xlane.f32.xlu0 %v3107_v32  ;;  %v3031_v48 = vmul.f32 %v12433_v27, %v12433_v27 }
 0x50d   :  { %16619 = vst [vmem:[#allocation36_spill] sm:$0xff] %v12437_v12  ;;  %v10201_v26 = vpop.eup %10200  ;;  %v12449_v14 = vmul.f32 %v10199_v59, %v12304_v29  ;;  %10220 = vpow2.f32 %v9264_v33  ;;  %3111 = vadd.xlane.f32.xlu1 %v3110_v54  ;;  %v2920_v55 = vadd.f32 %v12437_v12, %v12433_v27  ;;  %v12454_v37 = vadd.f32 %v12004_v17, %v2243_v10  ;;  %v2245_v52 = vpop.f32.mrb[59].mxu1 }
 0x50e   :  { %16620 = vst [vmem:[#allocation37_spill] sm:$0xff] %v12440_v0  ;;  %v10203_v2 = vpop.eup %10202  ;;  %v2654_v56 = vadd.f32 1.0, %v10201_v26  ;;  %10222 = vpow2.f32 %v9265_v6  ;;  %v9266_v44 = vmul.f32 -1.442695, %v12443_v7  ;;  %v9267_v29 = vmul.f32 -1.442695, %v12446_v61 }
 0x50f   :  { %16621 = vst [vmem:[#allocation38_spill] sm:$0xff] %v12449_v14  ;;  %v10205_v62 = vpop.eup %10204  ;;  %v2655_v45 = vadd.f32 1.0, %v10203_v2  ;;  %v12459_v59 = vadd.f32 %v12007_v60, %v2245_v52  ;;  %v2923_v33 = vadd.f32 %v12449_v14, %v12440_v0  ;;  %v3032_v26 = vmul.f32 %v12437_v12, %v12437_v12 }
 0x510   :  { %v10207_v22 = vpop.eup %10206  ;;  %10224 = vrcp.f32 %v2654_v56  ;;  %v2656_v24 = vadd.f32 1.0, %v10205_v62  ;;  %2921 = vadd.xlane.f32.xlu0 %v2920_v55  ;;  %v9268_v54 = vmul.f32 -1.442695, %v12454_v37  ;;  %v3033_v10 = vmul.f32 %v12440_v0, %v12440_v0 }
 0x511   :  { %v10209_v6 = vpop.eup %10208  ;;  %10226 = vrcp.f32 %v2655_v45  ;;  %v2657_v32 = vadd.f32 1.0, %v10207_v22  ;;  %2924 = vadd.xlane.f32.xlu1 %v2923_v33  ;;  %v3113_v56 = vadd.f32 %v3032_v26, %v3031_v48  ;;  %v3034_v62 = vmul.f32 %v12449_v14, %v12449_v14 }
 0x512   :  { %v10211_v52 = vpop.eup %10210  ;;  %v12471_v2 = vmul.f32 %v10209_v6, %v12326_v53  ;;  %10228 = vrcp.f32 %v2656_v24  ;;  %v2282_v27 = vpop.f32.mrb[60].mxu1  ;;  %v9269_v55 = vmul.f32 -1.442695, %v12459_v59 }
 0x513   :  { %v10213_v12 = vpop.eup %10212  ;;  %v12476_v45 = vmul.f32 %v10211_v52, %v12329_v23  ;;  %10230 = vrcp.f32 %v2657_v32  ;;  %v2284_v33 = vpop.f32.mrb[61].mxu1  ;;  %v3116_v53 = vadd.f32 %v3034_v62, %v3033_v10  ;;  %v12483_v24 = vadd.f32 %v12004_v17, %v2282_v27 }
 0x514   :  { %16622 = vst [vmem:[#allocation39_spill] sm:$0xff] %v12471_v2  ;;  %v10215_v22 = vpop.eup %10214  ;;  %v12480_v0 = vmul.f32 %v10213_v12, %v12334_v21  ;;  %10232 = vpow2.f32 %v9266_v44  ;;  %v2286_v48 = vpop.f32.mrb[62].mxu1  ;;  %3114 = vadd.xlane.f32.xlu0 %v3113_v56  ;;  %v12489_v23 = vadd.f32 %v12007_v60, %v2284_v33 }
 0x515   :  { %16623 = vst [vmem:[#allocation40_spill] sm:$0xff] %v12476_v45  ;;  %v10217_v26 = vpop.eup %10216  ;;  %v12486_v6 = vmul.f32 %v10215_v22, %v12340_v13  ;;  %10234 = vpow2.f32 %v9267_v29  ;;  %v2926_v32 = vadd.f32 %v12476_v45, %v12471_v2  ;;  %v2288_v21 = vpop.f32.mrb[63].mxu1  ;;  %3117 = vadd.xlane.f32.xlu1 %v3116_v53  ;;  %v12494_v27 = vadd.f32 %v12004_v17, %v2286_v48 }
 0x516   :  { %16624 = vst [vmem:[#allocation41_spill] sm:$0xff] %v12480_v0  ;;  %v10219_v12 = vpop.eup %10218  ;;  %v2658_v44 = vadd.f32 1.0, %v10217_v26  ;;  %10236 = vpow2.f32 %v9268_v54  ;;  %v12497_v13 = vadd.f32 %v12007_v60, %v2288_v21  ;;  %v9270_v33 = vmul.f32 -1.442695, %v12483_v24 }
 0x517   :  { %16625 = vst [vmem:[#allocation42_spill] sm:$0xff] %v12486_v6  ;;  %v10221_v10 = vpop.eup %10220  ;;  %v2659_v52 = vadd.f32 1.0, %v10219_v12  ;;  %10238 = vpow2.f32 %v9269_v55  ;;  %v2929_v29 = vadd.f32 %v12486_v6, %v12480_v0  ;;  %v3035_v54 = vmul.f32 %v12471_v2, %v12471_v2 }
 0x518   :  { %v10223_v56 = vpop.eup %10222  ;;  %10240 = vrcp.f32 %v2658_v44  ;;  %v2660_v62 = vadd.f32 1.0, %v10221_v10  ;;  %v9271_v53 = vmul.f32 -1.442695, %v12489_v23  ;;  %2927 = vadd.xlane.f32.xlu0 %v2926_v32  ;;  %v3036_v55 = vmul.f32 %v12476_v45, %v12476_v45 }
 0x519   :  { %10242 = vrcp.f32 %v2659_v52  ;;  %v2661_v22 = vadd.f32 1.0, %v10223_v56  ;;  %v9272_v26 = vmul.f32 -1.442695, %v12494_v27  ;;  %2930 = vadd.xlane.f32.xlu1 %v2929_v29  ;;  %v3037_v21 = vmul.f32 %v12480_v0, %v12480_v0 }
 0x51a   :  { %v10225_v48 = vpop.eup %10224  ;;  %10244 = vrcp.f32 %v2660_v62  ;;  %v3038_v12 = vmul.f32 %v12486_v6, %v12486_v6  ;;  %v9273_v32 = vmul.f32 -1.442695, %v12497_v13  ;;  %v3119_v52 = vadd.f32 %v3036_v55, %v3035_v54 }
 0x51b   :  { %v10227_v44 = vpop.eup %10226  ;;  %v12513_v10 = vmul.f32 %v10225_v48, %v12363_v8  ;;  %10246 = vrcp.f32 %v2661_v22 }
 0x51c   :  { %v10229_v56 = vpop.eup %10228  ;;  %v12517_v62 = vmul.f32 %v10227_v44, %v12369_v15  ;;  %10248 = vpow2.f32 %v9270_v33  ;;  %v3122_v29 = vadd.f32 %v3038_v12, %v3037_v21  ;;  %3120 = vadd.xlane.f32.xlu0 %v3119_v52 }
 0x51d   :  { %16626 = vst [vmem:[#allocation43_spill] sm:$0xff] %v12513_v10  ;;  %v10231_v45 = vpop.eup %10230  ;;  %v12520_v0 = vmul.f32 %v10229_v56, %v12374_v31  ;;  %10250 = vpow2.f32 %v9271_v53  ;;  %v3039_v8 = vmul.f32 %v12513_v10, %v12513_v10 }
 0x51e   :  { %16627 = vst [vmem:[#allocation44_spill] sm:$0xff] %v12517_v62  ;;  %v10233_v48 = vpop.eup %10232  ;;  %v12525_v22 = vmul.f32 %v10231_v45, %v12378_v18  ;;  %10252 = vpow2.f32 %v9272_v26  ;;  %3123 = vadd.xlane.f32.xlu1 %v3122_v29  ;;  %v2932_v15 = vadd.f32 %v12517_v62, %v12513_v10  ;;  %v3040_v33 = vmul.f32 %v12517_v62, %v12517_v62 }
 0x51f   :  { %16628 = vst [vmem:[#allocation45_spill] sm:$0xff] %v12520_v0  ;;  %v10235_v54 = vpop.eup %10234  ;;  %v2662_v31 = vadd.f32 1.0, %v10233_v48  ;;  %10254 = vpow2.f32 %v9273_v32  ;;  %v3041_v53 = vmul.f32 %v12520_v0, %v12520_v0 }
 0x520   :  { %16629 = vst [vmem:[#allocation46_spill] sm:$0xff] %v12525_v22  ;;  %v10237_v55 = vpop.eup %10236  ;;  %v2663_v21 = vadd.f32 1.0, %v10235_v54  ;;  %v2935_v18 = vadd.f32 %v12525_v22, %v12520_v0  ;;  %v2868_v45 = vpop.xlane.xlu0 %2867  ;;  %v3042_v26 = vmul.f32 %v12525_v22, %v12525_v22  ;;  %2933 = vadd.xlane.f32.xlu0 %v2932_v15  ;;  %v3125_v52 = vadd.f32 %v3040_v33, %v3039_v8 }
 0x521   :  { %v10239_v12 = vpop.eup %10238  ;;  %10256 = vrcp.f32 %v2662_v31  ;;  %v2664_v44 = vadd.f32 1.0, %v10237_v55  ;;  %v12537_v29 = vmul.f32 0.00390625, %v2868_v45  ;;  %v12545_v31 = vld [vmem:[%s16303_s5] sm:$0x77] }
 0x522   :  { %v10241_v56 = vpop.eup %10240  ;;  %10258 = vrcp.f32 %v2663_v21  ;;  %v2665_v32 = vadd.f32 1.0, %v10239_v12  ;;  %2936 = vadd.xlane.f32.xlu1 %v2935_v18  ;;  %v2871_v48 = vpop.xlane.xlu1 %2870  ;;  %v3128_v54 = vadd.f32 %v3042_v26, %v3041_v53  ;;  %v3478_v8 = vrot.slane %v12545_v31, %v11192_v11  ;;  %v16632_v12 = vld [vmem:[#allocation18_spill] sm:$0xff] }
 0x523   :  { %v10243_v62 = vpop.eup %10242  ;;  %v12540_v0 = vmul.f32 %v10241_v56, %v12403_v36  ;;  %10260 = vrcp.f32 %v2664_v44  ;;  %v3187_v33 = vmul.f32 %v12537_v29, %v12537_v29  ;;  %v3560_v55 = vrot.slane %v12545_v31, %v11210_v28 }
 0x524   :  { %v10245_v10 = vpop.eup %10244  ;;  %v12550_v15 = vmul.f32 %v10243_v62, %v12409_v41  ;;  %10262 = vrcp.f32 %v2665_v32  ;;  %v3061_v53 = vpop.xlane.xlu0 %3060  ;;  %3126 = vadd.xlane.f32.xlu0 %v3125_v52  ;;  %v12559_v18 = vmul.f32 0.00390625, %v2871_v48  ;;  %v3482_v41 = vrot.slane %v12545_v31, %v16632_v12 }
 0x525   :  { %16630 = vst [vmem:[#allocation47_spill] sm:$0xff] %v12540_v0  ;;  %v10247_v36 = vpop.eup %10246  ;;  %v12557_v21 = vmul.f32 %v10245_v10, %v12414_v39  ;;  %v3155_v45 = vmul.f32 0.00390625, %v3061_v53  ;;  %v3043_v39 = vmul.f32 %v12540_v0, %v12540_v0  ;;  %v12573_v12 = vrot.slane %v3478_v8, %v11192_v11 }
 0x526   :  { %16631 = vst [vmem:[#allocation48_spill] sm:$0xff] %v12550_v15  ;;  %v10249_v26 = vpop.eup %10248  ;;  %v12564_v62 = vmul.f32 %v10247_v36, %v12418_v58  ;;  %3129 = vadd.xlane.f32.xlu1 %v3128_v54  ;;  %v2938_v44 = vadd.f32 %v12550_v15, %v12540_v0  ;;  %v3064_v56 = vpop.xlane.xlu1 %3063  ;;  %v3188_v48 = vmul.f32 %v12559_v18, %v12559_v18 }
 0x527   :  { %v10251_v10 = vpop.eup %10250  ;;  %v2666_v52 = vadd.f32 1.0, %v10249_v26  ;;  %v3219_v32 = vsub.f32 %v3155_v45, %v3187_v33  ;;  %v3156_v53 = vmul.f32 0.00390625, %v3064_v56  ;;  %v3044_v6 = vmul.f32 %v12550_v15, %v12550_v15 }
 0x528   :  { %v10253_v22 = vpop.eup %10252  ;;  %v2667_v58 = vadd.f32 1.0, %v10251_v10  ;;  %v2941_v54 = vadd.f32 %v12564_v62, %v12557_v21  ;;  %v2874_v36 = vpop.xlane.xlu0 %2873  ;;  %2939 = vadd.xlane.f32.xlu0 %v2938_v44  ;;  %v12580_v56 = vrot.slane %v3560_v55, %v11210_v28  ;;  %v12583_v38 = vrot.slane %v3482_v41, %v11192_v11 }
 0x529   :  { %v10255_v0 = vpop.eup %10254  ;;  %10264 = vrcp.f32 %v2666_v52  ;;  %v2668_v26 = vadd.f32 1.0, %v10253_v22  ;;  %v3251_v33 = vmax.f32 %v3219_v32, 0.0  ;;  %v3220_v45 = vsub.f32 %v3156_v53, %v3188_v48 }
 0x52a   :  { %10266 = vrcp.f32 %v2667_v58  ;;  %v2669_v8 = vadd.f32 1.0, %v10255_v0  ;;  %2942 = vadd.xlane.f32.xlu1 %v2941_v54  ;;  %v3131_v10 = vadd.f32 %v3044_v6, %v3043_v39  ;;  %v2877_v2 = vpop.xlane.xlu1 %2876  ;;  %v12588_v44 = vmul.f32 0.00390625, %v2874_v36  ;;  %v16633_v39 = vld [vmem:[#allocation19_spill] sm:$0xff] }
 0x52b   :  { %v10257_v14 = vpop.eup %10256  ;;  %10268 = vrcp.f32 %v2668_v26  ;;  %v3347_v15 = vadd.f32 1e-05, %v3251_v33  ;;  %v3252_v40 = vmax.f32 %v3220_v45, 0.0  ;;  %v3045_v0 = vmul.f32 %v12557_v21, %v12557_v21 }
 0x52c   :  { %v10259_v52 = vpop.eup %10258  ;;  %v12586_v22 = vmul.f32 %v10257_v14, %v12443_v7  ;;  %10270 = vrcp.f32 %v2669_v8  ;;  %v3067_v55 = vpop.xlane.xlu0 %3066  ;;  %v3564_v32 = vrot.slane %v12545_v31, %v16633_v39  ;;  %3132 = vadd.xlane.f32.xlu0 %v3131_v10  ;;  %v12600_v14 = vmul.f32 0.00390625, %v2877_v2 }
 0x52d   :  { %v10261_v6 = vpop.eup %10260  ;;  %v12595_v41 = vmul.f32 %v10259_v52, %v12446_v61  ;;  %10272 = vrsqrt.f32 %v3347_v15  ;;  %v3348_v48 = vadd.f32 1e-05, %v3252_v40  ;;  %v3046_v58 = vmul.f32 %v12564_v62, %v12564_v62 }
 0x52e   :  { %v10263_v53 = vpop.eup %10262  ;;  %v12598_v7 = vmul.f32 %v10261_v6, %v12454_v37  ;;  %v3189_v54 = vmul.f32 %v12588_v44, %v12588_v44  ;;  %v3070_v36 = vpop.xlane.xlu1 %3069  ;;  %v3157_v61 = vmul.f32 0.00390625, %v3067_v55  ;;  %v3190_v37 = vmul.f32 %v12600_v14, %v12600_v14 }
 0x52f   :  { %v12607_v31 = vmul.f32 %v10263_v53, %v12459_v59  ;;  %10274 = vrsqrt.f32 %v3348_v48  ;;  %v2944_v40 = vadd.f32 %v12595_v41, %v12586_v22  ;;  %v3134_v15 = vadd.f32 %v3046_v58, %v3045_v0 }
 0x530   :  { %v3158_v2 = vmul.f32 0.00390625, %v3070_v36  ;;  %v3047_v26 = vmul.f32 %v12586_v22, %v12586_v22  ;;  %v12616_v33 = vrot.slane %v3564_v32, %v11210_v28  ;;  %v3221_v45 = vsub.f32 %v3157_v61, %v3189_v54 }
 0x531   :  { %2945 = vadd.xlane.f32.xlu0 %v2944_v40  ;;  %v2880_v59 = vpop.xlane.xlu0 %2879  ;;  %v3048_v8 = vmul.f32 %v12595_v41, %v12595_v41  ;;  %v3049_v10 = vmul.f32 %v12598_v7, %v12598_v7  ;;  %v3283_v52 = vsub.f32 %v12058_v4, %v12537_v29  ;;  %3135 = vadd.xlane.f32.xlu1 %v3134_v15 }
 0x532   :  { %v3222_v0 = vsub.f32 %v3158_v2, %v3190_v37  ;;  %v2947_v55 = vadd.f32 %v12607_v31, %v12598_v7  ;;  %v3050_v6 = vmul.f32 %v12607_v31, %v12607_v31  ;;  %v3285_v53 = vsub.f32 %v12064_v42, %v12559_v18 }
 0x533   :  { %v10265_v32 = vpop.eup %10264  ;;  %v3253_v58 = vmax.f32 %v3221_v45, 0.0  ;;  %v3137_v54 = vadd.f32 %v3048_v8, %v3047_v26  ;;  %v2883_v36 = vpop.xlane.xlu1 %2882  ;;  %v3286_v40 = vsub.f32 %v12069_v20, %v12559_v18  ;;  %v12637_v37 = vmul.f32 0.00390625, %v2880_v59 }
 0x534   :  { %v10267_v61 = vpop.eup %10266  ;;  %v12633_v4 = vmul.f32 %v10265_v32, %v12483_v24  ;;  %v3254_v15 = vmax.f32 %v3222_v0, 0.0  ;;  %v3140_v26 = vadd.f32 %v3050_v6, %v3049_v10  ;;  %v3288_v0 = vsub.f32 %v12085_v43, %v12588_v44 }
 0x535   :  { %v10269_v2 = vpop.eup %10268  ;;  %v12640_v39 = vmul.f32 %v10267_v61, %v12489_v23  ;;  %v3349_v45 = vadd.f32 1e-05, %v3253_v58  ;;  %3138 = vadd.xlane.f32.xlu0 %v3137_v54  ;;  %v3073_v8 = vpop.xlane.xlu0 %3072  ;;  %2948 = vadd.xlane.f32.xlu1 %v2947_v55  ;;  %v3191_v20 = vmul.f32 %v12637_v37, %v12637_v37  ;;  %v12654_v10 = vmul.f32 0.00390625, %v2883_v36 }
 0x536   :  { %v10271_v48 = vpop.eup %10270  ;;  %v12645_v24 = vmul.f32 %v10269_v2, %v12494_v27  ;;  %v3350_v32 = vadd.f32 1e-05, %v3254_v15  ;;  %v3159_v18 = vmul.f32 0.00390625, %v3073_v8  ;;  %v3051_v43 = vmul.f32 %v12633_v4, %v12633_v4 }
 0x537   :  { %v10273_v59 = vpop.eup %10272  ;;  %v12650_v23 = vmul.f32 %v10271_v48, %v12497_v13  ;;  %10276 = vrsqrt.f32 %v3349_v45  ;;  %v3076_v6 = vpop.xlane.xlu1 %3075  ;;  %v2950_v55 = vadd.f32 %v12640_v39, %v12633_v4  ;;  %v3192_v15 = vmul.f32 %v12654_v10, %v12654_v10 }
 0x538   :  { %v3411_v58 = vmul.f32 %v10273_v59, %v3283_v52  ;;  %10278 = vrsqrt.f32 %v3350_v32  ;;  %v3223_v27 = vsub.f32 %v3159_v18, %v3191_v20  ;;  %v2325_v54 = vpop.f32.mrb[64].mxu1  ;;  %v3160_v13 = vmul.f32 0.00390625, %v3076_v6 }
 0x539   :  { %16634 = vst [vmem:[#allocation49_spill] sm:$0xff] %v12650_v23  ;;  %v10275_v61 = vpop.eup %10274  ;;  %v2953_v48 = vadd.f32 %v12650_v23, %v12645_v24  ;;  %v2327_v36 = vpop.f32.mrb[65].mxu1  ;;  %3141 = vadd.xlane.f32.xlu1 %v3140_v26  ;;  %2951 = vadd.xlane.f32.xlu0 %v2950_v55  ;;  %v3052_v45 = vmul.f32 %v12640_v39, %v12640_v39 }
 0x53a   :  { %v3413_v2 = vmul.f32 %v10275_v61, %v3285_v53  ;;  %v3255_v52 = vmax.f32 %v3223_v27, 0.0  ;;  %v12667_v8 = vadd.f32 %v12004_v17, %v2325_v54  ;;  %v2329_v32 = vpop.f32.mrb[66].mxu1  ;;  %v3224_v20 = vsub.f32 %v3160_v13, %v3192_v15 }
 0x53b   :  { %v12670_v18 = vadd.f32 %v12007_v60, %v2327_v36  ;;  %v3053_v6 = vmul.f32 %v12645_v24, %v12645_v24  ;;  %v3054_v53 = vmul.f32 %v12650_v23, %v12650_v23  ;;  %v2331_v26 = vpop.f32.mrb[67].mxu1  ;;  %v3143_v55 = vadd.f32 %v3052_v45, %v3051_v43 }
 0x53c   :  { %v3351_v27 = vadd.f32 1e-05, %v3255_v52  ;;  %v9274_v42 = vmul.f32 -1.442695, %v12667_v8  ;;  %v12678_v28 = vadd.f32 %v12004_v17, %v2329_v32  ;;  %v3256_v54 = vmax.f32 %v3224_v20, 0.0 }
 0x53d   :  { %v9275_v15 = vmul.f32 -1.442695, %v12670_v18  ;;  %v3146_v13 = vadd.f32 %v3054_v53, %v3053_v6  ;;  %v12682_v36 = vadd.f32 %v12007_v60, %v2331_v26  ;;  %2954 = vadd.xlane.f32.xlu1 %v2953_v48  ;;  %3144 = vadd.xlane.f32.xlu0 %v3143_v55  ;;  %v16635_v43 = vsub.f32 %v12061_v30, %v12537_v29 }
 0x53e   :  { %10280 = vrsqrt.f32 %v3351_v27  ;;  %v9276_v11 = vmul.f32 -1.442695, %v12678_v28  ;;  %v3414_v45 = vmul.f32 %v10275_v61, %v3286_v40  ;;  %v3352_v23 = vadd.f32 1e-05, %v3256_v54 }
 0x53f   :  { %v3412_v52 = vmul.f32 %v10273_v59, %v16635_v43  ;;  %10282 = vpow2.f32 %v9274_v42  ;;  %v9277_v17 = vmul.f32 -1.442695, %v12682_v36  ;;  %v3493_v32 = vmul.f32 %v12573_v12, %v3411_v58 }
 0x540   :  { %10284 = vpow2.f32 %v9275_v15  ;;  %v3496_v20 = vmul.f32 %v12583_v38, %v3414_v45  ;;  %v3495_v48 = vmul.f32 %v12573_v12, %v3413_v2  ;;  %v3289_v53 = vsub.f32 %v12088_v47, %v12600_v14 }
 0x541   :  { %v3494_v60 = vmul.f32 %v12583_v38, %v3412_v52  ;;  %v10277_v6 = vpop.eup %10276  ;;  %v3290_v30 = vsub.f32 %v12093_v63, %v12600_v14  ;;  %10286 = vrsqrt.f32 %v3352_v23  ;;  %v3575_v29 = vadd.f32 %v12580_v56, %v3493_v32  ;;  %3147 = vadd.xlane.f32.xlu1 %v3146_v13 }
 0x542   :  { %v10279_v40 = vpop.eup %10278  ;;  %10288 = vpow2.f32 %v9276_v11  ;;  %v3578_v59 = vadd.f32 %v12616_v33, %v3496_v20  ;;  %v3577_v58 = vadd.f32 %v12580_v56, %v3495_v48  ;;  %v3416_v61 = vmul.f32 %v10277_v6, %v3288_v0 }
 0x543   :  { %v3576_v42 = vadd.f32 %v12616_v33, %v3494_v60  ;;  %10290 = vpow2.f32 %v9277_v17  ;;  %v3418_v2 = vmul.f32 %v10279_v40, %v3290_v30  ;;  %v16636_v47 = vsub.f32 %v12082_v1, %v12588_v44 }
 0x544   :  { %v3639_v14 = vpack.c.bf16 %v3577_v58, %v3575_v29  ;;  %v3417_v23 = vmul.f32 %v10279_v40, %v3289_v53  ;;  %v3498_v27 = vmul.f32 %v12583_v38, %v3416_v61  ;;  %v3291_v54 = vsub.f32 %v12106_v35, %v12637_v37 }
 0x545   :  { %v3415_v26 = vmul.f32 %v10277_v6, %v16636_v47  ;;  %v3640_v63 = vpack.c.bf16 %v3578_v59, %v3576_v42  ;;  %v3500_v11 = vmul.f32 %v12583_v38, %v3418_v2  ;;  %v3292_v1 = vsub.f32 %v12109_v25, %v12637_v37 }
 0x546   :  { %v3499_v0 = vmul.f32 %v12573_v12, %v3417_v23  ;;  %v3580_v44 = vadd.f32 %v12616_v33, %v3498_v27  ;;  %v3293_v20 = vsub.f32 %v12112_v5, %v12654_v10  ;;  %v3294_v25 = vsub.f32 %v12117_v34, %v12654_v10 }
 0x547   :  { %v3497_v55 = vmul.f32 %v12573_v12, %v3415_v26  ;;  %4087 = vmatprep.mubr.bf16.mxu0 %v3640_v63  ;;  %4280 = vmatprep.mubr.bf16.mxu1 %v3640_v63  ;;  %v3582_v15 = vadd.f32 %v12616_v33, %v3500_v11 }
 0x548   :  { %4088 = vmatmul.mubr.bf16.vlgmr.msra.gmra.mrb[68].mxu0 %v3639_v14  ;;  %4281 = vmatmul.mubr.bf16.vlgmr.msra.gmra.mrb[68].mxu1 %v3639_v14  ;;  %v10281_v13 = vpop.eup %10280  ;;  %v3581_v43 = vadd.f32 %v12580_v56, %v3499_v0 }
 0x549   :  { %v10283_v52 = vpop.eup %10282  ;;  %v3642_v45 = vpack.c.bf16 %v3582_v15, %v3580_v44  ;;  %v3579_v35 = vadd.f32 %v12580_v56, %v3497_v55  ;;  %v3420_v17 = vmul.f32 %v10281_v13, %v3292_v1  ;;  %v3419_v32 = vmul.f32 %v10281_v13, %v3291_v54 }
 0x54a   :  { %v10285_v60 = vpop.eup %10284  ;;  %v2670_v37 = vadd.f32 1.0, %v10283_v52 }
 0x54b   :  { %v10287_v48 = vpop.eup %10286  ;;  %v2671_v6 = vadd.f32 1.0, %v10285_v60  ;;  %4097 = vmatprep.mubr.bf16.mxu0 %v3642_v45  ;;  %4290 = vmatprep.mubr.bf16.mxu1 %v3642_v45  ;;  %v3641_v53 = vpack.c.bf16 %v3581_v43, %v3579_v35  ;;  %v3502_v40 = vmul.f32 %v12583_v38, %v3420_v17  ;;  %v3501_v5 = vmul.f32 %v12573_v12, %v3419_v32 }
 0x54c   :  { %v10289_v30 = vpop.eup %10288  ;;  %10292 = vrcp.f32 %v2670_v37  ;;  %v3422_v29 = vmul.f32 %v10287_v48, %v3294_v25  ;;  %v3421_v42 = vmul.f32 %v10287_v48, %v3293_v20 }
 0x54d   :  { %v10291_v59 = vpop.eup %10290  ;;  %10294 = vrcp.f32 %v2671_v6  ;;  %v2672_v58 = vadd.f32 1.0, %v10289_v30  ;;  %v3584_v2 = vadd.f32 %v12616_v33, %v3502_v40  ;;  %v3583_v63 = vadd.f32 %v12580_v56, %v3501_v5 }
 0x54e   :  { %v2673_v61 = vadd.f32 1.0, %v10291_v59  ;;  %v3504_v34 = vmul.f32 %v12583_v38, %v3422_v29  ;;  %v3503_v10 = vmul.f32 %v12573_v12, %v3421_v42 }
 0x54f   :  { %10296 = vrcp.f32 %v2672_v58 }
 0x550   :  { %4098 = vmatmul.mubr.bf16.gmra.mrb[72].mxu0 %v3641_v53  ;;  %4291 = vmatmul.mubr.bf16.gmra.mrb[72].mxu1 %v3641_v53  ;;  %10298 = vrcp.f32 %v2673_v61  ;;  %v3586_v47 = vadd.f32 %v12616_v33, %v3504_v34  ;;  %v3585_v26 = vadd.f32 %v12580_v56, %v3503_v10 }
 0x552   :  { %v3644_v14 = vpack.c.bf16 %v3586_v47, %v3584_v2  ;;  %v3643_v23 = vpack.c.bf16 %v3585_v26, %v3583_v63 }
 0x554   :  { %4107 = vmatprep.mubr.bf16.mxu0 %v3644_v14  ;;  %4300 = vmatprep.mubr.bf16.mxu1 %v3644_v14 }
 0x556   :  { %v10293_v27 = vpop.eup %10292 }
 0x557   :  { %v10295_v11 = vpop.eup %10294  ;;  %v12729_v55 = vmul.f32 %v10293_v27, %v12667_v8 }
 0x558   :  { %4108 = vmatmul.mubr.bf16.gmra.mrb[76].mxu0 %v3643_v23  ;;  %4301 = vmatmul.mubr.bf16.gmra.mrb[76].mxu1 %v3643_v23  ;;  %v12732_v54 = vmul.f32 %v10295_v11, %v12670_v18 }
 0x559   :  { %v10297_v0 = vpop.eup %10296  ;;  %v3055_v13 = vmul.f32 %v12729_v55, %v12729_v55 }
 0x55a   :  { %v10299_v1 = vpop.eup %10298  ;;  %v12735_v44 = vmul.f32 %v10297_v0, %v12678_v28  ;;  %v2956_v15 = vadd.f32 %v12732_v54, %v12729_v55  ;;  %v3056_v8 = vmul.f32 %v12732_v54, %v12732_v54 }
 0x55b   :  { %v12744_v43 = vmul.f32 %v10299_v1, %v12682_v36 }
 0x55c   :  { %2957 = vadd.xlane.f32.xlu0 %v2956_v15  ;;  %v3057_v28 = vmul.f32 %v12735_v44, %v12735_v44  ;;  %v3149_v45 = vadd.f32 %v3056_v8, %v3055_v13 }
 0x55d   :  { %v2959_v18 = vadd.f32 %v12744_v43, %v12735_v44  ;;  %v3058_v52 = vmul.f32 %v12744_v43, %v12744_v43 }
 0x55f   :  { %2960 = vadd.xlane.f32.xlu1 %v2959_v18  ;;  %v3152_v35 = vadd.f32 %v3058_v52, %v3057_v28 }
 0x560   :  { %3150 = vadd.xlane.f32.xlu0 %v3149_v45 }
 0x563   :  { %3153 = vadd.xlane.f32.xlu1 %v3152_v35 }
 0x569   :  { %v2886_v17 = vpop.xlane.xlu0 %2885 }
 0x56a   :  { %v2969_v32 = vmul.f32 0.00390625, %v2886_v17 }
 0x56b   :  { %v2889_v60 = vpop.xlane.xlu1 %2888 }
 0x56c   :  { %v2970_v36 = vmul.f32 0.00390625, %v2889_v60  ;;  %v3193_v20 = vmul.f32 %v2969_v32, %v2969_v32  ;;  %v3295_v28 = vsub.f32 %v12192_v46, %v2969_v32  ;;  %v3296_v17 = vsub.f32 %v12196_v51, %v2969_v32 }
 0x56d   :  { %v3079_v25 = vpop.xlane.xlu0 %3078 }
 0x56e   :  { %v3161_v37 = vmul.f32 0.00390625, %v3079_v25  ;;  %v3194_v48 = vmul.f32 %v2970_v36, %v2970_v36  ;;  %v3297_v46 = vsub.f32 %v12200_v9, %v2970_v36 }
 0x570   :  { %v3225_v6 = vsub.f32 %v3161_v37, %v3193_v20  ;;  %v3082_v53 = vpop.xlane.xlu1 %3081 }
 0x571   :  { %v3162_v30 = vmul.f32 0.00390625, %v3082_v53  ;;  %v2892_v29 = vpop.xlane.xlu0 %2891 }
 0x572   :  { %v3257_v40 = vmax.f32 %v3225_v6, 0.0  ;;  %v12752_v59 = vmul.f32 0.00390625, %v2892_v29 }
 0x573   :  { %v3226_v42 = vsub.f32 %v3162_v30, %v3194_v48  ;;  %v3298_v30 = vsub.f32 %v12205_v57, %v2970_v36 }
 0x574   :  { %v3353_v58 = vadd.f32 1e-05, %v3257_v40  ;;  %v2895_v5 = vpop.xlane.xlu1 %2894  ;;  %v3195_v10 = vmul.f32 %v12752_v59, %v12752_v59 }
 0x575   :  { %v3258_v61 = vmax.f32 %v3226_v42, 0.0  ;;  %v12754_v34 = vmul.f32 0.00390625, %v2895_v5 }
 0x576   :  { %10300 = vrsqrt.f32 %v3353_v58  ;;  %v3085_v2 = vpop.xlane.xlu0 %3084 }
 0x577   :  { %v3354_v47 = vadd.f32 1e-05, %v3258_v61  ;;  %v3163_v26 = vmul.f32 0.00390625, %v3085_v2  ;;  %v3196_v63 = vmul.f32 %v12754_v34, %v12754_v34 }
 0x578   :  { %v3088_v14 = vpop.xlane.xlu1 %3087 }
 0x579   :  { %10302 = vrsqrt.f32 %v3354_v47  ;;  %v3227_v23 = vsub.f32 %v3163_v26, %v3195_v10  ;;  %v3164_v27 = vmul.f32 0.00390625, %v3088_v14  ;;  %v3299_v26 = vsub.f32 %v12230_v16, %v12752_v59 }
 0x57a   :  { %v2898_v11 = vpop.xlane.xlu0 %2897 }
 0x57b   :  { %v3259_v0 = vmax.f32 %v3227_v23, 0.0  ;;  %v3228_v1 = vsub.f32 %v3164_v27, %v3196_v63  ;;  %v12760_v15 = vmul.f32 0.00390625, %v2898_v11  ;;  %v3300_v27 = vsub.f32 %v12236_v19, %v12752_v59 }
 0x57c   :  { %v2901_v13 = vpop.xlane.xlu1 %2900 }
 0x57d   :  { %v3355_v8 = vadd.f32 1e-05, %v3259_v0  ;;  %v3260_v18 = vmax.f32 %v3228_v1, 0.0  ;;  %v12763_v52 = vmul.f32 0.00390625, %v2901_v13  ;;  %v3197_v45 = vmul.f32 %v12760_v15, %v12760_v15 }
 0x57e   :  { %v3091_v35 = vpop.xlane.xlu0 %3090  ;;  %v3302_v13 = vsub.f32 %v12245_v3, %v12754_v34 }
 0x57f   :  { %10304 = vrsqrt.f32 %v3355_v8  ;;  %v3356_v60 = vadd.f32 1e-05, %v3260_v18  ;;  %v3165_v20 = vmul.f32 0.00390625, %v3091_v35  ;;  %v3198_v37 = vmul.f32 %v12763_v52, %v12763_v52 }
 0x580   :  { %v10301_v25 = vpop.eup %10300 }
 0x581   :  { %10306 = vrsqrt.f32 %v3356_v60  ;;  %v3229_v48 = vsub.f32 %v3165_v20, %v3197_v45  ;;  %v3424_v6 = vmul.f32 %v10301_v25, %v3296_v17  ;;  %v3423_v53 = vmul.f32 %v10301_v25, %v3295_v28 }
 0x582   :  { %v3094_v29 = vpop.xlane.xlu1 %3093  ;;  %v3301_v25 = vsub.f32 %v12240_v49, %v12754_v34 }
 0x583   :  { %v10303_v40 = vpop.eup %10302  ;;  %v3261_v42 = vmax.f32 %v3229_v48, 0.0  ;;  %v3166_v58 = vmul.f32 0.00390625, %v3094_v29  ;;  %v2904_v51 = vpop.xlane.xlu0 %2903  ;;  %v3506_v5 = vmul.f32 %v12583_v38, %v3424_v6  ;;  %v3505_v47 = vmul.f32 %v12573_v12, %v3423_v53 }
 0x584   :  { %v3426_v32 = vmul.f32 %v10303_v40, %v3298_v30  ;;  %v3425_v61 = vmul.f32 %v10303_v40, %v3297_v46  ;;  %v12776_v63 = vmul.f32 0.00390625, %v2904_v51 }
 0x585   :  { %v3357_v10 = vadd.f32 1e-05, %v3261_v42  ;;  %v3230_v2 = vsub.f32 %v3166_v58, %v3198_v37  ;;  %v3588_v0 = vadd.f32 %v12616_v33, %v3506_v5  ;;  %v3587_v45 = vadd.f32 %v12580_v56, %v3505_v47 }
 0x586   :  { %v2907_v9 = vpop.xlane.xlu1 %2906  ;;  %v3508_v57 = vmul.f32 %v12583_v38, %v3426_v32  ;;  %v3507_v23 = vmul.f32 %v12573_v12, %v3425_v61  ;;  %v3199_v11 = vmul.f32 %v12776_v63, %v12776_v63 }
 0x587   :  { %10308 = vrsqrt.f32 %v3357_v10  ;;  %v3262_v36 = vmax.f32 %v3230_v2, 0.0  ;;  %v12779_v14 = vmul.f32 0.00390625, %v2907_v9  ;;  %v3303_v10 = vsub.f32 %v12273_v50, %v12760_v15  ;;  %v16637_v2 = vld [vmem:[#allocation20_spill] sm:$0xff] }
 0x588   :  { %v3590_v16 = vadd.f32 %v12616_v33, %v3508_v57  ;;  %v3589_v17 = vadd.f32 %v12580_v56, %v3507_v23  ;;  %v3304_v47 = vsub.f32 %v16637_v2, %v12760_v15 }
 0x589   :  { %v10305_v1 = vpop.eup %10304  ;;  %v3358_v8 = vadd.f32 1e-05, %v3262_v36  ;;  %v3097_v18 = vpop.xlane.xlu0 %3096  ;;  %v3200_v28 = vmul.f32 %v12779_v14, %v12779_v14  ;;  %v16638_v36 = vld [vmem:[#allocation21_spill] sm:$0xff] }
 0x58a   :  { %v3167_v35 = vmul.f32 0.00390625, %v3097_v18  ;;  %v3100_v19 = vpop.xlane.xlu1 %3099  ;;  %v3646_v59 = vpack.c.bf16 %v3590_v16, %v3588_v0  ;;  %v3428_v60 = vmul.f32 %v10305_v1, %v3300_v27  ;;  %v3427_v3 = vmul.f32 %v10305_v1, %v3299_v26  ;;  %v16639_v27 = vld [vmem:[#allocation22_spill] sm:$0xff] }
 0x58b   :  { %v10307_v20 = vpop.eup %10306  ;;  %10310 = vrsqrt.f32 %v3358_v8  ;;  %v3168_v37 = vmul.f32 0.00390625, %v3100_v19  ;;  %v3645_v6 = vpack.c.bf16 %v3589_v17, %v3587_v45  ;;  %v3305_v23 = vsub.f32 %v16638_v36, %v12763_v52  ;;  %v16642_v36 = vld [vmem:[#allocation26_spill] sm:$0xff] }
 0x58c   :  { %v3231_v48 = vsub.f32 %v3167_v35, %v3199_v11  ;;  %4117 = vmatprep.mubr.bf16.mxu0 %v3646_v59  ;;  %4310 = vmatprep.mubr.bf16.mxu1 %v3646_v59  ;;  %v3430_v53 = vmul.f32 %v10307_v20, %v3302_v13  ;;  %v3429_v29 = vmul.f32 %v10307_v20, %v3301_v25 }
 0x58d   :  { %v3232_v46 = vsub.f32 %v3168_v37, %v3200_v28  ;;  %v2910_v30 = vpop.xlane.xlu0 %2909  ;;  %4118 = vmatmul.mubr.bf16.gmra.mrb[80].mxu0 %v3645_v6  ;;  %4311 = vmatmul.mubr.bf16.gmra.mrb[80].mxu1 %v3645_v6  ;;  %v3510_v51 = vmul.f32 %v12583_v38, %v3428_v60  ;;  %v3509_v5 = vmul.f32 %v12573_v12, %v3427_v3 }
 0x58e   :  { %v3263_v40 = vmax.f32 %v3231_v48, 0.0  ;;  %v12796_v42 = vmul.f32 0.00390625, %v2910_v30  ;;  %v2913_v58 = vpop.xlane.xlu1 %2912  ;;  %v3512_v49 = vmul.f32 %v12583_v38, %v3430_v53  ;;  %v3511_v61 = vmul.f32 %v12573_v12, %v3429_v29 }
 0x58f   :  { %v3264_v34 = vmax.f32 %v3232_v46, 0.0  ;;  %v12800_v32 = vmul.f32 0.00390625, %v2913_v58  ;;  %v3306_v11 = vsub.f32 %v16639_v27, %v12763_v52  ;;  %v3592_v15 = vadd.f32 %v12616_v33, %v3510_v51  ;;  %v16640_v51 = vld [vmem:[#allocation23_spill] sm:$0xff] }
 0x590   :  { %v3359_v26 = vadd.f32 1e-05, %v3263_v40  ;;  %v3201_v9 = vmul.f32 %v12796_v42, %v12796_v42  ;;  %v3594_v8 = vadd.f32 %v12616_v33, %v3512_v49  ;;  %v3591_v28 = vadd.f32 %v12580_v56, %v3509_v5 }
 0x591   :  { %v10309_v57 = vpop.eup %10308  ;;  %v3360_v0 = vadd.f32 1e-05, %v3264_v34  ;;  %v3103_v16 = vpop.xlane.xlu0 %3102  ;;  %v3202_v1 = vmul.f32 %v12800_v32, %v12800_v32  ;;  %v3593_v45 = vadd.f32 %v12580_v56, %v3511_v61  ;;  %v3307_v49 = vsub.f32 %v16640_v51, %v12776_v63 }
 0x592   :  { %10312 = vrsqrt.f32 %v3359_v26  ;;  %v3169_v50 = vmul.f32 0.00390625, %v3103_v16  ;;  %v3106_v13 = vpop.xlane.xlu1 %3105  ;;  %v3648_v52 = vpack.c.bf16 %v3594_v8, %v3592_v15  ;;  %v3432_v19 = vmul.f32 %v10309_v57, %v3304_v47 }
 0x593   :  { %10314 = vrsqrt.f32 %v3360_v0  ;;  %v3170_v18 = vmul.f32 0.00390625, %v3106_v13  ;;  %v3431_v59 = vmul.f32 %v10309_v57, %v3303_v10  ;;  %v3647_v25 = vpack.c.bf16 %v3593_v45, %v3591_v28  ;;  %v16641_v10 = vld [vmem:[#allocation24_spill] sm:$0xff]  ;;  %v16643_v45 = vld [vmem:[#allocation25_spill] sm:$0xff] }
 0x594   :  { %v3233_v35 = vsub.f32 %v3169_v50, %v3201_v9  ;;  %4127 = vmatprep.mubr.bf16.mxu0 %v3648_v52  ;;  %4320 = vmatprep.mubr.bf16.mxu1 %v3648_v52  ;;  %v3514_v40 = vmul.f32 %v12583_v38, %v3432_v19  ;;  %v3308_v2 = vsub.f32 %v16641_v10, %v12776_v63 }
 0x595   :  { %v10311_v17 = vpop.eup %10310  ;;  %v3234_v60 = vsub.f32 %v3170_v18, %v3202_v1  ;;  %v2916_v20 = vpop.xlane.xlu0 %2915  ;;  %4128 = vmatmul.mubr.bf16.gmra.mrb[84].mxu0 %v3647_v25  ;;  %4321 = vmatmul.mubr.bf16.gmra.mrb[84].mxu1 %v3647_v25  ;;  %v3513_v58 = vmul.f32 %v12573_v12, %v3431_v59 }
 0x596   :  { %v3265_v37 = vmax.f32 %v3233_v35, 0.0  ;;  %v2919_v3 = vpop.xlane.xlu1 %2918  ;;  %v3434_v48 = vmul.f32 %v10311_v17, %v3306_v11  ;;  %v3433_v6 = vmul.f32 %v10311_v17, %v3305_v23  ;;  %v12820_v46 = vmul.f32 0.00390625, %v2916_v20 }
 0x597   :  { %v3266_v53 = vmax.f32 %v3234_v60, 0.0  ;;  %v12822_v30 = vmul.f32 0.00390625, %v2919_v3  ;;  %v3310_v23 = vsub.f32 %v16642_v36, %v12779_v14  ;;  %v3596_v16 = vadd.f32 %v12616_v33, %v3514_v40 }
 0x598   :  { %v3361_v29 = vadd.f32 1e-05, %v3265_v37  ;;  %v3203_v5 = vmul.f32 %v12820_v46, %v12820_v46  ;;  %v3516_v9 = vmul.f32 %v12583_v38, %v3434_v48  ;;  %v3515_v57 = vmul.f32 %v12573_v12, %v3433_v6 }
 0x599   :  { %v3362_v34 = vadd.f32 1e-05, %v3266_v53  ;;  %v3204_v61 = vmul.f32 %v12822_v30, %v12822_v30  ;;  %v3109_v47 = vpop.xlane.xlu0 %3108  ;;  %v3595_v63 = vadd.f32 %v12580_v56, %v3513_v58  ;;  %v3309_v35 = vsub.f32 %v16643_v45, %v12779_v14  ;;  %v16644_v14 = vld [vmem:[#allocation27_spill] sm:$0xff] }
 0x59a   :  { %10316 = vrsqrt.f32 %v3361_v29  ;;  %v3112_v26 = vpop.xlane.xlu1 %3111  ;;  %v3171_v27 = vmul.f32 0.00390625, %v3109_v47  ;;  %v3598_v1 = vadd.f32 %v12616_v33, %v3516_v9  ;;  %v3597_v50 = vadd.f32 %v12580_v56, %v3515_v57 }
 0x59b   :  { %10318 = vrsqrt.f32 %v3362_v34  ;;  %v3172_v11 = vmul.f32 0.00390625, %v3112_v26  ;;  %v3311_v29 = vsub.f32 %v16644_v14, %v12796_v42 }
 0x59c   :  { %v10313_v0 = vpop.eup %10312  ;;  %v3235_v15 = vsub.f32 %v3171_v27, %v3203_v5  ;;  %v3650_v19 = vpack.c.bf16 %v3598_v1, %v3596_v16  ;;  %v3649_v17 = vpack.c.bf16 %v3597_v50, %v3595_v63  ;;  %v16646_v5 = vld [vmem:[#allocation29_spill] sm:$0xff] }
 0x59d   :  { %v10315_v13 = vpop.eup %10314  ;;  %v3236_v8 = vsub.f32 %v3172_v11, %v3204_v61  ;;  %v3436_v18 = vmul.f32 %v10313_v0, %v3308_v2  ;;  %v3435_v28 = vmul.f32 %v10313_v0, %v3307_v49  ;;  %v2922_v52 = vpop.xlane.xlu0 %2921  ;;  %v16645_v49 = vld [vmem:[#allocation28_spill] sm:$0xff]  ;;  %v3313_v61 = vsub.f32 %v16646_v5, %v12800_v32 }
 0x59e   :  { %v2925_v59 = vpop.xlane.xlu1 %2924  ;;  %v3438_v60 = vmul.f32 %v10315_v13, %v3310_v23  ;;  %v3267_v20 = vmax.f32 %v3235_v15, 0.0  ;;  %v12846_v3 = vmul.f32 0.00390625, %v2922_v52  ;;  %4137 = vmatprep.mubr.bf16.mxu0 %v3650_v19  ;;  %4330 = vmatprep.mubr.bf16.mxu1 %v3650_v19  ;;  %v3437_v53 = vmul.f32 %v10315_v13, %v3309_v35 }
 0x59f   :  { %v3268_v25 = vmax.f32 %v3236_v8, 0.0  ;;  %v12844_v37 = vmul.f32 0.00390625, %v2925_v59  ;;  %v3518_v48 = vmul.f32 %v12583_v38, %v3436_v18  ;;  %4138 = vmatmul.mubr.bf16.gmra.mrb[88].mxu0 %v3649_v17  ;;  %4331 = vmatmul.mubr.bf16.gmra.mrb[88].mxu1 %v3649_v17  ;;  %v3517_v51 = vmul.f32 %v12573_v12, %v3435_v28 }
 0x5a0   :  { %v3520_v6 = vmul.f32 %v12583_v38, %v3438_v60  ;;  %v3363_v40 = vadd.f32 1e-05, %v3267_v20  ;;  %v3312_v34 = vsub.f32 %v16645_v49, %v12796_v42  ;;  %v3205_v10 = vmul.f32 %v12846_v3, %v12846_v3  ;;  %v16647_v42 = vld [vmem:[#allocation30_spill] sm:$0xff] }
 0x5a1   :  { %v3364_v58 = vadd.f32 1e-05, %v3268_v25  ;;  %v3115_v2 = vpop.xlane.xlu0 %3114  ;;  %v3206_v47 = vmul.f32 %v12844_v37, %v12844_v37  ;;  %v3600_v57 = vadd.f32 %v12616_v33, %v3518_v48  ;;  %v3314_v27 = vsub.f32 %v16647_v42, %v12800_v32 }
 0x5a2   :  { %10320 = vrsqrt.f32 %v3363_v40  ;;  %v3173_v26 = vmul.f32 0.00390625, %v3115_v2  ;;  %v3118_v9 = vpop.xlane.xlu1 %3117  ;;  %v3602_v36 = vadd.f32 %v12616_v33, %v3520_v6  ;;  %v3519_v0 = vmul.f32 %v12573_v12, %v3437_v53  ;;  %v16648_v53 = vld [vmem:[#allocation31_spill] sm:$0xff] }
 0x5a3   :  { %10322 = vrsqrt.f32 %v3364_v58  ;;  %v3174_v11 = vmul.f32 0.00390625, %v3118_v9  ;;  %v3599_v50 = vadd.f32 %v12580_v56, %v3517_v51  ;;  %v3315_v14 = vsub.f32 %v16648_v53, %v12820_v46 }
 0x5a4   :  { %v10317_v23 = vpop.eup %10316  ;;  %v3237_v1 = vsub.f32 %v3173_v26, %v3205_v10  ;;  %v3652_v63 = vpack.c.bf16 %v3602_v36, %v3600_v57  ;;  %v3601_v18 = vadd.f32 %v12580_v56, %v3519_v0  ;;  %v16649_v10 = vld [vmem:[#allocation32_spill] sm:$0xff]  ;;  %v16650_v57 = vld [vmem:[#allocation33_spill] sm:$0xff] }
 0x5a5   :  { %v10319_v16 = vpop.eup %10318  ;;  %v3440_v13 = vmul.f32 %v10317_v23, %v3312_v34  ;;  %v3238_v15 = vsub.f32 %v3174_v11, %v3206_v47  ;;  %v2928_v8 = vpop.xlane.xlu0 %2927  ;;  %v3439_v45 = vmul.f32 %v10317_v23, %v3311_v29  ;;  %v3316_v2 = vsub.f32 %v16649_v10, %v12820_v46  ;;  %v16651_v23 = vld [vmem:[#allocation34_spill] sm:$0xff] }
 0x5a6   :  { %v3442_v28 = vmul.f32 %v10319_v16, %v3314_v27  ;;  %v3269_v35 = vmax.f32 %v3237_v1, 0.0  ;;  %v12868_v52 = vmul.f32 0.00390625, %v2928_v8  ;;  %4147 = vmatprep.mubr.bf16.mxu0 %v3652_v63  ;;  %v2931_v32 = vpop.xlane.xlu1 %2930  ;;  %4340 = vmatprep.mubr.bf16.mxu1 %v3652_v63  ;;  %v3441_v59 = vmul.f32 %v10319_v16, %v3313_v61 }
 0x5a7   :  { %v3522_v19 = vmul.f32 %v12583_v38, %v3440_v13  ;;  %v3270_v17 = vmax.f32 %v3238_v15, 0.0  ;;  %v12871_v60 = vmul.f32 0.00390625, %v2931_v32  ;;  %v3651_v20 = vpack.c.bf16 %v3601_v18, %v3599_v50 }
 0x5a8   :  { %v3524_v25 = vmul.f32 %v12583_v38, %v3442_v28  ;;  %v3365_v48 = vadd.f32 1e-05, %v3269_v35  ;;  %v3207_v6 = vmul.f32 %v12868_v52, %v12868_v52  ;;  %v3521_v51 = vmul.f32 %v12573_v12, %v3439_v45 }
 0x5a9   :  { %v3366_v29 = vadd.f32 1e-05, %v3270_v17  ;;  %4148 = vmatmul.mubr.bf16.gmra.mrb[92].mxu0 %v3651_v20  ;;  %4341 = vmatmul.mubr.bf16.gmra.mrb[92].mxu1 %v3651_v20  ;;  %v3121_v40 = vpop.xlane.xlu0 %3120  ;;  %v3208_v58 = vmul.f32 %v12871_v60, %v12871_v60  ;;  %v3604_v5 = vadd.f32 %v12616_v33, %v3522_v19  ;;  %v3523_v26 = vmul.f32 %v12573_v12, %v3441_v59 }
 0x5aa   :  { %10324 = vrsqrt.f32 %v3365_v48  ;;  %v3175_v49 = vmul.f32 0.00390625, %v3121_v40  ;;  %v3606_v61 = vadd.f32 %v12616_v33, %v3524_v25  ;;  %v3317_v36 = vsub.f32 %v16650_v57, %v12822_v30 }
 0x5ab   :  { %v3124_v34 = vpop.xlane.xlu1 %3123  ;;  %10326 = vrsqrt.f32 %v3366_v29  ;;  %v3318_v42 = vsub.f32 %v16651_v23, %v12822_v30  ;;  %v3603_v63 = vadd.f32 %v12580_v56, %v3521_v51  ;;  %v3605_v46 = vadd.f32 %v12580_v56, %v3523_v26 }
 0x5ac   :  { %v3176_v47 = vmul.f32 0.00390625, %v3124_v34  ;;  %v10321_v9 = vpop.eup %10320  ;;  %v3239_v27 = vsub.f32 %v3175_v49, %v3207_v6  ;;  %v3654_v11 = vpack.c.bf16 %v3606_v61, %v3604_v5  ;;  %v16652_v6 = vld [vmem:[#allocation36_spill] sm:$0xff]  ;;  %v16653_v5 = vld [vmem:[#allocation38_spill] sm:$0xff] }
 0x5ad   :  { %v10323_v0 = vpop.eup %10322  ;;  %v2934_v1 = vpop.xlane.xlu0 %2933  ;;  %v3444_v50 = vmul.f32 %v10321_v9, %v3316_v2  ;;  %v3443_v28 = vmul.f32 %v10321_v9, %v3315_v14  ;;  %v3653_v35 = vpack.c.bf16 %v3605_v46, %v3603_v63  ;;  %v3320_v53 = vsub.f32 %v16652_v6, %v12846_v3 }
 0x5ae   :  { %v3240_v16 = vsub.f32 %v3176_v47, %v3208_v58  ;;  %v3271_v13 = vmax.f32 %v3239_v27, 0.0  ;;  %v12892_v15 = vmul.f32 0.00390625, %v2934_v1  ;;  %4157 = vmatprep.mubr.bf16.mxu0 %v3654_v11  ;;  %4350 = vmatprep.mubr.bf16.mxu1 %v3654_v11  ;;  %v3446_v18 = vmul.f32 %v10323_v0, %v3318_v42 }
 0x5af   :  { %v2937_v8 = vpop.xlane.xlu1 %2936  ;;  %v3445_v32 = vmul.f32 %v10323_v0, %v3317_v36  ;;  %v3526_v17 = vmul.f32 %v12583_v38, %v3444_v50  ;;  %v3525_v51 = vmul.f32 %v12573_v12, %v3443_v28  ;;  %v3322_v61 = vsub.f32 %v16653_v5, %v12844_v37  ;;  %v16654_v28 = vld [vmem:[#allocation35_spill] sm:$0xff] }
 0x5b0   :  { %v3272_v45 = vmax.f32 %v3240_v16, 0.0  ;;  %v12894_v30 = vmul.f32 0.00390625, %v2937_v8  ;;  %v3367_v19 = vadd.f32 1e-05, %v3271_v13  ;;  %v3209_v59 = vmul.f32 %v12892_v15, %v12892_v15 }
 0x5b1   :  { %4158 = vmatmul.mubr.bf16.gmra.mrb[96].mxu0 %v3653_v35  ;;  %4351 = vmatmul.mubr.bf16.gmra.mrb[96].mxu1 %v3653_v35  ;;  %v3127_v25 = vpop.xlane.xlu0 %3126  ;;  %v3528_v40 = vmul.f32 %v12583_v38, %v3446_v18  ;;  %v3527_v49 = vmul.f32 %v12573_v12, %v3445_v32  ;;  %v3608_v2 = vadd.f32 %v12616_v33, %v3526_v17  ;;  %v16655_v35 = vld [vmem:[#allocation37_spill] sm:$0xff] }
 0x5b2   :  { %v3368_v20 = vadd.f32 1e-05, %v3272_v45  ;;  %v3210_v48 = vmul.f32 %v12894_v30, %v12894_v30  ;;  %10328 = vrsqrt.f32 %v3367_v19  ;;  %v3177_v14 = vmul.f32 0.00390625, %v3127_v25  ;;  %v16656_v19 = vld [vmem:[#allocation39_spill] sm:$0xff]  ;;  %v16657_v25 = vld [vmem:[#allocation40_spill] sm:$0xff] }
 0x5b3   :  { %v3130_v29 = vpop.xlane.xlu1 %3129  ;;  %v3610_v47 = vadd.f32 %v12616_v33, %v3528_v40  ;;  %v3607_v36 = vadd.f32 %v12580_v56, %v3525_v51  ;;  %v3609_v23 = vadd.f32 %v12580_v56, %v3527_v49  ;;  %v3319_v45 = vsub.f32 %v16654_v28, %v12846_v3 }
 0x5b4   :  { %10330 = vrsqrt.f32 %v3368_v20  ;;  %v3178_v58 = vmul.f32 0.00390625, %v3130_v29  ;;  %v10325_v34 = vpop.eup %10324  ;;  %v3241_v10 = vsub.f32 %v3177_v14, %v3209_v59  ;;  %v3321_v32 = vsub.f32 %v16655_v35, %v12844_v37  ;;  %v16658_v14 = vld [vmem:[#allocation42_spill] sm:$0xff] }
 0x5b5   :  { %v10327_v26 = vpop.eup %10326  ;;  %v2940_v57 = vpop.xlane.xlu0 %2939  ;;  %v3448_v42 = vmul.f32 %v10325_v34, %v3320_v53  ;;  %v3656_v0 = vpack.c.bf16 %v3610_v47, %v3608_v2  ;;  %v3655_v46 = vpack.c.bf16 %v3609_v23, %v3607_v36  ;;  %v3323_v59 = vsub.f32 %v16656_v19, %v12868_v52 }
 0x5b6   :  { %v3242_v9 = vsub.f32 %v3178_v58, %v3210_v48  ;;  %v3273_v27 = vmax.f32 %v3241_v10, 0.0  ;;  %v12912_v11 = vmul.f32 0.00390625, %v2940_v57  ;;  %v3450_v1 = vmul.f32 %v10327_v26, %v3322_v61 }
 0x5b7   :  { %v2943_v16 = vpop.xlane.xlu1 %2942  ;;  %4167 = vmatprep.mubr.bf16.mxu0 %v3656_v0  ;;  %4360 = vmatprep.mubr.bf16.mxu1 %v3656_v0  ;;  %v3530_v18 = vmul.f32 %v12583_v38, %v3448_v42  ;;  %v3324_v48 = vsub.f32 %v16657_v25, %v12868_v52  ;;  %v3326_v3 = vsub.f32 %v16658_v14, %v12871_v60 }
 0x5b8   :  { %v3274_v63 = vmax.f32 %v3242_v9, 0.0  ;;  %v3369_v50 = vadd.f32 1e-05, %v3273_v27  ;;  %v12914_v13 = vmul.f32 0.00390625, %v2943_v16  ;;  %v3211_v8 = vmul.f32 %v12912_v11, %v12912_v11  ;;  %v16659_v16 = vld [vmem:[#allocation41_spill] sm:$0xff] }
 0x5b9   :  { %4168 = vmatmul.mubr.bf16.gmra.mrb[100].mxu0 %v3655_v46  ;;  %4361 = vmatmul.mubr.bf16.gmra.mrb[100].mxu1 %v3655_v46  ;;  %v3133_v20 = vpop.xlane.xlu0 %3132  ;;  %v3532_v53 = vmul.f32 %v12583_v38, %v3450_v1  ;;  %v3447_v29 = vmul.f32 %v10325_v34, %v3319_v45  ;;  %v3449_v37 = vmul.f32 %v10327_v26, %v3321_v32 }
 0x5ba   :  { %v3370_v17 = vadd.f32 1e-05, %v3274_v63  ;;  %10332 = vrsqrt.f32 %v3369_v50  ;;  %v3179_v6 = vmul.f32 0.00390625, %v3133_v20  ;;  %v3212_v51 = vmul.f32 %v12914_v13, %v12914_v13  ;;  %v16661_v20 = vld [vmem:[#allocation44_spill] sm:$0xff] }
 0x5bb   :  { %v3612_v49 = vadd.f32 %v12616_v33, %v3530_v18  ;;  %v3614_v5 = vadd.f32 %v12616_v33, %v3532_v53  ;;  %v3529_v10 = vmul.f32 %v12573_v12, %v3447_v29  ;;  %v3531_v2 = vmul.f32 %v12573_v12, %v3449_v37 }
 0x5bc   :  { %10334 = vrsqrt.f32 %v3370_v17  ;;  %v10329_v40 = vpop.eup %10328  ;;  %v3243_v58 = vsub.f32 %v3179_v6, %v3211_v8  ;;  %v3325_v1 = vsub.f32 %v16659_v16, %v12871_v60  ;;  %v16660_v8 = vld [vmem:[#allocation43_spill] sm:$0xff]  ;;  %v3328_v25 = vsub.f32 %v16661_v20, %v12892_v15 }
 0x5bd   :  { %v3452_v47 = vmul.f32 %v10329_v40, %v3324_v48  ;;  %v3451_v9 = vmul.f32 %v10329_v40, %v3323_v59  ;;  %v3658_v36 = vpack.c.bf16 %v3614_v5, %v3612_v49  ;;  %v3611_v27 = vadd.f32 %v12580_v56, %v3529_v10  ;;  %v16663_v49 = vld [vmem:[#allocation46_spill] sm:$0xff] }
 0x5be   :  { %v10331_v52 = vpop.eup %10330  ;;  %v2946_v61 = vpop.xlane.xlu0 %2945  ;;  %v3275_v57 = vmax.f32 %v3243_v58, 0.0  ;;  %v3613_v0 = vadd.f32 %v12580_v56, %v3531_v2  ;;  %v3327_v18 = vsub.f32 %v16660_v8, %v12892_v15  ;;  %v3330_v15 = vsub.f32 %v16663_v49, %v12894_v30 }
 0x5bf   :  { %v3136_v34 = vpop.xlane.xlu1 %3135  ;;  %v12936_v26 = vmul.f32 0.00390625, %v2946_v61  ;;  %v3454_v23 = vmul.f32 %v10331_v52, %v3326_v3  ;;  %4177 = vmatprep.mubr.bf16.mxu0 %v3658_v36  ;;  %4370 = vmatprep.mubr.bf16.mxu1 %v3658_v36  ;;  %v3534_v50 = vmul.f32 %v12583_v38, %v3452_v47  ;;  %v3453_v60 = vmul.f32 %v10331_v52, %v3325_v1  ;;  %v16662_v3 = vld [vmem:[#allocation45_spill] sm:$0xff] }
 0x5c0   :  { %v3180_v42 = vmul.f32 0.00390625, %v3136_v34  ;;  %v3371_v63 = vadd.f32 1e-05, %v3275_v57  ;;  %v3657_v45 = vpack.c.bf16 %v3613_v0, %v3611_v27  ;;  %v3533_v17 = vmul.f32 %v12573_v12, %v3451_v9 }
 0x5c1   :  { %v3213_v46 = vmul.f32 %v12936_v26, %v12936_v26  ;;  %v3536_v32 = vmul.f32 %v12583_v38, %v3454_v23  ;;  %v3329_v29 = vsub.f32 %v16662_v3, %v12894_v30  ;;  %v3616_v40 = vadd.f32 %v12616_v33, %v3534_v50 }
 0x5c2   :  { %v3244_v28 = vsub.f32 %v3180_v42, %v3212_v51  ;;  %v3139_v35 = vpop.xlane.xlu0 %3138  ;;  %10336 = vrsqrt.f32 %v3371_v63  ;;  %4178 = vmatmul.mubr.bf16.gmra.mrb[104].mxu0 %v3657_v45  ;;  %4371 = vmatmul.mubr.bf16.gmra.mrb[104].mxu1 %v3657_v45  ;;  %v3535_v58 = vmul.f32 %v12573_v12, %v3453_v60  ;;  %v3615_v61 = vadd.f32 %v12580_v56, %v3533_v17 }
 0x5c3   :  { %v2949_v19 = vpop.xlane.xlu1 %2948  ;;  %v3181_v59 = vmul.f32 0.00390625, %v3139_v35  ;;  %v3618_v53 = vadd.f32 %v12616_v33, %v3536_v32 }
 0x5c4   :  { %v3276_v48 = vmax.f32 %v3244_v28, 0.0  ;;  %v12951_v6 = vmul.f32 0.00390625, %v2949_v19  ;;  %v10333_v14 = vpop.eup %10332  ;;  %v3617_v57 = vadd.f32 %v12580_v56, %v3535_v58 }
 0x5c5   :  { %v3245_v37 = vsub.f32 %v3181_v59, %v3213_v46  ;;  %v3660_v9 = vpack.c.bf16 %v3618_v53, %v3616_v40  ;;  %v3456_v34 = vmul.f32 %v10333_v14, %v3328_v25  ;;  %v3455_v16 = vmul.f32 %v10333_v14, %v3327_v18  ;;  %v16664_v18 = vld [vmem:[#allocation47_spill] sm:$0xff] }
 0x5c6   :  { %v10335_v51 = vpop.eup %10334  ;;  %v3372_v5 = vadd.f32 1e-05, %v3276_v48  ;;  %v3214_v52 = vmul.f32 %v12951_v6, %v12951_v6  ;;  %v2952_v47 = vpop.xlane.xlu0 %2951  ;;  %v3659_v30 = vpack.c.bf16 %v3617_v57, %v3615_v61  ;;  %v3331_v60 = vsub.f32 %v16664_v18, %v12912_v11  ;;  %v16665_v48 = vld [vmem:[#allocation48_spill] sm:$0xff] }
 0x5c7   :  { %v3277_v10 = vmax.f32 %v3245_v37, 0.0  ;;  %v3142_v2 = vpop.xlane.xlu1 %3141  ;;  %v12964_v23 = vmul.f32 0.00390625, %v2952_v47  ;;  %v3458_v42 = vmul.f32 %v10335_v51, %v3330_v15  ;;  %4187 = vmatprep.mubr.bf16.mxu0 %v3660_v9  ;;  %4380 = vmatprep.mubr.bf16.mxu1 %v3660_v9  ;;  %v3538_v0 = vmul.f32 %v12583_v38, %v3456_v34 }
 0x5c8   :  { %10338 = vrsqrt.f32 %v3372_v5  ;;  %v3182_v36 = vmul.f32 0.00390625, %v3142_v2  ;;  %v3457_v28 = vmul.f32 %v10335_v51, %v3329_v29  ;;  %v3537_v19 = vmul.f32 %v12573_v12, %v3455_v16 }
 0x5c9   :  { %v3373_v27 = vadd.f32 1e-05, %v3277_v10  ;;  %v3215_v63 = vmul.f32 %v12964_v23, %v12964_v23  ;;  %v3540_v8 = vmul.f32 %v12583_v38, %v3458_v42  ;;  %v3620_v17 = vadd.f32 %v12616_v33, %v3538_v0 }
 0x5ca   :  { %v3246_v1 = vsub.f32 %v3182_v36, %v3214_v52  ;;  %v3145_v50 = vpop.xlane.xlu0 %3144  ;;  %4188 = vmatmul.mubr.bf16.gmra.mrb[108].mxu0 %v3659_v30  ;;  %4381 = vmatmul.mubr.bf16.gmra.mrb[108].mxu1 %v3659_v30  ;;  %v3539_v25 = vmul.f32 %v12573_v12, %v3457_v28  ;;  %v3332_v53 = vsub.f32 %v16665_v48, %v12912_v11 }
 0x5cb   :  { %10340 = vrsqrt.f32 %v3373_v27  ;;  %v2955_v46 = vpop.xlane.xlu1 %2954  ;;  %v3183_v32 = vmul.f32 0.00390625, %v3145_v50  ;;  %v3622_v20 = vadd.f32 %v12616_v33, %v3540_v8  ;;  %v3333_v14 = vsub.f32 %v12557_v21, %v12914_v13 }
 0x5cc   :  { %v3278_v45 = vmax.f32 %v3246_v1, 0.0  ;;  %v12970_v35 = vmul.f32 0.00390625, %v2955_v46  ;;  %v10337_v59 = vpop.eup %10336  ;;  %v3619_v51 = vadd.f32 %v12580_v56, %v3537_v19  ;;  %v3621_v49 = vadd.f32 %v12580_v56, %v3539_v25 }
 0x5cd   :  { %v3247_v29 = vsub.f32 %v3183_v32, %v3215_v63  ;;  %v3662_v58 = vpack.c.bf16 %v3622_v20, %v3620_v17  ;;  %v3460_v52 = vmul.f32 %v10337_v59, %v3332_v53  ;;  %v3334_v11 = vsub.f32 %v12564_v62, %v12914_v13 }
 0x5ce   :  { %v3374_v3 = vadd.f32 1e-05, %v3278_v45  ;;  %v3216_v37 = vmul.f32 %v12970_v35, %v12970_v35  ;;  %v3661_v21 = vpack.c.bf16 %v3621_v49, %v3619_v51  ;;  %v3459_v61 = vmul.f32 %v10337_v59, %v3331_v60 }
 0x5cf   :  { %v3148_v40 = vpop.xlane.xlu1 %3147  ;;  %v3279_v15 = vmax.f32 %v3247_v29, 0.0  ;;  %4197 = vmatprep.mubr.bf16.mxu0 %v3662_v58  ;;  %4390 = vmatprep.mubr.bf16.mxu1 %v3662_v58  ;;  %v3542_v57 = vmul.f32 %v12583_v38, %v3460_v52  ;;  %v3335_v42 = vsub.f32 %v12586_v22, %v12936_v26  ;;  %v3336_v27 = vsub.f32 %v12595_v41, %v12936_v26 }
 0x5d0   :  { %10342 = vrsqrt.f32 %v3374_v3  ;;  %v3184_v5 = vmul.f32 0.00390625, %v3148_v40  ;;  %v3541_v36 = vmul.f32 %v12573_v12, %v3459_v61  ;;  %v3337_v26 = vsub.f32 %v12598_v7, %v12951_v6 }
 0x5d1   :  { %v3375_v2 = vadd.f32 1e-05, %v3279_v15  ;;  %v3624_v46 = vadd.f32 %v12616_v33, %v3542_v57  ;;  %v3338_v8 = vsub.f32 %v12607_v31, %v12951_v6  ;;  %v3339_v17 = vsub.f32 %v12633_v4, %v12964_v23 }
 0x5d2   :  { %v10339_v10 = vpop.eup %10338  ;;  %v3248_v47 = vsub.f32 %v3184_v5, %v3216_v37  ;;  %4198 = vmatmul.mubr.bf16.gmra.mrb[112].mxu0 %v3661_v21  ;;  %4391 = vmatmul.mubr.bf16.gmra.mrb[112].mxu1 %v3661_v21  ;;  %v3623_v22 = vadd.f32 %v12580_v56, %v3541_v36  ;;  %v3340_v7 = vsub.f32 %v12640_v39, %v12964_v23  ;;  %v16666_v39 = vld [vmem:[#allocation49_spill] sm:$0xff] }
 0x5d3   :  { %v3462_v9 = vmul.f32 %v10339_v10, %v3334_v11  ;;  %v3461_v34 = vmul.f32 %v10339_v10, %v3333_v14  ;;  %10344 = vrsqrt.f32 %v3375_v2  ;;  %v3341_v4 = vsub.f32 %v12645_v24, %v12970_v35 }
 0x5d4   :  { %v3280_v62 = vmax.f32 %v3248_v47, 0.0  ;;  %v3342_v23 = vsub.f32 %v16666_v39, %v12970_v35 }
 0x5d5   :  { %v10341_v13 = vpop.eup %10340  ;;  %v3544_v30 = vmul.f32 %v12583_v38, %v3462_v9  ;;  %v3543_v0 = vmul.f32 %v12573_v12, %v3461_v34 }
 0x5d6   :  { %v3376_v16 = vadd.f32 1e-05, %v3280_v62  ;;  %v3464_v1 = vmul.f32 %v10341_v13, %v3336_v27  ;;  %v3463_v63 = vmul.f32 %v10341_v13, %v3335_v42 }
 0x5d7   :  { %v3626_v50 = vadd.f32 %v12616_v33, %v3544_v30  ;;  %v3625_v41 = vadd.f32 %v12580_v56, %v3543_v0 }
 0x5d8   :  { %10346 = vrsqrt.f32 %v3376_v16  ;;  %v3546_v19 = vmul.f32 %v12583_v38, %v3464_v1  ;;  %v3545_v59 = vmul.f32 %v12573_v12, %v3463_v63 }
 0x5d9   :  { %v3664_v28 = vpack.c.bf16 %v3626_v50, %v3624_v46  ;;  %v3663_v45 = vpack.c.bf16 %v3625_v41, %v3623_v22 }
 0x5da   :  { %v10343_v32 = vpop.eup %10342  ;;  %v3628_v25 = vadd.f32 %v12616_v33, %v3546_v19  ;;  %v3627_v48 = vadd.f32 %v12580_v56, %v3545_v59 }
 0x5db   :  { %4207 = vmatprep.mubr.bf16.mxu0 %v3664_v28  ;;  %4400 = vmatprep.mubr.bf16.mxu1 %v3664_v28  ;;  %v3466_v18 = vmul.f32 %v10343_v32, %v3338_v8  ;;  %v3465_v60 = vmul.f32 %v10343_v32, %v3337_v26 }
 0x5dc   :  { %4208 = vmatmul.mubr.bf16.gmra.mrb[116].mxu0 %v3663_v45  ;;  %4401 = vmatmul.mubr.bf16.gmra.mrb[116].mxu1 %v3663_v45 }
 0x5dd   :  { %v3548_v31 = vmul.f32 %v12583_v38, %v3466_v18  ;;  %v3547_v6 = vmul.f32 %v12573_v12, %v3465_v60  ;;  %v10345_v20 = vpop.eup %10344 }
 0x5de   :  { %v3468_v3 = vmul.f32 %v10345_v20, %v3340_v7  ;;  %v3467_v29 = vmul.f32 %v10345_v20, %v3339_v17 }
 0x5df   :  { %v3630_v53 = vadd.f32 %v12616_v33, %v3548_v31  ;;  %v3629_v14 = vadd.f32 %v12580_v56, %v3547_v6 }
 0x5e0   :  { %v3550_v51 = vmul.f32 %v12583_v38, %v3468_v3  ;;  %v3549_v5 = vmul.f32 %v12573_v12, %v3467_v29 }
 0x5e1   :  { %v3666_v37 = vpack.c.bf16 %v3630_v53, %v3628_v25  ;;  %v3665_v40 = vpack.c.bf16 %v3629_v14, %v3627_v48  ;;  %v16667_v25 = vmov 0  }
 0x5e2   :  { %v10347_v58 = vpop.eup %10346  ;;  %v3632_v11 = vadd.f32 %v12616_v33, %v3550_v51  ;;  %v3631_v21 = vadd.f32 %v12580_v56, %v3549_v5  ;;  %v13045_v5 = vld [vmem:[%s16593_s24] sm:$0xff]  }
 0x5e3   :  { %4217 = vmatprep.mubr.bf16.mxu0 %v3666_v37  ;;  %4410 = vmatprep.mubr.bf16.mxu1 %v3666_v37  ;;  %v3470_v49 = vmul.f32 %v10347_v58, %v3342_v23  ;;  %v3469_v15 = vmul.f32 %v10347_v58, %v3341_v4 }
 0x5e4   :  { %4218 = vmatmul.mubr.bf16.gmra.mrb[120].mxu0 %v3665_v40  ;;  %4411 = vmatmul.mubr.bf16.gmra.mrb[120].mxu1 %v3665_v40 }
 0x5e5   :  { %v3552_v52 = vmul.f32 %v12583_v38, %v3470_v49  ;;  %v3551_v24 = vmul.f32 %v12573_v12, %v3469_v15 }
 0x5e7   :  { %v3634_v35 = vadd.f32 %v12616_v33, %v3552_v52  ;;  %v3633_v61 = vadd.f32 %v12580_v56, %v3551_v24 }
 0x5e9   :  { %v3668_v10 = vpack.c.bf16 %v3634_v35, %v3632_v11  ;;  %v3667_v2 = vpack.c.bf16 %v3633_v61, %v3631_v21  ;;  %v2958_v47 = vpop.xlane.xlu0 %2957 }
 0x5ea   :  { %v2993_v9 = vmul.f32 0.00390625, %v2958_v47 }
 0x5eb   :  { %4227 = vmatprep.mubr.bf16.mxu0 %v3668_v10  ;;  %4420 = vmatprep.mubr.bf16.mxu1 %v3668_v10 }
 0x5ec   :  { %4228 = vmatmul.mubr.bf16.gmra.mrb[124].mxu0 %v3667_v2  ;;  %4421 = vmatmul.mubr.bf16.gmra.mrb[124].mxu1 %v3667_v2  ;;  %v2961_v57 = vpop.xlane.xlu1 %2960  ;;  %v3217_v42 = vmul.f32 %v2993_v9, %v2993_v9  ;;  %v3343_v22 = vsub.f32 %v12729_v55, %v2993_v9  ;;  %v3344_v41 = vsub.f32 %v12732_v54, %v2993_v9 }
 0x5ed   :  { %v2994_v34 = vmul.f32 0.00390625, %v2961_v57  ;;  %v3151_v36 = vpop.xlane.xlu0 %3150 }
 0x5ee   :  { %v3185_v27 = vmul.f32 0.00390625, %v3151_v36 }
 0x5ef   :  { %v3218_v30 = vmul.f32 %v2994_v34, %v2994_v34  ;;  %v3345_v45 = vsub.f32 %v12735_v44, %v2994_v34  ;;  %v3346_v32 = vsub.f32 %v12744_v43, %v2994_v34 }
 0x5f0   :  { %v3249_v62 = vsub.f32 %v3185_v27, %v3217_v42  ;;  %v3154_v13 = vpop.xlane.xlu1 %3153 }
 0x5f1   :  { %v3186_v0 = vmul.f32 0.00390625, %v3154_v13 }
 0x5f2   :  { %v3281_v16 = vmax.f32 %v3249_v62, 0.0 }
 0x5f3   :  { %v3250_v1 = vsub.f32 %v3186_v0, %v3218_v30 }
 0x5f4   :  { %v3377_v63 = vadd.f32 1e-05, %v3281_v16 }
 0x5f5   :  { %v3282_v46 = vmax.f32 %v3250_v1, 0.0 }
 0x5f6   :  { %10348 = vrsqrt.f32 %v3377_v63 }
 0x5f7   :  { %v3378_v50 = vadd.f32 1e-05, %v3282_v46 }
 0x5f9   :  { %10350 = vrsqrt.f32 %v3378_v50 }
 0x600   :  { %v10349_v26 = vpop.eup %10348 }
 0x601   :  { %v3472_v8 = vmul.f32 %v10349_v26, %v3344_v41  ;;  %v3471_v28 = vmul.f32 %v10349_v26, %v3343_v22 }
 0x603   :  { %v10351_v19 = vpop.eup %10350  ;;  %v3554_v18 = vmul.f32 %v12583_v38, %v3472_v8  ;;  %v3553_v17 = vmul.f32 %v12573_v12, %v3471_v28 }
 0x604   :  { %v3474_v59 = vmul.f32 %v10351_v19, %v3346_v32  ;;  %v3473_v60 = vmul.f32 %v10351_v19, %v3345_v45 }
 0x605   :  { %v3636_v54 = vadd.f32 %v12616_v33, %v3554_v18  ;;  %v3635_v6 = vadd.f32 %v12580_v56, %v3553_v17 }
 0x606   :  { %v3556_v7 = vmul.f32 %v12583_v38, %v3474_v59  ;;  %v3555_v55 = vmul.f32 %v12573_v12, %v3473_v60 }
 0x608   :  { %v3638_v31 = vadd.f32 %v12616_v33, %v3556_v7  ;;  %v3637_v44 = vadd.f32 %v12580_v56, %v3555_v55 }
 0x60a   :  { %v3670_v43 = vpack.c.bf16 %v3638_v31, %v3636_v54  ;;  %v3669_v20 = vpack.c.bf16 %v3637_v44, %v3635_v6 }
 0x60c   :  { %4237 = vmatprep.mubr.bf16.mxu0 %v3670_v43  ;;  %4430 = vmatprep.mubr.bf16.mxu1 %v3670_v43 }
 0x60d   :  { %4238 = vmatmul.mubr.bf16.gmra.mrb[128].mxu0 %v3669_v20  ;;  %4431 = vmatmul.mubr.bf16.gmra.mrb[128].mxu1 %v3669_v20 }
 0x60e   :  { %4537 = vmatprep.mubr.bf16.mxu0 %v16667_v25  ;;  %4838 = vmatprep.mubr.bf16.mxu1 %v16667_v25 }
 0x61b   :  { %v4089_v38 = vpop.f32.mrb[68].mxu0  ;;  %v4282_v12 = vpop.f32.mrb[68].mxu1 }
 0x61c   :  { %v4091_v48 = vpop.f32.mrb[69].mxu0  ;;  %v4284_v53 = vpop.f32.mrb[69].mxu1 }
 0x61d   :  { %v4093_v14 = vpop.f32.mrb[70].mxu0  ;;  %v4286_v33 = vpop.f32.mrb[70].mxu1 }
 0x61e   :  { %v4441_v3 = vpack.c.bf16 %v4093_v14, %v4089_v38  ;;  %v4443_v29 = vpack.c.bf16 %v4286_v33, %v4282_v12  ;;  %v4095_v4 = vpop.f32.mrb[71].mxu0  ;;  %v4288_v56 = vpop.f32.mrb[71].mxu1 }
 0x61f   :  { %v4442_v39 = vpack.c.bf16 %v4095_v4, %v4091_v48  ;;  %v4444_v23 = vpack.c.bf16 %v4288_v56, %v4284_v53 }
 0x621   :  { %4505 = vmatprep.subr.bf16.mxu0 %v4442_v39 }
 0x622   :  { %4506 = vmatpush1.bf16.msra.mxu0 %v4441_v3 }
 0x623   :  { %v4099_v37 = vpop.f32.mrb[72].mxu0  ;;  %v4292_v40 = vpop.f32.mrb[72].mxu1  ;;  %4548 = vmatprep.subr.bf16.mxu0 %v4444_v23 }
 0x624   :  { %v4101_v58 = vpop.f32.mrb[73].mxu0  ;;  %v4294_v51 = vpop.f32.mrb[73].mxu1 }
 0x625   :  { %v4103_v49 = vpop.f32.mrb[74].mxu0  ;;  %v4296_v15 = vpop.f32.mrb[74].mxu1  ;;  %9342 = vmatmul.mubr.msk.bf16.vlgmr.msra.gmra.mrb[132].mxu0 %vm127_vm1, %v13045_v5 }
 0x626   :  { %v4445_v52 = vpack.c.bf16 %v4103_v49, %v4099_v37  ;;  %v4447_v24 = vpack.c.bf16 %v4296_v15, %v4292_v40  ;;  %v4105_v11 = vpop.f32.mrb[75].mxu0  ;;  %v4298_v35 = vpop.f32.mrb[75].mxu1  ;;  %4549 = vmatpush1.bf16.msra.mxu0 %v4443_v29  ;;  %4580 = vmatprep.mubr.bf16.mxu0 %v16667_v25 }
 0x627   :  { %v4446_v21 = vpack.c.bf16 %v4105_v11, %v4101_v58  ;;  %v4448_v61 = vpack.c.bf16 %v4298_v35, %v4294_v51 }
 0x629   :  { %4591 = vmatprep.subr.bf16.mxu0 %v4446_v21 }
 0x62b   :  { %v4109_v10 = vpop.f32.mrb[76].mxu0  ;;  %v4302_v2 = vpop.f32.mrb[76].mxu1 }
 0x62c   :  { %v4111_v47 = vpop.f32.mrb[77].mxu0  ;;  %v4304_v9 = vpop.f32.mrb[77].mxu1 }
 0x62d   :  { %v4113_v57 = vpop.f32.mrb[78].mxu0  ;;  %v4306_v34 = vpop.f32.mrb[78].mxu1  ;;  %9343 = vmatmul.mubr.msk.bf16.vlgmr.msra.gmra.mrb[136].mxu0 %vm127_vm1, %v13045_v5 }
 0x62e   :  { %v4449_v36 = vpack.c.bf16 %v4113_v57, %v4109_v10  ;;  %v4451_v42 = vpack.c.bf16 %v4306_v34, %v4302_v2  ;;  %4592 = vmatpush1.bf16.msra.mxu0 %v4445_v52  ;;  %v4115_v27 = vpop.f32.mrb[79].mxu0  ;;  %v4308_v62 = vpop.f32.mrb[79].mxu1  ;;  %4623 = vmatprep.mubr.bf16.mxu0 %v16667_v25 }
 0x62f   :  { %v4450_v13 = vpack.c.bf16 %v4115_v27, %v4111_v47  ;;  %v4452_v30 = vpack.c.bf16 %v4308_v62, %v4304_v9  ;;  %4634 = vmatprep.subr.bf16.mxu0 %v4448_v61 }
 0x635   :  { %9344 = vmatmul.mubr.msk.bf16.vlgmr.msra.gmra.mrb[140].mxu0 %vm127_vm1, %v13045_v5 }
 0x636   :  { %4635 = vmatpush1.bf16.msra.mxu0 %v4447_v24  ;;  %4666 = vmatprep.mubr.bf16.mxu0 %v16667_v25 }
 0x637   :  { %4677 = vmatprep.subr.bf16.mxu0 %v4450_v13 }
 0x63d   :  { %9345 = vmatmul.mubr.msk.bf16.vlgmr.msra.gmra.mrb[144].mxu0 %vm127_vm1, %v13045_v5 }
 0x63e   :  { %4678 = vmatpush1.bf16.msra.mxu0 %v4449_v36  ;;  %4709 = vmatprep.mubr.bf16.mxu0 %v16667_v25 }
 0x63f   :  { %4720 = vmatprep.subr.bf16.mxu0 %v4452_v30 }
 0x645   :  { %9346 = vmatmul.mubr.msk.bf16.vlgmr.msra.gmra.mrb[148].mxu0 %vm127_vm1, %v13045_v5 }
 0x646   :  { %4721 = vmatpush1.bf16.msra.mxu0 %v4451_v42  ;;  %4752 = vmatprep.mubr.bf16.mxu0 %v16667_v25 }
 0x64d   :  { %9347 = vmatmul.mubr.msk.bf16.vlgmr.msra.gmra.mrb[152].mxu0 %vm127_vm1, %v13045_v5 }
 0x64e   :  { %4795 = vmatprep.mubr.bf16.mxu0 %v16667_v25 }
 0x660   :  { %v4119_v0 = vpop.f32.mrb[80].mxu0  ;;  %v4312_v16 = vpop.f32.mrb[80].mxu1 }
 0x661   :  { %v4121_v1 = vpop.f32.mrb[81].mxu0  ;;  %v4314_v63 = vpop.f32.mrb[81].mxu1 }
 0x662   :  { %v4123_v46 = vpop.f32.mrb[82].mxu0  ;;  %v4316_v50 = vpop.f32.mrb[82].mxu1 }
 0x663   :  { %v4453_v22 = vpack.c.bf16 %v4123_v46, %v4119_v0  ;;  %v4455_v41 = vpack.c.bf16 %v4316_v50, %v4312_v16  ;;  %v4125_v26 = vpop.f32.mrb[83].mxu0  ;;  %v4318_v8 = vpop.f32.mrb[83].mxu1 }
 0x664   :  { %v4454_v28 = vpack.c.bf16 %v4125_v26, %v4121_v1  ;;  %v4456_v45 = vpack.c.bf16 %v4318_v8, %v4314_v63 }
 0x666   :  { %4763 = vmatprep.subr.bf16.mxu0 %v4454_v28  ;;  %4806 = vmatprep.subr.bf16.mxu1 %v4456_v45 }
 0x667   :  { %4764 = vmatpush1.bf16.msra.mxu0 %v4453_v22  ;;  %4807 = vmatpush1.bf16.msra.mxu1 %v4455_v41 }
 0x668   :  { %v4129_v32 = vpop.f32.mrb[84].mxu0  ;;  %v4322_v19 = vpop.f32.mrb[84].mxu1 }
 0x669   :  { %v4131_v59 = vpop.f32.mrb[85].mxu0  ;;  %v4324_v18 = vpop.f32.mrb[85].mxu1 }
 0x66a   :  { %9348 = vmatmul.mubr.msk.bf16.vlgmr.msra.gmra.mrb[156].mxu0 %vm127_vm1, %v13045_v5  ;;  %9349 = vmatmul.mubr.msk.bf16.vlgmr.msra.gmra.mrb[132].mxu1 %vm127_vm1, %v13045_v5  ;;  %v4133_v60 = vpop.f32.mrb[86].mxu0  ;;  %v4326_v17 = vpop.f32.mrb[86].mxu1 }
 0x66b   :  { %4881 = vmatprep.mubr.bf16.mxu0 %v16667_v25  ;;  %4924 = vmatprep.mubr.bf16.mxu1 %v16667_v25  ;;  %v4457_v7 = vpack.c.bf16 %v4133_v60, %v4129_v32  ;;  %v4459_v55 = vpack.c.bf16 %v4326_v17, %v4322_v19  ;;  %v4135_v54 = vpop.f32.mrb[87].mxu0  ;;  %v4328_v31 = vpop.f32.mrb[87].mxu1 }
 0x66c   :  { %v4458_v6 = vpack.c.bf16 %v4135_v54, %v4131_v59  ;;  %v4460_v44 = vpack.c.bf16 %v4328_v31, %v4324_v18 }
 0x66e   :  { %4849 = vmatprep.subr.bf16.mxu0 %v4458_v6  ;;  %4892 = vmatprep.subr.bf16.mxu1 %v4460_v44 }
 0x66f   :  { %4850 = vmatpush1.bf16.msra.mxu0 %v4457_v7  ;;  %4893 = vmatpush1.bf16.msra.mxu1 %v4459_v55 }
 0x672   :  { %v4139_v43 = vpop.f32.mrb[88].mxu0  ;;  %v4332_v20 = vpop.f32.mrb[88].mxu1  ;;  %9350 = vmatmul.mubr.msk.bf16.vlgmr.msra.gmra.mrb[160].mxu0 %vm127_vm1, %v13045_v5  ;;  %9351 = vmatmul.mubr.msk.bf16.vlgmr.msra.gmra.mrb[136].mxu1 %vm127_vm1, %v13045_v5 }
 0x673   :  { %v4141_v38 = vpop.f32.mrb[89].mxu0  ;;  %v4334_v12 = vpop.f32.mrb[89].mxu1  ;;  %4967 = vmatprep.mubr.bf16.mxu0 %v16667_v25  ;;  %5010 = vmatprep.mubr.bf16.mxu1 %v16667_v25 }
 0x674   :  { %v4143_v48 = vpop.f32.mrb[90].mxu0  ;;  %v4336_v53 = vpop.f32.mrb[90].mxu1 }
 0x675   :  { %v4461_v14 = vpack.c.bf16 %v4143_v48, %v4139_v43  ;;  %v4463_v33 = vpack.c.bf16 %v4336_v53, %v4332_v20  ;;  %v4145_v3 = vpop.f32.mrb[91].mxu0  ;;  %v4338_v29 = vpop.f32.mrb[91].mxu1 }
 0x676   :  { %v4462_v4 = vpack.c.bf16 %v4145_v3, %v4141_v38  ;;  %v4464_v56 = vpack.c.bf16 %v4338_v29, %v4334_v12 }
 0x678   :  { %4935 = vmatprep.subr.bf16.mxu0 %v4462_v4  ;;  %4978 = vmatprep.subr.bf16.mxu1 %v4464_v56 }
 0x679   :  { %4936 = vmatpush1.bf16.msra.mxu0 %v4461_v14  ;;  %4979 = vmatpush1.bf16.msra.mxu1 %v4463_v33 }
 0x67c   :  { %v4149_v39 = vpop.f32.mrb[92].mxu0  ;;  %v4342_v23 = vpop.f32.mrb[92].mxu1  ;;  %9352 = vmatmul.mubr.msk.bf16.vlgmr.msra.gmra.mrb[164].mxu0 %vm127_vm1, %v13045_v5  ;;  %9353 = vmatmul.mubr.msk.bf16.vlgmr.msra.gmra.mrb[140].mxu1 %vm127_vm1, %v13045_v5 }
 0x67d   :  { %v4151_v37 = vpop.f32.mrb[93].mxu0  ;;  %v4344_v40 = vpop.f32.mrb[93].mxu1  ;;  %5053 = vmatprep.mubr.bf16.mxu0 %v16667_v25  ;;  %5096 = vmatprep.mubr.bf16.mxu1 %v16667_v25 }
 0x67e   :  { %v4153_v58 = vpop.f32.mrb[94].mxu0  ;;  %v4346_v51 = vpop.f32.mrb[94].mxu1 }
 0x67f   :  { %v4465_v49 = vpack.c.bf16 %v4153_v58, %v4149_v39  ;;  %v4467_v15 = vpack.c.bf16 %v4346_v51, %v4342_v23  ;;  %v4155_v52 = vpop.f32.mrb[95].mxu0  ;;  %v4348_v24 = vpop.f32.mrb[95].mxu1 }
 0x680   :  { %v4466_v11 = vpack.c.bf16 %v4155_v52, %v4151_v37  ;;  %v4468_v35 = vpack.c.bf16 %v4348_v24, %v4344_v40 }
 0x682   :  { %5021 = vmatprep.subr.bf16.mxu0 %v4466_v11  ;;  %5064 = vmatprep.subr.bf16.mxu1 %v4468_v35 }
 0x683   :  { %5022 = vmatpush1.bf16.msra.mxu0 %v4465_v49  ;;  %5065 = vmatpush1.bf16.msra.mxu1 %v4467_v15 }
 0x684   :  { %v4159_v21 = vpop.f32.mrb[96].mxu0  ;;  %v4352_v61 = vpop.f32.mrb[96].mxu1 }
 0x685   :  { %v4161_v10 = vpop.f32.mrb[97].mxu0  ;;  %v4354_v2 = vpop.f32.mrb[97].mxu1 }
 0x686   :  { %v4163_v47 = vpop.f32.mrb[98].mxu0  ;;  %v4356_v9 = vpop.f32.mrb[98].mxu1  ;;  %9354 = vmatmul.mubr.msk.bf16.vlgmr.msra.gmra.mrb[168].mxu0 %vm127_vm1, %v13045_v5  ;;  %9355 = vmatmul.mubr.msk.bf16.vlgmr.msra.gmra.mrb[144].mxu1 %vm127_vm1, %v13045_v5 }
 0x687   :  { %v4469_v57 = vpack.c.bf16 %v4163_v47, %v4159_v21  ;;  %v4471_v34 = vpack.c.bf16 %v4356_v9, %v4352_v61  ;;  %v4165_v36 = vpop.f32.mrb[99].mxu0  ;;  %v4358_v42 = vpop.f32.mrb[99].mxu1  ;;  %5139 = vmatprep.mubr.bf16.mxu0 %v16667_v25  ;;  %5182 = vmatprep.mubr.bf16.mxu1 %v16667_v25 }
 0x688   :  { %v4470_v27 = vpack.c.bf16 %v4165_v36, %v4161_v10  ;;  %v4472_v62 = vpack.c.bf16 %v4358_v42, %v4354_v2 }
 0x68a   :  { %5107 = vmatprep.subr.bf16.mxu0 %v4470_v27  ;;  %5150 = vmatprep.subr.bf16.mxu1 %v4472_v62 }
 0x68b   :  { %5108 = vmatpush1.bf16.msra.mxu0 %v4469_v57  ;;  %5151 = vmatpush1.bf16.msra.mxu1 %v4471_v34 }
 0x68c   :  { %v4169_v13 = vpop.f32.mrb[100].mxu0  ;;  %v4362_v30 = vpop.f32.mrb[100].mxu1 }
 0x68d   :  { %v4171_v0 = vpop.f32.mrb[101].mxu0  ;;  %v4364_v16 = vpop.f32.mrb[101].mxu1 }
 0x68e   :  { %v4173_v1 = vpop.f32.mrb[102].mxu0  ;;  %v4366_v63 = vpop.f32.mrb[102].mxu1  ;;  %9356 = vmatmul.mubr.msk.bf16.vlgmr.msra.gmra.mrb[172].mxu0 %vm127_vm1, %v13045_v5  ;;  %9357 = vmatmul.mubr.msk.bf16.vlgmr.msra.gmra.mrb[148].mxu1 %vm127_vm1, %v13045_v5  ;;  %v13098_v5 = vld [vmem:[%s16593_s24 + $0x8] sm:$0xff]  }
 0x68f   :  { %v4473_v46 = vpack.c.bf16 %v4173_v1, %v4169_v13  ;;  %v4475_v50 = vpack.c.bf16 %v4366_v63, %v4362_v30  ;;  %v4175_v22 = vpop.f32.mrb[103].mxu0  ;;  %v4368_v41 = vpop.f32.mrb[103].mxu1  ;;  %5225 = vmatprep.mubr.bf16.mxu0 %v16667_v25  ;;  %5268 = vmatprep.mubr.bf16.mxu1 %v16667_v25 }
 0x690   :  { %v4474_v26 = vpack.c.bf16 %v4175_v22, %v4171_v0  ;;  %v4476_v8 = vpack.c.bf16 %v4368_v41, %v4364_v16 }
 0x692   :  { %5193 = vmatprep.subr.bf16.mxu0 %v4474_v26  ;;  %5236 = vmatprep.subr.bf16.mxu1 %v4476_v8 }
 0x693   :  { %5194 = vmatpush1.bf16.msra.mxu0 %v4473_v46  ;;  %5237 = vmatpush1.bf16.msra.mxu1 %v4475_v50 }
 0x695   :  { %v4179_v28 = vpop.f32.mrb[104].mxu0  ;;  %v4372_v45 = vpop.f32.mrb[104].mxu1 }
 0x696   :  { %9358 = vmatmul.mubr.msk.bf16.vlgmr.msra.gmra.mrb[176].mxu0 %vm127_vm1, %v13098_v5  ;;  %9359 = vmatmul.mubr.msk.bf16.vlgmr.msra.gmra.mrb[152].mxu1 %vm127_vm1, %v13098_v5  ;;  %v4181_v32 = vpop.f32.mrb[105].mxu0  ;;  %v4374_v19 = vpop.f32.mrb[105].mxu1 }
 0x697   :  { %5311 = vmatprep.mubr.bf16.mxu0 %v16667_v25  ;;  %5354 = vmatprep.mubr.bf16.mxu1 %v16667_v25  ;;  %v4183_v59 = vpop.f32.mrb[106].mxu0  ;;  %v4376_v18 = vpop.f32.mrb[106].mxu1 }
 0x698   :  { %v4477_v60 = vpack.c.bf16 %v4183_v59, %v4179_v28  ;;  %v4479_v17 = vpack.c.bf16 %v4376_v18, %v4372_v45  ;;  %v4185_v7 = vpop.f32.mrb[107].mxu0  ;;  %v4378_v55 = vpop.f32.mrb[107].mxu1 }
 0x699   :  { %v4478_v54 = vpack.c.bf16 %v4185_v7, %v4181_v32  ;;  %v4480_v31 = vpack.c.bf16 %v4378_v55, %v4374_v19 }
 0x69b   :  { %5279 = vmatprep.subr.bf16.mxu0 %v4478_v54  ;;  %5322 = vmatprep.subr.bf16.mxu1 %v4480_v31 }
 0x69c   :  { %5280 = vmatpush1.bf16.msra.mxu0 %v4477_v60  ;;  %5323 = vmatpush1.bf16.msra.mxu1 %v4479_v17 }
 0x69d   :  { %v4189_v6 = vpop.f32.mrb[108].mxu0  ;;  %v4382_v44 = vpop.f32.mrb[108].mxu1 }
 0x69e   :  { %v4191_v43 = vpop.f32.mrb[109].mxu0  ;;  %v4384_v20 = vpop.f32.mrb[109].mxu1 }
 0x69f   :  { %v4193_v38 = vpop.f32.mrb[110].mxu0  ;;  %v4386_v12 = vpop.f32.mrb[110].mxu1  ;;  %9360 = vmatmul.mubr.msk.bf16.vlgmr.msra.gmra.mrb[180].mxu0 %vm127_vm1, %v13098_v5  ;;  %9361 = vmatmul.mubr.msk.bf16.vlgmr.msra.gmra.mrb[156].mxu1 %vm127_vm1, %v13098_v5 }
 0x6a0   :  { %v4481_v48 = vpack.c.bf16 %v4193_v38, %v4189_v6  ;;  %v4483_v53 = vpack.c.bf16 %v4386_v12, %v4382_v44  ;;  %v4195_v14 = vpop.f32.mrb[111].mxu0  ;;  %v4388_v33 = vpop.f32.mrb[111].mxu1  ;;  %5397 = vmatprep.mubr.bf16.mxu0 %v16667_v25  ;;  %5440 = vmatprep.mubr.bf16.mxu1 %v16667_v25 }
 0x6a1   :  { %v4482_v3 = vpack.c.bf16 %v4195_v14, %v4191_v43  ;;  %v4484_v29 = vpack.c.bf16 %v4388_v33, %v4384_v20 }
 0x6a3   :  { %5365 = vmatprep.subr.bf16.mxu0 %v4482_v3  ;;  %5408 = vmatprep.subr.bf16.mxu1 %v4484_v29  ;;  %v16668_v3 = vld [vmem:[#allocation14_spill] sm:$0xff] }
 0x6a4   :  { %5366 = vmatpush1.bf16.msra.mxu0 %v4481_v48  ;;  %5409 = vmatpush1.bf16.msra.mxu1 %v4483_v53 }
 0x6a5   :  { %v4199_v4 = vpop.f32.mrb[112].mxu0  ;;  %v4392_v56 = vpop.f32.mrb[112].mxu1 }
 0x6a6   :  { %v4201_v39 = vpop.f32.mrb[113].mxu0  ;;  %v4394_v23 = vpop.f32.mrb[113].mxu1 }
 0x6a7   :  { %v4203_v37 = vpop.f32.mrb[114].mxu0  ;;  %v4396_v40 = vpop.f32.mrb[114].mxu1  ;;  %9362 = vmatmul.mubr.msk.bf16.vlgmr.msra.gmra.mrb[184].mxu0 %vm127_vm1, %v13098_v5  ;;  %9363 = vmatmul.mubr.msk.bf16.vlgmr.msra.gmra.mrb[160].mxu1 %vm127_vm1, %v13098_v5 }
 0x6a8   :  { %v4485_v58 = vpack.c.bf16 %v4203_v37, %v4199_v4  ;;  %v4487_v51 = vpack.c.bf16 %v4396_v40, %v4392_v56  ;;  %v4205_v49 = vpop.f32.mrb[115].mxu0  ;;  %v4398_v15 = vpop.f32.mrb[115].mxu1  ;;  %5483 = vmatprep.mubr.bf16.mxu0 %v16667_v25  ;;  %5526 = vmatprep.mubr.bf16.mxu1 %v16667_v25  ;;  %v16669_v4 = vld [vmem:[#allocation16_spill] sm:$0xff] }
 0x6a9   :  { %v4486_v52 = vpack.c.bf16 %v4205_v49, %v4201_v39  ;;  %v4488_v24 = vpack.c.bf16 %v4398_v15, %v4394_v23  ;;  %v13161_v23 = vld [vmem:[%s16305_s7 + $0x8] sm:$0x77] }
 0x6aa   :  { %v5896_v40 = vrot.slane %v13161_v23, %v16668_v3  ;;  %v5900_v49 = vrot.slane %v13161_v23, %v16669_v4 }
 0x6ab   :  { %5451 = vmatprep.subr.bf16.mxu0 %v4486_v52  ;;  %5494 = vmatprep.subr.bf16.mxu1 %v4488_v24 }
 0x6ac   :  { %5452 = vmatpush1.bf16.msra.mxu0 %v4485_v58  ;;  %5495 = vmatpush1.bf16.msra.mxu1 %v4487_v51 }
 0x6af   :  { %v4209_v11 = vpop.f32.mrb[116].mxu0  ;;  %v4402_v35 = vpop.f32.mrb[116].mxu1  ;;  %9364 = vmatmul.mubr.msk.bf16.vlgmr.msra.gmra.mrb[188].mxu0 %vm127_vm1, %v13098_v5  ;;  %9365 = vmatmul.mubr.msk.bf16.vlgmr.msra.gmra.mrb[164].mxu1 %vm127_vm1, %v13098_v5 }
 0x6b0   :  { %v4211_v21 = vpop.f32.mrb[117].mxu0  ;;  %v4404_v61 = vpop.f32.mrb[117].mxu1  ;;  %5569 = vmatprep.mubr.bf16.mxu0 %v16667_v25  ;;  %5612 = vmatprep.mubr.bf16.mxu1 %v16667_v25 }
 0x6b1   :  { %v4213_v10 = vpop.f32.mrb[118].mxu0  ;;  %v4406_v2 = vpop.f32.mrb[118].mxu1 }
 0x6b2   :  { %v4489_v47 = vpack.c.bf16 %v4213_v10, %v4209_v11  ;;  %v4491_v9 = vpack.c.bf16 %v4406_v2, %v4402_v35  ;;  %v4215_v57 = vpop.f32.mrb[119].mxu0  ;;  %v4408_v34 = vpop.f32.mrb[119].mxu1  ;;  %v13185_v10 = vrot.slane %v5896_v40, %v16668_v3 }
 0x6b3   :  { %v4490_v36 = vpack.c.bf16 %v4215_v57, %v4211_v21  ;;  %v4492_v42 = vpack.c.bf16 %v4408_v34, %v4404_v61 }
 0x6b5   :  { %5537 = vmatprep.subr.bf16.mxu0 %v4490_v36  ;;  %5580 = vmatprep.subr.bf16.mxu1 %v4492_v42 }
 0x6b6   :  { %5538 = vmatpush1.bf16.msra.mxu0 %v4489_v47  ;;  %5581 = vmatpush1.bf16.msra.mxu1 %v4491_v9  ;;  %v13189_v47 = vrot.slane %v5900_v49, %v16668_v3 }
 0x6b7   :  { %v4219_v27 = vpop.f32.mrb[120].mxu0  ;;  %v4412_v62 = vpop.f32.mrb[120].mxu1 }
 0x6b8   :  { %v4221_v13 = vpop.f32.mrb[121].mxu0  ;;  %v4414_v30 = vpop.f32.mrb[121].mxu1 }
 0x6b9   :  { %v4223_v0 = vpop.f32.mrb[122].mxu0  ;;  %v4416_v16 = vpop.f32.mrb[122].mxu1  ;;  %9366 = vmatmul.mubr.msk.bf16.vlgmr.msra.gmra.mrb[192].mxu0 %vm127_vm1, %v13098_v5  ;;  %9367 = vmatmul.mubr.msk.bf16.vlgmr.msra.gmra.mrb[168].mxu1 %vm127_vm1, %v13098_v5 }
 0x6ba   :  { %v4493_v1 = vpack.c.bf16 %v4223_v0, %v4219_v27  ;;  %v4495_v63 = vpack.c.bf16 %v4416_v16, %v4412_v62  ;;  %v4225_v46 = vpop.f32.mrb[123].mxu0  ;;  %v4418_v50 = vpop.f32.mrb[123].mxu1  ;;  %5655 = vmatprep.mubr.bf16.mxu0 %v16667_v25  ;;  %5698 = vmatprep.mubr.bf16.mxu1 %v16667_v25 }
 0x6bb   :  { %v4494_v22 = vpack.c.bf16 %v4225_v46, %v4221_v13  ;;  %v4496_v41 = vpack.c.bf16 %v4418_v50, %v4414_v30 }
 0x6bd   :  { %5623 = vmatprep.subr.bf16.mxu0 %v4494_v22  ;;  %5666 = vmatprep.subr.bf16.mxu1 %v4496_v41 }
 0x6be   :  { %5624 = vmatpush1.bf16.msra.mxu0 %v4493_v1  ;;  %5667 = vmatpush1.bf16.msra.mxu1 %v4495_v63 }
 0x6bf   :  { %v4229_v26 = vpop.f32.mrb[124].mxu0  ;;  %v4422_v8 = vpop.f32.mrb[124].mxu1 }
 0x6c0   :  { %v4231_v28 = vpop.f32.mrb[125].mxu0  ;;  %v4424_v45 = vpop.f32.mrb[125].mxu1 }
 0x6c1   :  { %v4233_v32 = vpop.f32.mrb[126].mxu0  ;;  %v4426_v19 = vpop.f32.mrb[126].mxu1  ;;  %9368 = vmatmul.mubr.msk.bf16.vlgmr.msra.gmra.mrb[196].mxu0 %vm127_vm1, %v13098_v5  ;;  %9369 = vmatmul.mubr.msk.bf16.vlgmr.msra.gmra.mrb[172].mxu1 %vm127_vm1, %v13098_v5 }
 0x6c2   :  { %v4497_v59 = vpack.c.bf16 %v4233_v32, %v4229_v26  ;;  %v4499_v18 = vpack.c.bf16 %v4426_v19, %v4422_v8  ;;  %v4235_v60 = vpop.f32.mrb[127].mxu0  ;;  %v4428_v17 = vpop.f32.mrb[127].mxu1  ;;  %5741 = vmatprep.mubr.bf16.mxu0 %v16667_v25  ;;  %5784 = vmatprep.mubr.bf16.mxu1 %v16667_v25 }
 0x6c3   :  { %v4498_v7 = vpack.c.bf16 %v4235_v60, %v4231_v28  ;;  %v4500_v55 = vpack.c.bf16 %v4428_v17, %v4424_v45 }
 0x6c5   :  { %5709 = vmatprep.subr.bf16.mxu0 %v4498_v7  ;;  %5752 = vmatprep.subr.bf16.mxu1 %v4500_v55 }
 0x6c6   :  { %5710 = vmatpush1.bf16.msra.mxu0 %v4497_v59  ;;  %5753 = vmatpush1.bf16.msra.mxu1 %v4499_v18 }
 0x6c9   :  { %9370 = vmatmul.mubr.msk.bf16.vlgmr.msra.gmra.mrb[200].mxu0 %vm127_vm1, %v13098_v5  ;;  %9371 = vmatmul.mubr.msk.bf16.vlgmr.msra.gmra.mrb[176].mxu1 %vm127_vm1, %v13098_v5 }
 0x6ca   :  { %5827 = vmatprep.mubr.bf16.mxu0 %v16667_v25  ;;  %5870 = vmatprep.mubr.bf16.mxu1 %v16667_v25  ;;  %v13149_v25 = vld [vmem:[%s16305_s7] sm:$0x77] }
 0x6cb   :  { %v5888_v29 = vrot.slane %v13149_v25, %v16668_v3  ;;  %v5892_v56 = vrot.slane %v13149_v25, %v16669_v4 }
 0x6cd   :  { %v13156_v39 = vrot.slane %v5888_v29, %v16668_v3 }
 0x6cf   :  { %16670 = vst [vmem:[#allocation20_spill] sm:$0xff] %v13156_v39 }
 0x6e0   :  { %v4239_v54 = vpop.f32.mrb[128].mxu0  ;;  %v4432_v31 = vpop.f32.mrb[128].mxu1 }
 0x6e1   :  { %v4241_v6 = vpop.f32.mrb[129].mxu0  ;;  %v4434_v44 = vpop.f32.mrb[129].mxu1 }
 0x6e2   :  { %v4243_v43 = vpop.f32.mrb[130].mxu0  ;;  %v4436_v20 = vpop.f32.mrb[130].mxu1 }
 0x6e3   :  { %v4501_v38 = vpack.c.bf16 %v4243_v43, %v4239_v54  ;;  %v4503_v12 = vpack.c.bf16 %v4436_v20, %v4432_v31  ;;  %v4245_v48 = vpop.f32.mrb[131].mxu0  ;;  %v4438_v53 = vpop.f32.mrb[131].mxu1 }
 0x6e4   :  { %v4502_v14 = vpack.c.bf16 %v4245_v48, %v4241_v6  ;;  %v4504_v33 = vpack.c.bf16 %v4438_v53, %v4434_v44 }
 0x6e6   :  { %5795 = vmatprep.subr.bf16.mxu0 %v4502_v14  ;;  %5838 = vmatprep.subr.bf16.mxu1 %v4504_v33 }
 0x6e7   :  { %5796 = vmatpush1.bf16.msra.mxu0 %v4501_v38  ;;  %5839 = vmatpush1.bf16.msra.mxu1 %v4503_v12 }
 0x6ea   :  { %9372 = vmatmul.mubr.msk.bf16.vlgmr.msra.gmra.mrb[204].mxu0 %vm127_vm1, %v13098_v5  ;;  %9373 = vmatmul.mubr.msk.bf16.vlgmr.msra.gmra.mrb[180].mxu1 %vm127_vm1, %v13098_v5  ;;  %v13164_v5 = vrot.slane %v5892_v56, %v16668_v3 }
 0x6ec   :  { %16671 = vst [vmem:[#allocation21_spill] sm:$0xff] %v13164_v5 }
 0x6f8   :  { %v4539_v37 = vpop.f32.mrb[132].mxu0 }
 0x6f9   :  { %v13169_v58 = vadd.f32 %v13156_v39, %v4539_v37  ;;  %v4541_v51 = vpop.f32.mrb[133].mxu0 }
 0x6fa   :  { %v13174_v15 = vadd.f32 %v13164_v5, %v4541_v51  ;;  %v4543_v52 = vpop.f32.mrb[134].mxu0 }
 0x6fb   :  { %v9374_v24 = vmul.f32 -1.442695, %v13169_v58  ;;  %v13178_v11 = vadd.f32 %v13156_v39, %v4543_v52  ;;  %v4545_v35 = vpop.f32.mrb[135].mxu0 }
 0x6fc   :  { %v9375_v21 = vmul.f32 -1.442695, %v13174_v15  ;;  %v13182_v61 = vadd.f32 %v13164_v5, %v4545_v35 }
 0x6fd   :  { %10352 = vpow2.f32 %v9374_v24  ;;  %v9378_v2 = vmul.f32 -1.442695, %v13178_v11 }
 0x6fe   :  { %10354 = vpow2.f32 %v9375_v21  ;;  %v9379_v9 = vmul.f32 -1.442695, %v13182_v61 }
 0x6ff   :  { %10356 = vpow2.f32 %v9378_v2 }
 0x700   :  { %10358 = vpow2.f32 %v9379_v9  ;;  %v4582_v57 = vpop.f32.mrb[136].mxu0 }
 0x701   :  { %v13193_v34 = vadd.f32 %v13185_v10, %v4582_v57  ;;  %v4584_v36 = vpop.f32.mrb[137].mxu0 }
 0x702   :  { %v13196_v42 = vadd.f32 %v13189_v47, %v4584_v36  ;;  %v4586_v27 = vpop.f32.mrb[138].mxu0 }
 0x703   :  { %v9376_v62 = vmul.f32 -1.442695, %v13193_v34  ;;  %v13200_v13 = vadd.f32 %v13185_v10, %v4586_v27  ;;  %v4588_v30 = vpop.f32.mrb[139].mxu0 }
 0x704   :  { %v9377_v0 = vmul.f32 -1.442695, %v13196_v42  ;;  %v13204_v16 = vadd.f32 %v13189_v47, %v4588_v30 }
 0x705   :  { %10360 = vpow2.f32 %v9376_v62  ;;  %v9380_v1 = vmul.f32 -1.442695, %v13200_v13 }
 0x706   :  { %10362 = vpow2.f32 %v9377_v0  ;;  %v9381_v63 = vmul.f32 -1.442695, %v13204_v16 }
 0x707   :  { %v10353_v46 = vpop.eup %10352  ;;  %10364 = vpow2.f32 %v9380_v1 }
 0x708   :  { %v10355_v50 = vpop.eup %10354  ;;  %v6433_v22 = vadd.f32 1.0, %v10353_v46  ;;  %10366 = vpow2.f32 %v9381_v63  ;;  %v4625_v41 = vpop.f32.mrb[140].mxu0 }
 0x709   :  { %v10357_v26 = vpop.eup %10356  ;;  %v6434_v8 = vadd.f32 1.0, %v10355_v50  ;;  %v13209_v28 = vadd.f32 %v13156_v39, %v4625_v41  ;;  %v4627_v45 = vpop.f32.mrb[141].mxu0 }
 0x70a   :  { %v10359_v32 = vpop.eup %10358  ;;  %10368 = vrcp.f32 %v6433_v22  ;;  %v6437_v19 = vadd.f32 1.0, %v10357_v26  ;;  %v13212_v59 = vadd.f32 %v13164_v5, %v4627_v45  ;;  %v4629_v18 = vpop.f32.mrb[142].mxu0 }
 0x70b   :  { %10370 = vrcp.f32 %v6434_v8  ;;  %v6438_v60 = vadd.f32 1.0, %v10359_v32  ;;  %v9382_v17 = vmul.f32 -1.442695, %v13209_v28  ;;  %v13216_v7 = vadd.f32 %v13156_v39, %v4629_v18  ;;  %v4631_v55 = vpop.f32.mrb[143].mxu0 }
 0x70c   :  { %10372 = vrcp.f32 %v6437_v19  ;;  %v9383_v54 = vmul.f32 -1.442695, %v13212_v59  ;;  %v13220_v31 = vadd.f32 %v13164_v5, %v4631_v55 }
 0x70d   :  { %10374 = vrcp.f32 %v6438_v60  ;;  %v9386_v6 = vmul.f32 -1.442695, %v13216_v7 }
 0x70e   :  { %10376 = vpow2.f32 %v9382_v17  ;;  %v9387_v44 = vmul.f32 -1.442695, %v13220_v31 }
 0x70f   :  { %v10361_v43 = vpop.eup %10360  ;;  %10378 = vpow2.f32 %v9383_v54 }
 0x710   :  { %v10363_v20 = vpop.eup %10362  ;;  %v6435_v38 = vadd.f32 1.0, %v10361_v43  ;;  %10380 = vpow2.f32 %v9386_v6  ;;  %v4668_v12 = vpop.f32.mrb[144].mxu0 }
 0x711   :  { %v10365_v48 = vpop.eup %10364  ;;  %v6436_v53 = vadd.f32 1.0, %v10363_v20  ;;  %10382 = vpow2.f32 %v9387_v44  ;;  %v13225_v14 = vadd.f32 %v13185_v10, %v4668_v12  ;;  %v4670_v33 = vpop.f32.mrb[145].mxu0 }
 0x712   :  { %v10367_v29 = vpop.eup %10366  ;;  %10384 = vrcp.f32 %v6435_v38  ;;  %v6439_v4 = vadd.f32 1.0, %v10365_v48  ;;  %v13228_v56 = vadd.f32 %v13189_v47, %v4670_v33  ;;  %v4672_v37 = vpop.f32.mrb[146].mxu0 }
 0x713   :  { %10386 = vrcp.f32 %v6436_v53  ;;  %v6440_v40 = vadd.f32 1.0, %v10367_v29  ;;  %v9384_v51 = vmul.f32 -1.442695, %v13225_v14  ;;  %v13232_v49 = vadd.f32 %v13185_v10, %v4672_v37  ;;  %v4674_v52 = vpop.f32.mrb[147].mxu0 }
 0x714   :  { %v10369_v24 = vpop.eup %10368  ;;  %10388 = vrcp.f32 %v6439_v4  ;;  %v9385_v35 = vmul.f32 -1.442695, %v13228_v56  ;;  %v13236_v21 = vadd.f32 %v13189_v47, %v4674_v52 }
 0x715   :  { %v10371_v2 = vpop.eup %10370  ;;  %v13239_v9 = vmul.f32 %v10369_v24, %v13169_v58  ;;  %10390 = vrcp.f32 %v6440_v40  ;;  %v9388_v57 = vmul.f32 -1.442695, %v13232_v49 }
 0x716   :  { %v10373_v36 = vpop.eup %10372  ;;  %v13243_v27 = vmul.f32 %v10371_v2, %v13174_v15  ;;  %10392 = vpow2.f32 %v9384_v51  ;;  %v9389_v62 = vmul.f32 -1.442695, %v13236_v21 }
 0x717   :  { %16672 = vst [vmem:[#allocation22_spill] sm:$0xff] %v13239_v9  ;;  %v10375_v30 = vpop.eup %10374  ;;  %v7138_v0 = vmul.f32 %v13239_v9, %v13239_v9  ;;  %10394 = vpow2.f32 %v9385_v35  ;;  %v13251_v63 = vmul.f32 %v10373_v36, %v13178_v11 }
 0x718   :  { %16673 = vst [vmem:[#allocation23_spill] sm:$0xff] %v13243_v27  ;;  %v10377_v1 = vpop.eup %10376  ;;  %v6945_v58 = vadd.f32 %v13243_v27, %v13239_v9  ;;  %v13254_v46 = vmul.f32 %v10375_v30, %v13182_v61  ;;  %10396 = vpow2.f32 %v9388_v57  ;;  %v4711_v15 = vpop.f32.mrb[148].mxu0  ;;  %v7139_v22 = vmul.f32 %v13243_v27, %v13243_v27 }
 0x719   :  { %16674 = vst [vmem:[#allocation24_spill] sm:$0xff] %v13251_v63  ;;  %v10379_v50 = vpop.eup %10378  ;;  %v6441_v41 = vadd.f32 1.0, %v10377_v1  ;;  %10398 = vpow2.f32 %v9389_v62  ;;  %v13259_v26 = vadd.f32 %v13156_v39, %v4711_v15  ;;  %v4713_v8 = vpop.f32.mrb[149].mxu0  ;;  %v7142_v11 = vmul.f32 %v13251_v63, %v13251_v63 }
 0x71a   :  { %16675 = vst [vmem:[#allocation26_spill] sm:$0xff] %v13254_v46  ;;  %v10381_v45 = vpop.eup %10380  ;;  %v7143_v61 = vmul.f32 %v13254_v46, %v13254_v46  ;;  %v6442_v32 = vadd.f32 1.0, %v10379_v50  ;;  %v13266_v19 = vadd.f32 %v13164_v5, %v4713_v8  ;;  %v4715_v18 = vpop.f32.mrb[150].mxu0  ;;  %v6950_v48 = vadd.f32 %v13254_v46, %v13251_v63 }
 0x71b   :  { %v10383_v60 = vpop.eup %10382  ;;  %10400 = vrcp.f32 %v6441_v41  ;;  %v6445_v17 = vadd.f32 1.0, %v10381_v45  ;;  %v9390_v55 = vmul.f32 -1.442695, %v13259_v26  ;;  %v13270_v54 = vadd.f32 %v13156_v39, %v4715_v18  ;;  %v4717_v6 = vpop.f32.mrb[151].mxu0 }
 0x71c   :  { %v10385_v44 = vpop.eup %10384  ;;  %10402 = vrcp.f32 %v6442_v32  ;;  %v6446_v43 = vadd.f32 1.0, %v10383_v60  ;;  %v9391_v20 = vmul.f32 -1.442695, %v13266_v19  ;;  %v13274_v38 = vadd.f32 %v13164_v5, %v4717_v6 }
 0x71d   :  { %v10387_v12 = vpop.eup %10386  ;;  %v13279_v53 = vmul.f32 %v10385_v44, %v13193_v34  ;;  %10404 = vrcp.f32 %v6445_v17  ;;  %v9394_v33 = vmul.f32 -1.442695, %v13270_v54  ;;  %v7266_v40 = vadd.f32 %v7139_v22, %v7138_v0 }
 0x71e   :  { %v10389_v29 = vpop.eup %10388  ;;  %v13283_v4 = vmul.f32 %v10387_v12, %v13196_v42  ;;  %10406 = vrcp.f32 %v6446_v43  ;;  %v9395_v37 = vmul.f32 -1.442695, %v13274_v38  ;;  %v7271_v34 = vadd.f32 %v7143_v61, %v7142_v11 }
 0x71f   :  { %16676 = vst [vmem:[#allocation25_spill] sm:$0xff] %v13279_v53  ;;  %v10391_v51 = vpop.eup %10390  ;;  %v13287_v52 = vmul.f32 %v10389_v29, %v13200_v13  ;;  %10408 = vpow2.f32 %v9390_v55  ;;  %v6946_v24 = vadd.f32 %v6945_v58, %v13279_v53  ;;  %v7140_v2 = vmul.f32 %v13279_v53, %v13279_v53 }
 0x720   :  { %16677 = vst [vmem:[#allocation27_spill] sm:$0xff] %v13283_v4  ;;  %v10393_v35 = vpop.eup %10392  ;;  %v13293_v57 = vmul.f32 %v10391_v51, %v13204_v16  ;;  %10410 = vpow2.f32 %v9391_v20  ;;  %v4754_v42 = vpop.f32.mrb[152].mxu0  ;;  %v7141_v36 = vmul.f32 %v13283_v4, %v13283_v4 }
 0x721   :  { %16678 = vst [vmem:[#allocation28_spill] sm:$0xff] %v13287_v52  ;;  %v10395_v62 = vpop.eup %10394  ;;  %v7144_v13 = vmul.f32 %v13287_v52, %v13287_v52  ;;  %v6443_v30 = vadd.f32 1.0, %v10393_v35  ;;  %10412 = vpow2.f32 %v9394_v33  ;;  %v13300_v0 = vadd.f32 %v13185_v10, %v4754_v42  ;;  %v4756_v1 = vpop.f32.mrb[153].mxu0 }
 0x722   :  { %16679 = vst [vmem:[#allocation29_spill] sm:$0xff] %v13293_v57  ;;  %v10397_v58 = vpop.eup %10396  ;;  %v6444_v15 = vadd.f32 1.0, %v10395_v62  ;;  %10414 = vpow2.f32 %v9395_v37  ;;  %v13303_v16 = vadd.f32 %v13189_v47, %v4756_v1  ;;  %v4758_v50 = vpop.f32.mrb[154].mxu0  ;;  %v6947_v22 = vadd.f32 %v6946_v24, %v13283_v4 }
 0x723   :  { %v10399_v41 = vpop.eup %10398  ;;  %10416 = vrcp.f32 %v6443_v30  ;;  %v6447_v8 = vadd.f32 1.0, %v10397_v58  ;;  %v9392_v45 = vmul.f32 -1.442695, %v13300_v0  ;;  %v13308_v11 = vadd.f32 %v13185_v10, %v4758_v50  ;;  %v4760_v61 = vpop.f32.mrb[155].mxu0 }
 0x724   :  { %10418 = vrcp.f32 %v6444_v15  ;;  %v6448_v32 = vadd.f32 1.0, %v10399_v41  ;;  %v9393_v18 = vmul.f32 -1.442695, %v13303_v16  ;;  %6948 = vadd.xlane.f32.xlu0 %v6947_v22  ;;  %v13312_v60 = vadd.f32 %v13189_v47, %v4760_v61 }
 0x725   :  { %v10401_v17 = vpop.eup %10400  ;;  %10420 = vrcp.f32 %v6447_v8  ;;  %v9396_v55 = vmul.f32 -1.442695, %v13308_v11  ;;  %v6951_v6 = vadd.f32 %v6950_v48, %v13287_v52  ;;  %v7267_v44 = vadd.f32 %v7266_v40, %v7140_v2 }
 0x726   :  { %v10403_v43 = vpop.eup %10402  ;;  %v13317_v20 = vmul.f32 %v10401_v17, %v13209_v28  ;;  %10422 = vrcp.f32 %v6448_v32  ;;  %v9397_v12 = vmul.f32 -1.442695, %v13312_v60  ;;  %v7145_v33 = vmul.f32 %v13293_v57, %v13293_v57 }
 0x727   :  { %v10405_v29 = vpop.eup %10404  ;;  %v13323_v37 = vmul.f32 %v10403_v43, %v13212_v59  ;;  %10424 = vpow2.f32 %v9392_v45  ;;  %v6952_v51 = vadd.f32 %v6951_v6, %v13293_v57  ;;  %v7268_v24 = vadd.f32 %v7267_v44, %v7141_v36 }
 0x728   :  { %16680 = vst [vmem:[#allocation30_spill] sm:$0xff] %v13317_v20  ;;  %v10407_v48 = vpop.eup %10406  ;;  %10426 = vpow2.f32 %v9393_v18  ;;  %v7272_v40 = vadd.f32 %v7271_v34, %v7144_v13  ;;  %v13327_v28 = vmul.f32 %v10405_v29, %v13216_v7  ;;  %v7146_v36 = vmul.f32 %v13317_v20, %v13317_v20 }
 0x729   :  { %16681 = vst [vmem:[#allocation31_spill] sm:$0xff] %v13323_v37  ;;  %v10409_v35 = vpop.eup %10408  ;;  %10428 = vpow2.f32 %v9396_v55  ;;  %6953 = vadd.xlane.f32.xlu1 %v6952_v51  ;;  %7269 = vadd.xlane.f32.xlu0 %v7268_v24  ;;  %v13330_v42 = vmul.f32 %v10407_v48, %v13220_v31  ;;  %v6955_v34 = vadd.f32 %v13323_v37, %v13317_v20 }
 0x72a   :  { %16682 = vst [vmem:[#allocation32_spill] sm:$0xff] %v13327_v28  ;;  %v10411_v2 = vpop.eup %10410  ;;  %v6449_v59 = vadd.f32 1.0, %v10409_v35  ;;  %10430 = vpow2.f32 %v9397_v12  ;;  %v7273_v62 = vadd.f32 %v7272_v40, %v7145_v33  ;;  %v7147_v7 = vmul.f32 %v13323_v37, %v13323_v37 }
 0x72b   :  { %16683 = vst [vmem:[#allocation33_spill] sm:$0xff] %v13330_v42  ;;  %v10413_v30 = vpop.eup %10412  ;;  %v6450_v13 = vadd.f32 1.0, %v10411_v2  ;;  %v7150_v58 = vmul.f32 %v13327_v28, %v13327_v28  ;;  %v7151_v31 = vmul.f32 %v13330_v42, %v13330_v42  ;;  %v6960_v8 = vadd.f32 %v13330_v42, %v13327_v28 }
 0x72c   :  { %v10415_v1 = vpop.eup %10414  ;;  %10432 = vrcp.f32 %v6449_v59  ;;  %v6453_v15 = vadd.f32 1.0, %v10413_v30  ;;  %v7276_v18 = vadd.f32 %v7147_v7, %v7146_v36 }
 0x72d   :  { %v10417_v50 = vpop.eup %10416  ;;  %10434 = vrcp.f32 %v6450_v13  ;;  %v6454_v22 = vadd.f32 1.0, %v10415_v1  ;;  %7274 = vadd.xlane.f32.xlu1 %v7273_v62  ;;  %v7281_v43 = vadd.f32 %v7151_v31, %v7150_v58 }
 0x72e   :  { %v10419_v41 = vpop.eup %10418  ;;  %v13345_v45 = vmul.f32 %v10417_v50, %v13225_v14  ;;  %10436 = vrcp.f32 %v6453_v15 }
 0x72f   :  { %v10421_v61 = vpop.eup %10420  ;;  %v13348_v32 = vmul.f32 %v10419_v41, %v13228_v56  ;;  %10438 = vrcp.f32 %v6454_v22 }
 0x730   :  { %16684 = vst [vmem:[#allocation34_spill] sm:$0xff] %v13345_v45  ;;  %v10423_v17 = vpop.eup %10422  ;;  %v7148_v55 = vmul.f32 %v13345_v45, %v13345_v45  ;;  %v13353_v6 = vmul.f32 %v10421_v61, %v13232_v49  ;;  %v6956_v44 = vadd.f32 %v6955_v34, %v13345_v45 }
 0x731   :  { %16685 = vst [vmem:[#allocation36_spill] sm:$0xff] %v13348_v32  ;;  %v10425_v12 = vpop.eup %10424  ;;  %v13357_v14 = vmul.f32 %v10423_v17, %v13236_v21  ;;  %v7149_v56 = vmul.f32 %v13348_v32, %v13348_v32 }
 0x732   :  { %16686 = vst [vmem:[#allocation38_spill] sm:$0xff] %v13353_v6  ;;  %v10427_v33 = vpop.eup %10426  ;;  %v7152_v29 = vmul.f32 %v13353_v6, %v13353_v6  ;;  %v6451_v51 = vadd.f32 1.0, %v10425_v12  ;;  %v6957_v24 = vadd.f32 %v6956_v44, %v13348_v32  ;;  %v6961_v49 = vadd.f32 %v6960_v8, %v13353_v6 }
 0x733   :  { %16687 = vst [vmem:[#allocation35_spill] sm:$0xff] %v13357_v14  ;;  %v10429_v48 = vpop.eup %10428  ;;  %v6452_v40 = vadd.f32 1.0, %v10427_v33  ;;  %v7277_v35 = vadd.f32 %v7276_v18, %v7148_v55  ;;  %v7153_v2 = vmul.f32 %v13357_v14, %v13357_v14 }
 0x734   :  { %v10431_v21 = vpop.eup %10430  ;;  %10440 = vrcp.f32 %v6451_v51  ;;  %v6455_v59 = vadd.f32 1.0, %v10429_v48  ;;  %6958 = vadd.xlane.f32.xlu0 %v6957_v24  ;;  %v6962_v62 = vadd.f32 %v6961_v49, %v13357_v14  ;;  %v7282_v30 = vadd.f32 %v7281_v43, %v7152_v29 }
 0x735   :  { %10442 = vrcp.f32 %v6452_v40  ;;  %v6456_v36 = vadd.f32 1.0, %v10431_v21  ;;  %v7278_v34 = vadd.f32 %v7277_v35, %v7149_v56 }
 0x736   :  { %v10433_v7 = vpop.eup %10432  ;;  %10444 = vrcp.f32 %v6455_v59  ;;  %6963 = vadd.xlane.f32.xlu1 %v6962_v62  ;;  %v7283_v13 = vadd.f32 %v7282_v30, %v7153_v2 }
 0x737   :  { %v10435_v1 = vpop.eup %10434  ;;  %10446 = vrcp.f32 %v6456_v36  ;;  %v13369_v15 = vmul.f32 %v10433_v7, %v13259_v26 }
 0x738   :  { %v10437_v58 = vpop.eup %10436  ;;  %7279 = vadd.xlane.f32.xlu0 %v7278_v34  ;;  %v13372_v50 = vmul.f32 %v10435_v1, %v13266_v19 }
 0x739   :  { %v10439_v31 = vpop.eup %10438  ;;  %16688 = vst [vmem:[#allocation37_spill] sm:$0xff] %v13369_v15  ;;  %v13375_v22 = vmul.f32 %v10437_v58, %v13270_v54  ;;  %v7154_v8 = vmul.f32 %v13369_v15, %v13369_v15 }
 0x73a   :  { %16689 = vst [vmem:[#allocation39_spill] sm:$0xff] %v13372_v50  ;;  %v13378_v41 = vmul.f32 %v10439_v31, %v13274_v38  ;;  %7284 = vadd.xlane.f32.xlu1 %v7283_v13  ;;  %v7155_v61 = vmul.f32 %v13372_v50, %v13372_v50  ;;  %v6965_v54 = vadd.f32 %v13372_v50, %v13369_v15 }
 0x73b   :  { %16690 = vst [vmem:[#allocation40_spill] sm:$0xff] %v13375_v22  ;;  %v7158_v26 = vmul.f32 %v13375_v22, %v13375_v22 }
 0x73c   :  { %16691 = vst [vmem:[#allocation42_spill] sm:$0xff] %v13378_v41  ;;  %v7159_v19 = vmul.f32 %v13378_v41, %v13378_v41  ;;  %v6970_v38 = vadd.f32 %v13378_v41, %v13375_v22  ;;  %v7286_v12 = vadd.f32 %v7155_v61, %v7154_v8 }
 0x73d   :  { %v4797_v44 = vpop.f32.mrb[156].mxu0  ;;  %v4840_v43 = vpop.f32.mrb[132].mxu1 }
 0x73e   :  { %v10441_v18 = vpop.eup %10440  ;;  %v13399_v29 = vadd.f32 %v13156_v39, %v4797_v44  ;;  %v4799_v51 = vpop.f32.mrb[157].mxu0  ;;  %v13402_v24 = vadd.f32 %v13185_v10, %v4840_v43  ;;  %v7291_v48 = vadd.f32 %v7159_v19, %v7158_v26 }
 0x73f   :  { %v10443_v17 = vpop.eup %10442  ;;  %v13393_v55 = vmul.f32 %v10441_v18, %v13300_v0  ;;  %v4842_v49 = vpop.f32.mrb[133].mxu1  ;;  %v13410_v2 = vadd.f32 %v13164_v5, %v4799_v51 }
 0x740   :  { %v10445_v56 = vpop.eup %10444  ;;  %v13396_v33 = vmul.f32 %v10443_v17, %v13303_v16  ;;  %v4801_v21 = vpop.f32.mrb[158].mxu0  ;;  %v9398_v30 = vmul.f32 -1.442695, %v13399_v29  ;;  %v9400_v7 = vmul.f32 -1.442695, %v13402_v24  ;;  %v13430_v8 = vadd.f32 %v13189_v47, %v4842_v49 }
 0x741   :  { %16692 = vst [vmem:[#allocation41_spill] sm:$0xff] %v13393_v55  ;;  %v10447_v40 = vpop.eup %10446  ;;  %v7156_v0 = vmul.f32 %v13393_v55, %v13393_v55  ;;  %v13407_v35 = vmul.f32 %v10445_v56, %v13308_v11  ;;  %v6966_v16 = vadd.f32 %v6965_v54, %v13393_v55  ;;  %v4844_v59 = vpop.f32.mrb[134].mxu1  ;;  %v13418_v36 = vadd.f32 %v13156_v39, %v4801_v21 }
 0x742   :  { %16693 = vst [vmem:[#allocation43_spill] sm:$0xff] %v13396_v33  ;;  %v13414_v62 = vmul.f32 %v10447_v40, %v13312_v60  ;;  %v4803_v34 = vpop.f32.mrb[159].mxu0  ;;  %v4846_v11 = vpop.f32.mrb[135].mxu1  ;;  %v9399_v1 = vmul.f32 -1.442695, %v13410_v2  ;;  %10448 = vpow2.f32 %v9398_v30  ;;  %v13435_v19 = vadd.f32 %v13185_v10, %v4844_v59 }
 0x743   :  { %16694 = vst [vmem:[#allocation44_spill] sm:$0xff] %v13407_v35  ;;  %v7160_v13 = vmul.f32 %v13407_v35, %v13407_v35  ;;  %v6967_v58 = vadd.f32 %v6966_v16, %v13396_v33  ;;  %v13426_v31 = vadd.f32 %v13164_v5, %v4803_v34  ;;  %v9402_v60 = vmul.f32 -1.442695, %v13418_v36 }
 0x744   :  { %16695 = vst [vmem:[#allocation45_spill] sm:$0xff] %v13414_v62  ;;  %v6971_v61 = vadd.f32 %v6970_v38, %v13407_v35  ;;  %10450 = vpow2.f32 %v9399_v1  ;;  %v7157_v54 = vmul.f32 %v13396_v33, %v13396_v33  ;;  %v9401_v18 = vmul.f32 -1.442695, %v13430_v8  ;;  %v16696_v1 = vld [vmem:[#allocation13_spill] sm:$0xff] }
 0x745   :  { %6968 = vadd.xlane.f32.xlu0 %v6967_v58  ;;  %v9403_v26 = vmul.f32 -1.442695, %v13426_v31  ;;  %10452 = vpow2.f32 %v9402_v60  ;;  %v7287_v44 = vadd.f32 %v7286_v12, %v7156_v0  ;;  %v9404_v43 = vmul.f32 -1.442695, %v13435_v19  ;;  %v4883_v40 = vpop.f32.mrb[160].mxu0  ;;  %v4926_v16 = vpop.f32.mrb[136].mxu1 }
 0x746   :  { %v6972_v17 = vadd.f32 %v6971_v61, %v13414_v62  ;;  %v13443_v38 = vadd.f32 %v13189_v47, %v4846_v11  ;;  %v7161_v56 = vmul.f32 %v13414_v62, %v13414_v62  ;;  %v7292_v49 = vadd.f32 %v7291_v48, %v7160_v13  ;;  %v4885_v0 = vpop.f32.mrb[161].mxu0  ;;  %v4928_v59 = vpop.f32.mrb[137].mxu1 }
 0x747   :  { %10454 = vpow2.f32 %v9403_v26  ;;  %v7288_v51 = vadd.f32 %v7287_v44, %v7157_v54  ;;  %v13449_v12 = vadd.f32 %v13156_v39, %v4883_v40  ;;  %v13452_v34 = vadd.f32 %v13164_v5, %v4885_v0  ;;  %v4930_v11 = vpop.f32.mrb[138].mxu1  ;;  %v16697_v54 = vld [vmem:[#allocation17_spill] sm:$0xff] }
 0x748   :  { %10456 = vpow2.f32 %v9400_v7  ;;  %6973 = vadd.xlane.f32.xlu1 %v6972_v17  ;;  %v9405_v21 = vmul.f32 -1.442695, %v13443_v38  ;;  %v7293_v30 = vadd.f32 %v7292_v49, %v7161_v56  ;;  %v4887_v7 = vpop.f32.mrb[162].mxu0  ;;  %v7877_v48 = vrot.slane %v13149_v25, %v16696_v1  ;;  %v4932_v61 = vpop.f32.mrb[139].mxu1  ;;  %v16698_v49 = vld [vmem:[#allocation18_spill] sm:$0xff] }
 0x749   :  { %10458 = vpow2.f32 %v9401_v18  ;;  %7289 = vadd.xlane.f32.xlu0 %v7288_v51  ;;  %v9406_v13 = vmul.f32 -1.442695, %v13449_v12  ;;  %v13458_v58 = vadd.f32 %v13156_v39, %v4887_v7  ;;  %v4889_v60 = vpop.f32.mrb[163].mxu0  ;;  %v7885_v26 = vrot.slane %v13161_v23, %v16696_v1 }
 0x74a   :  { %10460 = vpow2.f32 %v9404_v43  ;;  %v8041_v18 = vrot.slane %v13149_v25, %v16697_v54  ;;  %v9407_v17 = vmul.f32 -1.442695, %v13452_v34  ;;  %v13466_v44 = vadd.f32 %v13164_v5, %v4889_v60 }
 0x74b   :  { %10462 = vpow2.f32 %v9405_v21  ;;  %v8049_v43 = vrot.slane %v13161_v23, %v16697_v54  ;;  %v9410_v56 = vmul.f32 -1.442695, %v13458_v58  ;;  %v7881_v40 = vrot.slane %v13149_v25, %v16698_v49 }
 0x74c   :  { %7294 = vadd.xlane.f32.xlu1 %v7293_v30  ;;  %10464 = vpow2.f32 %v9406_v13  ;;  %v10449_v51 = vpop.eup %10448  ;;  %v9411_v21 = vmul.f32 -1.442695, %v13466_v44  ;;  %v13475_v30 = vrot.slane %v7877_v48, %v16696_v1  ;;  %v7889_v7 = vrot.slane %v13161_v23, %v16698_v49 }
 0x74d   :  { %10466 = vpow2.f32 %v9407_v17  ;;  %v6457_v60 = vadd.f32 1.0, %v10449_v51  ;;  %v13480_v13 = vrot.slane %v7885_v26, %v16696_v1  ;;  %v13483_v62 = vrot.slane %v8041_v18, %v16697_v54 }
 0x74e   :  { %v10451_v0 = vpop.eup %10450  ;;  %16699 = vst [vmem:[#allocation46_spill] sm:$0xff] %v13475_v30  ;;  %10468 = vpow2.f32 %v9410_v56  ;;  %v13486_v41 = vrot.slane %v8049_v43, %v16697_v54  ;;  %v13489_v22 = vadd.f32 %v13185_v10, %v4926_v16  ;;  %v16703_v56 = vld [vmem:[#allocation19_spill] sm:$0xff]  ;;  %v13494_v18 = vadd.f32 %v13189_v47, %v4928_v59 }
 0x74f   :  { %v10453_v3 = vpop.eup %10452  ;;  %16700 = vst [vmem:[#allocation47_spill] sm:$0xff] %v13480_v13  ;;  %16701 = vst [vmem:[#allocation48_spill] sm:$0xff] %v13483_v62  ;;  %v6458_v35 = vadd.f32 1.0, %v10451_v0  ;;  %10470 = vpow2.f32 %v9411_v21  ;;  %v8045_v49 = vrot.slane %v13149_v25, %v16703_v56  ;;  %v4969_v0 = vpop.f32.mrb[164].mxu0  ;;  %v13503_v25 = vrot.slane %v7881_v40, %v16696_v1 }
 0x750   :  { %16702 = vst [vmem:[#allocation49_spill] sm:$0xff] %v13486_v41  ;;  %10472 = vrcp.f32 %v6457_v60  ;;  %v6461_v48 = vadd.f32 1.0, %v10453_v3  ;;  %v5012_v21 = vpop.f32.mrb[140].mxu1  ;;  %v13497_v60 = vadd.f32 %v13185_v10, %v4930_v11  ;;  %v13500_v3 = vadd.f32 %v13189_v47, %v4932_v61  ;;  %v4971_v16 = vpop.f32.mrb[165].mxu0 }
 0x751   :  { %v10455_v17 = vpop.eup %10454  ;;  %10474 = vrcp.f32 %v6458_v35  ;;  %v5014_v55 = vpop.f32.mrb[141].mxu1  ;;  %16704 = vst [vmem:[#allocation16_spill] sm:$0xff] %v13503_v25  ;;  %v13506_v35 = vrot.slane %v7889_v7, %v16696_v1  ;;  %v8053_v11 = vrot.slane %v13161_v23, %v16703_v56  ;;  %v9408_v15 = vmul.f32 -1.442695, %v13489_v22 }
 0x752   :  { %v10457_v51 = vpop.eup %10456  ;;  %v6462_v26 = vadd.f32 1.0, %v10455_v17  ;;  %10476 = vrcp.f32 %v6461_v48  ;;  %v4973_v17 = vpop.f32.mrb[166].mxu0  ;;  %v13512_v40 = vrot.slane %v8045_v49, %v16697_v54  ;;  %v9409_v1 = vmul.f32 -1.442695, %v13494_v18 }
 0x753   :  { %v10459_v33 = vpop.eup %10458  ;;  %v6459_v43 = vadd.f32 1.0, %v10457_v51  ;;  %16705 = vst [vmem:[#allocation18_spill] sm:$0xff] %v13506_v35  ;;  %v5016_v48 = vpop.f32.mrb[142].mxu1  ;;  %v9412_v23 = vmul.f32 -1.442695, %v13497_v60  ;;  %v13521_v35 = vadd.f32 %v13164_v5, %v4971_v16  ;;  %v13524_v49 = vadd.f32 %v13156_v39, %v4973_v17 }
 0x754   :  { %v10461_v50 = vpop.eup %10460  ;;  %10478 = vrcp.f32 %v6462_v26  ;;  %v6460_v59 = vadd.f32 1.0, %v10459_v33  ;;  %v4975_v41 = vpop.f32.mrb[167].mxu0  ;;  %16706 = vst [vmem:[#allocation19_spill] sm:$0xff] %v13512_v40  ;;  %v13515_v26 = vadd.f32 %v13156_v39, %v4969_v0 }
 0x755   :  { %v10463_v51 = vpop.eup %10462  ;;  %10480 = vrcp.f32 %v6459_v43  ;;  %v6463_v61 = vadd.f32 1.0, %v10461_v50  ;;  %v5018_v62 = vpop.f32.mrb[143].mxu1  ;;  %v9413_v50 = vmul.f32 -1.442695, %v13500_v3  ;;  %v13534_v16 = vadd.f32 %v13164_v5, %v4975_v41 }
 0x756   :  { %10482 = vrcp.f32 %v6460_v59  ;;  %v6464_v7 = vadd.f32 1.0, %v10463_v51  ;;  %v10465_v33 = vpop.eup %10464  ;;  %v13527_v51 = vadd.f32 %v13185_v10, %v5012_v21  ;;  %v9418_v41 = vmul.f32 -1.442695, %v13524_v49 }
 0x757   :  { %10484 = vrcp.f32 %v6463_v61  ;;  %v10467_v56 = vpop.eup %10466  ;;  %v6465_v43 = vadd.f32 1.0, %v10465_v33  ;;  %v13530_v61 = vadd.f32 %v13189_v47, %v5014_v55 }
 0x758   :  { %10486 = vrcp.f32 %v6464_v7  ;;  %v10469_v59 = vpop.eup %10468  ;;  %v6466_v0 = vadd.f32 1.0, %v10467_v56  ;;  %v9414_v7 = vmul.f32 -1.442695, %v13515_v26  ;;  %v13537_v56 = vadd.f32 %v13185_v10, %v5016_v48 }
 0x759   :  { %10488 = vpow2.f32 %v9408_v15  ;;  %v10471_v40 = vpop.eup %10470  ;;  %v6469_v13 = vadd.f32 1.0, %v10469_v59  ;;  %v13540_v15 = vadd.f32 %v13189_v47, %v5018_v62  ;;  %v5055_v21 = vpop.f32.mrb[168].mxu0  ;;  %v9415_v59 = vmul.f32 -1.442695, %v13521_v35 }
 0x75a   :  { %10490 = vrcp.f32 %v6465_v43  ;;  %v10473_v33 = vpop.eup %10472  ;;  %v6470_v17 = vadd.f32 1.0, %v10471_v40  ;;  %v5098_v55 = vpop.f32.mrb[144].mxu1  ;;  %v13543_v43 = vrot.slane %v8053_v11, %v16697_v54  ;;  %v9416_v48 = vmul.f32 -1.442695, %v13527_v51 }
 0x75b   :  { %10492 = vrcp.f32 %v6466_v0  ;;  %v10475_v25 = vpop.eup %10474  ;;  %v5057_v30 = vpop.f32.mrb[169].mxu0  ;;  %v9417_v62 = vmul.f32 -1.442695, %v13530_v61  ;;  %v13550_v14 = vadd.f32 %v13156_v39, %v5055_v21  ;;  %v9419_v21 = vmul.f32 -1.442695, %v13534_v16 }
 0x75c   :  { %16707 = vst [vmem:[#allocation50_spill] sm:$0xff] %v13543_v43  ;;  %10494 = vrcp.f32 %v6469_v13  ;;  %v5100_v0 = vpop.f32.mrb[145].mxu1  ;;  %v10477_v40 = vpop.eup %10476  ;;  %v13555_v13 = vmul.f32 %v10473_v33, %v13399_v29  ;;  %v13558_v54 = vmul.f32 %v10475_v25, %v13410_v2  ;;  %v9420_v45 = vmul.f32 -1.442695, %v13537_v56 }
 0x75d   :  { %10496 = vrcp.f32 %v6470_v17  ;;  %16708 = vst [vmem:[#allocation51_spill] sm:$0xff] %v13550_v14  ;;  %v5059_v6 = vpop.f32.mrb[170].mxu0  ;;  %v13552_v42 = vpop.f32.mrb[146].mxu1  ;;  %v13561_v43 = vmul.f32 %v10477_v40, %v13418_v36  ;;  %v9421_v37 = vmul.f32 -1.442695, %v13540_v15  ;;  %v13569_v2 = vadd.f32 %v13164_v5, %v5057_v30 }
 0x75e   :  { %v10479_v11 = vpop.eup %10478  ;;  %16709 = vst [vmem:[#allocation52_spill] sm:$0xff] %v13555_v13  ;;  %16710 = vst [vmem:[#allocation53_spill] sm:$0xff] %v13558_v54  ;;  %10498 = vpow2.f32 %v9409_v1  ;;  %v5061_v17 = vpop.f32.mrb[171].mxu0  ;;  %v13572_v36 = vadd.f32 %v13185_v10, %v5098_v55  ;;  %v13575_v1 = vadd.f32 %v13189_v47, %v5100_v0  ;;  %v13587_v30 = vadd.f32 %v13558_v54, %v13555_v13 }
 0x75f   :  { %16711 = vst [vmem:[#allocation54_spill] sm:$0xff] %v13561_v43  ;;  %v13563_v28 = vpop.f32.mrb[147].mxu1  ;;  %v10481_v32 = vpop.eup %10480  ;;  %10500 = vpow2.f32 %v9412_v23  ;;  %16712 = vst [vmem:[#allocation55_spill] sm:$0xff] %v13569_v2  ;;  %v13579_v23 = vmul.f32 %v13555_v13, %v13555_v13  ;;  %v13582_v33 = vmul.f32 %v10479_v11, %v13426_v31  ;;  %v13591_v55 = vmul.f32 %v13558_v54, %v13558_v54 }
 0x760   :  { %v10483_v29 = vpop.eup %10482  ;;  %10502 = vpow2.f32 %v9413_v50  ;;  %16713 = vst [vmem:[#allocation56_spill] sm:$0xff] %v13572_v36  ;;  %16714 = vst [vmem:[#allocation57_spill] sm:$0xff] %v13575_v1  ;;  %v9422_v50 = vmul.f32 -1.442695, %v13550_v14  ;;  %v13595_v0 = vmul.f32 %v13561_v43, %v13561_v43  ;;  %v13598_v31 = vmul.f32 %v10481_v32, %v13402_v24 }
 0x761   :  { %v10485_v25 = vpop.eup %10484  ;;  %16715 = vst [vmem:[#allocation58_spill] sm:$0xff] %v13582_v33  ;;  %10504 = vpow2.f32 %v9414_v7  ;;  %v13604_v11 = vadd.f32 %v13156_v39, %v5059_v6  ;;  %v5141_v13 = vpop.f32.mrb[172].mxu0  ;;  %v13609_v46 = vmul.f32 -1.442695, %v13569_v2  ;;  %v13618_v6 = vadd.f32 %v13582_v33, %v13561_v43 }
 0x762   :  { %v10487_v40 = vpop.eup %10486  ;;  %10506 = vpow2.f32 %v9415_v59  ;;  %16716 = vst [vmem:[#allocation59_spill] sm:$0xff] %v13598_v31  ;;  %v13601_v7 = vmul.f32 %v10485_v25, %v13435_v19  ;;  %v13606_v57 = vpop.f32.mrb[148].mxu1  ;;  %v13612_v59 = vadd.f32 %v13164_v5, %v5061_v17  ;;  %v13633_v63 = vmul.f32 %v13598_v31, %v13598_v31 }
 0x763   :  { %v10489_v20 = vpop.eup %10488  ;;  %10508 = vpow2.f32 %v9418_v41  ;;  %16718 = vst [vmem:[#allocation61_spill] sm:$0xff] %v13604_v11  ;;  %v5143_v32 = vpop.f32.mrb[173].mxu0  ;;  %v13622_v41 = vmul.f32 %v13582_v33, %v13582_v33  ;;  %v13636_v43 = vmul.f32 %v10487_v40, %v13443_v38  ;;  %v13639_v33 = vmul.f32 -1.442695, %v13572_v36 }
 0x764   :  { %16717 = vst [vmem:[#allocation60_spill] sm:$0xff] %v13601_v7  ;;  %v10491_v54 = vpop.eup %10490  ;;  %v6467_v52 = vadd.f32 1.0, %v10489_v20  ;;  %10510 = vpow2.f32 %v9419_v21  ;;  %16719 = vst [vmem:[#allocation62_spill] sm:$0xff] %v13612_v59  ;;  %v13614_v24 = vpop.f32.mrb[149].mxu1  ;;  %v13625_v20 = vmul.f32 %v10483_v29, %v13430_v8  ;;  %v13645_v29 = vmul.f32 %v13601_v7, %v13601_v7 }
 0x765   :  { %v10493_v19 = vpop.eup %10492  ;;  %10512 = vpow2.f32 %v9416_v48  ;;  %v13627_v21 = vpop.f32.mrb[174].mxu0  ;;  %16721 = vst [vmem:[#allocation64_spill] sm:$0xff] %v13636_v43  ;;  %v13648_v53 = vmul.f32 %v10491_v54, %v13449_v12  ;;  %v13651_v27 = vmul.f32 -1.442695, %v13604_v11  ;;  %v13657_v40 = vmul.f32 -1.442695, %v13612_v59 }
 0x766   :  { %16720 = vst [vmem:[#allocation63_spill] sm:$0xff] %v13625_v20  ;;  %v13629_v17 = vpop.f32.mrb[150].mxu1  ;;  %v10495_v25 = vpop.eup %10494  ;;  %10514 = vrcp.f32 %v6467_v52  ;;  %v13654_v52 = vmul.f32 %v10493_v19, %v13452_v34  ;;  %v13660_v9 = vmul.f32 -1.442695, %v13575_v1  ;;  %v13667_v54 = vadd.f32 %v13185_v10, %v13552_v42 }
 0x767   :  { %v5147_v4 = vpop.f32.mrb[175].mxu0  ;;  %v13641_v8 = vpop.f32.mrb[151].mxu1  ;;  %16722 = vst [vmem:[#allocation65_spill] sm:$0xff] %v13648_v53  ;;  %10516 = vpow2.f32 %v9417_v62  ;;  %v13663_v2 = vmul.f32 %v10495_v25, %v13458_v58  ;;  %v13674_v19 = vadd.f32 %v13189_v47, %v13563_v28  ;;  %v13678_v58 = vmul.f32 %v13648_v53, %v13648_v53 }
 0x768   :  { %v10497_v48 = vpop.eup %10496  ;;  %16723 = vst [vmem:[#allocation66_spill] sm:$0xff] %v13654_v52  ;;  %10518 = vpow2.f32 %v9420_v45  ;;  %16725 = vst [vmem:[#allocation68_spill] sm:$0xff] %v13667_v54  ;;  %v13681_v42 = vadd.f32 %v13156_v39, %v5141_v13  ;;  %v13691_v28 = vmul.f32 %v13654_v52, %v13654_v52 }
 0x769   :  { %v10499_v38 = vpop.eup %10498  ;;  %16724 = vst [vmem:[#allocation67_spill] sm:$0xff] %v13663_v2  ;;  %10520 = vpow2.f32 %v9421_v37  ;;  %v13670_v34 = vmul.f32 %v10497_v48, %v13466_v44  ;;  %16727 = vst [vmem:[#allocation70_spill] sm:$0xff] %v13674_v19  ;;  %v13683_v25 = vpop.f32.mrb[176].mxu0  ;;  %v13699_v13 = vmul.f32 %v13663_v2, %v13663_v2 }
 0x76a   :  { %v10501_v36 = vpop.eup %10500  ;;  %v6468_v12 = vadd.f32 1.0, %v10499_v38  ;;  %10522 = vpow2.f32 %v9422_v50  ;;  %16728 = vst [vmem:[#allocation71_spill] sm:$0xff] %v13678_v58  ;;  %16729 = vst [vmem:[#allocation72_spill] sm:$0xff] %v13681_v42  ;;  %v13693_v48 = vpop.f32.mrb[177].mxu0  ;;  %v13722_v58 = vmul.f32 -1.442695, %v13674_v19 }
 0x76b   :  { %v10503_v62 = vpop.eup %10502  ;;  %16726 = vst [vmem:[#allocation69_spill] sm:$0xff] %v13670_v34  ;;  %v6471_v45 = vadd.f32 1.0, %v10501_v36  ;;  %v13687_v36 = vadd.f32 %v13654_v52, %v13648_v53  ;;  %16730 = vst [vmem:[#allocation73_spill] sm:$0xff] %v13691_v28  ;;  %v13695_v38 = vpop.f32.mrb[152].mxu1  ;;  %v13702_v53 = vmul.f32 -1.442695, %v13667_v54  ;;  %v13713_v28 = vadd.f32 %v13164_v5, %v5143_v32 }
 0x76c   :  { %v10505_v1 = vpop.eup %10504  ;;  %10524 = vrcp.f32 %v6468_v12  ;;  %v6472_v37 = vadd.f32 1.0, %v10503_v62  ;;  %16731 = vst [vmem:[#allocation74_spill] sm:$0xff] %v13699_v13  ;;  %v13704_v59 = vpop.f32.mrb[178].mxu0  ;;  %v13727_v32 = vmul.f32 -1.442695, %v13681_v42  ;;  %v13749_v42 = vadd.f32 %v13189_v47, %v13614_v24 }
 0x76d   :  { %v10507_v44 = vpop.eup %10506  ;;  %10526 = vrcp.f32 %v6471_v45  ;;  %v6473_v50 = vadd.f32 1.0, %v10505_v1  ;;  %v13706_v52 = vpop.f32.mrb[153].mxu1  ;;  %v13710_v1 = vadd.f32 %v13670_v34, %v13663_v2  ;;  %16733 = vst [vmem:[#allocation76_spill] sm:$0xff] %v13713_v28  ;;  %v6981_v24 = vadd.f32 %v13618_v6, %v13601_v7 }
 0x76e   :  { %v10509_v12 = vpop.eup %10508  ;;  %10528 = vrcp.f32 %v6472_v37  ;;  %v6474_v62 = vadd.f32 1.0, %v10507_v44  ;;  %v13715_v13 = vpop.f32.mrb[179].mxu0  ;;  %v13719_v44 = vmul.f32 %v13670_v34, %v13670_v34  ;;  %16738 = vst [vmem:[#allocation81_spill] sm:$0xff] %v13749_v42 }
 0x76f   :  { %v10511_v45 = vpop.eup %10510  ;;  %16732 = vst [vmem:[#allocation75_spill] sm:$0xff] %v13710_v1  ;;  %10530 = vrcp.f32 %v6473_v50  ;;  %v6477_v11 = vadd.f32 1.0, %v10509_v12  ;;  %v13724_v14 = vpop.f32.mrb[154].mxu1  ;;  %v13731_v12 = vadd.f32 %v13156_v39, %v13627_v21  ;;  %v13745_v21 = vmul.f32 -1.442695, %v13713_v28 }
 0x770   :  { %v10513_v37 = vpop.eup %10512  ;;  %16734 = vst [vmem:[#allocation77_spill] sm:$0xff] %v13719_v44  ;;  %10532 = vrcp.f32 %v6474_v62  ;;  %v6478_v54 = vadd.f32 1.0, %v10511_v45  ;;  %v13733_v1 = vpop.f32.mrb[155].mxu1  ;;  %v13736_v62 = vadd.f32 %v13164_v5, %v5147_v4  ;;  %v13740_v45 = vadd.f32 %v13185_v10, %v13606_v57 }
 0x771   :  { %v10515_v2 = vpop.eup %10514  ;;  %10534 = vrcp.f32 %v6477_v11  ;;  %v6475_v50 = vadd.f32 1.0, %v10513_v37  ;;  %16735 = vst [vmem:[#allocation78_spill] sm:$0xff] %v13731_v12  ;;  %v6976_v11 = vadd.f32 %v13587_v30, %v13598_v31  ;;  %v13754_v57 = vadd.f32 %v13185_v10, %v13629_v17 }
 0x772   :  { %v10517_v34 = vpop.eup %10516  ;;  %10536 = vrcp.f32 %v6478_v54  ;;  %16736 = vst [vmem:[#allocation79_spill] sm:$0xff] %v13736_v62  ;;  %16737 = vst [vmem:[#allocation80_spill] sm:$0xff] %v13740_v45  ;;  %v13767_v17 = vadd.f32 %v13189_v47, %v13641_v8  ;;  %v13777_v6 = vmul.f32 -1.442695, %v13740_v45 }
 0x773   :  { %v10519_v37 = vpop.eup %10518  ;;  %10538 = vrcp.f32 %v6475_v50  ;;  %v6476_v19 = vadd.f32 1.0, %v10517_v34  ;;  %16739 = vst [vmem:[#allocation82_spill] sm:$0xff] %v13754_v57  ;;  %v6977_v30 = vadd.f32 %v6976_v11, %v13625_v20  ;;  %v13758_v50 = vmul.f32 -1.442695, %v13731_v12  ;;  %v13769_v11 = vpop.f32.mrb[180].mxu0 }
 0x774   :  { %v10521_v54 = vpop.eup %10520  ;;  %v6479_v4 = vadd.f32 1.0, %v10519_v37  ;;  %10540 = vpow2.f32 %v13609_v46  ;;  %v13763_v37 = vmul.f32 %v10515_v2, %v13489_v22  ;;  %16741 = vst [vmem:[#allocation84_spill] sm:$0xff] %v13767_v17  ;;  %v13774_v12 = vmul.f32 -1.442695, %v13736_v62  ;;  %v13780_v2 = vpop.f32.mrb[181].mxu0 }
 0x775   :  { %v10523_v31 = vpop.eup %10522  ;;  %10542 = vrcp.f32 %v6476_v19  ;;  %v6480_v34 = vadd.f32 1.0, %v10521_v54  ;;  %6978 = vadd.xlane.f32.xlu0 %v6977_v30  ;;  %v13771_v19 = vpop.f32.mrb[156].mxu1  ;;  %v6982_v22 = vadd.f32 %v6981_v24, %v13636_v43  ;;  %v13789_v30 = vmul.f32 -1.442695, %v13749_v42 }
 0x776   :  { %v10525_v28 = vpop.eup %10524  ;;  %16740 = vst [vmem:[#allocation83_spill] sm:$0xff] %v13763_v37  ;;  %10544 = vrcp.f32 %v6479_v4  ;;  %v6481_v46 = vadd.f32 1.0, %v10523_v31  ;;  %v13782_v31 = vpop.f32.mrb[157].mxu1  ;;  %v13786_v4 = vmul.f32 %v13763_v37, %v13763_v37  ;;  %v13801_v62 = vadd.f32 %v13156_v39, %v13683_v25 }
 0x777   :  { %v10527_v54 = vpop.eup %10526  ;;  %10546 = vrcp.f32 %v6480_v34  ;;  %16742 = vst [vmem:[#allocation85_spill] sm:$0xff] %v13782_v31  ;;  %v13792_v34 = vmul.f32 -1.442695, %v13754_v57  ;;  %v13794_v7 = vpop.f32.mrb[182].mxu0  ;;  %6983 = vadd.xlane.f32.xlu1 %v6982_v22  ;;  %v7296_v57 = vadd.f32 %v13591_v55, %v13579_v23  ;;  %v13814_v44 = vmul.f32 %v10525_v28, %v13494_v18 }
 0x778   :  { %v10529_v8 = vpop.eup %10528  ;;  %10548 = vrcp.f32 %v6481_v46  ;;  %v13796_v45 = vpop.f32.mrb[158].mxu1  ;;  %16744 = vst [vmem:[#allocation87_spill] sm:$0xff] %v13801_v62  ;;  %v13805_v46 = vadd.f32 %v13164_v5, %v13693_v48  ;;  %v7165_v25 = vmul.f32 %v13625_v20, %v13625_v20  ;;  %v13823_v22 = vmul.f32 %v10527_v54, %v13497_v60 }
 0x779   :  { %16743 = vst [vmem:[#allocation86_spill] sm:$0xff] %v13796_v45  ;;  %v10531_v24 = vpop.eup %10530  ;;  %10550 = vpow2.f32 %v13651_v27  ;;  %v13809_v42 = vpop.f32.mrb[183].mxu0  ;;  %16746 = vst [vmem:[#allocation89_spill] sm:$0xff] %v13814_v44  ;;  %v13818_v27 = vmul.f32 -1.442695, %v13767_v17  ;;  %v7297_v23 = vadd.f32 %v7296_v57, %v13633_v63  ;;  %v13829_v18 = vadd.f32 %v13156_v39, %v13704_v59 }
 0x77a   :  { %16745 = vst [vmem:[#allocation88_spill] sm:$0xff] %v13805_v46  ;;  %v13811_v31 = vpop.f32.mrb[159].mxu1  ;;  %v10533_v45 = vpop.eup %10532  ;;  %10552 = vpow2.f32 %v13657_v40  ;;  %16747 = vst [vmem:[#allocation90_spill] sm:$0xff] %v13823_v22  ;;  %v13832_v40 = vmul.f32 %v10531_v24, %v13515_v26  ;;  %v13840_v60 = vadd.f32 %v13164_v5, %v13715_v13  ;;  %v13847_v59 = vmul.f32 -1.442695, %v13801_v62 }
 0x77b   :  { %v10535_v48 = vpop.eup %10534  ;;  %10554 = vpow2.f32 %v13639_v33  ;;  %16748 = vst [vmem:[#allocation91_spill] sm:$0xff] %v13829_v18  ;;  %v13835_v28 = vmul.f32 %v10533_v45, %v13521_v35  ;;  %v13850_v26 = vmul.f32 -1.442695, %v13805_v46  ;;  %v13853_v45 = vmul.f32 %v10529_v8, %v13500_v3  ;;  %v13861_v57 = vpop.f32.mrb[160].mxu1 }
 0x77c   :  { %v10537_v55 = vpop.eup %10536  ;;  %16749 = vst [vmem:[#allocation92_spill] sm:$0xff] %v13832_v40  ;;  %10556 = vpow2.f32 %v13660_v9  ;;  %16751 = vst [vmem:[#allocation94_spill] sm:$0xff] %v13840_v60  ;;  %v13843_v63 = vmul.f32 %v10535_v48, %v13524_v49  ;;  %v7298_v13 = vadd.f32 %v7297_v23, %v7165_v25  ;;  %v13859_v49 = vpop.f32.mrb[184].mxu0  ;;  %v13865_v54 = vmul.f32 %v13823_v22, %v13823_v22 }
 0x77d   :  { %16750 = vst [vmem:[#allocation93_spill] sm:$0xff] %v13835_v28  ;;  %v10539_v33 = vpop.eup %10538  ;;  %10558 = vpow2.f32 %v13702_v53  ;;  %16753 = vst [vmem:[#allocation96_spill] sm:$0xff] %v13853_v45  ;;  %v13856_v9 = vmul.f32 %v10537_v55, %v13534_v16  ;;  %v13869_v3 = vmul.f32 -1.442695, %v13829_v18  ;;  %v13871_v16 = vpop.f32.mrb[185].mxu0  ;;  %v13877_v25 = vmul.f32 %v13832_v40, %v13832_v40 }
 0x77e   :  { %16752 = vst [vmem:[#allocation95_spill] sm:$0xff] %v13843_v63  ;;  %v10541_v35 = vpop.eup %10540  ;;  %10560 = vpow2.f32 %v13722_v58  ;;  %v13873_v8 = vpop.f32.mrb[161].mxu1  ;;  %v13881_v48 = vadd.f32 %v13835_v28, %v13832_v40  ;;  %7299 = vadd.xlane.f32.xlu0 %v7298_v13  ;;  %v13893_v20 = vmul.f32 %v13835_v28, %v13835_v28  ;;  %v13897_v18 = vmul.f32 %v13843_v63, %v13843_v63 }
 0x77f   :  { %16754 = vst [vmem:[#allocation97_spill] sm:$0xff] %v13856_v9  ;;  %v10543_v53 = vpop.eup %10542  ;;  %v6482_v24 = vadd.f32 1.0, %v10541_v35  ;;  %10562 = vpow2.f32 %v13727_v32  ;;  %v13885_v32 = vmul.f32 -1.442695, %v13840_v60  ;;  %v13887_v23 = vpop.f32.mrb[186].mxu0  ;;  %v13900_v40 = vmul.f32 %v10539_v33, %v13527_v51 }
 0x780   :  { %v10545_v58 = vpop.eup %10544  ;;  %10564 = vpow2.f32 %v13745_v21  ;;  %v13889_v55 = vpop.f32.mrb[162].mxu1  ;;  %v13908_v17 = vadd.f32 %v13856_v9, %v13843_v63  ;;  %v7169_v28 = vmul.f32 %v13636_v43, %v13636_v43  ;;  %v7301_v46 = vadd.f32 %v13622_v41, %v13595_v0 }
 0x781   :  { %v10547_v35 = vpop.eup %10546  ;;  %16755 = vst [vmem:[#allocation98_spill] sm:$0xff] %v13900_v40  ;;  %10566 = vrcp.f32 %v6482_v24  ;;  %v13902_v21 = vpop.f32.mrb[187].mxu0  ;;  %v13917_v33 = vmul.f32 %v13856_v9, %v13856_v9  ;;  %v13921_v24 = vmul.f32 %v13900_v40, %v13900_v40  ;;  %v13924_v63 = vmul.f32 %v10543_v53, %v13530_v61 }
 0x782   :  { %v13904_v13 = vpop.f32.mrb[163].mxu1  ;;  %v10549_v60 = vpop.eup %10548  ;;  %10568 = vpow2.f32 %v13758_v50  ;;  %v13930_v0 = vadd.f32 %v13185_v10, %v13695_v38  ;;  %v7302_v41 = vadd.f32 %v7301_v46, %v13645_v29  ;;  %v13934_v43 = vmul.f32 %v10545_v58, %v13537_v56 }
 0x783   :  { %16756 = vst [vmem:[#allocation99_spill] sm:$0xff] %v13904_v13  ;;  %v10551_v51 = vpop.eup %10550  ;;  %16757 = vst [vmem:[#allocation100_spill] sm:$0xff] %v13924_v63  ;;  %10570 = vpow2.f32 %v13774_v12  ;;  %v6986_v61 = vadd.f32 %v13687_v36, %v13763_v37  ;;  %v13945_v29 = vpop.f32.mrb[164].mxu1  ;;  %v13948_v46 = vmul.f32 %v10547_v35, %v13540_v15 }
 0x784   :  { %v10553_v50 = vpop.eup %10552  ;;  %v6485_v62 = vadd.f32 1.0, %v10551_v51  ;;  %10572 = vpow2.f32 %v13777_v6  ;;  %16758 = vst [vmem:[#allocation101_spill] sm:$0xff] %v13934_v43  ;;  %v13941_v6 = vadd.f32 %v13189_v47, %v13706_v52  ;;  %v7303_v38 = vadd.f32 %v7302_v41, %v7169_v28  ;;  %v13943_v51 = vpop.f32.mrb[188].mxu0  ;;  %16760 = vst [vmem:[#allocation103_spill] sm:$0xff] %v13945_v29 }
 0x785   :  { %v10555_v9 = vpop.eup %10554  ;;  %v6486_v13 = vadd.f32 1.0, %v10553_v50  ;;  %10574 = vpow2.f32 %v13789_v30  ;;  %16761 = vst [vmem:[#allocation104_spill] sm:$0xff] %v13948_v46  ;;  %v6987_v36 = vadd.f32 %v6986_v61, %v13814_v44  ;;  %v13951_v58 = vpop.f32.mrb[189].mxu0  ;;  %v13956_v28 = vmul.f32 -1.442695, %v13930_v0  ;;  %v16763_v50 = vld [vmem:[#allocation75_spill] sm:$0xff] }
 0x786   :  { %v10557_v12 = vpop.eup %10556  ;;  %10576 = vrcp.f32 %v6485_v62  ;;  %v6483_v53 = vadd.f32 1.0, %v10555_v9  ;;  %16759 = vst [vmem:[#allocation102_spill] sm:$0xff] %v13941_v6  ;;  %v13953_v62 = vpop.f32.mrb[165].mxu1  ;;  %7304 = vadd.xlane.f32.xlu1 %v7303_v38  ;;  %v6991_v41 = vadd.f32 %v16763_v50, %v13823_v22  ;;  %v16766_v61 = vld [vmem:[#allocation51_spill] sm:$0xff] }
 0x787   :  { %v10559_v56 = vpop.eup %10558  ;;  %10578 = vrcp.f32 %v6486_v13  ;;  %v6484_v30 = vadd.f32 1.0, %v10557_v12  ;;  %16762 = vst [vmem:[#allocation105_spill] sm:$0xff] %v13953_v62  ;;  %v13960_v15 = vpop.f32.mrb[190].mxu0  ;;  %v13965_v12 = vmul.f32 %v10549_v60, %v16766_v61  ;;  %6988 = vadd.xlane.f32.xlu0 %v6987_v36  ;;  %v13986_v36 = vadd.f32 %v13156_v39, %v13769_v11 }
 0x788   :  { %v10561_v9 = vpop.eup %10560  ;;  %10580 = vrcp.f32 %v6483_v53  ;;  %v6487_v52 = vadd.f32 1.0, %v10559_v56  ;;  %16764 = vst [vmem:[#allocation75_spill] sm:$0xff] %v13960_v15  ;;  %v13962_v35 = vpop.f32.mrb[166].mxu1  ;;  %v13969_v53 = vadd.f32 %v13185_v10, %v13724_v14  ;;  %v6992_v60 = vadd.f32 %v6991_v41, %v13853_v45  ;;  %v16772_v41 = vld [vmem:[#allocation71_spill] sm:$0xff] }
 0x789   :  { %16765 = vst [vmem:[#allocation106_spill] sm:$0xff] %v13962_v35  ;;  %v10563_v13 = vpop.eup %10562  ;;  %16767 = vst [vmem:[#allocation51_spill] sm:$0xff] %v13965_v12  ;;  %10582 = vrcp.f32 %v6484_v30  ;;  %v6488_v37 = vadd.f32 1.0, %v10561_v9  ;;  %v13971_v56 = vpop.f32.mrb[191].mxu0  ;;  %v13977_v35 = vadd.f32 %v13189_v47, %v13733_v1  ;;  %v13982_v9 = vmul.f32 %v13934_v43, %v13934_v43  ;;  %v16778_v15 = vld [vmem:[#allocation55_spill] sm:$0xff] }
 0x78a   :  { %16768 = vst [vmem:[#allocation107_spill] sm:$0xff] %v13971_v56  ;;  %v13973_v38 = vpop.f32.mrb[167].mxu1  ;;  %v10565_v50 = vpop.eup %10564  ;;  %10584 = vrcp.f32 %v6487_v52  ;;  %v6489_v22 = vadd.f32 1.0, %v10563_v13  ;;  %16771 = vst [vmem:[#allocation110_spill] sm:$0xff] %v13986_v36  ;;  %v13990_v52 = vmul.f32 %v13965_v12, %v13965_v12  ;;  %v13993_v1 = vmul.f32 -1.442695, %v13941_v6  ;;  %6993 = vadd.xlane.f32.xlu1 %v6992_v60 }
 0x78b   :  { %16769 = vst [vmem:[#allocation108_spill] sm:$0xff] %v13973_v38  ;;  %16770 = vst [vmem:[#allocation109_spill] sm:$0xff] %v13977_v35  ;;  %v10567_v30 = vpop.eup %10566  ;;  %10586 = vrcp.f32 %v6488_v37  ;;  %v6490_v14 = vadd.f32 1.0, %v10565_v50  ;;  %v16773_v13 = vld [vmem:[#allocation73_spill] sm:$0xff]  ;;  %v13998_v50 = vmul.f32 -1.442695, %v13969_v53  ;;  %v7173_v11 = vmul.f32 %v13814_v44, %v13814_v44 }
 0x78c   :  { %v10569_v61 = vpop.eup %10568  ;;  %10588 = vrcp.f32 %v6489_v22  ;;  %v7306_v38 = vadd.f32 %v16773_v13, %v16772_v41  ;;  %v14004_v22 = vmul.f32 -1.442695, %v13977_v35  ;;  %v14008_v60 = vadd.f32 %v13164_v5, %v13780_v2  ;;  %v14010_v41 = vpop.f32.mrb[192].mxu0 }
 0x78d   :  { %v10571_v62 = vpop.eup %10570  ;;  %10590 = vrcp.f32 %v6490_v14  ;;  %v6493_v37 = vadd.f32 1.0, %v10569_v61  ;;  %16774 = vst [vmem:[#allocation71_spill] sm:$0xff] %v14010_v41  ;;  %v14012_v14 = vpop.f32.mrb[168].mxu1  ;;  %v14015_v44 = vmul.f32 -1.442695, %v13986_v36  ;;  %v14023_v2 = vmul.f32 %v10567_v30, %v16778_v15 }
 0x78e   :  { %v10573_v29 = vpop.eup %10572  ;;  %v6494_v56 = vadd.f32 1.0, %v10571_v62  ;;  %10592 = vpow2.f32 %v13792_v34  ;;  %16775 = vst [vmem:[#allocation73_spill] sm:$0xff] %v14012_v14  ;;  %v7307_v62 = vadd.f32 %v7306_v38, %v13786_v4  ;;  %v14018_v34 = vpop.f32.mrb[193].mxu0  ;;  %v14027_v14 = vadd.f32 %v13156_v39, %v13794_v7  ;;  %v16786_v7 = vld [vmem:[#allocation61_spill] sm:$0xff] }
 0x78f   :  { %v10575_v61 = vpop.eup %10574  ;;  %10594 = vrcp.f32 %v6493_v37  ;;  %v6491_v13 = vadd.f32 1.0, %v10573_v29  ;;  %16776 = vst [vmem:[#allocation111_spill] sm:$0xff] %v14018_v34  ;;  %v14020_v35 = vpop.f32.mrb[169].mxu1  ;;  %16779 = vst [vmem:[#allocation55_spill] sm:$0xff] %v14023_v2  ;;  %v14033_v4 = vadd.f32 %v13164_v5, %v13809_v42  ;;  %v14037_v38 = vadd.f32 %v13185_v10, %v13771_v19  ;;  %v16791_v19 = vld [vmem:[#allocation62_spill] sm:$0xff] }
 0x790   :  { %16777 = vst [vmem:[#allocation112_spill] sm:$0xff] %v14020_v35  ;;  %v10577_v6 = vpop.eup %10576  ;;  %10596 = vrcp.f32 %v6494_v56  ;;  %v6492_v41 = vadd.f32 1.0, %v10575_v61  ;;  %16780 = vst [vmem:[#allocation113_spill] sm:$0xff] %v14027_v14  ;;  %v14029_v29 = vpop.f32.mrb[194].mxu0  ;;  %v7308_v36 = vadd.f32 %v7307_v62, %v7173_v11  ;;  %v16788_v11 = vld [vmem:[#allocation74_spill] sm:$0xff]  ;;  %v16789_v62 = vld [vmem:[#allocation77_spill] sm:$0xff] }
 0x791   :  { %16781 = vst [vmem:[#allocation114_spill] sm:$0xff] %v14029_v29  ;;  %v10579_v37 = vpop.eup %10578  ;;  %10598 = vrcp.f32 %v6491_v13  ;;  %16782 = vst [vmem:[#allocation115_spill] sm:$0xff] %v14033_v4  ;;  %v14039_v15 = vpop.f32.mrb[195].mxu0  ;;  %v14044_v61 = vmul.f32 %v10577_v6, %v16786_v7  ;;  %v14047_v13 = vmul.f32 -1.442695, %v14008_v60  ;;  %v7311_v42 = vadd.f32 %v16789_v62, %v16788_v11 }
 0x792   :  { %16783 = vst [vmem:[#allocation116_spill] sm:$0xff] %v14037_v38  ;;  %16784 = vst [vmem:[#allocation117_spill] sm:$0xff] %v14039_v15  ;;  %v14041_v56 = vpop.f32.mrb[170].mxu1  ;;  %v10581_v30 = vpop.eup %10580  ;;  %10600 = vrcp.f32 %v6492_v41  ;;  %v14054_v34 = vmul.f32 %v10579_v37, %v16791_v19  ;;  %7309 = vadd.xlane.f32.xlu0 %v7308_v36  ;;  %v7177_v41 = vmul.f32 %v13853_v45, %v13853_v45  ;;  %v14077_v37 = vmul.f32 -1.442695, %v14033_v4 }
 0x793   :  { %16785 = vst [vmem:[#allocation118_spill] sm:$0xff] %v14041_v56  ;;  %16787 = vst [vmem:[#allocation61_spill] sm:$0xff] %v14044_v61  ;;  %v14051_v35 = vpop.f32.mrb[171].mxu1  ;;  %v10583_v29 = vpop.eup %10582  ;;  %10602 = vpow2.f32 %v13818_v27  ;;  %v16793_v56 = vld [vmem:[#allocation85_spill] sm:$0xff]  ;;  %v14065_v11 = vadd.f32 %v14023_v2, %v13965_v12  ;;  %v14069_v62 = vmul.f32 %v14023_v2, %v14023_v2  ;;  %v14073_v27 = vmul.f32 -1.442695, %v14027_v14 }
 0x794   :  { %16790 = vst [vmem:[#allocation74_spill] sm:$0xff] %v14051_v35  ;;  %16792 = vst [vmem:[#allocation77_spill] sm:$0xff] %v14054_v34  ;;  %v14059_v6 = vadd.f32 %v13189_v47, %v16793_v56  ;;  %v10585_v7 = vpop.eup %10584  ;;  %10604 = vpow2.f32 %v13847_v59  ;;  %v14080_v56 = vmul.f32 -1.442695, %v14037_v38  ;;  %v7312_v19 = vadd.f32 %v7311_v42, %v13865_v54  ;;  %v16795_v59 = vld [vmem:[#allocation56_spill] sm:$0xff]  ;;  %v14093_v35 = vpop.f32.mrb[196].mxu0 }
 0x795   :  { %v10587_v36 = vpop.eup %10586  ;;  %10606 = vpow2.f32 %v13850_v26  ;;  %v14085_v2 = vmul.f32 %v14044_v61, %v14044_v61  ;;  %v14088_v45 = vmul.f32 %v10581_v30, %v16795_v59  ;;  %v6996_v26 = vadd.f32 %v13881_v48, %v13900_v40  ;;  %16797 = vst [vmem:[#allocation56_spill] sm:$0xff] %v14093_v35  ;;  %v14095_v15 = vpop.f32.mrb[172].mxu1  ;;  %v16801_v40 = vld [vmem:[#allocation68_spill] sm:$0xff] }
 0x796   :  { %16794 = vst [vmem:[#allocation62_spill] sm:$0xff] %v14059_v6  ;;  %v10589_v12 = vpop.eup %10588  ;;  %10608 = vpow2.f32 %v13869_v3  ;;  %16798 = vst [vmem:[#allocation119_spill] sm:$0xff] %v14095_v15  ;;  %v14099_v54 = vadd.f32 %v14054_v34, %v14044_v61  ;;  %v14103_v42 = vmul.f32 -1.442695, %v14059_v6  ;;  %v7313_v30 = vadd.f32 %v7312_v19, %v7177_v41  ;;  %v14105_v59 = vpop.f32.mrb[197].mxu0  ;;  %v16803_v15 = vld [vmem:[#allocation86_spill] sm:$0xff] }
 0x797   :  { %16796 = vst [vmem:[#allocation85_spill] sm:$0xff] %v14088_v45  ;;  %v10591_v38 = vpop.eup %10590  ;;  %10610 = vpow2.f32 %v13885_v32  ;;  %16799 = vst [vmem:[#allocation120_spill] sm:$0xff] %v14105_v59  ;;  %v14107_v3 = vpop.f32.mrb[173].mxu1  ;;  %v14110_v35 = vmul.f32 %v10585_v7, %v16801_v40  ;;  %v14115_v61 = vadd.f32 %v13185_v10, %v16803_v15  ;;  %v6997_v32 = vadd.f32 %v6996_v26, %v13924_v63  ;;  %v16806_v19 = vld [vmem:[#allocation72_spill] sm:$0xff] }
 0x798   :  { %16800 = vst [vmem:[#allocation121_spill] sm:$0xff] %v14107_v3  ;;  %v10593_v48 = vpop.eup %10592  ;;  %10612 = vpow2.f32 %v13956_v28  ;;  %v14118_v4 = vpop.f32.mrb[198].mxu0  ;;  %v14123_v59 = vmul.f32 %v10589_v12, %v16806_v19  ;;  %v16808_v3 = vld [vmem:[#allocation76_spill] sm:$0xff]  ;;  %7314 = vadd.xlane.f32.xlu1 %v7313_v30  ;;  %v14135_v26 = vmul.f32 %v14054_v34, %v14054_v34  ;;  %v14139_v12 = vmul.f32 %v14088_v45, %v14088_v45  ;;  %v16812_v19 = vld [vmem:[#allocation57_spill] sm:$0xff]  ;;  %v16814_v30 = vld [vmem:[#allocation78_spill] sm:$0xff] }
 0x799   :  { %16802 = vst [vmem:[#allocation68_spill] sm:$0xff] %v14110_v35  ;;  %16804 = vst [vmem:[#allocation86_spill] sm:$0xff] %v14118_v4  ;;  %v14120_v6 = vpop.f32.mrb[174].mxu1  ;;  %v10595_v41 = vpop.eup %10594  ;;  %v14126_v14 = vmul.f32 %v10591_v38, %v16808_v3  ;;  %v6495_v40 = vadd.f32 1.0, %v10593_v48  ;;  %10614 = vpow2.f32 %v13993_v1  ;;  %v14142_v38 = vmul.f32 %v10583_v29, %v16812_v19  ;;  %6998 = vadd.xlane.f32.xlu0 %v6997_v32  ;;  %v16817_v19 = vld [vmem:[#allocation70_spill] sm:$0xff] }
 0x79a   :  { %16805 = vst [vmem:[#allocation122_spill] sm:$0xff] %v14120_v6  ;;  %16807 = vst [vmem:[#allocation72_spill] sm:$0xff] %v14123_v59  ;;  %v14129_v28 = vpop.f32.mrb[199].mxu0  ;;  %v14131_v15 = vpop.f32.mrb[175].mxu1  ;;  %10616 = vpow2.f32 %v13998_v50  ;;  %v14146_v3 = vmul.f32 %v10595_v41, %v16814_v30  ;;  %v14150_v48 = vadd.f32 %v13189_v47, %v13811_v31  ;;  %v7001_v34 = vadd.f32 %v13908_v17, %v13934_v43 }
 0x79b   :  { %16809 = vst [vmem:[#allocation76_spill] sm:$0xff] %v14126_v14  ;;  %16810 = vst [vmem:[#allocation123_spill] sm:$0xff] %v14129_v28  ;;  %v10597_v7 = vpop.eup %10596  ;;  %10618 = vrcp.f32 %v6495_v40  ;;  %v14156_v29 = vmul.f32 %v14110_v35, %v14110_v35  ;;  %v14159_v50 = vmul.f32 %v10587_v36, %v16817_v19  ;;  %v14163_v32 = vmul.f32 -1.442695, %v14115_v61 }
 0x79c   :  { %16811 = vst [vmem:[#allocation124_spill] sm:$0xff] %v14131_v15  ;;  %16813 = vst [vmem:[#allocation57_spill] sm:$0xff] %v14142_v38  ;;  %v10599_v1 = vpop.eup %10598  ;;  %10620 = vpow2.f32 %v14004_v22  ;;  %v14167_v31 = vmul.f32 %v14123_v59, %v14123_v59  ;;  %v14171_v17 = vadd.f32 %v14126_v14, %v14123_v59  ;;  %v14175_v40 = vmul.f32 %v14126_v14, %v14126_v14  ;;  %v16819_v22 = vld [vmem:[#allocation79_spill] sm:$0xff]  ;;  %v14183_v6 = vpop.f32.mrb[200].mxu0 }
 0x79d   :  { %16815 = vst [vmem:[#allocation78_spill] sm:$0xff] %v14146_v3  ;;  %16816 = vst [vmem:[#allocation125_spill] sm:$0xff] %v14150_v48  ;;  %v10601_v15 = vpop.eup %10600  ;;  %10622 = vpow2.f32 %v14015_v44  ;;  %v14179_v30 = vmul.f32 %v10597_v7, %v16819_v22  ;;  %v7002_v43 = vadd.f32 %v7001_v34, %v13948_v46  ;;  %v14185_v28 = vpop.f32.mrb[176].mxu1  ;;  %v14189_v14 = vmul.f32 %v14146_v3, %v14146_v3 }
 0x79e   :  { %16818 = vst [vmem:[#allocation70_spill] sm:$0xff] %v14159_v50  ;;  %v10603_v41 = vpop.eup %10602  ;;  %10624 = vpow2.f32 %v14047_v13  ;;  %16821 = vst [vmem:[#allocation126_spill] sm:$0xff] %v14183_v6  ;;  %v14193_v44 = vmul.f32 -1.442695, %v14150_v48  ;;  %v14195_v7 = vpop.f32.mrb[201].mxu0  ;;  %v7181_v22 = vmul.f32 %v13924_v63, %v13924_v63  ;;  %v16828_v48 = vld [vmem:[#allocation80_spill] sm:$0xff] }
 0x79f   :  { %v10605_v36 = vpop.eup %10604  ;;  %16820 = vst [vmem:[#allocation79_spill] sm:$0xff] %v14179_v30  ;;  %v6496_v19 = vadd.f32 1.0, %v10603_v41  ;;  %16822 = vst [vmem:[#allocation127_spill] sm:$0xff] %v14185_v28  ;;  %10626 = vpow2.f32 %v14073_v27  ;;  %v14197_v13 = vpop.f32.mrb[177].mxu1  ;;  %7003 = vadd.xlane.f32.xlu1 %v7002_v43  ;;  %v7316_v28 = vadd.f32 %v13893_v20, %v13877_v25  ;;  %v14220_v25 = vadd.f32 %v13164_v5, %v13871_v16 }
 0x7a0   :  { %v10607_v59 = vpop.eup %10606  ;;  %16823 = vst [vmem:[#allocation128_spill] sm:$0xff] %v14189_v14  ;;  %v6497_v4 = vadd.f32 1.0, %v10605_v36  ;;  %16824 = vst [vmem:[#allocation129_spill] sm:$0xff] %v14195_v7  ;;  %v14203_v36 = vpop.f32.mrb[202].mxu0  ;;  %v14208_v14 = vmul.f32 %v10599_v1, %v16828_v48 }
 0x7a1   :  { %16825 = vst [vmem:[#allocation130_spill] sm:$0xff] %v14197_v13  ;;  %v10609_v34 = vpop.eup %10608  ;;  %10628 = vrcp.f32 %v6496_v19  ;;  %v6498_v41 = vadd.f32 1.0, %v10607_v59  ;;  %16826 = vst [vmem:[#allocation131_spill] sm:$0xff] %v14203_v36  ;;  %v14205_v27 = vpop.f32.mrb[178].mxu1  ;;  %v14212_v59 = vadd.f32 %v13156_v39, %v13859_v49  ;;  %v7317_v1 = vadd.f32 %v7316_v28, %v13921_v24  ;;  %v16856_v36 = vld [vmem:[#allocation109_spill] sm:$0xff] }
 0x7a2   :  { %16827 = vst [vmem:[#allocation132_spill] sm:$0xff] %v14205_v27  ;;  %v10611_v6 = vpop.eup %10610  ;;  %16829 = vst [vmem:[#allocation80_spill] sm:$0xff] %v14208_v14  ;;  %10630 = vrcp.f32 %v6497_v4  ;;  %v6501_v13 = vadd.f32 1.0, %v10609_v34  ;;  %v14214_v43 = vpop.f32.mrb[203].mxu0  ;;  %v14225_v4 = vadd.f32 %v14179_v30, %v14146_v3  ;;  %v14229_v49 = vmul.f32 %v14179_v30, %v14179_v30 }
 0x7a3   :  { %16830 = vst [vmem:[#allocation133_spill] sm:$0xff] %v14214_v43  ;;  %v14216_v19 = vpop.f32.mrb[179].mxu1  ;;  %v10613_v63 = vpop.eup %10612  ;;  %10632 = vrcp.f32 %v6498_v41  ;;  %v6502_v20 = vadd.f32 1.0, %v10611_v6  ;;  %v16832_v41 = vld [vmem:[#allocation81_spill] sm:$0xff]  ;;  %v7318_v27 = vadd.f32 %v7317_v1, %v7181_v22  ;;  %v14236_v24 = vmul.f32 %v14208_v14, %v14208_v14 }
 0x7a4   :  { %16831 = vst [vmem:[#allocation134_spill] sm:$0xff] %v14216_v19  ;;  %v10615_v48 = vpop.eup %10614  ;;  %10634 = vrcp.f32 %v6501_v13  ;;  %v6499_v34 = vadd.f32 1.0, %v10613_v63  ;;  %v14232_v6 = vmul.f32 %v10601_v15, %v16832_v41  ;;  %v14239_v3 = vmul.f32 -1.442695, %v14212_v59 }
 0x7a5   :  { %v10617_v19 = vpop.eup %10616  ;;  %10636 = vrcp.f32 %v6502_v20  ;;  %v6500_v16 = vadd.f32 1.0, %v10615_v48  ;;  %v14242_v63 = vmul.f32 -1.442695, %v14220_v25  ;;  %7319 = vadd.xlane.f32.xlu0 %v7318_v27  ;;  %v7185_v15 = vmul.f32 %v13948_v46, %v13948_v46 }
 0x7a6   :  { %16833 = vst [vmem:[#allocation81_spill] sm:$0xff] %v14232_v6  ;;  %v10619_v43 = vpop.eup %10618  ;;  %10638 = vrcp.f32 %v6499_v34  ;;  %v6503_v28 = vadd.f32 1.0, %v10617_v19  ;;  %v7321_v13 = vadd.f32 %v13917_v33, %v13897_v18  ;;  %v14250_v19 = vadd.f32 %v13156_v39, %v13887_v23 }
 0x7a7   :  { %v10621_v30 = vpop.eup %10620  ;;  %10640 = vrcp.f32 %v6500_v16  ;;  %v14254_v1 = vadd.f32 %v13164_v5, %v13902_v21  ;;  %v14259_v27 = vadd.f32 %v13185_v10, %v13861_v57  ;;  %v14264_v23 = vadd.f32 %v13189_v47, %v13873_v8  ;;  %v16834_v16 = vld [vmem:[#allocation82_spill] sm:$0xff] }
 0x7a8   :  { %v10623_v22 = vpop.eup %10622  ;;  %10642 = vrcp.f32 %v6503_v28  ;;  %v6504_v20 = vadd.f32 1.0, %v10621_v30  ;;  %v7322_v18 = vadd.f32 %v7321_v13, %v13982_v9  ;;  %v7006_v21 = vadd.f32 %v14065_v11, %v14088_v45 }
 0x7a9   :  { %v10625_v48 = vpop.eup %10624  ;;  %v6505_v34 = vadd.f32 1.0, %v10623_v22  ;;  %10644 = vpow2.f32 %v14077_v37  ;;  %v14269_v28 = vmul.f32 %v10619_v43, %v16834_v16  ;;  %v14273_v9 = vadd.f32 %v13185_v10, %v13889_v55  ;;  %v16840_v16 = vld [vmem:[#allocation88_spill] sm:$0xff] }
 0x7aa   :  { %v10627_v33 = vpop.eup %10626  ;;  %10646 = vrcp.f32 %v6504_v20  ;;  %v6506_v30 = vadd.f32 1.0, %v10625_v48  ;;  %v7323_v57 = vadd.f32 %v7322_v18, %v7185_v15  ;;  %v7007_v13 = vadd.f32 %v7006_v21, %v14142_v38  ;;  %v16836_v48 = vld [vmem:[#allocation99_spill] sm:$0xff] }
 0x7ab   :  { %v10629_v41 = vpop.eup %10628  ;;  %16835 = vst [vmem:[#allocation82_spill] sm:$0xff] %v14269_v28  ;;  %10648 = vrcp.f32 %v6505_v34  ;;  %v6509_v37 = vadd.f32 1.0, %v10627_v33  ;;  %v7011_v8 = vadd.f32 %v14099_v54, %v14110_v35  ;;  %v9458_v11 = vmul.f32 -1.442695, %v14250_v19 }
 0x7ac   :  { %v10631_v22 = vpop.eup %10630  ;;  %10650 = vrcp.f32 %v6506_v30  ;;  %v9459_v43 = vmul.f32 -1.442695, %v14254_v1  ;;  %7324 = vadd.xlane.f32.xlu1 %v7323_v57  ;;  %v14282_v15 = vadd.f32 %v13189_v47, %v16836_v48  ;;  %v9456_v55 = vmul.f32 -1.442695, %v14259_v27  ;;  %7008 = vadd.xlane.f32.xlu0 %v7007_v13  ;;  %v16838_v30 = vld [vmem:[#allocation87_spill] sm:$0xff] }
 0x7ad   :  { %v10633_v20 = vpop.eup %10632  ;;  %10652 = vrcp.f32 %v6509_v37  ;;  %v7012_v18 = vadd.f32 %v7011_v8, %v14159_v50  ;;  %v14289_v54 = vadd.f32 %v13156_v39, %v13943_v51  ;;  %v14292_v21 = vmul.f32 %v10631_v22, %v16838_v30  ;;  %v16842_v8 = vld [vmem:[#allocation84_spill] sm:$0xff]  ;;  %v16844_v30 = vld [vmem:[#allocation91_spill] sm:$0xff] }
 0x7ae   :  { %v10635_v34 = vpop.eup %10634  ;;  %10654 = vpow2.f32 %v14080_v56  ;;  %v14295_v37 = vmul.f32 %v10633_v20, %v16840_v16  ;;  %v9457_v56 = vmul.f32 -1.442695, %v14264_v23  ;;  %v14301_v13 = vmul.f32 %v14269_v28, %v14269_v28 }
 0x7af   :  { %16837 = vst [vmem:[#allocation99_spill] sm:$0xff] %v14289_v54  ;;  %v10637_v33 = vpop.eup %10636  ;;  %16839 = vst [vmem:[#allocation87_spill] sm:$0xff] %v14292_v21  ;;  %10656 = vpow2.f32 %v14103_v42  ;;  %v14304_v48 = vmul.f32 %v10629_v41, %v16842_v8  ;;  %v9460_v51 = vmul.f32 -1.442695, %v14273_v9  ;;  %v14309_v20 = vmul.f32 %v10635_v34, %v16844_v30 }
 0x7b0   :  { %16841 = vst [vmem:[#allocation88_spill] sm:$0xff] %v14295_v37  ;;  %v10639_v57 = vpop.eup %10638  ;;  %10658 = vpow2.f32 %v14163_v32  ;;  %v9461_v42 = vmul.f32 -1.442695, %v14282_v15  ;;  %7013 = vadd.xlane.f32.xlu1 %v7012_v18  ;;  %v14315_v16 = vadd.f32 %v13164_v5, %v13951_v58  ;;  %v14319_v41 = vmul.f32 %v14292_v21, %v14292_v21  ;;  %v16847_v32 = vld [vmem:[#allocation94_spill] sm:$0xff] }
 0x7b1   :  { %16843 = vst [vmem:[#allocation84_spill] sm:$0xff] %v14304_v48  ;;  %v10641_v22 = vpop.eup %10640  ;;  %16845 = vst [vmem:[#allocation91_spill] sm:$0xff] %v14309_v20  ;;  %10660 = vpow2.f32 %v14193_v44  ;;  %v14322_v8 = vmul.f32 %v10637_v33, %v16847_v32  ;;  %v14326_v34 = vmul.f32 -1.442695, %v14289_v54  ;;  %v14330_v18 = vadd.f32 %v14295_v37, %v14292_v21 }
 0x7b2   :  { %16846 = vst [vmem:[#allocation135_spill] sm:$0xff] %v14315_v16  ;;  %v10643_v35 = vpop.eup %10642  ;;  %10662 = vpow2.f32 %v14239_v3  ;;  %v14334_v58 = vmul.f32 %v14295_v37, %v14295_v37  ;;  %v7189_v3 = vmul.f32 %v14142_v38, %v14142_v38  ;;  %v7326_v45 = vadd.f32 %v14069_v62, %v13990_v52  ;;  %v16851_v62 = vld [vmem:[#allocation75_spill] sm:$0xff] }
 0x7b3   :  { %16848 = vst [vmem:[#allocation94_spill] sm:$0xff] %v14322_v8  ;;  %v10645_v44 = vpop.eup %10644  ;;  %v14337_v30 = vmul.f32 %v10643_v35, %v13969_v53  ;;  %10664 = vpow2.f32 %v14242_v63  ;;  %v14346_v46 = vmul.f32 %v14309_v20, %v14309_v20  ;;  %v14349_v37 = vmul.f32 %v10639_v57, %v13930_v0  ;;  %v16854_v38 = vld [vmem:[#allocation107_spill] sm:$0xff] }
 0x7b4   :  { %v10647_v33 = vpop.eup %10646  ;;  %v6510_v32 = vadd.f32 1.0, %v10645_v44  ;;  %10666 = vpow2.f32 %v9458_v11  ;;  %v14352_v35 = vmul.f32 -1.442695, %v14315_v16  ;;  %v14356_v63 = vadd.f32 %v14322_v8, %v14309_v20 }
 0x7b5   :  { %16849 = vst [vmem:[#allocation136_spill] sm:$0xff] %v14337_v30  ;;  %v10649_v21 = vpop.eup %10648  ;;  %16850 = vst [vmem:[#allocation137_spill] sm:$0xff] %v14349_v37  ;;  %10668 = vpow2.f32 %v9459_v43  ;;  %v7327_v52 = vadd.f32 %v7326_v45, %v14139_v12  ;;  %v14361_v11 = vadd.f32 %v13156_v39, %v16851_v62  ;;  %v14365_v0 = vmul.f32 %v14322_v8, %v14322_v8  ;;  %v16852_v43 = vld [vmem:[#allocation102_spill] sm:$0xff] }
 0x7b6   :  { %v10651_v53 = vpop.eup %10650  ;;  %10670 = vrcp.f32 %v6510_v32  ;;  %v14368_v57 = vmul.f32 %v10641_v22, %v16852_v43  ;;  %v14372_v20 = vadd.f32 %v13164_v5, %v16854_v38  ;;  %v14376_v45 = vmul.f32 %v14349_v37, %v14349_v37 }
 0x7b7   :  { %v10653_v44 = vpop.eup %10652  ;;  %10672 = vpow2.f32 %v9456_v55  ;;  %v14380_v12 = vmul.f32 %v14337_v30, %v14337_v30  ;;  %v7328_v62 = vadd.f32 %v7327_v52, %v7189_v3  ;;  %v14383_v22 = vmul.f32 %v10647_v33, %v16856_v36  ;;  %v16858_v55 = vld [vmem:[#allocation110_spill] sm:$0xff]  ;;  %v16862_v52 = vld [vmem:[#allocation113_spill] sm:$0xff] }
 0x7b8   :  { %16853 = vst [vmem:[#allocation75_spill] sm:$0xff] %v14368_v57  ;;  %v10655_v32 = vpop.eup %10654  ;;  %10674 = vpow2.f32 %v9457_v56  ;;  %v14386_v43 = vmul.f32 %v10649_v21, %v16858_v55  ;;  %v14389_v16 = vmul.f32 %v10651_v53, %v14008_v60  ;;  %v14395_v36 = vmul.f32 -1.442695, %v14372_v20  ;;  %v16861_v21 = vld [vmem:[#allocation103_spill] sm:$0xff] }
 0x7b9   :  { %16855 = vst [vmem:[#allocation102_spill] sm:$0xff] %v14380_v12  ;;  %v10657_v8 = vpop.eup %10656  ;;  %16857 = vst [vmem:[#allocation107_spill] sm:$0xff] %v14383_v22  ;;  %v6507_v38 = vadd.f32 1.0, %v10655_v32  ;;  %10676 = vpow2.f32 %v9460_v51  ;;  %7329 = vadd.xlane.f32.xlu0 %v7328_v62  ;;  %v14392_v12 = vmul.f32 -1.442695, %v14361_v11  ;;  %v14399_v33 = vadd.f32 %v13185_v10, %v16861_v21 }
 0x7ba   :  { %16859 = vst [vmem:[#allocation109_spill] sm:$0xff] %v14386_v43  ;;  %v10659_v7 = vpop.eup %10658  ;;  %16860 = vst [vmem:[#allocation110_spill] sm:$0xff] %v14389_v16  ;;  %v6508_v54 = vadd.f32 1.0, %v10657_v8  ;;  %10678 = vpow2.f32 %v9461_v42  ;;  %v7193_v42 = vmul.f32 %v14159_v50, %v14159_v50  ;;  %v7331_v8 = vadd.f32 %v14135_v26, %v14085_v2 }
 0x7bb   :  { %v10661_v56 = vpop.eup %10660  ;;  %10680 = vrcp.f32 %v6507_v38  ;;  %v6511_v3 = vadd.f32 1.0, %v10659_v7  ;;  %v14406_v32 = vmul.f32 %v10653_v44, %v16862_v52  ;;  %v7016_v62 = vadd.f32 %v14171_v17, %v14208_v14 }
 0x7bc   :  { %v10663_v51 = vpop.eup %10662  ;;  %10682 = vrcp.f32 %v6508_v54  ;;  %v6512_v60 = vadd.f32 1.0, %v10661_v56  ;;  %v14412_v54 = vmul.f32 %v14386_v43, %v14386_v43  ;;  %v7332_v56 = vadd.f32 %v7331_v8, %v14156_v29 }
 0x7bd   :  { %v10665_v53 = vpop.eup %10664  ;;  %16863 = vst [vmem:[#allocation103_spill] sm:$0xff] %v14406_v32  ;;  %10684 = vrcp.f32 %v6511_v3  ;;  %v6513_v7 = vadd.f32 1.0, %v10663_v51  ;;  %v14417_v2 = vadd.f32 %v14389_v16, %v14386_v43  ;;  %v7017_v44 = vadd.f32 %v7016_v62, %v14232_v6  ;;  %v16869_v62 = vld [vmem:[#allocation105_spill] sm:$0xff] }
 0x7be   :  { %v10667_v55 = vpop.eup %10666  ;;  %16864 = vst [vmem:[#allocation113_spill] sm:$0xff] %v14412_v54  ;;  %10686 = vrcp.f32 %v6512_v60  ;;  %v6514_v38 = vadd.f32 1.0, %v10665_v53  ;;  %v7333_v51 = vadd.f32 %v7332_v56, %v7193_v42  ;;  %v7021_v52 = vadd.f32 %v14225_v4, %v14269_v28  ;;  %v14422_v60 = vpop.f32.mrb[204].mxu0 }
 0x7bf   :  { %v10669_v21 = vpop.eup %10668  ;;  %10688 = vrcp.f32 %v6513_v7  ;;  %v6517_v26 = vadd.f32 1.0, %v10667_v55  ;;  %16865 = vst [vmem:[#allocation138_spill] sm:$0xff] %v14422_v60  ;;  %v14424_v53 = vpop.f32.mrb[180].mxu1  ;;  %v14428_v8 = vmul.f32 %v14389_v16, %v14389_v16  ;;  %v14432_v7 = vmul.f32 %v14406_v32, %v14406_v32  ;;  %7018 = vadd.xlane.f32.xlu0 %v7017_v44  ;;  %v16875_v44 = vld [vmem:[#allocation115_spill] sm:$0xff] }
 0x7c0   :  { %v10671_v3 = vpop.eup %10670  ;;  %10690 = vrcp.f32 %v6514_v38  ;;  %v6518_v17 = vadd.f32 1.0, %v10669_v21  ;;  %16866 = vst [vmem:[#allocation139_spill] sm:$0xff] %v14424_v53  ;;  %v14436_v42 = vadd.f32 %v13189_v47, %v16869_v62  ;;  %v14438_v4 = vpop.f32.mrb[205].mxu0  ;;  %7334 = vadd.xlane.f32.xlu1 %v7333_v51  ;;  %v16872_v21 = vld [vmem:[#allocation106_spill] sm:$0xff]  ;;  %v7022_v43 = vadd.f32 %v7021_v52, %v14304_v48 }
 0x7c1   :  { %v10673_v29 = vpop.eup %10672  ;;  %16867 = vst [vmem:[#allocation140_spill] sm:$0xff] %v14428_v8  ;;  %16868 = vst [vmem:[#allocation141_spill] sm:$0xff] %v14432_v7  ;;  %10692 = vrcp.f32 %v6517_v26  ;;  %v14440_v55 = vpop.f32.mrb[181].mxu1  ;;  %v14444_v16 = vadd.f32 %v13185_v10, %v16872_v21  ;;  %v14452_v14 = vmul.f32 %v10671_v3, %v16875_v44 }
 0x7c2   :  { %16870 = vst [vmem:[#allocation105_spill] sm:$0xff] %v14438_v4  ;;  %16871 = vst [vmem:[#allocation142_spill] sm:$0xff] %v14440_v55  ;;  %v10675_v38 = vpop.eup %10674  ;;  %10694 = vrcp.f32 %v6518_v17  ;;  %v6515_v56 = vadd.f32 1.0, %v10673_v29  ;;  %v14447_v26 = vpop.f32.mrb[206].mxu0  ;;  %v16877_v17 = vld [vmem:[#allocation108_spill] sm:$0xff]  ;;  %v16879_v55 = vld [vmem:[#allocation71_spill] sm:$0xff] }
 0x7c3   :  { %16873 = vst [vmem:[#allocation106_spill] sm:$0xff] %v14447_v26  ;;  %v14449_v28 = vpop.f32.mrb[182].mxu1  ;;  %v10677_v62 = vpop.eup %10676  ;;  %16876 = vst [vmem:[#allocation115_spill] sm:$0xff] %v14452_v14  ;;  %v6516_v50 = vadd.f32 1.0, %v10675_v38  ;;  %10696 = vpow2.f32 %v14326_v34  ;;  %v14457_v51 = vadd.f32 %v13189_v47, %v16877_v17  ;;  %v14463_v53 = vadd.f32 %v13156_v39, %v16879_v55  ;;  %v16884_v4 = vld [vmem:[#allocation116_spill] sm:$0xff] }
 0x7c4   :  { %16874 = vst [vmem:[#allocation143_spill] sm:$0xff] %v14449_v28  ;;  %v14459_v29 = vpop.f32.mrb[207].mxu0  ;;  %v10679_v21 = vpop.eup %10678  ;;  %10698 = vrcp.f32 %v6515_v56  ;;  %v6519_v52 = vadd.f32 1.0, %v10677_v62  ;;  %v16880_v28 = vld [vmem:[#allocation111_spill] sm:$0xff]  ;;  %v7197_v17 = vmul.f32 %v14232_v6, %v14232_v6  ;;  %v7336_v56 = vadd.f32 %v14175_v40, %v14167_v31  ;;  %7023 = vadd.xlane.f32.xlu1 %v7022_v43 }
 0x7c5   :  { %16878 = vst [vmem:[#allocation108_spill] sm:$0xff] %v14459_v29  ;;  %v14467_v3 = vadd.f32 %v13164_v5, %v16880_v28  ;;  %v14469_v38 = vpop.f32.mrb[183].mxu1  ;;  %v10681_v34 = vpop.eup %10680  ;;  %10700 = vrcp.f32 %v6516_v50  ;;  %v6520_v44 = vadd.f32 1.0, %v10679_v21  ;;  %v9464_v55 = vmul.f32 -1.442695, %v14399_v33 }
 0x7c6   :  { %16881 = vst [vmem:[#allocation71_spill] sm:$0xff] %v14469_v38  ;;  %v10683_v62 = vpop.eup %10682  ;;  %10702 = vrcp.f32 %v6519_v52  ;;  %v9465_v29 = vmul.f32 -1.442695, %v14436_v42  ;;  %v9468_v28 = vmul.f32 -1.442695, %v14444_v16  ;;  %v7337_v21 = vadd.f32 %v7336_v56, %v14236_v24  ;;  %v16882_v38 = vld [vmem:[#allocation114_spill] sm:$0xff] }
 0x7c7   :  { %v10685_v26 = vpop.eup %10684  ;;  %10704 = vrcp.f32 %v6520_v44  ;;  %v9469_v50 = vmul.f32 -1.442695, %v14457_v51  ;;  %v14482_v6 = vadd.f32 %v13156_v39, %v16882_v38  ;;  %v14486_v40 = vadd.f32 %v14452_v14, %v14406_v32  ;;  %v16886_v32 = vld [vmem:[#allocation62_spill] sm:$0xff] }
 0x7c8   :  { %v10687_v31 = vpop.eup %10686  ;;  %v14490_v52 = vmul.f32 %v14452_v14, %v14452_v14  ;;  %10706 = vpow2.f32 %v14352_v35  ;;  %v9470_v43 = vmul.f32 -1.442695, %v14463_v53  ;;  %v14495_v24 = vmul.f32 %v10681_v34, %v16884_v4  ;;  %v16888_v14 = vld [vmem:[#allocation117_spill] sm:$0xff] }
 0x7c9   :  { %v10689_v44 = vpop.eup %10688  ;;  %10708 = vpow2.f32 %v14392_v12  ;;  %v9471_v38 = vmul.f32 -1.442695, %v14467_v3  ;;  %v7338_v56 = vadd.f32 %v7337_v21, %v7197_v17  ;;  %v14500_v7 = vmul.f32 %v10683_v62, %v16886_v32  ;;  %v16894_v62 = vld [vmem:[#allocation128_spill] sm:$0xff] }
 0x7ca   :  { %16883 = vst [vmem:[#allocation111_spill] sm:$0xff] %v14490_v52  ;;  %16885 = vst [vmem:[#allocation114_spill] sm:$0xff] %v14495_v24  ;;  %v10691_v60 = vpop.eup %10690  ;;  %10710 = vpow2.f32 %v14395_v36  ;;  %v14505_v35 = vadd.f32 %v13164_v5, %v16888_v14  ;;  %v16889_v52 = vld [vmem:[#allocation73_spill] sm:$0xff]  ;;  %v14513_v12 = vmul.f32 %v14495_v24, %v14495_v24  ;;  %v14516_v34 = vmul.f32 %v10685_v26, %v14115_v61  ;;  %v16898_v26 = vld [vmem:[#allocation112_spill] sm:$0xff] }
 0x7cb   :  { %16887 = vst [vmem:[#allocation116_spill] sm:$0xff] %v14500_v7  ;;  %v14509_v8 = vadd.f32 %v13185_v10, %v16889_v52  ;;  %v10693_v4 = vpop.eup %10692  ;;  %10712 = vpow2.f32 %v9464_v55  ;;  %7339 = vadd.xlane.f32.xlu0 %v7338_v56  ;;  %v9474_v36 = vmul.f32 -1.442695, %v14482_v6  ;;  %v14520_v14 = vmul.f32 %v10689_v44, %v14212_v59 }
 0x7cc   :  { %16890 = vst [vmem:[#allocation62_spill] sm:$0xff] %v14513_v12  ;;  %16891 = vst [vmem:[#allocation117_spill] sm:$0xff] %v14516_v34  ;;  %v10695_v32 = vpop.eup %10694  ;;  %v14523_v17 = vmul.f32 %v10691_v60, %v14220_v25  ;;  %10714 = vpow2.f32 %v9465_v29  ;;  %v7341_v21 = vadd.f32 %v14229_v49, %v16894_v62  ;;  %v16895_v12 = vld [vmem:[#allocation125_spill] sm:$0xff]  ;;  %v14531_v61 = vmul.f32 %v10693_v4, %v14250_v19 }
 0x7cd   :  { %16892 = vst [vmem:[#allocation73_spill] sm:$0xff] %v14520_v14  ;;  %v10697_v52 = vpop.eup %10696  ;;  %v14528_v54 = vmul.f32 %v10687_v31, %v16895_v12  ;;  %10716 = vpow2.f32 %v9468_v28  ;;  %v14535_v55 = vadd.f32 %v13189_v47, %v16898_v26  ;;  %v14538_v25 = vmul.f32 %v10695_v32, %v14254_v1 }
 0x7ce   :  { %16893 = vst [vmem:[#allocation144_spill] sm:$0xff] %v14523_v17  ;;  %16897 = vst [vmem:[#allocation125_spill] sm:$0xff] %v14531_v61  ;;  %v10699_v59 = vpop.eup %10698  ;;  %v6521_v60 = vadd.f32 1.0, %v10697_v52  ;;  %10718 = vpow2.f32 %v9469_v50  ;;  %v7201_v49 = vmul.f32 %v14304_v48, %v14304_v48  ;;  %v14544_v31 = vmul.f32 %v14516_v34, %v14516_v34  ;;  %v16915_v48 = vld [vmem:[#allocation122_spill] sm:$0xff] }
 0x7cf   :  { %16896 = vst [vmem:[#allocation128_spill] sm:$0xff] %v14528_v54  ;;  %16899 = vst [vmem:[#allocation112_spill] sm:$0xff] %v14538_v25  ;;  %v10701_v29 = vpop.eup %10700  ;;  %10720 = vpow2.f32 %v9470_v43  ;;  %v9475_v19 = vmul.f32 -1.442695, %v14505_v35  ;;  %v9472_v28 = vmul.f32 -1.442695, %v14509_v8  ;;  %v14550_v1 = vmul.f32 %v14520_v14, %v14520_v14 }
 0x7d0   :  { %v10703_v44 = vpop.eup %10702  ;;  %v14554_v50 = vadd.f32 %v14523_v17, %v14520_v14  ;;  %10722 = vrcp.f32 %v6521_v60  ;;  %v7342_v56 = vadd.f32 %v7341_v21, %v14301_v13  ;;  %v14559_v43 = vmul.f32 %v14523_v17, %v14523_v17 }
 0x7d1   :  { %v10705_v4 = vpop.eup %10704  ;;  %v14563_v12 = vmul.f32 %v14531_v61, %v14531_v61  ;;  %10724 = vpow2.f32 %v9471_v38  ;;  %v7026_v32 = vadd.f32 %v14330_v18, %v14349_v37  ;;  %v14569_v52 = vadd.f32 %v14538_v25, %v14531_v61 }
 0x7d2   :  { %v10707_v62 = vpop.eup %10706  ;;  %10726 = vpow2.f32 %v9474_v36  ;;  %v9473_v13 = vmul.f32 -1.442695, %v14535_v55  ;;  %v7343_v21 = vadd.f32 %v7342_v56, %v7201_v49  ;;  %v14574_v60 = vmul.f32 %v14538_v25, %v14538_v25 }
 0x7d3   :  { %v10709_v26 = vpop.eup %10708  ;;  %v6522_v17 = vadd.f32 1.0, %v10707_v62  ;;  %10728 = vpow2.f32 %v9475_v19  ;;  %v7027_v38 = vadd.f32 %v7026_v32, %v14368_v57  ;;  %v14578_v18 = vmul.f32 %v10699_v59, %v14259_v27  ;;  %v16902_v62 = vld [vmem:[#allocation118_spill] sm:$0xff] }
 0x7d4   :  { %v10711_v14 = vpop.eup %10710  ;;  %v6525_v37 = vadd.f32 1.0, %v10709_v26  ;;  %10730 = vpow2.f32 %v9472_v28  ;;  %7344 = vadd.xlane.f32.xlu1 %v7343_v21  ;;  %v7031_v36 = vadd.f32 %v14356_v63, %v14337_v30  ;;  %v14583_v56 = vmul.f32 %v10701_v29, %v14264_v23  ;;  %v16904_v23 = vld [vmem:[#allocation74_spill] sm:$0xff]  ;;  %v16910_v30 = vld [vmem:[#allocation123_spill] sm:$0xff] }
 0x7d5   :  { %16900 = vst [vmem:[#allocation145_spill] sm:$0xff] %v14578_v18  ;;  %v10713_v49 = vpop.eup %10712  ;;  %10732 = vrcp.f32 %v6522_v17  ;;  %v6526_v25 = vadd.f32 1.0, %v10711_v14  ;;  %v14587_v19 = vadd.f32 %v13185_v10, %v16902_v62  ;;  %7028 = vadd.xlane.f32.xlu0 %v7027_v38  ;;  %v14590_v27 = vmul.f32 %v10703_v44, %v14273_v9  ;;  %v16906_v14 = vld [vmem:[#allocation56_spill] sm:$0xff] }
 0x7d6   :  { %16901 = vst [vmem:[#allocation146_spill] sm:$0xff] %v14583_v56  ;;  %v10715_v32 = vpop.eup %10714  ;;  %10734 = vrcp.f32 %v6525_v37  ;;  %v6523_v59 = vadd.f32 1.0, %v10713_v49  ;;  %v7032_v28 = vadd.f32 %v7031_v36, %v14383_v22  ;;  %v14595_v17 = vadd.f32 %v13189_v47, %v16904_v23  ;;  %v16907_v49 = vld [vmem:[#allocation120_spill] sm:$0xff] }
 0x7d7   :  { %16903 = vst [vmem:[#allocation118_spill] sm:$0xff] %v14590_v27  ;;  %v10717_v63 = vpop.eup %10716  ;;  %10736 = vrcp.f32 %v6526_v25  ;;  %v6524_v21 = vadd.f32 1.0, %v10715_v32  ;;  %v14599_v29 = vadd.f32 %v13156_v39, %v16906_v14  ;;  %v7205_v9 = vmul.f32 %v14368_v57, %v14368_v57 }
 0x7d8   :  { %16905 = vst [vmem:[#allocation74_spill] sm:$0xff] %v14595_v17  ;;  %v10719_v26 = vpop.eup %10718  ;;  %10738 = vrcp.f32 %v6523_v59  ;;  %v6527_v38 = vadd.f32 1.0, %v10717_v63  ;;  %7033 = vadd.xlane.f32.xlu1 %v7032_v28  ;;  %v7346_v37 = vadd.f32 %v14334_v58, %v14319_v41  ;;  %v14607_v44 = vmul.f32 %v14578_v18, %v14578_v18 }
 0x7d9   :  { %v10721_v25 = vpop.eup %10720  ;;  %10740 = vrcp.f32 %v6524_v21  ;;  %v6528_v36 = vadd.f32 1.0, %v10719_v26  ;;  %v14611_v62 = vadd.f32 %v13164_v5, %v16907_v49  ;;  %v14614_v59 = vmul.f32 %v10705_v4, %v14282_v15 }
 0x7da   :  { %v10723_v32 = vpop.eup %10722  ;;  %10742 = vrcp.f32 %v6527_v38  ;;  %v6529_v28 = vadd.f32 1.0, %v10721_v25  ;;  %v7347_v63 = vadd.f32 %v7346_v37, %v14376_v45  ;;  %v14619_v58 = vmul.f32 %v14590_v27, %v14590_v27  ;;  %v16909_v37 = vld [vmem:[#allocation86_spill] sm:$0xff] }
 0x7db   :  { %16908 = vst [vmem:[#allocation56_spill] sm:$0xff] %v14614_v59  ;;  %v10725_v41 = vpop.eup %10724  ;;  %10744 = vrcp.f32 %v6528_v36  ;;  %v9476_v21 = vmul.f32 -1.442695, %v14587_v19  ;;  %v9477_v23 = vmul.f32 -1.442695, %v14595_v17  ;;  %v14627_v49 = vadd.f32 %v13156_v39, %v16909_v37 }
 0x7dc   :  { %v10727_v14 = vpop.eup %10726  ;;  %10746 = vrcp.f32 %v6529_v28  ;;  %v6530_v26 = vadd.f32 1.0, %v10725_v41  ;;  %v9478_v15 = vmul.f32 -1.442695, %v14599_v29  ;;  %v7348_v4 = vadd.f32 %v7347_v63, %v7205_v9  ;;  %v16911_v41 = vld [vmem:[#allocation119_spill] sm:$0xff] }
 0x7dd   :  { %v10729_v38 = vpop.eup %10728  ;;  %v6533_v25 = vadd.f32 1.0, %v10727_v14  ;;  %10748 = vpow2.f32 %v9473_v13  ;;  %v9479_v45 = vmul.f32 -1.442695, %v14611_v62  ;;  %v14631_v28 = vadd.f32 %v13164_v5, %v16910_v30  ;;  %v16914_v30 = vld [vmem:[#allocation102_spill] sm:$0xff] }
 0x7de   :  { %v10731_v36 = vpop.eup %10730  ;;  %10750 = vrcp.f32 %v6530_v26  ;;  %v6534_v61 = vadd.f32 1.0, %v10729_v38  ;;  %7349 = vadd.xlane.f32.xlu0 %v7348_v4  ;;  %v7351_v9 = vadd.f32 %v14365_v0, %v14346_v46  ;;  %v14637_v14 = vadd.f32 %v13185_v10, %v16911_v41  ;;  %v16912_v4 = vld [vmem:[#allocation121_spill] sm:$0xff]  ;;  %v16919_v41 = vld [vmem:[#allocation135_spill] sm:$0xff] }
 0x7df   :  { %v10733_v63 = vpop.eup %10732  ;;  %10752 = vrcp.f32 %v6533_v25  ;;  %v6531_v13 = vadd.f32 1.0, %v10731_v36  ;;  %v7209_v37 = vmul.f32 %v14383_v22, %v14383_v22  ;;  %v14643_v38 = vadd.f32 %v13189_v47, %v16912_v4  ;;  %v16917_v25 = vld [vmem:[#allocation99_spill] sm:$0xff] }
 0x7e0   :  { %v10735_v26 = vpop.eup %10734  ;;  %10754 = vrcp.f32 %v6534_v61  ;;  %v7352_v57 = vadd.f32 %v7351_v9, %v16914_v30  ;;  %v14648_v46 = vadd.f32 %v13185_v10, %v16915_v48  ;;  %v14651_v36 = vmul.f32 %v10723_v32, %v16917_v25 }
 0x7e1   :  { %16913 = vst [vmem:[#allocation120_spill] sm:$0xff] %v14643_v38  ;;  %v10737_v0 = vpop.eup %10736  ;;  %v14654_v17 = vmul.f32 %v10733_v63, %v16919_v41  ;;  %10756 = vrcp.f32 %v6531_v13  ;;  %v7036_v61 = vadd.f32 %v14417_v2, %v14495_v24  ;;  %v14659_v4 = vmul.f32 %v10735_v26, %v14361_v11  ;;  %v16922_v63 = vld [vmem:[#allocation124_spill] sm:$0xff] }
 0x7e2   :  { %16916 = vst [vmem:[#allocation86_spill] sm:$0xff] %v14648_v46  ;;  %16918 = vst [vmem:[#allocation123_spill] sm:$0xff] %v14651_v36  ;;  %v10739_v22 = vpop.eup %10738  ;;  %10758 = vpow2.f32 %v9476_v21  ;;  %v9482_v9 = vmul.f32 -1.442695, %v14627_v49  ;;  %v9483_v48 = vmul.f32 -1.442695, %v14631_v28  ;;  %v7353_v25 = vadd.f32 %v7352_v57, %v7209_v37 }
 0x7e3   :  { %16920 = vst [vmem:[#allocation119_spill] sm:$0xff] %v14654_v17  ;;  %16921 = vst [vmem:[#allocation121_spill] sm:$0xff] %v14659_v4  ;;  %v10741_v30 = vpop.eup %10740  ;;  %10760 = vpow2.f32 %v9477_v23  ;;  %v9480_v32 = vmul.f32 -1.442695, %v14637_v14  ;;  %v14666_v13 = vadd.f32 %v13189_v47, %v16922_v63  ;;  %v14670_v2 = vmul.f32 %v14651_v36, %v14651_v36 }
 0x7e4   :  { %v10743_v41 = vpop.eup %10742  ;;  %10762 = vpow2.f32 %v9478_v15  ;;  %v9481_v11 = vmul.f32 -1.442695, %v14643_v38  ;;  %v9484_v21 = vmul.f32 -1.442695, %v14648_v46  ;;  %v14676_v23 = vadd.f32 %v14654_v17, %v14651_v36  ;;  %7354 = vadd.xlane.f32.xlu1 %v7353_v25  ;;  %v16926_v46 = vld [vmem:[#allocation129_spill] sm:$0xff] }
 0x7e5   :  { %v10745_v26 = vpop.eup %10744  ;;  %v14679_v57 = vmul.f32 %v10737_v0, %v14372_v20  ;;  %10764 = vpow2.f32 %v9479_v45  ;;  %v7037_v37 = vadd.f32 %v7036_v61, %v14500_v7  ;;  %v14684_v15 = vmul.f32 %v14654_v17, %v14654_v17  ;;  %v16925_v0 = vld [vmem:[#allocation126_spill] sm:$0xff] }
 0x7e6   :  { %v10747_v63 = vpop.eup %10746  ;;  %v14688_v24 = vmul.f32 %v14659_v4, %v14659_v4  ;;  %10766 = vpow2.f32 %v9482_v9  ;;  %v7041_v36 = vadd.f32 %v14486_v40, %v14516_v34  ;;  %v14693_v20 = vmul.f32 %v10739_v22, %v14399_v33 }
 0x7e7   :  { %16923 = vst [vmem:[#allocation102_spill] sm:$0xff] %v14679_v57  ;;  %v10749_v38 = vpop.eup %10748  ;;  %10768 = vpow2.f32 %v9483_v48  ;;  %7038 = vadd.xlane.f32.xlu0 %v7037_v37  ;;  %v9485_v45 = vmul.f32 -1.442695, %v14666_v13  ;;  %v14698_v61 = vadd.f32 %v13156_v39, %v16925_v0  ;;  %v14703_v40 = vadd.f32 %v13164_v5, %v16926_v46 }
 0x7e8   :  { %16924 = vst [vmem:[#allocation122_spill] sm:$0xff] %v14693_v20  ;;  %v10751_v25 = vpop.eup %10750  ;;  %v6532_v17 = vadd.f32 1.0, %v10749_v38  ;;  %10770 = vpow2.f32 %v9480_v32  ;;  %v7042_v9 = vadd.f32 %v7041_v36, %v14528_v54  ;;  %v14707_v22 = vadd.f32 %v14679_v57, %v14659_v4 }
 0x7e9   :  { %16927 = vst [vmem:[#allocation99_spill] sm:$0xff] %v14703_v40  ;;  %v10753_v34 = vpop.eup %10752  ;;  %v14710_v33 = vmul.f32 %v10743_v41, %v14444_v16  ;;  %10772 = vpow2.f32 %v9481_v11  ;;  %v9486_v48 = vmul.f32 -1.442695, %v14698_v61  ;;  %v14715_v38 = vmul.f32 %v14679_v57, %v14679_v57 }
 0x7ea   :  { %v10755_v37 = vpop.eup %10754  ;;  %v14718_v36 = vmul.f32 %v10741_v30, %v14436_v42  ;;  %10774 = vrcp.f32 %v6532_v17  ;;  %7043 = vadd.xlane.f32.xlu1 %v7042_v9  ;;  %v9487_v46 = vmul.f32 -1.442695, %v14703_v40  ;;  %v14725_v16 = vmul.f32 %v14693_v20, %v14693_v20  ;;  %v16933_v30 = vld [vmem:[#allocation113_spill] sm:$0xff]  ;;  %v16934_v9 = vld [vmem:[#allocation140_spill] sm:$0xff]  ;;  %v16938_v40 = vld [vmem:[#allocation131_spill] sm:$0xff] }
 0x7eb   :  { %16928 = vst [vmem:[#allocation135_spill] sm:$0xff] %v14710_v33  ;;  %v14721_v32 = vpop.eup %10756  ;;  %v14728_v41 = vmul.f32 %v10747_v63, %v14463_v53  ;;  %v14731_v11 = vmul.f32 %v10751_v25, %v14467_v3  ;;  %10776 = vpow2.f32 %v9484_v21  ;;  %v14734_v42 = vmul.f32 %v10745_v26, %v14457_v51 }
 0x7ec   :  { %16929 = vst [vmem:[#allocation124_spill] sm:$0xff] %v14718_v36  ;;  %v10759_v0 = vpop.eup %10758  ;;  %10778 = vpow2.f32 %v9485_v45  ;;  %v7213_v17 = vmul.f32 %v14500_v7, %v14500_v7  ;;  %v7356_v57 = vadd.f32 %v16934_v9, %v16933_v30  ;;  %v14742_v53 = vmul.f32 %v14710_v33, %v14710_v33  ;;  %v16937_v45 = vld [vmem:[#allocation62_spill] sm:$0xff] }
 0x7ed   :  { %16930 = vst [vmem:[#allocation126_spill] sm:$0xff] %v14728_v41  ;;  %16931 = vst [vmem:[#allocation129_spill] sm:$0xff] %v14731_v11  ;;  %v10761_v4 = vpop.eup %10760  ;;  %v14746_v3 = vmul.f32 %v14728_v41, %v14728_v41  ;;  %v6535_v21 = vadd.f32 1.0, %v10759_v0  ;;  %10780 = vpow2.f32 %v9486_v48  ;;  %v14749_v26 = vmul.f32 %v10753_v34, %v14482_v6  ;;  %v16939_v34 = vld [vmem:[#allocation133_spill] sm:$0xff] }
 0x7ee   :  { %16932 = vst [vmem:[#allocation147_spill] sm:$0xff] %v14734_v42  ;;  %v10763_v51 = vpop.eup %10762  ;;  %v6536_v63 = vadd.f32 1.0, %v10761_v4  ;;  %10782 = vpow2.f32 %v9487_v46  ;;  %v7357_v25 = vadd.f32 %v7356_v57, %v16937_v45  ;;  %v14754_v9 = vadd.f32 %v14731_v11, %v14728_v41 }
 0x7ef   :  { %16935 = vst [vmem:[#allocation113_spill] sm:$0xff] %v14746_v3  ;;  %16936 = vst [vmem:[#allocation140_spill] sm:$0xff] %v14749_v26  ;;  %v10765_v30 = vpop.eup %10764  ;;  %10784 = vrcp.f32 %v6535_v21  ;;  %v6537_v7 = vadd.f32 1.0, %v10763_v51  ;;  %v14758_v3 = vadd.f32 %v13156_v39, %v16938_v40  ;;  %v14762_v4 = vadd.f32 %v13164_v5, %v16939_v34  ;;  %v16940_v51 = vld [vmem:[#allocation127_spill] sm:$0xff] }
 0x7f0   :  { %v10767_v48 = vpop.eup %10766  ;;  %10786 = vrcp.f32 %v6536_v63  ;;  %v6538_v0 = vadd.f32 1.0, %v10765_v30  ;;  %v7358_v6 = vadd.f32 %v7357_v25, %v7213_v17  ;;  %v14766_v46 = vmul.f32 %v14731_v11, %v14731_v11  ;;  %v16944_v11 = vld [vmem:[#allocation111_spill] sm:$0xff] }
 0x7f1   :  { %v10769_v57 = vpop.eup %10768  ;;  %10788 = vrcp.f32 %v6537_v7  ;;  %v6541_v21 = vadd.f32 1.0, %v10767_v48  ;;  %v14770_v45 = vadd.f32 %v13185_v10, %v16940_v51  ;;  %v14773_v63 = vmul.f32 %v10755_v37, %v14505_v35  ;;  %v16943_v48 = vld [vmem:[#allocation141_spill] sm:$0xff] }
 0x7f2   :  { %v10771_v40 = vpop.eup %10770  ;;  %10790 = vrcp.f32 %v6538_v0  ;;  %v6542_v17 = vadd.f32 1.0, %v10769_v57  ;;  %7359 = vadd.xlane.f32.xlu0 %v7358_v6  ;;  %v9490_v25 = vmul.f32 -1.442695, %v14758_v3  ;;  %v7217_v7 = vmul.f32 %v14528_v54, %v14528_v54  ;;  %v16945_v54 = vld [vmem:[#allocation130_spill] sm:$0xff] }
 0x7f3   :  { %16941 = vst [vmem:[#allocation62_spill] sm:$0xff] %v14770_v45  ;;  %16942 = vst [vmem:[#allocation131_spill] sm:$0xff] %v14773_v63  ;;  %v10773_v30 = vpop.eup %10772  ;;  %10792 = vrcp.f32 %v6541_v21  ;;  %v6539_v34 = vadd.f32 1.0, %v10771_v40  ;;  %v7361_v41 = vadd.f32 %v16944_v11, %v16943_v48  ;;  %v14784_v35 = vmul.f32 %v14749_v26, %v14749_v26 }
 0x7f4   :  { %v14780_v51 = vpop.eup %10774  ;;  %10794 = vrcp.f32 %v6542_v17  ;;  %v6540_v37 = vadd.f32 1.0, %v10773_v30  ;;  %v9491_v0 = vmul.f32 -1.442695, %v14762_v4  ;;  %v9488_v57 = vmul.f32 -1.442695, %v14770_v45  ;;  %v16946_v17 = vld [vmem:[#allocation132_spill] sm:$0xff] }
 0x7f5   :  { %v10777_v6 = vpop.eup %10776  ;;  %10796 = vrcp.f32 %v6539_v34  ;;  %v7362_v21 = vadd.f32 %v7361_v41, %v14544_v31  ;;  %v7046_v40 = vadd.f32 %v14554_v50, %v14578_v18  ;;  %v14793_v5 = vadd.f32 %v13189_v47, %v16945_v54  ;;  %v16947_v18 = vld [vmem:[#allocation134_spill] sm:$0xff] }
 0x7f6   :  { %v10779_v11 = vpop.eup %10778  ;;  %10798 = vrcp.f32 %v6540_v37  ;;  %v6543_v48 = vadd.f32 1.0, %v10777_v6  ;;  %v14797_v30 = vadd.f32 %v13185_v10, %v16946_v17  ;;  %v14802_v37 = vadd.f32 %v13189_v47, %v16947_v18 }
 0x7f7   :  { %v10781_v39 = vpop.eup %10780  ;;  %v6544_v34 = vadd.f32 1.0, %v10779_v11  ;;  %10800 = vpow2.f32 %v9490_v25  ;;  %v7363_v45 = vadd.f32 %v7362_v21, %v7217_v7  ;;  %v7047_v31 = vadd.f32 %v7046_v40, %v14583_v56 }
 0x7f8   :  { %v10783_v41 = vpop.eup %10782  ;;  %10802 = vrcp.f32 %v6543_v48  ;;  %v6545_v50 = vadd.f32 1.0, %v10781_v39  ;;  %v7051_v54 = vadd.f32 %v14569_v52, %v14590_v27  ;;  %v7221_v25 = vmul.f32 %v14583_v56, %v14583_v56 }
 0x7f9   :  { %v10785_v6 = vpop.eup %10784  ;;  %10804 = vrcp.f32 %v6544_v34  ;;  %v6546_v17 = vadd.f32 1.0, %v10783_v41  ;;  %7364 = vadd.xlane.f32.xlu1 %v7363_v45  ;;  %7048 = vadd.xlane.f32.xlu0 %v7047_v31  ;;  %v7366_v7 = vadd.f32 %v14559_v43, %v14550_v1  ;;  %v14812_v39 = vmul.f32 %v14721_v32, %v14509_v8 }
 0x7fa   :  { %v10787_v21 = vpop.eup %10786  ;;  %10806 = vrcp.f32 %v6545_v50  ;;  %v9489_v18 = vmul.f32 -1.442695, %v14793_v5  ;;  %v7052_v52 = vadd.f32 %v7051_v54, %v14614_v59  ;;  %v9492_v45 = vmul.f32 -1.442695, %v14797_v30 }
 0x7fb   :  { %16948 = vst [vmem:[#allocation133_spill] sm:$0xff] %v14812_v39  ;;  %v10789_v40 = vpop.eup %10788  ;;  %10808 = vrcp.f32 %v6546_v17  ;;  %v7367_v11 = vadd.f32 %v7366_v7, %v14607_v44  ;;  %v7371_v48 = vadd.f32 %v14574_v60, %v14563_v12  ;;  %v9493_v43 = vmul.f32 -1.442695, %v14802_v37 }
 0x7fc   :  { %v10791_v1 = vpop.eup %10790  ;;  %10810 = vpow2.f32 %v9491_v0  ;;  %v7225_v8 = vmul.f32 %v14614_v59, %v14614_v59  ;;  %v7056_v32 = vadd.f32 %v14676_v23, %v14693_v20  ;;  %v14826_v31 = vmul.f32 %v10785_v6, %v14587_v19 }
 0x7fd   :  { %v10793_v34 = vpop.eup %10792  ;;  %10812 = vpow2.f32 %v9488_v57  ;;  %7053 = vadd.xlane.f32.xlu1 %v7052_v52  ;;  %v7368_v44 = vadd.f32 %v7367_v11, %v7221_v25  ;;  %v7372_v41 = vadd.f32 %v7371_v48, %v14619_v58  ;;  %v7070_v60 = vadd.f32 %v14773_v63, %v14749_v26 }
 0x7fe   :  { %16949 = vst [vmem:[#allocation127_spill] sm:$0xff] %v14826_v31  ;;  %v10795_v12 = vpop.eup %10794  ;;  %v14833_v0 = vmul.f32 %v14773_v63, %v14773_v63  ;;  %v14837_v23 = vmul.f32 %v14812_v39, %v14812_v39  ;;  %10814 = vpow2.f32 %v9489_v18  ;;  %v14840_v57 = vmul.f32 %v10789_v40, %v14599_v29 }
 0x7ff   :  { %v10797_v19 = vpop.eup %10796  ;;  %v14843_v50 = vmul.f32 %v10791_v1, %v14611_v62  ;;  %10816 = vpow2.f32 %v9492_v45  ;;  %7369 = vadd.xlane.f32.xlu0 %v7368_v44  ;;  %v7057_v58 = vadd.f32 %v7056_v32, %v14718_v36  ;;  %v14848_v6 = vmul.f32 %v14780_v51, %v14535_v55  ;;  %v16954_v62 = vld [vmem:[#allocation74_spill] sm:$0xff] }
 0x800   :  { %16950 = vst [vmem:[#allocation141_spill] sm:$0xff] %v14840_v57  ;;  %v10799_v54 = vpop.eup %10798  ;;  %v14851_v17 = vmul.f32 %v10793_v34, %v14627_v49  ;;  %10818 = vpow2.f32 %v9493_v43  ;;  %v7373_v25 = vadd.f32 %v7372_v41, %v7225_v8  ;;  %v14855_v29 = vmul.f32 %v14826_v31, %v14826_v31 }
 0x801   :  { %16951 = vst [vmem:[#allocation111_spill] sm:$0xff] %v14843_v50  ;;  %16952 = vst [vmem:[#allocation130_spill] sm:$0xff] %v14848_v6  ;;  %v10801_v7 = vpop.eup %10800  ;;  %v14858_v18 = vmul.f32 %v10787_v21, %v16954_v62  ;;  %v14861_v52 = vmul.f32 %v10795_v12, %v14631_v28  ;;  %v7061_v55 = vadd.f32 %v14707_v22, %v14710_v33  ;;  %v6954_v62 = vpop.xlane.xlu1 %6953 }
 0x802   :  { %16953 = vst [vmem:[#allocation132_spill] sm:$0xff] %v14851_v17  ;;  %v10803_v51 = vpop.eup %10802  ;;  %v14867_v49 = vmul.f32 %v14840_v57, %v14840_v57  ;;  %v6549_v40 = vadd.f32 1.0, %v10801_v7  ;;  %7374 = vadd.xlane.f32.xlu1 %v7373_v25  ;;  %v7229_v45 = vmul.f32 %v14718_v36, %v14718_v36  ;;  %v7376_v21 = vadd.f32 %v14684_v15, %v14670_v2 }
 0x803   :  { %16955 = vst [vmem:[#allocation134_spill] sm:$0xff] %v14858_v18  ;;  %16956 = vst [vmem:[#allocation74_spill] sm:$0xff] %v14861_v52  ;;  %v10805_v11 = vpop.eup %10804  ;;  %v14875_v28 = vadd.f32 %v14843_v50, %v14840_v57  ;;  %v14879_v22 = vmul.f32 %v14843_v50, %v14843_v50  ;;  %7058 = vadd.xlane.f32.xlu0 %v7057_v58  ;;  %v7062_v48 = vadd.f32 %v7061_v55, %v14734_v42  ;;  %v16958_v58 = vld [vmem:[#allocation86_spill] sm:$0xff] }
 0x804   :  { %v7381_v1 = vadd.f32 %v14715_v38, %v14688_v24  ;;  %v10807_v43 = vpop.eup %10806  ;;  %v14886_v8 = vmul.f32 %v14851_v17, %v14851_v17  ;;  %v7377_v2 = vadd.f32 %v7376_v21, %v14725_v16  ;;  %v7233_v15 = vmul.f32 %v14734_v42, %v14734_v42  ;;  %v6949_v38 = vpop.xlane.xlu0 %6948  ;;  %v17006_v42 = vld [vmem:[#allocation71_spill] sm:$0xff] }
 0x805   :  { %v7066_v32 = vadd.f32 %v14754_v9, %v14812_v39  ;;  %v10809_v34 = vpop.eup %10808  ;;  %v7080_v44 = vadd.f32 %v14861_v52, %v14851_v17  ;;  %v14896_v41 = vmul.f32 %v10797_v19, %v14637_v14  ;;  %10820 = vrcp.f32 %v6549_v40  ;;  %v16960_v19 = vld [vmem:[#allocation120_spill] sm:$0xff] }
 0x806   :  { %v7382_v24 = vadd.f32 %v7381_v1, %v14742_v53  ;;  %v10811_v12 = vpop.eup %10810  ;;  %v14901_v16 = vmul.f32 %v14861_v52, %v14861_v52  ;;  %v14904_v25 = vmul.f32 %v10803_v51, %v16958_v58  ;;  %7063 = vadd.xlane.f32.xlu1 %v7062_v48  ;;  %v7378_v9 = vadd.f32 %v7377_v2, %v7229_v45  ;;  %v16964_v58 = vld [vmem:[#allocation99_spill] sm:$0xff] }
 0x807   :  { %16957 = vst [vmem:[#allocation148_spill] sm:$0xff] %v14896_v41  ;;  %v7071_v7 = vadd.f32 %v7070_v60, %v14826_v31  ;;  %v10813_v55 = vpop.eup %10812  ;;  %v7244_v14 = vmul.f32 %v14896_v41, %v14896_v41  ;;  %v14910_v53 = vmul.f32 %v10799_v54, %v16960_v19  ;;  %v14913_v40 = vmul.f32 %v10805_v11, %v14666_v13  ;;  %v17005_v31 = vld [vmem:[#allocation18_spill] sm:$0xff] }
 0x808   :  { %16959 = vst [vmem:[#allocation86_spill] sm:$0xff] %v14904_v25  ;;  %v6550_v21 = vadd.f32 1.0, %v10811_v12  ;;  %v10815_v1 = vpop.eup %10814  ;;  %v6547_v52 = vadd.f32 1.0, %v10813_v55  ;;  %7379 = vadd.xlane.f32.xlu0 %v7378_v9  ;;  %v7383_v51 = vadd.f32 %v7382_v24, %v7233_v15  ;;  %v7067_v45 = vadd.f32 %v7066_v32, %v14848_v6  ;;  %v7270_v24 = vpop.xlane.xlu0 %7269  ;;  %v16992_v9 = vld [vmem:[#allocation108_spill] sm:$0xff] }
 0x809   :  { %16961 = vst [vmem:[#allocation120_spill] sm:$0xff] %v14910_v53  ;;  %16962 = vst [vmem:[#allocation149_spill] sm:$0xff] %v14913_v40  ;;  %v14916_v48 = vmul.f32 0.001953125, %v6949_v38  ;;  %v10817_v60 = vpop.eup %10816  ;;  %v14919_v2 = vmul.f32 %v10807_v43, %v14698_v61  ;;  %v14922_v17 = vmul.f32 %v10809_v34, %v16964_v58  ;;  %v6548_v54 = vadd.f32 1.0, %v10815_v1  ;;  %v16966_v43 = vld [vmem:[#allocation113_spill] sm:$0xff] }
 0x80a   :  { %10822 = vrcp.f32 %v6550_v21  ;;  %v10819_v13 = vpop.eup %10818  ;;  %v7248_v11 = vmul.f32 %v14904_v25, %v14904_v25  ;;  %v6551_v12 = vadd.f32 1.0, %v10817_v60  ;;  %7384 = vadd.xlane.f32.xlu1 %v7383_v51  ;;  %v7072_v15 = vadd.f32 %v7071_v7, %v14858_v18  ;;  %v7275_v7 = vpop.xlane.xlu1 %7274 }
 0x80b   :  { %16963 = vst [vmem:[#allocation150_spill] sm:$0xff] %v14919_v2  ;;  %16965 = vst [vmem:[#allocation99_spill] sm:$0xff] %v14922_v17  ;;  %10824 = vrcp.f32 %v6547_v52  ;;  %v6552_v32 = vadd.f32 1.0, %v10819_v13  ;;  %v7237_v61 = vmul.f32 %v14848_v6, %v14848_v6  ;;  %v7386_v34 = vadd.f32 %v14766_v46, %v16966_v43  ;;  %v16967_v52 = vld [vmem:[#allocation22_spill] sm:$0xff] }
 0x80c   :  { %10826 = vrcp.f32 %v6548_v54  ;;  %v14933_v38 = vmul.f32 %v14919_v2, %v14919_v2  ;;  %7068 = vadd.xlane.f32.xlu0 %v7067_v45  ;;  %v14937_v55 = vmul.f32 0.001953125, %v6954_v62  ;;  %v7085_v19 = vadd.f32 %v14922_v17, %v14919_v2 }
 0x80d   :  { %10828 = vrcp.f32 %v6551_v12  ;;  %v7387_v21 = vadd.f32 %v7386_v34, %v14837_v23  ;;  %v7458_v46 = vmul.f32 %v14916_v48, %v14916_v48  ;;  %v7426_v1 = vmul.f32 0.001953125, %v7270_v24  ;;  %v16968_v12 = vld [vmem:[#allocation23_spill] sm:$0xff] }
 0x80e   :  { %10830 = vrcp.f32 %v6552_v32  ;;  %7073 = vadd.xlane.f32.xlu1 %v7072_v15  ;;  %v7241_v51 = vmul.f32 %v14858_v18, %v14858_v18  ;;  %v7391_v45 = vadd.f32 %v14833_v0, %v14784_v35  ;;  %v7459_v62 = vmul.f32 %v14937_v55, %v14937_v55  ;;  %v16987_v15 = vld [vmem:[#allocation139_spill] sm:$0xff] }
 0x80f   :  { %v10821_v60 = vpop.eup %10820  ;;  %v14952_v58 = vmul.f32 %v14922_v17, %v14922_v17  ;;  %v7388_v23 = vadd.f32 %v7387_v21, %v7237_v61  ;;  %v7427_v54 = vmul.f32 0.001953125, %v7275_v7  ;;  %v7076_v13 = vadd.f32 %v14875_v28, %v14896_v41  ;;  %v16970_v7 = vld [vmem:[#allocation25_spill] sm:$0xff] }
 0x810   :  { %v7490_v32 = vsub.f32 %v7426_v1, %v7458_v46  ;;  %v7392_v43 = vadd.f32 %v7391_v45, %v14855_v29  ;;  %v7081_v35 = vadd.f32 %v7080_v44, %v14904_v25  ;;  %v7245_v24 = vmul.f32 %v14910_v53, %v14910_v53 }
 0x811   :  { %7389 = vadd.xlane.f32.xlu0 %v7388_v23  ;;  %v7491_v0 = vsub.f32 %v7427_v54, %v7459_v62  ;;  %v7077_v34 = vadd.f32 %v7076_v13, %v14910_v53  ;;  %v7396_v61 = vadd.f32 %v14879_v22, %v14867_v49  ;;  %v14966_v28 = vmul.f32 %v10821_v60, %v14758_v3  ;;  %v16972_v22 = vld [vmem:[#allocation138_spill] sm:$0xff]  ;;  %v16973_v60 = vld [vmem:[#allocation20_spill] sm:$0xff] }
 0x812   :  { %v7522_v46 = vmax.f32 %v7490_v32, 0.0  ;;  %v7393_v29 = vadd.f32 %v7392_v43, %v7241_v51  ;;  %v7082_v45 = vadd.f32 %v7081_v35, %v14913_v40  ;;  %v7401_v23 = vadd.f32 %v14901_v16, %v14886_v8  ;;  %v16974_v43 = vld [vmem:[#allocation62_spill] sm:$0xff] }
 0x813   :  { %16969 = vst [vmem:[#allocation113_spill] sm:$0xff] %v14966_v28  ;;  %v7523_v44 = vmax.f32 %v7491_v0, 0.0  ;;  %v7397_v62 = vadd.f32 %v7396_v61, %v7244_v14  ;;  %v7249_v3 = vmul.f32 %v14913_v40, %v14913_v40  ;;  %v14980_v51 = vadd.f32 %v16973_v60, %v16972_v22 }
 0x814   :  { %v10823_v1 = vpop.eup %10822  ;;  %v7682_v49 = vadd.f32 1e-05, %v7522_v46  ;;  %7394 = vadd.xlane.f32.xlu1 %v7393_v29  ;;  %v7402_v16 = vadd.f32 %v7401_v23, %v7248_v11  ;;  %v6959_v46 = vpop.xlane.xlu0 %6958  ;;  %v16977_v29 = vld [vmem:[#allocation105_spill] sm:$0xff] }
 0x815   :  { %v10825_v54 = vpop.eup %10824  ;;  %v14974_v13 = vmul.f32 %v10823_v1, %v14762_v4  ;;  %v7683_v14 = vadd.f32 1e-05, %v7523_v44  ;;  %7078 = vadd.xlane.f32.xlu0 %v7077_v34  ;;  %v7398_v8 = vadd.f32 %v7397_v62, %v7245_v24  ;;  %v16978_v1 = vld [vmem:[#allocation21_spill] sm:$0xff]  ;;  %v16980_v34 = vld [vmem:[#allocation27_spill] sm:$0xff]  ;;  %v16981_v24 = vld [vmem:[#allocation24_spill] sm:$0xff] }
 0x816   :  { %v10827_v32 = vpop.eup %10826  ;;  %v14983_v35 = vmul.f32 %v10825_v54, %v16974_v43  ;;  %10832 = vrsqrt.f32 %v7682_v49  ;;  %v14992_v22 = vadd.f32 %v16978_v1, %v16977_v29  ;;  %v7557_v11 = vsub.f32 %v16980_v34, %v14916_v48  ;;  %v16983_v62 = vld [vmem:[#allocation26_spill] sm:$0xff]  ;;  %v16984_v43 = vld [vmem:[#allocation28_spill] sm:$0xff]  ;;  %v16985_v29 = vld [vmem:[#allocation29_spill] sm:$0xff] }
 0x817   :  { %16971 = vst [vmem:[#allocation22_spill] sm:$0xff] %v14974_v13  ;;  %v10829_v0 = vpop.eup %10828  ;;  %v7090_v4 = vadd.f32 %v14974_v13, %v14966_v28  ;;  %v14988_v61 = vmul.f32 %v10827_v32, %v14793_v5  ;;  %v7558_v44 = vsub.f32 %v16981_v24, %v14937_v55  ;;  %10834 = vrsqrt.f32 %v7683_v14 }
 0x818   :  { %16975 = vst [vmem:[#allocation23_spill] sm:$0xff] %v14983_v35  ;;  %v10831_v21 = vpop.eup %10830  ;;  %v14995_v54 = vmul.f32 %v10829_v0, %v14797_v30  ;;  %v7559_v23 = vsub.f32 %v16983_v62, %v14937_v55  ;;  %7083 = vadd.xlane.f32.xlu1 %v7082_v45  ;;  %v7086_v49 = vadd.f32 %v7085_v19, %v14983_v35  ;;  %v9494_v32 = vmul.f32 -1.442695, %v14980_v51  ;;  %v6964_v30 = vpop.xlane.xlu1 %6963  ;;  %v16986_v62 = vld [vmem:[#allocation106_spill] sm:$0xff] }
 0x819   :  { %16976 = vst [vmem:[#allocation25_spill] sm:$0xff] %v14988_v61  ;;  %v15002_v5 = vmul.f32 %v10831_v21, %v14802_v37  ;;  %v7560_v0 = vsub.f32 %v16984_v43, %v14937_v55  ;;  %v7561_v34 = vsub.f32 %v16985_v29, %v14937_v55  ;;  %7399 = vadd.xlane.f32.xlu0 %v7398_v8  ;;  %v15012_v24 = vmul.f32 0.001953125, %v6959_v46  ;;  %v16988_v46 = vld [vmem:[#allocation30_spill] sm:$0xff] }
 0x81a   :  { %16979 = vst [vmem:[#allocation138_spill] sm:$0xff] %v14995_v54  ;;  %v7403_v14 = vadd.f32 %v7402_v16, %v7249_v3  ;;  %v7087_v37 = vadd.f32 %v7086_v49, %v14988_v61  ;;  %10836 = vpow2.f32 %v9494_v32  ;;  %v9495_v21 = vmul.f32 -1.442695, %v14992_v22 }
 0x81b   :  { %16982 = vst [vmem:[#allocation20_spill] sm:$0xff] %v15002_v5  ;;  %v7091_v19 = vadd.f32 %v7090_v4, %v14995_v54  ;;  %v7254_v45 = vmul.f32 %v14966_v28, %v14966_v28  ;;  %v15021_v43 = vadd.f32 %v16973_v60, %v16986_v62  ;;  %v15025_v55 = vadd.f32 %v13185_v10, %v16987_v15  ;;  %v16990_v62 = vld [vmem:[#allocation34_spill] sm:$0xff]  ;;  %v7280_v15 = vpop.xlane.xlu0 %7279 }
 0x81c   :  { %v15027_v3 = vmul.f32 0.001953125, %v6964_v30  ;;  %v7255_v8 = vmul.f32 %v14974_v13, %v14974_v13  ;;  %v7252_v16 = vmul.f32 %v14983_v35, %v14983_v35  ;;  %7404 = vadd.xlane.f32.xlu1 %v7403_v14  ;;  %10838 = vpow2.f32 %v9495_v21  ;;  %v16989_v30 = vld [vmem:[#allocation31_spill] sm:$0xff]  ;;  %v16991_v21 = vld [vmem:[#allocation36_spill] sm:$0xff]  ;;  %v16994_v13 = vld [vmem:[#allocation142_spill] sm:$0xff]  ;;  %v7285_v2 = vpop.xlane.xlu1 %7284 }
 0x81d   :  { %v7092_v4 = vadd.f32 %v7091_v19, %v15002_v5  ;;  %v7256_v60 = vmul.f32 %v14995_v54, %v14995_v54  ;;  %7088 = vadd.xlane.f32.xlu0 %v7087_v37  ;;  %v9498_v49 = vmul.f32 -1.442695, %v15021_v43  ;;  %v9496_v32 = vmul.f32 -1.442695, %v15025_v55  ;;  %v16993_v37 = vld [vmem:[#allocation32_spill] sm:$0xff]  ;;  %v16995_v19 = vld [vmem:[#allocation33_spill] sm:$0xff] }
 0x81e   :  { %v15048_v54 = vadd.f32 %v16978_v1, %v16992_v9  ;;  %v15054_v28 = vadd.f32 %v13189_v47, %v16994_v13  ;;  %v7253_v29 = vmul.f32 %v14988_v61, %v14988_v61  ;;  %v16996_v9 = vld [vmem:[#allocation38_spill] sm:$0xff]  ;;  %v16998_v13 = vsub.f32 %v16967_v52, %v14916_v48 }
 0x81f   :  { %10840 = vpow2.f32 %v9498_v49  ;;  %v16997_v49 = vld [vmem:[#allocation35_spill] sm:$0xff]  ;;  %v17000_v14 = vsub.f32 %v16970_v7, %v14916_v48  ;;  %v7406_v52 = vadd.f32 %v14952_v58, %v14933_v38  ;;  %v7428_v7 = vmul.f32 0.001953125, %v7280_v15 }
 0x820   :  { %v10833_v35 = vpop.eup %10832  ;;  %7093 = vadd.xlane.f32.xlu1 %v7092_v4  ;;  %10842 = vpow2.f32 %v9496_v32  ;;  %v16999_v4 = vsub.f32 %v16968_v12, %v14916_v48  ;;  %v9499_v57 = vmul.f32 -1.442695, %v15048_v54  ;;  %v9497_v18 = vmul.f32 -1.442695, %v15054_v28  ;;  %v17004_v38 = vld [vmem:[#allocation47_spill] sm:$0xff] }
 0x821   :  { %v10835_v40 = vpop.eup %10834  ;;  %v7746_v25 = vmul.f32 %v10833_v35, %v16998_v13  ;;  %v7748_v61 = vmul.f32 %v10833_v35, %v17000_v14  ;;  %v7749_v53 = vmul.f32 %v10833_v35, %v7557_v11  ;;  %v17001_v13 = vld [vmem:[#allocation143_spill] sm:$0xff]  ;;  %v7460_v48 = vmul.f32 %v15012_v24, %v15012_v24  ;;  %v6969_v11 = vpop.xlane.xlu0 %6968 }
 0x822   :  { %v7747_v32 = vmul.f32 %v10833_v35, %v16999_v4  ;;  %v7750_v1 = vmul.f32 %v10835_v40, %v7558_v44  ;;  %v7751_v41 = vmul.f32 %v10835_v40, %v7559_v23  ;;  %v7752_v50 = vmul.f32 %v10835_v40, %v7560_v0  ;;  %v6974_v44 = vpop.xlane.xlu1 %6973  ;;  %v17002_v23 = vld [vmem:[#allocation46_spill] sm:$0xff] }
 0x823   :  { %v7753_v17 = vmul.f32 %v10835_v40, %v7561_v34  ;;  %v15079_v12 = vadd.f32 %v13185_v10, %v17001_v13  ;;  %v7257_v35 = vmul.f32 %v15002_v5, %v15002_v5  ;;  %v7411_v40 = vadd.f32 %v7255_v8, %v7254_v45  ;;  %v17003_v34 = vld [vmem:[#allocation16_spill] sm:$0xff] }
 0x824   :  { %v10837_v4 = vpop.eup %10836  ;;  %v7910_v0 = vmul.f32 %v17002_v23, %v7746_v25  ;;  %v7911_v14 = vmul.f32 %v17003_v34, %v7747_v32  ;;  %v7912_v58 = vmul.f32 %v17004_v38, %v7748_v61  ;;  %v7913_v10 = vmul.f32 %v17005_v31, %v7749_v53 }
 0x825   :  { %v7914_v63 = vmul.f32 %v17002_v23, %v7750_v1  ;;  %v7915_v26 = vmul.f32 %v17003_v34, %v7751_v41  ;;  %v7916_v15 = vmul.f32 %v17004_v38, %v7752_v50  ;;  %v7917_v5 = vmul.f32 %v17005_v31, %v7753_v17 }
 0x826   :  { %v10839_v13 = vpop.eup %10838  ;;  %v6553_v45 = vadd.f32 1.0, %v10837_v4  ;;  %10844 = vpow2.f32 %v9499_v57  ;;  %v7407_v6 = vadd.f32 %v7406_v52, %v7252_v16  ;;  %v9500_v25 = vmul.f32 -1.442695, %v15079_v12  ;;  %v7295_v52 = vpop.xlane.xlu1 %7294 }
 0x827   :  { %v6554_v8 = vadd.f32 1.0, %v10839_v13  ;;  %10846 = vpow2.f32 %v9497_v18  ;;  %v7492_v32 = vsub.f32 %v7428_v7, %v7460_v48  ;;  %v7412_v61 = vadd.f32 %v7411_v40, %v7256_v60  ;;  %v7290_v18 = vpop.xlane.xlu0 %7289 }
 0x828   :  { %10848 = vrcp.f32 %v6553_v45  ;;  %v7408_v53 = vadd.f32 %v7407_v6, %v7253_v29  ;;  %v15096_v1 = vadd.f32 %v13189_v47, %v17006_v42  ;;  %v7461_v50 = vmul.f32 %v15027_v3, %v15027_v3  ;;  %v17007_v29 = vld [vmem:[#allocation48_spill] sm:$0xff]  ;;  %v17008_v47 = vld [vmem:[#allocation19_spill] sm:$0xff]  ;;  %v17010_v45 = vld [vmem:[#allocation50_spill] sm:$0xff] }
 0x829   :  { %v10841_v39 = vpop.eup %10840  ;;  %10850 = vrcp.f32 %v6554_v8  ;;  %v7524_v57 = vmax.f32 %v7492_v32, 0.0  ;;  %v7413_v16 = vadd.f32 %v7412_v61, %v7257_v35  ;;  %v7429_v6 = vmul.f32 0.001953125, %v7285_v2 }
 0x82a   :  { %v10843_v17 = vpop.eup %10842  ;;  %v6557_v41 = vadd.f32 1.0, %v10841_v39  ;;  %7409 = vadd.xlane.f32.xlu0 %v7408_v53  ;;  %10852 = vpow2.f32 %v9500_v25  ;;  %v9501_v60 = vmul.f32 -1.442695, %v15096_v1  ;;  %v15102_v48 = vadd.f32 %v17007_v29, %v7910_v0  ;;  %v17009_v39 = vld [vmem:[#allocation49_spill] sm:$0xff]  ;;  %v6984_v25 = vpop.xlane.xlu1 %6983 }
 0x82b   :  { %v6555_v4 = vadd.f32 1.0, %v10843_v17  ;;  %v15105_v42 = vadd.f32 %v17008_v47, %v7911_v14  ;;  %v7684_v7 = vadd.f32 1e-05, %v7524_v57  ;;  %7414 = vadd.xlane.f32.xlu1 %v7413_v16  ;;  %v15108_v40 = vadd.f32 %v17009_v39, %v7912_v58  ;;  %v6979_v14 = vpop.xlane.xlu0 %6978 }
 0x82c   :  { %10854 = vrcp.f32 %v6557_v41  ;;  %v7493_v35 = vsub.f32 %v7429_v6, %v7461_v50  ;;  %v15110_v13 = vmul.f32 0.001953125, %v6969_v11  ;;  %v15113_v8 = vadd.f32 %v17010_v45, %v7913_v10  ;;  %v17011_v41 = vld [vmem:[#allocation37_spill] sm:$0xff] }
 0x82d   :  { %10856 = vrcp.f32 %v6555_v4  ;;  %v15116_v2 = vadd.f32 %v17007_v29, %v7914_v63  ;;  %v7430_v0 = vmul.f32 0.001953125, %v7290_v18  ;;  %v15118_v61 = vmul.f32 0.001953125, %v6974_v44  ;;  %v17012_v44 = vld [vmem:[#allocation39_spill] sm:$0xff] }
 0x82e   :  { %10858 = vrsqrt.f32 %v7684_v7  ;;  %v7525_v32 = vmax.f32 %v7493_v35, 0.0  ;;  %v7431_v58 = vmul.f32 0.001953125, %v7295_v52  ;;  %v15121_v53 = vadd.f32 %v17008_v47, %v7915_v26  ;;  %v17013_v52 = vld [vmem:[#allocation41_spill] sm:$0xff]  ;;  %v17014_v4 = vld [vmem:[#allocation43_spill] sm:$0xff]  ;;  %v7305_v27 = vpop.xlane.xlu1 %7304 }
 0x82f   :  { %10860 = vpow2.f32 %v9501_v60  ;;  %v15124_v11 = vadd.f32 %v17009_v39, %v7916_v15  ;;  %v15127_v10 = vadd.f32 %v17010_v45, %v7917_v5  ;;  %v7462_v63 = vmul.f32 %v15110_v13, %v15110_v13  ;;  %v7300_v59 = vpop.xlane.xlu0 %7299 }
 0x830   :  { %v10845_v50 = vpop.eup %10844  ;;  %v7685_v17 = vadd.f32 1e-05, %v7525_v32  ;;  %v7463_v26 = vmul.f32 %v15118_v61, %v15118_v61  ;;  %v17015_v32 = vld [vmem:[#allocation40_spill] sm:$0xff]  ;;  %v15155_v57 = vmul.f32 0.001953125, %v6979_v14  ;;  %v15157_v56 = vmul.f32 0.001953125, %v6984_v25 }
 0x831   :  { %v10847_v18 = vpop.eup %10846  ;;  %v6558_v15 = vadd.f32 1.0, %v10845_v50  ;;  %v7494_v6 = vsub.f32 %v7430_v0, %v7462_v63  ;;  %v17019_v63 = vld [vmem:[#allocation44_spill] sm:$0xff]  ;;  %v15159_v50 = vmul.f32 0.001953125, %v7300_v59  ;;  %v17023_v59 = vsub.f32 %v16988_v46, %v15012_v24 }
 0x832   :  { %v10849_v7 = vpop.eup %10848  ;;  %v6556_v35 = vadd.f32 1.0, %v10847_v18  ;;  %10862 = vrsqrt.f32 %v7685_v17  ;;  %v7495_v33 = vsub.f32 %v7431_v58, %v7463_v26 }
 0x833   :  { %v10851_v16 = vpop.eup %10850  ;;  %v15144_v36 = vmul.f32 %v10849_v7, %v14980_v51  ;;  %10864 = vrcp.f32 %v6558_v15  ;;  %v7526_v5 = vmax.f32 %v7494_v6, 0.0  ;;  %v17020_v51 = vld [vmem:[#allocation45_spill] sm:$0xff] }
 0x834   :  { %v10853_v60 = vpop.eup %10852  ;;  %v15149_v0 = vmul.f32 %v10851_v16, %v14992_v22  ;;  %10866 = vrcp.f32 %v6556_v35  ;;  %v7527_v58 = vmax.f32 %v7495_v33, 0.0  ;;  %v15161_v22 = vmul.f32 0.001953125, %v7305_v27 }
 0x835   :  { %17016 = vst [vmem:[#allocation62_spill] sm:$0xff] %v15144_v36  ;;  %v6559_v18 = vadd.f32 1.0, %v10853_v60  ;;  %v7686_v7 = vadd.f32 1e-05, %v7526_v5  ;;  %v7258_v33 = vmul.f32 %v15144_v36, %v15144_v36  ;;  %v17024_v5 = vsub.f32 %v16989_v30, %v15012_v24 }
 0x836   :  { %17018 = vst [vmem:[#allocation105_spill] sm:$0xff] %v15149_v0  ;;  %v10855_v26 = vpop.eup %10854  ;;  %v7687_v20 = vadd.f32 1e-05, %v7527_v58  ;;  %v7095_v25 = vadd.f32 %v15149_v0, %v15144_v36 }
 0x837   :  { %v10857_v6 = vpop.eup %10856  ;;  %v15166_v60 = vmul.f32 %v10855_v26, %v15021_v43  ;;  %10868 = vrcp.f32 %v6559_v18  ;;  %v17025_v43 = vsub.f32 %v16990_v62, %v15012_v24  ;;  %v17026_v18 = vsub.f32 %v16991_v21, %v15012_v24  ;;  %v15195_v24 = vpop.xlane.xlu0 %6988 }
 0x838   :  { %v10859_v16 = vpop.eup %10858  ;;  %v15169_v35 = vmul.f32 %v10857_v6, %v15025_v55  ;;  %v7259_v55 = vmul.f32 %v15149_v0, %v15149_v0  ;;  %10870 = vrsqrt.f32 %v7686_v7 }
 0x839   :  { %17021 = vst [vmem:[#allocation21_spill] sm:$0xff] %v15166_v60  ;;  %v10861_v14 = vpop.eup %10860  ;;  %v7754_v27 = vmul.f32 %v10859_v16, %v17023_v59  ;;  %v7755_v58 = vmul.f32 %v10859_v16, %v17024_v5  ;;  %v7756_v26 = vmul.f32 %v10859_v16, %v17025_v43  ;;  %v7757_v6 = vmul.f32 %v10859_v16, %v17026_v18 }
 0x83a   :  { %17022 = vst [vmem:[#allocation27_spill] sm:$0xff] %v15169_v35  ;;  %v6560_v15 = vadd.f32 1.0, %v10861_v14  ;;  %10872 = vrsqrt.f32 %v7687_v20  ;;  %v7262_v62 = vmul.f32 %v15166_v60, %v15166_v60  ;;  %v7260_v5 = vmul.f32 %v15169_v35, %v15169_v35 }
 0x83b   :  { %v7918_v46 = vmul.f32 %v17002_v23, %v7754_v27  ;;  %v7919_v59 = vmul.f32 %v17003_v34, %v7755_v58  ;;  %v7920_v30 = vmul.f32 %v17004_v38, %v7756_v26  ;;  %v7921_v43 = vmul.f32 %v17005_v31, %v7757_v6 }
 0x83c   :  { %10874 = vrcp.f32 %v6560_v15  ;;  %v10863_v21 = vpop.eup %10862  ;;  %v7096_v14 = vadd.f32 %v7095_v25, %v15169_v35  ;;  %v17027_v15 = vsub.f32 %v16993_v37, %v15027_v3  ;;  %v17028_v18 = vsub.f32 %v16995_v19, %v15027_v3 }
 0x83d   :  { %v15198_v7 = vadd.f32 %v17007_v29, %v7918_v46  ;;  %v15201_v16 = vadd.f32 %v17008_v47, %v7919_v59  ;;  %v15204_v20 = vadd.f32 %v17009_v39, %v7920_v30  ;;  %v10865_v27 = vpop.eup %10864  ;;  %v15208_v58 = vadd.f32 %v17010_v45, %v7921_v43 }
 0x83e   :  { %v7758_v26 = vmul.f32 %v10863_v21, %v17027_v15  ;;  %v7759_v6 = vmul.f32 %v10863_v21, %v17028_v18  ;;  %v17029_v46 = vsub.f32 %v16996_v9, %v15027_v3  ;;  %v10867_v30 = vpop.eup %10866  ;;  %v15220_v17 = vmul.f32 %v10865_v27, %v15048_v54  ;;  %v15226_v15 = vpop.xlane.xlu1 %6993 }
 0x83f   :  { %v8202_v25 = vmax.f32 %v15102_v48, %v15198_v7  ;;  %v8217_v43 = vmax.f32 %v15105_v42, %v15201_v16  ;;  %v7416_v37 = vadd.f32 %v7259_v55, %v7258_v33  ;;  %v15229_v19 = vmul.f32 %v10867_v30, %v15054_v28 }
 0x840   :  { %v7760_v59 = vmul.f32 %v10863_v21, %v17029_v46  ;;  %17030 = vst [vmem:[#allocation24_spill] sm:$0xff] %v15220_v17  ;;  %v8232_v9 = vmax.f32 %v15108_v40, %v15204_v20  ;;  %v17032_v18 = vsub.f32 %v16997_v49, %v15027_v3  ;;  %v7922_v27 = vmul.f32 %v17002_v23, %v7758_v26 }
 0x841   :  { %17031 = vst [vmem:[#allocation26_spill] sm:$0xff] %v15229_v19  ;;  %v7263_v48 = vmul.f32 %v15220_v17, %v15220_v17  ;;  %v8247_v42 = vmax.f32 %v15113_v8, %v15208_v58  ;;  %v7923_v33 = vmul.f32 %v17003_v34, %v7759_v6  ;;  %v10869_v55 = vpop.eup %10868  ;;  %v7100_v40 = vadd.f32 %v15220_v17, %v15166_v60 }
 0x842   :  { %v7761_v54 = vmul.f32 %v10863_v21, %v17032_v18  ;;  %v7924_v28 = vmul.f32 %v17004_v38, %v7760_v59  ;;  %v8086_v3 = vadd.f32 %v17007_v29, %v7922_v27  ;;  %v7097_v49 = vadd.f32 %v7096_v14, %v15229_v19  ;;  %v15248_v21 = vpop.xlane.xlu0 %7309  ;;  %v10871_v26 = vpop.eup %10870 }
 0x843   :  { %v15251_v16 = vmul.f32 %v10869_v55, %v15079_v12  ;;  %v8087_v8 = vadd.f32 %v17008_v47, %v7923_v33  ;;  %v7261_v58 = vmul.f32 %v15229_v19, %v15229_v19  ;;  %v7417_v59 = vadd.f32 %v7416_v37, %v7260_v5 }
 0x844   :  { %v7925_v7 = vmul.f32 %v17005_v31, %v7761_v54  ;;  %v8088_v20 = vadd.f32 %v17009_v39, %v7924_v28  ;;  %v8262_v46 = vmax.f32 %v15116_v2, %v8086_v3  ;;  %7098 = vadd.xlane.f32.xlu0 %v7097_v49  ;;  %v7421_v14 = vadd.f32 %v7263_v48, %v7262_v62  ;;  %v10873_v30 = vpop.eup %10872  ;;  %v7315_v28 = vpop.xlane.xlu1 %7314  ;;  %v17040_v49 = vld [vmem:[#allocation42_spill] sm:$0xff] }
 0x845   :  { %17033 = vst [vmem:[#allocation28_spill] sm:$0xff] %v15251_v16  ;;  %v7264_v12 = vmul.f32 %v15251_v16, %v15251_v16  ;;  %v8277_v18 = vmax.f32 %v15121_v53, %v8087_v8  ;;  %v17034_v27 = vsub.f32 %v17011_v41, %v15110_v13  ;;  %v17035_v2 = vsub.f32 %v17012_v44, %v15110_v13 }
 0x846   :  { %v8089_v6 = vadd.f32 %v17010_v45, %v7925_v7  ;;  %v8292_v54 = vmax.f32 %v15124_v11, %v8088_v20  ;;  %v10875_v55 = vpop.eup %10874  ;;  %v17036_v5 = vsub.f32 %v17013_v52, %v15110_v13  ;;  %v17037_v53 = vsub.f32 %v17014_v4, %v15110_v13 }
 0x847   :  { %v7762_v33 = vmul.f32 %v10871_v26, %v17034_v27  ;;  %v7763_v62 = vmul.f32 %v10871_v26, %v17035_v2  ;;  %v15277_v48 = vmul.f32 %v10875_v55, %v15096_v1  ;;  %v17041_v44 = vsub.f32 %v17040_v49, %v15118_v61 }
 0x848   :  { %v8307_v7 = vmax.f32 %v15127_v10, %v8089_v6  ;;  %v7764_v37 = vmul.f32 %v10871_v26, %v17036_v5  ;;  %v7765_v11 = vmul.f32 %v10871_v26, %v17037_v53  ;;  %v17039_v10 = vsub.f32 %v17015_v32, %v15118_v61  ;;  %v6999_v26 = vpop.xlane.xlu0 %6998 }
 0x849   :  { %17038 = vst [vmem:[#allocation29_spill] sm:$0xff] %v15277_v48  ;;  %v7926_v41 = vmul.f32 %v17002_v23, %v7762_v33  ;;  %v7767_v8 = vmul.f32 %v10873_v30, %v17041_v44  ;;  %v7927_v52 = vmul.f32 %v17003_v34, %v7763_v62  ;;  %v17042_v1 = vsub.f32 %v17019_v63, %v15118_v61 }
 0x84a   :  { %v7766_v3 = vmul.f32 %v10873_v30, %v17039_v10  ;;  %v7928_v20 = vmul.f32 %v17004_v38, %v7764_v37  ;;  %v7929_v13 = vmul.f32 %v17005_v31, %v7765_v11  ;;  %v17043_v32 = vsub.f32 %v17020_v51, %v15118_v61  ;;  %v7004_v51 = vpop.xlane.xlu1 %7003 }
 0x84b   :  { %v7768_v4 = vmul.f32 %v10873_v30, %v17042_v1  ;;  %v8090_v6 = vadd.f32 %v17007_v29, %v7926_v41  ;;  %v7931_v55 = vmul.f32 %v17003_v34, %v7767_v8  ;;  %v8091_v2 = vadd.f32 %v17008_v47, %v7927_v52 }
 0x84c   :  { %v7769_v27 = vmul.f32 %v10873_v30, %v17043_v32  ;;  %v7930_v33 = vmul.f32 %v17002_v23, %v7766_v3  ;;  %v8092_v62 = vadd.f32 %v17009_v39, %v7928_v20  ;;  %v8093_v5 = vadd.f32 %v17010_v45, %v7929_v13 }
 0x84d   :  { %v7932_v63 = vmul.f32 %v17004_v38, %v7768_v4  ;;  %v15302_v37 = vmax.f32 %v8202_v25, %v8090_v6  ;;  %v8095_v61 = vadd.f32 %v17008_v47, %v7931_v55  ;;  %v15307_v30 = vmax.f32 %v8217_v43, %v8091_v2  ;;  %v7320_v43 = vpop.xlane.xlu0 %7319  ;;  %v17044_v6 = vld [vmem:[#allocation52_spill] sm:$0xff] }
 0x84e   :  { %v7933_v53 = vmul.f32 %v17005_v31, %v7769_v27  ;;  %v8094_v11 = vadd.f32 %v17007_v29, %v7930_v33  ;;  %v15309_v41 = vmax.f32 %v8232_v9, %v8092_v62  ;;  %v15311_v10 = vmax.f32 %v8247_v42, %v8093_v5  ;;  %v17045_v33 = vld [vmem:[#allocation53_spill] sm:$0xff] }
 0x84f   :  { %v8096_v3 = vadd.f32 %v17009_v39, %v7932_v63  ;;  %v15317_v25 = vmax.f32 %v8277_v18, %v8095_v61  ;;  %v7101_v8 = vadd.f32 %v7100_v40, %v15251_v16  ;;  %v7418_v20 = vadd.f32 %v7417_v59, %v7261_v58 }
 0x850   :  { %v8097_v49 = vadd.f32 %v17010_v45, %v7933_v53  ;;  %v15315_v44 = vmax.f32 %v8262_v46, %v8094_v11  ;;  %v7422_v13 = vadd.f32 %v7421_v14, %v7264_v12  ;;  %v7464_v42 = vmul.f32 %v15155_v57, %v15155_v57  ;;  %v7325_v14 = vpop.xlane.xlu1 %7324  ;;  %v17048_v11 = vld [vmem:[#allocation54_spill] sm:$0xff] }
 0x851   :  { %v15320_v52 = vmax.f32 %v8292_v54, %v8096_v3  ;;  %v7102_v9 = vadd.f32 %v7101_v8, %v15277_v48  ;;  %v7465_v46 = vmul.f32 %v15157_v56, %v15157_v56  ;;  %7419 = vadd.xlane.f32.xlu0 %v7418_v20  ;;  %v15330_v18 = vmul.f32 0.001953125, %v15226_v15  ;;  %v17049_v3 = vld [vmem:[#allocation58_spill] sm:$0xff] }
 0x852   :  { %v15322_v1 = vmax.f32 %v8307_v7, %v8097_v49  ;;  %v7265_v40 = vmul.f32 %v15277_v48, %v15277_v48  ;;  %v7496_v58 = vsub.f32 %v15159_v50, %v7464_v42  ;;  %v15337_v12 = vmul.f32 0.001953125, %v15195_v24  ;;  %v17046_v50 = vld [vmem:[#allocation59_spill] sm:$0xff] }
 0x853   :  { %7103 = vadd.xlane.f32.xlu1 %v7102_v9  ;;  %v7497_v59 = vsub.f32 %v15161_v22, %v7465_v46  ;;  %v7434_v54 = vmul.f32 0.001953125, %v15248_v21  ;;  %v7435_v7 = vmul.f32 0.001953125, %v7315_v28  ;;  %v7467_v24 = vmul.f32 %v15330_v18, %v15330_v18  ;;  %v7009_v21 = vpop.xlane.xlu0 %7008  ;;  %v17047_v28 = vld [vmem:[#allocation63_spill] sm:$0xff] }
 0x854   :  { %v7423_v4 = vadd.f32 %v7422_v13, %v7265_v40  ;;  %v7528_v32 = vmax.f32 %v7496_v58, 0.0  ;;  %v7466_v22 = vmul.f32 %v15337_v12, %v15337_v12  ;;  %v7581_v62 = vsub.f32 %v17047_v28, %v15155_v57  ;;  %v7014_v46 = vpop.xlane.xlu1 %7013 }
 0x855   :  { %v7529_v27 = vmax.f32 %v7497_v59, 0.0  ;;  %v15352_v53 = vmul.f32 0.001953125, %v6999_v26  ;;  %v7582_v61 = vsub.f32 %v17048_v11, %v15157_v56  ;;  %v7583_v49 = vsub.f32 %v17049_v3, %v15157_v56  ;;  %v17050_v59 = vld [vmem:[#allocation60_spill] sm:$0xff]  ;;  %v17055_v3 = vld [vmem:[#allocation89_spill] sm:$0xff] }
 0x856   :  { %v7688_v5 = vadd.f32 1e-05, %v7528_v32  ;;  %v7498_v8 = vsub.f32 %v7434_v54, %v7466_v22  ;;  %v7499_v20 = vsub.f32 %v7435_v7, %v7467_v24  ;;  %v15358_v13 = vmul.f32 0.001953125, %v7004_v51  ;;  %v17051_v32 = vld [vmem:[#allocation64_spill] sm:$0xff]  ;;  %v17052_v54 = vld [vmem:[#allocation65_spill] sm:$0xff]  ;;  %v17053_v51 = vld [vmem:[#allocation66_spill] sm:$0xff] }
 0x857   :  { %7424 = vadd.xlane.f32.xlu1 %v7423_v4  ;;  %v7689_v63 = vadd.f32 1e-05, %v7529_v27  ;;  %v7468_v9 = vmul.f32 %v15352_v53, %v15352_v53  ;;  %v7436_v42 = vmul.f32 0.001953125, %v7320_v43  ;;  %v7437_v58 = vmul.f32 0.001953125, %v7325_v14  ;;  %v17054_v14 = vld [vmem:[#allocation83_spill] sm:$0xff] }
 0x858   :  { %10876 = vrsqrt.f32 %v7688_v5  ;;  %v7530_v40 = vmax.f32 %v7498_v8, 0.0  ;;  %v7531_v26 = vmax.f32 %v7499_v20, 0.0  ;;  %v7584_v4 = vsub.f32 %v17050_v59, %v15157_v56  ;;  %v17057_v59 = vld [vmem:[#allocation69_spill] sm:$0xff]  ;;  %v7335_v55 = vpop.xlane.xlu1 %7334  ;;  %v17060_v20 = vld [vmem:[#allocation92_spill] sm:$0xff] }
 0x859   :  { %10878 = vrsqrt.f32 %v7689_v63  ;;  %v7585_v27 = vsub.f32 %v17051_v32, %v15157_v56  ;;  %v7500_v43 = vsub.f32 %v7436_v42, %v7468_v9  ;;  %v7469_v5 = vmul.f32 %v15358_v13, %v15358_v13  ;;  %v7330_v63 = vpop.xlane.xlu0 %7329  ;;  %v17056_v56 = vld [vmem:[#allocation67_spill] sm:$0xff]  ;;  %v17059_v9 = vld [vmem:[#allocation96_spill] sm:$0xff] }
 0x85a   :  { %v7690_v24 = vadd.f32 1e-05, %v7530_v40  ;;  %v7691_v28 = vadd.f32 1e-05, %v7531_v26  ;;  %v17058_v40 = vld [vmem:[#allocation90_spill] sm:$0xff]  ;;  %v15384_v2 = vmul.f32 0.001953125, %v7009_v21 }
 0x85b   :  { %v7532_v22 = vmax.f32 %v7500_v43, 0.0  ;;  %v7501_v7 = vsub.f32 %v7437_v58, %v7469_v5  ;;  %v15386_v11 = vmul.f32 0.001953125, %v7014_v46  ;;  %v15388_v8 = vmul.f32 0.001953125, %v7330_v63  ;;  %v17061_v26 = vld [vmem:[#allocation93_spill] sm:$0xff]  ;;  %v17062_v43 = vld [vmem:[#allocation98_spill] sm:$0xff]  ;;  %v17063_v21 = vld [vmem:[#allocation100_spill] sm:$0xff] }
 0x85c   :  { %10880 = vrsqrt.f32 %v7690_v24  ;;  %v15400_v46 = vmul.f32 %v15384_v2, %v15384_v2  ;;  %v15408_v16 = vmul.f32 0.001953125, %v7335_v55  ;;  %v17068_v55 = vsub.f32 %v17045_v33, %v15155_v57 }
 0x85d   :  { %10882 = vrsqrt.f32 %v7691_v28  ;;  %v7692_v15 = vadd.f32 1e-05, %v7532_v22  ;;  %v7533_v48 = vmax.f32 %v7501_v7, 0.0  ;;  %v17064_v28 = vld [vmem:[#allocation95_spill] sm:$0xff]  ;;  %v15416_v17 = vmul.f32 %v15386_v11, %v15386_v11 }
 0x85e   :  { %v17067_v22 = vsub.f32 %v17044_v6, %v15155_v57 }
 0x85f   :  { %10884 = vrsqrt.f32 %v7692_v15  ;;  %v15410_v58 = vadd.f32 1e-05, %v7533_v48  ;;  %v17069_v48 = vsub.f32 %v17046_v50, %v15155_v57 }
 0x861   :  { %10886 = vrsqrt.f32 %v15410_v58 }
 0x862   :  { %v10877_v42 = vpop.eup %10876 }
 0x863   :  { %v10879_v5 = vpop.eup %10878  ;;  %v7770_v60 = vmul.f32 %v10877_v42, %v17067_v22  ;;  %v7771_v32 = vmul.f32 %v10877_v42, %v17068_v55  ;;  %v7772_v15 = vmul.f32 %v10877_v42, %v17069_v48  ;;  %v7773_v19 = vmul.f32 %v10877_v42, %v7581_v62 }
 0x864   :  { %v7774_v35 = vmul.f32 %v10879_v5, %v7582_v61  ;;  %v7775_v24 = vmul.f32 %v10879_v5, %v7583_v49  ;;  %v7776_v0 = vmul.f32 %v10879_v5, %v7584_v4  ;;  %v7777_v36 = vmul.f32 %v10879_v5, %v7585_v27 }
 0x865   :  { %v7934_v7 = vmul.f32 %v17002_v23, %v7770_v60  ;;  %v7935_v63 = vmul.f32 %v17003_v34, %v7771_v32  ;;  %v7936_v6 = vmul.f32 %v17004_v38, %v7772_v15  ;;  %v7937_v22 = vmul.f32 %v17005_v31, %v7773_v19 }
 0x866   :  { %v7938_v33 = vmul.f32 %v17002_v23, %v7774_v35  ;;  %v7939_v55 = vmul.f32 %v17003_v34, %v7775_v24  ;;  %v7940_v57 = vmul.f32 %v17004_v38, %v7776_v0  ;;  %v7941_v50 = vmul.f32 %v17005_v31, %v7777_v36  ;;  %v10881_v4 = vpop.eup %10880 }
 0x867   :  { %v8098_v62 = vadd.f32 %v17007_v29, %v7934_v7  ;;  %v8099_v61 = vadd.f32 %v17008_v47, %v7935_v63  ;;  %v8100_v60 = vadd.f32 %v17009_v39, %v7936_v6  ;;  %v8101_v49 = vadd.f32 %v17010_v45, %v7937_v22  ;;  %v10883_v0 = vpop.eup %10882 }
 0x868   :  { %v8102_v27 = vadd.f32 %v17007_v29, %v7938_v33  ;;  %v8103_v19 = vadd.f32 %v17008_v47, %v7939_v55  ;;  %v8104_v35 = vadd.f32 %v17009_v39, %v7940_v57  ;;  %v8105_v32 = vadd.f32 %v17010_v45, %v7941_v50  ;;  %v7019_v33 = vpop.xlane.xlu0 %7018 }
 0x869   :  { %v8204_v36 = vmax.f32 %v15302_v37, %v8098_v62  ;;  %v8219_v42 = vmax.f32 %v15307_v30, %v8099_v61  ;;  %v8234_v24 = vmax.f32 %v15309_v41, %v8100_v60  ;;  %v8249_v5 = vmax.f32 %v15311_v10, %v8101_v49  ;;  %v10885_v55 = vpop.eup %10884 }
 0x86a   :  { %v8264_v63 = vmax.f32 %v15315_v44, %v8102_v27  ;;  %v8279_v7 = vmax.f32 %v15317_v25, %v8103_v19  ;;  %v8294_v48 = vmax.f32 %v15320_v52, %v8104_v35  ;;  %v8309_v15 = vmax.f32 %v15322_v1, %v8105_v32  ;;  %v7024_v52 = vpop.xlane.xlu1 %7023 }
 0x86b   :  { %v17070_v6 = vsub.f32 %v17052_v54, %v15337_v12  ;;  %v17071_v37 = vsub.f32 %v17053_v51, %v15337_v12  ;;  %v17072_v41 = vsub.f32 %v17054_v14, %v15337_v12  ;;  %v17073_v44 = vsub.f32 %v17055_v3, %v15337_v12 }
 0x86c   :  { %v17074_v1 = vsub.f32 %v17056_v56, %v15330_v18  ;;  %v17075_v57 = vsub.f32 %v17057_v59, %v15330_v18  ;;  %v17076_v50 = vsub.f32 %v17058_v40, %v15330_v18  ;;  %v17077_v62 = vsub.f32 %v17059_v9, %v15330_v18 }
 0x86d   :  { %v7778_v22 = vmul.f32 %v10881_v4, %v17070_v6  ;;  %v7779_v30 = vmul.f32 %v10881_v4, %v17071_v37  ;;  %v7780_v10 = vmul.f32 %v10881_v4, %v17072_v41  ;;  %v7781_v25 = vmul.f32 %v10881_v4, %v17073_v44 }
 0x86e   :  { %v7782_v54 = vmul.f32 %v10883_v0, %v17074_v1  ;;  %v7783_v51 = vmul.f32 %v10883_v0, %v17075_v57  ;;  %v7784_v14 = vmul.f32 %v10883_v0, %v17076_v50  ;;  %v7785_v12 = vmul.f32 %v10883_v0, %v17077_v62  ;;  %v7345_v44 = vpop.xlane.xlu1 %7344 }
 0x86f   :  { %v7942_v3 = vmul.f32 %v17002_v23, %v7778_v22  ;;  %v7943_v61 = vmul.f32 %v17003_v34, %v7779_v30  ;;  %v7944_v60 = vmul.f32 %v17004_v38, %v7780_v10  ;;  %v7945_v56 = vmul.f32 %v17005_v31, %v7781_v25  ;;  %v7340_v10 = vpop.xlane.xlu0 %7339 }
 0x870   :  { %v7946_v49 = vmul.f32 %v17002_v23, %v7782_v54  ;;  %v7947_v59 = vmul.f32 %v17003_v34, %v7783_v51  ;;  %v7948_v4 = vmul.f32 %v17004_v38, %v7784_v14  ;;  %v7949_v40 = vmul.f32 %v17005_v31, %v7785_v12 }
 0x871   :  { %v8106_v27 = vadd.f32 %v17007_v29, %v7942_v3  ;;  %v8107_v18 = vadd.f32 %v17008_v47, %v7943_v61  ;;  %v8108_v9 = vadd.f32 %v17009_v39, %v7944_v60  ;;  %v8109_v19 = vadd.f32 %v17010_v45, %v7945_v56  ;;  %v17084_v56 = vld [vmem:[#allocation51_spill] sm:$0xff] }
 0x872   :  { %v8110_v35 = vadd.f32 %v17007_v29, %v7946_v49  ;;  %v8111_v32 = vadd.f32 %v17008_v47, %v7947_v59  ;;  %v8112_v0 = vadd.f32 %v17009_v39, %v7948_v4  ;;  %v8113_v6 = vadd.f32 %v17010_v45, %v7949_v40  ;;  %v7034_v60 = vpop.xlane.xlu1 %7033 }
 0x873   :  { %v15491_v22 = vmax.f32 %v8204_v36, %v8106_v27  ;;  %v15493_v37 = vmax.f32 %v8219_v42, %v8107_v18  ;;  %v15495_v30 = vmax.f32 %v8234_v24, %v8108_v9  ;;  %v15497_v41 = vmax.f32 %v8249_v5, %v8109_v19  ;;  %v7029_v61 = vpop.xlane.xlu0 %7028  ;;  %v17086_v9 = vld [vmem:[#allocation85_spill] sm:$0xff] }
 0x874   :  { %v15499_v25 = vmax.f32 %v8264_v63, %v8110_v35  ;;  %v15501_v1 = vmax.f32 %v8279_v7, %v8111_v32  ;;  %v15503_v54 = vmax.f32 %v8294_v48, %v8112_v0  ;;  %v15505_v57 = vmax.f32 %v8309_v15, %v8113_v6  ;;  %v17082_v48 = vld [vmem:[#allocation104_spill] sm:$0xff]  ;;  %v17087_v0 = vld [vmem:[#allocation57_spill] sm:$0xff] }
 0x875   :  { %v17078_v36 = vsub.f32 %v17060_v20, %v15352_v53  ;;  %v17079_v42 = vsub.f32 %v17061_v26, %v15352_v53  ;;  %v17080_v5 = vsub.f32 %v17062_v43, %v15352_v53  ;;  %v17081_v63 = vsub.f32 %v17063_v21, %v15352_v53 }
 0x876   :  { %v7601_v15 = vsub.f32 %v17082_v48, %v15358_v13  ;;  %v17083_v20 = vsub.f32 %v15388_v8, %v15400_v46  ;;  %v7503_v26 = vsub.f32 %v15408_v16, %v15416_v17  ;;  %v15531_v3 = vmul.f32 0.001953125, %v7019_v33  ;;  %v17091_v48 = vld [vmem:[#allocation70_spill] sm:$0xff] }
 0x877   :  { %v7786_v51 = vmul.f32 %v10885_v55, %v17078_v36  ;;  %v7787_v24 = vmul.f32 %v10885_v55, %v17079_v42  ;;  %v7788_v50 = vmul.f32 %v10885_v55, %v17080_v5  ;;  %v7789_v7 = vmul.f32 %v10885_v55, %v17081_v63  ;;  %v17088_v36 = vld [vmem:[#allocation61_spill] sm:$0xff]  ;;  %v17090_v63 = vld [vmem:[#allocation68_spill] sm:$0xff] }
 0x878   :  { %v7534_v14 = vmax.f32 %v17083_v20, 0.0  ;;  %v7535_v55 = vmax.f32 %v7503_v26, 0.0  ;;  %v15533_v58 = vmul.f32 0.001953125, %v7024_v52  ;;  %v7602_v33 = vsub.f32 %v17084_v56, %v15384_v2  ;;  %v17085_v52 = vld [vmem:[#allocation55_spill] sm:$0xff]  ;;  %v17089_v5 = vld [vmem:[#allocation77_spill] sm:$0xff]  ;;  %v17093_v26 = vld [vmem:[#allocation76_spill] sm:$0xff] }
 0x879   :  { %v7950_v62 = vmul.f32 %v17002_v23, %v7786_v51  ;;  %v7951_v43 = vmul.f32 %v17003_v34, %v7787_v24  ;;  %v7952_v12 = vmul.f32 %v17004_v38, %v7788_v50  ;;  %v7953_v53 = vmul.f32 %v17005_v31, %v7789_v7  ;;  %v17095_v56 = vld [vmem:[#allocation81_spill] sm:$0xff] }
 0x87a   :  { %v7694_v21 = vadd.f32 1e-05, %v7534_v14  ;;  %v7603_v49 = vsub.f32 %v17085_v52, %v15384_v2  ;;  %v7695_v59 = vadd.f32 1e-05, %v7535_v55  ;;  %v7604_v19 = vsub.f32 %v17086_v9, %v15384_v2  ;;  %v17092_v14 = vld [vmem:[#allocation72_spill] sm:$0xff]  ;;  %v10887_v55 = vpop.eup %10886 }
 0x87b   :  { %v15536_v8 = vadd.f32 %v17007_v29, %v7950_v62  ;;  %v15539_v46 = vadd.f32 %v17008_v47, %v7951_v43  ;;  %v15542_v17 = vadd.f32 %v17009_v39, %v7952_v12  ;;  %v15545_v16 = vadd.f32 %v17010_v45, %v7953_v53  ;;  %v17094_v43 = vld [vmem:[#allocation80_spill] sm:$0xff]  ;;  %v7350_v53 = vpop.xlane.xlu0 %7349 }
 0x87c   :  { %10888 = vrsqrt.f32 %v7694_v21  ;;  %v7472_v35 = vmul.f32 %v15531_v3, %v15531_v3  ;;  %v7440_v32 = vmul.f32 0.001953125, %v7340_v10  ;;  %v7605_v6 = vsub.f32 %v17087_v0, %v15384_v2  ;;  %v7355_v21 = vpop.xlane.xlu1 %7354  ;;  %v17097_v0 = vld [vmem:[#allocation97_spill] sm:$0xff] }
 0x87d   :  { %v8206_v4 = vmax.f32 %v15491_v22, %v15536_v8  ;;  %v8221_v40 = vmax.f32 %v15493_v37, %v15539_v46  ;;  %v8236_v27 = vmax.f32 %v15495_v30, %v15542_v17  ;;  %v8251_v18 = vmax.f32 %v15497_v41, %v15545_v16 }
 0x87e   :  { %10890 = vrsqrt.f32 %v7695_v59  ;;  %v7606_v51 = vsub.f32 %v17088_v36, %v15386_v11  ;;  %v7473_v42 = vmul.f32 %v15533_v58, %v15533_v58  ;;  %v7441_v24 = vmul.f32 0.001953125, %v7345_v44 }
 0x87f   :  { %v7607_v50 = vsub.f32 %v17089_v5, %v15386_v11  ;;  %v7608_v7 = vsub.f32 %v17090_v63, %v15386_v11  ;;  %v7609_v20 = vsub.f32 %v17091_v48, %v15386_v11  ;;  %v7504_v10 = vsub.f32 %v7440_v32, %v7472_v35 }
 0x880   :  { %v7610_v2 = vsub.f32 %v17092_v14, %v15531_v3  ;;  %v7505_v44 = vsub.f32 %v7441_v24, %v7473_v42  ;;  %v15583_v9 = vmul.f32 0.001953125, %v7029_v61  ;;  %v15585_v11 = vmul.f32 0.001953125, %v7034_v60  ;;  %v17099_v42 = vld [vmem:[#allocation101_spill] sm:$0xff]  ;;  %v7044_v16 = vpop.xlane.xlu1 %7043 }
 0x881   :  { %v7536_v59 = vmax.f32 %v7504_v10, 0.0  ;;  %v17096_v35 = vsub.f32 %v17064_v28, %v15358_v13  ;;  %v17098_v36 = vsub.f32 %v17097_v0, %v15358_v13  ;;  %v17100_v24 = vsub.f32 %v17099_v42, %v15358_v13 }
 0x882   :  { %v7793_v48 = vmul.f32 %v10887_v55, %v7601_v15  ;;  %v7537_v52 = vmax.f32 %v7505_v44, 0.0  ;;  %v15596_v10 = vmul.f32 0.001953125, %v7350_v53  ;;  %v15598_v61 = vmul.f32 0.001953125, %v7355_v21 }
 0x883   :  { %v7790_v32 = vmul.f32 %v10887_v55, %v17096_v35  ;;  %v7791_v5 = vmul.f32 %v10887_v55, %v17098_v36  ;;  %v7792_v63 = vmul.f32 %v10887_v55, %v17100_v24  ;;  %v7696_v12 = vadd.f32 1e-05, %v7536_v59 }
 0x884   :  { %v7957_v0 = vmul.f32 %v17005_v31, %v7793_v48  ;;  %v7697_v62 = vadd.f32 1e-05, %v7537_v52  ;;  %v7474_v13 = vmul.f32 %v15583_v9, %v15583_v9  ;;  %v7475_v15 = vmul.f32 %v15585_v11, %v15585_v11 }
 0x885   :  { %v7954_v60 = vmul.f32 %v17002_v23, %v7790_v32  ;;  %v7955_v28 = vmul.f32 %v17003_v34, %v7791_v5  ;;  %v7956_v35 = vmul.f32 %v17004_v38, %v7792_v63  ;;  %10892 = vrsqrt.f32 %v7696_v12 }
 0x886   :  { %v10889_v36 = vpop.eup %10888  ;;  %v8121_v55 = vadd.f32 %v17010_v45, %v7957_v0  ;;  %10894 = vrsqrt.f32 %v7697_v62  ;;  %v7506_v17 = vsub.f32 %v15596_v10, %v7474_v13  ;;  %v7507_v41 = vsub.f32 %v15598_v61, %v7475_v15 }
 0x887   :  { %v8118_v44 = vadd.f32 %v17007_v29, %v7954_v60  ;;  %v8119_v53 = vadd.f32 %v17008_v47, %v7955_v28  ;;  %v8120_v21 = vadd.f32 %v17009_v39, %v7956_v35  ;;  %v7794_v32 = vmul.f32 %v10889_v36, %v7602_v33 }
 0x888   :  { %v10891_v59 = vpop.eup %10890  ;;  %v7795_v5 = vmul.f32 %v10889_v36, %v7603_v49  ;;  %v7796_v42 = vmul.f32 %v10889_v36, %v7604_v19  ;;  %v7797_v12 = vmul.f32 %v10889_v36, %v7605_v6  ;;  %v8311_v48 = vmax.f32 %v15505_v57, %v8121_v55  ;;  %v7039_v55 = vpop.xlane.xlu0 %7038 }
 0x889   :  { %v8266_v52 = vmax.f32 %v15499_v25, %v8118_v44  ;;  %v8281_v24 = vmax.f32 %v15501_v1, %v8119_v53  ;;  %v8296_v63 = vmax.f32 %v15503_v54, %v8120_v21  ;;  %v7958_v60 = vmul.f32 %v17002_v23, %v7794_v32 }
 0x88a   :  { %v7959_v28 = vmul.f32 %v17003_v34, %v7795_v5  ;;  %v7960_v35 = vmul.f32 %v17004_v38, %v7796_v42  ;;  %v7961_v0 = vmul.f32 %v17005_v31, %v7797_v12  ;;  %v7798_v33 = vmul.f32 %v10891_v59, %v7606_v51  ;;  %v17105_v12 = vld [vmem:[#allocation79_spill] sm:$0xff] }
 0x88b   :  { %v7799_v49 = vmul.f32 %v10891_v59, %v7607_v50  ;;  %v7800_v19 = vmul.f32 %v10891_v59, %v7608_v7  ;;  %v7801_v6 = vmul.f32 %v10891_v59, %v7609_v20  ;;  %v8122_v25 = vadd.f32 %v17007_v29, %v7958_v60 }
 0x88c   :  { %v8123_v1 = vadd.f32 %v17008_v47, %v7959_v28  ;;  %v8124_v54 = vadd.f32 %v17009_v39, %v7960_v35  ;;  %v8125_v57 = vadd.f32 %v17010_v45, %v7961_v0  ;;  %v7962_v36 = vmul.f32 %v17002_v23, %v7798_v33  ;;  %v7360_v28 = vpop.xlane.xlu0 %7359 }
 0x88d   :  { %v7963_v44 = vmul.f32 %v17003_v34, %v7799_v49  ;;  %v7964_v53 = vmul.f32 %v17004_v38, %v7800_v19  ;;  %v7965_v21 = vmul.f32 %v17005_v31, %v7801_v6  ;;  %v15631_v51 = vmax.f32 %v8206_v4, %v8122_v25 }
 0x88e   :  { %v15636_v50 = vmax.f32 %v8221_v40, %v8123_v1  ;;  %v15641_v7 = vmax.f32 %v8236_v27, %v8124_v54  ;;  %v15646_v20 = vmax.f32 %v8251_v18, %v8125_v57  ;;  %v8126_v22 = vadd.f32 %v17007_v29, %v7962_v36  ;;  %v17101_v40 = vld [vmem:[#allocation78_spill] sm:$0xff]  ;;  %v7365_v1 = vpop.xlane.xlu1 %7364  ;;  %v17108_v54 = vld [vmem:[#allocation87_spill] sm:$0xff]  ;;  %v17109_v57 = vld [vmem:[#allocation88_spill] sm:$0xff] }
 0x88f   :  { %v8127_v8 = vadd.f32 %v17008_v47, %v7963_v44  ;;  %v8128_v4 = vadd.f32 %v17009_v39, %v7964_v53  ;;  %v8129_v37 = vadd.f32 %v17010_v45, %v7965_v21  ;;  %v10893_v46 = vpop.eup %10892  ;;  %v7614_v30 = vsub.f32 %v17101_v40, %v15533_v58 }
 0x890   :  { %v15656_v27 = vmax.f32 %v8266_v52, %v8126_v22  ;;  %v7802_v5 = vmul.f32 %v10893_v46, %v7610_v2  ;;  %v17102_v62 = vsub.f32 %v17093_v26, %v15531_v3  ;;  %v17103_v10 = vsub.f32 %v17094_v43, %v15531_v3  ;;  %v10895_v40 = vpop.eup %10894 }
 0x891   :  { %v15658_v18 = vmax.f32 %v8281_v24, %v8127_v8  ;;  %v15660_v59 = vmax.f32 %v8296_v63, %v8128_v4  ;;  %v15662_v32 = vmax.f32 %v8311_v48, %v8129_v37  ;;  %v17104_v13 = vsub.f32 %v17095_v56, %v15531_v3  ;;  %v17106_v24 = vld [vmem:[#allocation82_spill] sm:$0xff]  ;;  %v17107_v3 = vld [vmem:[#allocation84_spill] sm:$0xff]  ;;  %v17110_v4 = vld [vmem:[#allocation137_spill] sm:$0xff] }
 0x892   :  { %v7803_v42 = vmul.f32 %v10893_v46, %v17102_v62  ;;  %v7804_v61 = vmul.f32 %v10893_v46, %v17103_v10  ;;  %v7615_v52 = vsub.f32 %v17105_v12, %v15533_v58  ;;  %v7616_v63 = vsub.f32 %v17106_v24, %v15533_v58  ;;  %v7049_v10 = vpop.xlane.xlu0 %7048 }
 0x893   :  { %v7805_v15 = vmul.f32 %v10893_v46, %v17104_v13  ;;  %v7538_v14 = vmax.f32 %v7506_v17, 0.0  ;;  %v7539_v2 = vmax.f32 %v7507_v41, 0.0  ;;  %v7966_v48 = vmul.f32 %v17002_v23, %v7802_v5  ;;  %v17111_v17 = vld [vmem:[#allocation75_spill] sm:$0xff] }
 0x894   :  { %v7967_v26 = vmul.f32 %v17003_v34, %v7803_v42  ;;  %v7968_v60 = vmul.f32 %v17004_v38, %v7804_v61  ;;  %v7617_v56 = vsub.f32 %v17107_v3, %v15533_v58  ;;  %v15686_v33 = vmul.f32 0.001953125, %v7044_v16  ;;  %v17112_v16 = vld [vmem:[#allocation91_spill] sm:$0xff] }
 0x895   :  { %v7969_v43 = vmul.f32 %v17005_v31, %v7805_v15  ;;  %v7698_v35 = vadd.f32 1e-05, %v7538_v14  ;;  %v7699_v0 = vadd.f32 1e-05, %v7539_v2  ;;  %v15689_v49 = vadd.f32 %v17007_v29, %v7966_v48  ;;  %v9795_v61 = vld [vmem:[#allocation6 + $0x40] sm:$0xff]  }
 0x896   :  { %v15692_v19 = vadd.f32 %v17008_v47, %v7967_v26  ;;  %v15695_v6 = vadd.f32 %v17009_v39, %v7968_v60  ;;  %v7618_v58 = vsub.f32 %v17108_v54, %v15583_v9  ;;  %v7619_v36 = vsub.f32 %v17109_v57, %v15583_v9  ;;  %v9796_v13 = vld [vmem:[#allocation6 + $0xc0] sm:$0xff]   ;;  %v9799_v26 = vld [vmem:[#allocation6 + $0x48] sm:$0xff]   ;;  %v17113_v60 = vld [vmem:[#allocation94_spill] sm:$0xff]  ;;  %9561 = vmatprep.subr.bf16.mxu0 %v9795_v61 }
 0x897   :  { %v15698_v25 = vadd.f32 %v17010_v45, %v7969_v43  ;;  %10896 = vrsqrt.f32 %v7698_v35  ;;  %v15704_v44 = vmul.f32 0.001953125, %v7039_v55  ;;  %v8208_v53 = vmax.f32 %v15631_v51, %v15689_v49  ;;  %v9797_v2 = vld [vmem:[#allocation6] sm:$0xff]   ;;  %9583 = vmatprep.subr.bf16.mxu1 %v9796_v13  ;;  %v9806_v54 = vld [vmem:[#allocation6 + $0x90] sm:$0xff]  }
 0x898   :  { %v8223_v21 = vmax.f32 %v15636_v50, %v15692_v19  ;;  %v8238_v22 = vmax.f32 %v15641_v7, %v15695_v6  ;;  %v7620_v37 = vsub.f32 %v17110_v4, %v15583_v9  ;;  %10898 = vrsqrt.f32 %v7699_v0  ;;  %v9798_v48 = vld [vmem:[#allocation6 + $0x80] sm:$0xff]   ;;  %v7054_v4 = vpop.xlane.xlu1 %7053  ;;  %9562 = vmatpush3.bf16.msra.mxu0 %v9797_v2 }
 0x899   :  { %v8253_v8 = vmax.f32 %v15646_v20, %v15698_v25  ;;  %v7476_v55 = vmul.f32 %v15704_v44, %v15704_v44  ;;  %v7444_v46 = vmul.f32 0.001953125, %v7360_v28  ;;  %v7621_v41 = vsub.f32 %v17111_v17, %v15583_v9  ;;  %v17114_v28 = vld [vmem:[#allocation136_spill] sm:$0xff]  ;;  %9584 = vmatpush3.bf16.msra.mxu1 %v9798_v48  ;;  %9563 = vmatprep.subr.bf16.mxu0 %v9799_v26 }
 0x89a   :  { %v7622_v5 = vsub.f32 %v17112_v16, %v15585_v11  ;;  %v7477_v62 = vmul.f32 %v15686_v33, %v15686_v33  ;;  %v7445_v42 = vmul.f32 0.001953125, %v7365_v1  ;;  %v7806_v15 = vmul.f32 %v10895_v40, %v7614_v30  ;;  %v9800_v1 = vld [vmem:[#allocation6 + $0xc8] sm:$0xff]   ;;  %v9811_v51 = vld [vmem:[#allocation6 + $0x60] sm:$0xff]  }
 0x89b   :  { %v7807_v12 = vmul.f32 %v10895_v40, %v7615_v52  ;;  %v7808_v24 = vmul.f32 %v10895_v40, %v7616_v63  ;;  %v7809_v14 = vmul.f32 %v10895_v40, %v7617_v56  ;;  %v7623_v43 = vsub.f32 %v17113_v60, %v15585_v11  ;;  %v17115_v56 = vld [vmem:[#allocation107_spill] sm:$0xff]  ;;  %v17116_v60 = vld [vmem:[#allocation109_spill] sm:$0xff]  ;;  %9585 = vmatprep.subr.bf16.mxu1 %v9800_v1 }
 0x89c   :  { %v7624_v3 = vsub.f32 %v17114_v28, %v15585_v11  ;;  %v7508_v35 = vsub.f32 %v7444_v46, %v7476_v55  ;;  %v7509_v0 = vsub.f32 %v7445_v42, %v7477_v62  ;;  %v7970_v17 = vmul.f32 %v17002_v23, %v7806_v15  ;;  %v9801_v62 = vld [vmem:[#allocation6 + $0x8] sm:$0xff]   ;;  %v9812_v49 = vld [vmem:[#allocation6 + $0xe0] sm:$0xff]  }
 0x89d   :  { %v7971_v30 = vmul.f32 %v17003_v34, %v7807_v12  ;;  %v7972_v52 = vmul.f32 %v17004_v38, %v7808_v24  ;;  %v7973_v63 = vmul.f32 %v17005_v31, %v7809_v14  ;;  %v7625_v40 = vsub.f32 %v17115_v56, %v15585_v11  ;;  %v9802_v12 = vld [vmem:[#allocation6 + $0x88] sm:$0xff]   ;;  %v9803_v24 = vld [vmem:[#allocation6 + $0x50] sm:$0xff]   ;;  %9564 = vmatpush3.bf16.msra.mxu0 %v9801_v62  ;;  %v9813_v25 = vld [vmem:[#allocation6 + $0x20] sm:$0xff]  }
 0x89e   :  { %v7626_v28 = vsub.f32 %v17116_v60, %v15704_v44  ;;  %v7540_v55 = vmax.f32 %v7508_v35, 0.0  ;;  %v7541_v46 = vmax.f32 %v7509_v0, 0.0  ;;  %v15737_v42 = vadd.f32 %v17007_v29, %v7970_v17  ;;  %v17117_v14 = vld [vmem:[#allocation110_spill] sm:$0xff]  ;;  %v7370_v17 = vpop.xlane.xlu0 %7369  ;;  %9586 = vmatpush3.bf16.msra.mxu1 %v9802_v12  ;;  %9565 = vmatprep.subr.bf16.mxu0 %v9803_v24  ;;  %v9818_v60 = vld [vmem:[#allocation6 + $0xa8] sm:$0xff]  }
 0x89f   :  { %v15740_v61 = vadd.f32 %v17008_v47, %v7971_v30  ;;  %v15743_v15 = vadd.f32 %v17009_v39, %v7972_v52  ;;  %v15746_v13 = vadd.f32 %v17010_v45, %v7973_v63  ;;  %v15750_v35 = vmul.f32 0.001953125, %v7049_v10  ;;  %v9804_v30 = vld [vmem:[#allocation6 + $0xd0] sm:$0xff]  }
 0x8a0   :  { %v7700_v48 = vadd.f32 1e-05, %v7540_v55  ;;  %v15752_v0 = vmul.f32 0.001953125, %v7054_v4  ;;  %v8268_v52 = vmax.f32 %v15656_v27, %v15737_v42  ;;  %v7375_v27 = vpop.xlane.xlu1 %7374  ;;  %v9805_v42 = vld [vmem:[#allocation6 + $0x10] sm:$0xff]   ;;  %9587 = vmatprep.subr.bf16.mxu1 %v9804_v30 }
 0x8a1   :  { %v10897_v56 = vpop.eup %10896  ;;  %v8283_v26 = vmax.f32 %v15658_v18, %v15740_v61  ;;  %v8298_v63 = vmax.f32 %v15660_v59, %v15743_v15  ;;  %v8313_v55 = vmax.f32 %v15662_v32, %v15746_v13  ;;  %v7701_v61 = vadd.f32 1e-05, %v7541_v46  ;;  %v9808_v13 = vld [vmem:[#allocation6 + $0xd8] sm:$0xff]   ;;  %9566 = vmatpush3.bf16.msra.mxu0 %v9805_v42 }
 0x8a2   :  { %v7810_v10 = vmul.f32 %v10897_v56, %v7618_v58  ;;  %v7811_v4 = vmul.f32 %v10897_v56, %v7619_v36  ;;  %v7812_v1 = vmul.f32 %v10897_v56, %v7620_v37  ;;  %v7813_v2 = vmul.f32 %v10897_v56, %v7621_v41  ;;  %v10899_v18 = vpop.eup %10898  ;;  %v9807_v37 = vld [vmem:[#allocation6 + $0x58] sm:$0xff]   ;;  %9588 = vmatpush3.bf16.msra.mxu1 %v9806_v54  ;;  %v9814_v54 = vld [vmem:[#allocation6 + $0xa0] sm:$0xff]  }
 0x8a3   :  { %10900 = vrsqrt.f32 %v7700_v48  ;;  %v7478_v59 = vmul.f32 %v15750_v35, %v15750_v35  ;;  %v7446_v32 = vmul.f32 0.001953125, %v7370_v17  ;;  %v7814_v41 = vmul.f32 %v10899_v18, %v7622_v5  ;;  %v15785_v5 = vpop.xlane.xlu0 %7058  ;;  %9567 = vmatprep.subr.bf16.mxu0 %v9807_v37  ;;  %9589 = vmatprep.subr.bf16.mxu1 %v9808_v13 }
 0x8a4   :  { %v7974_v58 = vmul.f32 %v17002_v23, %v7810_v10  ;;  %v7975_v9 = vmul.f32 %v17003_v34, %v7811_v4  ;;  %v7976_v57 = vmul.f32 %v17004_v38, %v7812_v1  ;;  %v7977_v36 = vmul.f32 %v17005_v31, %v7813_v2  ;;  %v9809_v2 = vld [vmem:[#allocation6 + $0x18] sm:$0xff]   ;;  %v7064_v1 = vpop.xlane.xlu1 %7063 }
 0x8a5   :  { %v7815_v46 = vmul.f32 %v10899_v18, %v7623_v43  ;;  %v7816_v62 = vmul.f32 %v10899_v18, %v7624_v3  ;;  %v7817_v15 = vmul.f32 %v10899_v18, %v7625_v40  ;;  %v7978_v30 = vmul.f32 %v17002_v23, %v7814_v41  ;;  %v9810_v43 = vld [vmem:[#allocation6 + $0x98] sm:$0xff]   ;;  %9568 = vmatpush3.bf16.msra.mxu0 %v9809_v2  ;;  %v17122_v41 = vld [vmem:[#allocation117_spill] sm:$0xff] }
 0x8a6   :  { %v8138_v12 = vadd.f32 %v17007_v29, %v7974_v58  ;;  %v8139_v24 = vadd.f32 %v17008_v47, %v7975_v9  ;;  %v8140_v48 = vadd.f32 %v17009_v39, %v7976_v57  ;;  %v8141_v17 = vadd.f32 %v17010_v45, %v7977_v36  ;;  %9590 = vmatpush3.bf16.msra.mxu1 %v9810_v43  ;;  %v9815_v58 = vld [vmem:[#allocation6 + $0x68] sm:$0xff]  }
 0x8a7   :  { %v7979_v56 = vmul.f32 %v17003_v34, %v7815_v46  ;;  %v7980_v11 = vmul.f32 %v17004_v38, %v7816_v62  ;;  %v7981_v16 = vmul.f32 %v17005_v31, %v7817_v15  ;;  %10902 = vrsqrt.f32 %v7701_v61  ;;  %v17118_v61 = vld [vmem:[#allocation114_spill] sm:$0xff]  ;;  %9569 = vmatprep.subr.bf16.mxu0 %v9811_v51  ;;  %9591 = vmatprep.subr.bf16.mxu1 %v9812_v49  ;;  %v7380_v62 = vpop.xlane.xlu0 %7379  ;;  %v9817_v2 = vld [vmem:[#allocation6 + $0x28] sm:$0xff]  }
 0x8a8   :  { %v15790_v3 = vmax.f32 %v8208_v53, %v8138_v12  ;;  %v15795_v40 = vmax.f32 %v8223_v21, %v8139_v24  ;;  %v15800_v10 = vmax.f32 %v8238_v22, %v8140_v48  ;;  %v15805_v4 = vmax.f32 %v8253_v8, %v8141_v17  ;;  %v7385_v17 = vpop.xlane.xlu1 %7384 }
 0x8a9   :  { %v8142_v53 = vadd.f32 %v17007_v29, %v7978_v30  ;;  %v8143_v50 = vadd.f32 %v17008_v47, %v7979_v56  ;;  %v8144_v19 = vadd.f32 %v17009_v39, %v7980_v11  ;;  %v8145_v21 = vadd.f32 %v17010_v45, %v7981_v16  ;;  %9570 = vmatpush3.bf16.msra.mxu0 %v9813_v25  ;;  %v17124_v30 = vld [vmem:[#allocation128_spill] sm:$0xff]  ;;  %v17125_v11 = vld [vmem:[#allocation73_spill] sm:$0xff] }
 0x8aa   :  { %v7510_v7 = vsub.f32 %v7446_v32, %v7478_v59  ;;  %v7479_v20 = vmul.f32 %v15752_v0, %v15752_v0  ;;  %v7447_v6 = vmul.f32 0.001953125, %v7375_v27  ;;  %v7628_v59 = vsub.f32 %v17118_v61, %v15704_v44  ;;  %v17119_v32 = vld [vmem:[#allocation116_spill] sm:$0xff]  ;;  %9592 = vmatpush3.bf16.msra.mxu1 %v9814_v54  ;;  %9571 = vmatprep.subr.bf16.mxu0 %v9815_v58  ;;  %v9821_v58 = vld [vmem:[#allocation6 + $0x30] sm:$0xff]  }
 0x8ab   :  { %v15813_v22 = vmax.f32 %v8268_v52, %v8142_v53  ;;  %v15815_v8 = vmax.f32 %v8283_v26, %v8143_v50  ;;  %v15817_v42 = vmax.f32 %v8298_v63, %v8144_v19  ;;  %v15819_v18 = vmax.f32 %v8313_v55, %v8145_v21  ;;  %v9816_v52 = vld [vmem:[#allocation6 + $0xe8] sm:$0xff]   ;;  %v17120_v63 = vld [vmem:[#allocation103_spill] sm:$0xff]  ;;  %v9820_v50 = vld [vmem:[#allocation6 + $0xf0] sm:$0xff]  }
 0x8ac   :  { %v7629_v9 = vsub.f32 %v17119_v32, %v15704_v44  ;;  %v7542_v27 = vmax.f32 %v7510_v7, 0.0  ;;  %v7511_v57 = vsub.f32 %v7447_v6, %v7479_v20  ;;  %v7630_v36 = vsub.f32 %v17120_v63, %v15686_v33  ;;  %v17121_v55 = vld [vmem:[#allocation115_spill] sm:$0xff]  ;;  %9593 = vmatprep.subr.bf16.mxu1 %v9816_v52  ;;  %v7069_v32 = vpop.xlane.xlu0 %7068  ;;  %v7074_v63 = vpop.xlane.xlu1 %7073 }
 0x8ad   :  { %v10901_v26 = vpop.eup %10900  ;;  %v7631_v37 = vsub.f32 %v17121_v55, %v15686_v33  ;;  %v7632_v46 = vsub.f32 %v17122_v41, %v15686_v33  ;;  %v17123_v13 = vsub.f32 %v17117_v14, %v15704_v44  ;;  %v7633_v56 = vsub.f32 %v17124_v30, %v15686_v33  ;;  %v17126_v33 = vld [vmem:[#allocation144_spill] sm:$0xff]  ;;  %9572 = vmatpush3.bf16.msra.mxu0 %v9817_v2  ;;  %v9823_v55 = vld [vmem:[#allocation6 + $0x78] sm:$0xff]  }
 0x8ae   :  { %v7818_v15 = vmul.f32 %v10901_v26, %v7626_v28  ;;  %v7820_v24 = vmul.f32 %v10901_v26, %v7628_v59  ;;  %v7821_v48 = vmul.f32 %v10901_v26, %v7629_v9  ;;  %v7634_v16 = vsub.f32 %v17125_v11, %v15750_v35  ;;  %v9819_v28 = vld [vmem:[#allocation6 + $0x70] sm:$0xff]   ;;  %9594 = vmatpush3.bf16.msra.mxu1 %v9818_v60  ;;  %v9826_v60 = vld [vmem:[#allocation6 + $0xb8] sm:$0xff]  }
 0x8af   :  { %v7819_v12 = vmul.f32 %v10901_v26, %v17123_v13  ;;  %v7702_v43 = vadd.f32 1e-05, %v7542_v27  ;;  %v7543_v51 = vmax.f32 %v7511_v57, 0.0  ;;  %v7635_v19 = vsub.f32 %v17126_v33, %v15750_v35  ;;  %9573 = vmatprep.subr.bf16.mxu0 %v9819_v28  ;;  %v9822_v9 = vld [vmem:[#allocation6 + $0xb0] sm:$0xff]   ;;  %9595 = vmatprep.subr.bf16.mxu1 %v9820_v50 }
 0x8b0   :  { %v7982_v44 = vmul.f32 %v17002_v23, %v7818_v15  ;;  %v7984_v49 = vmul.f32 %v17004_v38, %v7820_v24  ;;  %v7985_v53 = vmul.f32 %v17005_v31, %v7821_v48  ;;  %v15847_v7 = vmul.f32 0.001953125, %v7064_v1  ;;  %v17127_v24 = vld [vmem:[#allocation145_spill] sm:$0xff] }
 0x8b1   :  { %v7983_v14 = vmul.f32 %v17003_v34, %v7819_v12  ;;  %10904 = vrsqrt.f32 %v7702_v43  ;;  %v7703_v21 = vadd.f32 1e-05, %v7543_v51  ;;  %v15862_v61 = vmul.f32 0.001953125, %v15785_v5  ;;  %v10903_v27 = vpop.eup %10902  ;;  %v9824_v12 = vld [vmem:[#allocation6 + $0xf8] sm:$0xff]   ;;  %9574 = vmatpush3.bf16.msra.mxu0 %v9821_v58  ;;  %v17129_v28 = vld [vmem:[#allocation125_spill] sm:$0xff] }
 0x8b2   :  { %v15850_v20 = vadd.f32 %v17007_v29, %v7982_v44  ;;  %v15856_v25 = vadd.f32 %v17009_v39, %v7984_v49  ;;  %v15859_v54 = vadd.f32 %v17010_v45, %v7985_v53  ;;  %v7448_v1 = vmul.f32 0.001953125, %v7380_v62  ;;  %v9825_v51 = vld [vmem:[#allocation6 + $0x38] sm:$0xff]   ;;  %9596 = vmatpush3.bf16.msra.mxu1 %v9822_v9  ;;  %9575 = vmatprep.subr.bf16.mxu0 %v9823_v55 }
 0x8b3   :  { %v15853_v6 = vadd.f32 %v17008_v47, %v7983_v14  ;;  %10906 = vrsqrt.f32 %v7703_v21  ;;  %v7449_v59 = vmul.f32 0.001953125, %v7385_v17  ;;  %v7822_v41 = vmul.f32 %v10903_v27, %v7630_v36  ;;  %v17128_v17 = vld [vmem:[#allocation146_spill] sm:$0xff]  ;;  %v17130_v14 = vld [vmem:[#allocation112_spill] sm:$0xff]  ;;  %9597 = vmatprep.subr.bf16.mxu1 %v9824_v12 }
 0x8b4   :  { %v8210_v57 = vmax.f32 %v15790_v3, %v15850_v20  ;;  %v8240_v26 = vmax.f32 %v15800_v10, %v15856_v25  ;;  %v8255_v5 = vmax.f32 %v15805_v4, %v15859_v54  ;;  %v7823_v62 = vmul.f32 %v10903_v27, %v7631_v37  ;;  %v17131_v9 = vld [vmem:[#allocation118_spill] sm:$0xff] }
 0x8b5   :  { %v8225_v52 = vmax.f32 %v15795_v40, %v15853_v6  ;;  %v7824_v15 = vmul.f32 %v10903_v27, %v7632_v46  ;;  %v7825_v13 = vmul.f32 %v10903_v27, %v7633_v56  ;;  %v7636_v48 = vsub.f32 %v17127_v24, %v15750_v35  ;;  %9576 = vmatpush3.bf16.msra.mxu0 %v9825_v51 }
 0x8b6   :  { %v7637_v2 = vsub.f32 %v17128_v17, %v15750_v35  ;;  %v7480_v30 = vmul.f32 %v15862_v61, %v15862_v61  ;;  %v7481_v43 = vmul.f32 %v15847_v7, %v15847_v7  ;;  %v7986_v36 = vmul.f32 %v17002_v23, %v7822_v41  ;;  %9598 = vmatpush3.bf16.msra.mxu1 %v9826_v60 }
 0x8b7   :  { %v7987_v37 = vmul.f32 %v17003_v34, %v7823_v62  ;;  %v7988_v46 = vmul.f32 %v17004_v38, %v7824_v15  ;;  %v7989_v56 = vmul.f32 %v17005_v31, %v7825_v13  ;;  %v7638_v44 = vsub.f32 %v17129_v28, %v15752_v0  ;;  %v7390_v62 = vpop.xlane.xlu0 %7389  ;;  %v17132_v13 = vld [vmem:[#allocation56_spill] sm:$0xff] }
 0x8b8   :  { %v7639_v49 = vsub.f32 %v17130_v14, %v15752_v0  ;;  %v7512_v53 = vsub.f32 %v7448_v1, %v7480_v30  ;;  %v7513_v50 = vsub.f32 %v7449_v59, %v7481_v43  ;;  %v8150_v21 = vadd.f32 %v17007_v29, %v7986_v36  ;;  %v7395_v59 = vpop.xlane.xlu1 %7394 }
 0x8b9   :  { %v8151_v58 = vadd.f32 %v17008_v47, %v7987_v37  ;;  %v8152_v27 = vadd.f32 %v17009_v39, %v7988_v46  ;;  %v8153_v41 = vadd.f32 %v17010_v45, %v7989_v56  ;;  %v7640_v15 = vsub.f32 %v17131_v9, %v15752_v0 }
 0x8ba   :  { %v7641_v24 = vsub.f32 %v17132_v13, %v15752_v0  ;;  %v7544_v17 = vmax.f32 %v7512_v53, 0.0  ;;  %v7545_v1 = vmax.f32 %v7513_v50, 0.0  ;;  %v8270_v30 = vmax.f32 %v15813_v22, %v8150_v21 }
 0x8bb   :  { %v10905_v55 = vpop.eup %10904  ;;  %v8285_v43 = vmax.f32 %v15815_v8, %v8151_v58  ;;  %v8300_v36 = vmax.f32 %v15817_v42, %v8152_v27  ;;  %v8315_v37 = vmax.f32 %v15819_v18, %v8153_v41  ;;  %v17133_v56 = vmov 0.0   ;;  %v7079_v60 = vpop.xlane.xlu0 %7078 }
 0x8bc   :  { %v7826_v12 = vmul.f32 %v10905_v55, %v7634_v16  ;;  %v7827_v0 = vmul.f32 %v10905_v55, %v7635_v19  ;;  %v7828_v46 = vmul.f32 %v10905_v55, %v7636_v48  ;;  %v7829_v51 = vmul.f32 %v10905_v55, %v7637_v2  ;;  %9633 = vmatprep.subr.bf16.mxu0 %v17133_v56  ;;  %v7084_v21 = vpop.xlane.xlu1 %7083  ;;  %v17134_v55 = vld [vmem:[#allocation123_spill] sm:$0xff] }
 0x8bd   :  { %v10907_v22 = vpop.eup %10906  ;;  %v7704_v28 = vadd.f32 1e-05, %v7544_v17  ;;  %v7705_v8 = vadd.f32 1e-05, %v7545_v1  ;;  %v15907_v14 = vmul.f32 0.001953125, %v7069_v32  ;;  %v15909_v42 = vmul.f32 0.001953125, %v7074_v63  ;;  %9653 = vmatprep.subr.bf16.mxu1 %v17133_v56 }
 0x8be   :  { %v7990_v18 = vmul.f32 %v17002_v23, %v7826_v12  ;;  %v7991_v11 = vmul.f32 %v17003_v34, %v7827_v0  ;;  %v7992_v35 = vmul.f32 %v17004_v38, %v7828_v46  ;;  %v7993_v16 = vmul.f32 %v17005_v31, %v7829_v51  ;;  %v17138_v51 = vld [vmem:[#allocation121_spill] sm:$0xff] }
 0x8bf   :  { %v7830_v33 = vmul.f32 %v10907_v22, %v7638_v44  ;;  %v7831_v19 = vmul.f32 %v10907_v22, %v7639_v49  ;;  %v7832_v48 = vmul.f32 %v10907_v22, %v7640_v15  ;;  %v7833_v2 = vmul.f32 %v10907_v22, %v7641_v24 }
 0x8c0   :  { %v8154_v32 = vadd.f32 %v17007_v29, %v7990_v18  ;;  %v8155_v63 = vadd.f32 %v17008_v47, %v7991_v11  ;;  %v8156_v53 = vadd.f32 %v17009_v39, %v7992_v35  ;;  %v8157_v50 = vadd.f32 %v17010_v45, %v7993_v16  ;;  %v7405_v1 = vpop.xlane.xlu1 %7404 }
 0x8c1   :  { %v7994_v58 = vmul.f32 %v17002_v23, %v7830_v33  ;;  %v7995_v27 = vmul.f32 %v17003_v34, %v7831_v19  ;;  %v7996_v41 = vmul.f32 %v17004_v38, %v7832_v48  ;;  %v7997_v44 = vmul.f32 %v17005_v31, %v7833_v2  ;;  %v17140_v33 = vld [vmem:[#allocation135_spill] sm:$0xff] }
 0x8c2   :  { %v15927_v49 = vmax.f32 %v8210_v57, %v8154_v32  ;;  %v15932_v9 = vmax.f32 %v8225_v52, %v8155_v63  ;;  %v15937_v15 = vmax.f32 %v8240_v26, %v8156_v53  ;;  %v15942_v13 = vmax.f32 %v8255_v5, %v8157_v50  ;;  %v7400_v52 = vpop.xlane.xlu0 %7399  ;;  %v17141_v48 = vld [vmem:[#allocation147_spill] sm:$0xff]  ;;  %v17142_v63 = vld [vmem:[#allocation126_spill] sm:$0xff]  ;;  %v17143_v50 = vld [vmem:[#allocation129_spill] sm:$0xff] }
 0x8c3   :  { %v8158_v24 = vadd.f32 %v17007_v29, %v7994_v58  ;;  %v8159_v3 = vadd.f32 %v17008_v47, %v7995_v27  ;;  %v8160_v20 = vadd.f32 %v17009_v39, %v7996_v41  ;;  %v8161_v40 = vadd.f32 %v17010_v45, %v7997_v44  ;;  %v17144_v41 = vld [vmem:[#allocation133_spill] sm:$0xff] }
 0x8c4   :  { %10908 = vrsqrt.f32 %v7704_v28  ;;  %v7482_v6 = vmul.f32 %v15907_v14, %v15907_v14  ;;  %v7450_v10 = vmul.f32 0.001953125, %v7390_v62  ;;  %v7483_v5 = vmul.f32 %v15909_v42, %v15909_v42  ;;  %v17135_v62 = vld [vmem:[#allocation119_spill] sm:$0xff] }
 0x8c5   :  { %v15950_v25 = vmax.f32 %v8270_v30, %v8158_v24  ;;  %v15952_v57 = vmax.f32 %v8285_v43, %v8159_v3  ;;  %v15954_v4 = vmax.f32 %v8300_v36, %v8160_v20  ;;  %v15956_v54 = vmax.f32 %v8315_v37, %v8161_v40  ;;  %v17136_v43 = vld [vmem:[#allocation122_spill] sm:$0xff]  ;;  %v17137_v37 = vld [vmem:[#allocation124_spill] sm:$0xff] }
 0x8c6   :  { %10910 = vrsqrt.f32 %v7705_v8  ;;  %v7514_v26 = vsub.f32 %v7450_v10, %v7482_v6  ;;  %v7451_v17 = vmul.f32 0.001953125, %v7395_v59  ;;  %v7642_v12 = vsub.f32 %v17134_v55, %v15862_v61  ;;  %v17139_v8 = vld [vmem:[#allocation102_spill] sm:$0xff]  ;;  %v7089_v27 = vpop.xlane.xlu0 %7088  ;;  %v17146_v20 = vld [vmem:[#allocation140_spill] sm:$0xff]  ;;  %v17147_v6 = vld [vmem:[#allocation131_spill] sm:$0xff] }
 0x8c7   :  { %v7643_v30 = vsub.f32 %v17135_v62, %v15862_v61  ;;  %v7644_v36 = vsub.f32 %v17136_v43, %v15862_v61  ;;  %v15966_v0 = vmul.f32 0.001953125, %v7084_v21  ;;  %v7645_v46 = vsub.f32 %v17137_v37, %v15862_v61  ;;  %v17149_v62 = vld [vmem:[#allocation134_spill] sm:$0xff] }
 0x8c8   :  { %v7646_v22 = vsub.f32 %v17138_v51, %v15847_v7  ;;  %v7546_v28 = vmax.f32 %v7514_v26, 0.0  ;;  %v7515_v59 = vsub.f32 %v7451_v17, %v7483_v5  ;;  %v7647_v18 = vsub.f32 %v17139_v8, %v15847_v7  ;;  %v7094_v5 = vpop.xlane.xlu1 %7093 }
 0x8c9   :  { %v15974_v11 = vmul.f32 0.001953125, %v7079_v60  ;;  %v7452_v35 = vmul.f32 0.001953125, %v7400_v52  ;;  %v7453_v16 = vmul.f32 0.001953125, %v7405_v1  ;;  %v7648_v19 = vsub.f32 %v17140_v33, %v15847_v7  ;;  %v17148_v1 = vld [vmem:[#allocation127_spill] sm:$0xff] }
 0x8ca   :  { %v7649_v2 = vsub.f32 %v17141_v48, %v15847_v7  ;;  %v7706_v32 = vadd.f32 1e-05, %v7546_v28  ;;  %v7547_v61 = vmax.f32 %v7515_v59, 0.0  ;;  %v7650_v53 = vsub.f32 %v17142_v63, %v15907_v14  ;;  %v17145_v7 = vld [vmem:[#allocation130_spill] sm:$0xff] }
 0x8cb   :  { %v7651_v21 = vsub.f32 %v17143_v50, %v15907_v14  ;;  %v7484_v60 = vmul.f32 %v15974_v11, %v15974_v11  ;;  %v7485_v58 = vmul.f32 %v15966_v0, %v15966_v0  ;;  %v7652_v44 = vsub.f32 %v17144_v41, %v15907_v14 }
 0x8cc   :  { %v7653_v24 = vsub.f32 %v17145_v7, %v15907_v14  ;;  %10912 = vrsqrt.f32 %v7706_v32  ;;  %v7707_v3 = vadd.f32 1e-05, %v7547_v61  ;;  %v7654_v40 = vsub.f32 %v17146_v20, %v15909_v42 }
 0x8cd   :  { %v7655_v10 = vsub.f32 %v17147_v6, %v15909_v42  ;;  %v7516_v52 = vsub.f32 %v7452_v35, %v7484_v60  ;;  %v7517_v26 = vsub.f32 %v7453_v16, %v7485_v58  ;;  %v7656_v55 = vsub.f32 %v17148_v1, %v15909_v42 }
 0x8ce   :  { %v10909_v17 = vpop.eup %10908  ;;  %v7657_v43 = vsub.f32 %v17149_v62, %v15909_v42  ;;  %10914 = vrsqrt.f32 %v7707_v3  ;;  %v16000_v14 = vmul.f32 0.001953125, %v7089_v27  ;;  %v16006_v16 = vmul.f32 0.001953125, %v7094_v5 }
 0x8cf   :  { %v7834_v37 = vmul.f32 %v10909_v17, %v7642_v12  ;;  %v7835_v51 = vmul.f32 %v10909_v17, %v7643_v30  ;;  %v7836_v28 = vmul.f32 %v10909_v17, %v7644_v36  ;;  %v7837_v59 = vmul.f32 %v10909_v17, %v7645_v46 }
 0x8d0   :  { %v10911_v8 = vpop.eup %10910  ;;  %v16002_v33 = vmax.f32 %v7516_v52, 0.0  ;;  %v16004_v35 = vmax.f32 %v7517_v26, 0.0  ;;  %v16010_v48 = vmul.f32 %v16000_v14, %v16000_v14 }
 0x8d1   :  { %v7998_v42 = vmul.f32 %v17002_v23, %v7834_v37  ;;  %v7999_v32 = vmul.f32 %v17003_v34, %v7835_v51  ;;  %v8000_v12 = vmul.f32 %v17004_v38, %v7836_v28  ;;  %v8001_v30 = vmul.f32 %v17005_v31, %v7837_v59  ;;  %v7410_v59 = vpop.xlane.xlu0 %7409 }
 0x8d2   :  { %v7838_v36 = vmul.f32 %v10911_v8, %v7646_v22  ;;  %v7839_v46 = vmul.f32 %v10911_v8, %v7647_v18  ;;  %v7840_v61 = vmul.f32 %v10911_v8, %v7648_v19  ;;  %v7841_v63 = vmul.f32 %v10911_v8, %v7649_v2 }
 0x8d3   :  { %v8162_v50 = vadd.f32 %v17007_v29, %v7998_v42  ;;  %v8163_v60 = vadd.f32 %v17008_v47, %v7999_v32  ;;  %v8164_v58 = vadd.f32 %v17009_v39, %v8000_v12  ;;  %v8165_v27 = vadd.f32 %v17010_v45, %v8001_v30 }
 0x8d4   :  { %v8002_v41 = vmul.f32 %v17002_v23, %v7838_v36  ;;  %v8003_v7 = vmul.f32 %v17003_v34, %v7839_v46  ;;  %v8004_v3 = vmul.f32 %v17004_v38, %v7840_v61  ;;  %v8005_v20 = vmul.f32 %v17005_v31, %v7841_v63 }
 0x8d5   :  { %v8212_v22 = vmax.f32 %v15927_v49, %v8162_v50  ;;  %v8227_v18 = vmax.f32 %v15932_v9, %v8163_v60  ;;  %v8242_v19 = vmax.f32 %v15937_v15, %v8164_v58  ;;  %v8257_v2 = vmax.f32 %v15942_v13, %v8165_v27 }
 0x8d6   :  { %v10913_v6 = vpop.eup %10912  ;;  %v8166_v52 = vadd.f32 %v17007_v29, %v8002_v41  ;;  %v8167_v26 = vadd.f32 %v17008_v47, %v8003_v7  ;;  %v8168_v5 = vadd.f32 %v17009_v39, %v8004_v3  ;;  %v8169_v17 = vadd.f32 %v17010_v45, %v8005_v20  ;;  %v7415_v41 = vpop.xlane.xlu1 %7414 }
 0x8d7   :  { %v7842_v1 = vmul.f32 %v10913_v6, %v7650_v53  ;;  %v7843_v62 = vmul.f32 %v10913_v6, %v7651_v21  ;;  %v7844_v37 = vmul.f32 %v10913_v6, %v7652_v44  ;;  %v7845_v51 = vmul.f32 %v10913_v6, %v7653_v24 }
 0x8d8   :  { %v10915_v49 = vpop.eup %10914  ;;  %v8272_v9 = vmax.f32 %v15950_v25, %v8166_v52  ;;  %v8287_v15 = vmax.f32 %v15952_v57, %v8167_v26  ;;  %v8302_v13 = vmax.f32 %v15954_v4, %v8168_v5  ;;  %v8317_v28 = vmax.f32 %v15956_v54, %v8169_v17 }
 0x8d9   :  { %v8006_v8 = vmul.f32 %v17002_v23, %v7842_v1  ;;  %v8007_v42 = vmul.f32 %v17003_v34, %v7843_v62  ;;  %v8008_v32 = vmul.f32 %v17004_v38, %v7844_v37  ;;  %v8009_v53 = vmul.f32 %v17005_v31, %v7845_v51 }
 0x8da   :  { %v7846_v21 = vmul.f32 %v10915_v49, %v7654_v40  ;;  %v7847_v44 = vmul.f32 %v10915_v49, %v7655_v10  ;;  %v7848_v24 = vmul.f32 %v10915_v49, %v7656_v55  ;;  %v7849_v12 = vmul.f32 %v10915_v49, %v7657_v43  ;;  %v7099_v40 = vpop.xlane.xlu0 %7098  ;;  %v17153_v49 = vld [vmem:[#allocation141_spill] sm:$0xff] }
 0x8db   :  { %v8170_v25 = vadd.f32 %v17007_v29, %v8006_v8  ;;  %v8171_v57 = vadd.f32 %v17008_v47, %v8007_v42  ;;  %v8172_v4 = vadd.f32 %v17009_v39, %v8008_v32  ;;  %v8173_v54 = vadd.f32 %v17010_v45, %v8009_v53  ;;  %v17154_v8 = vld [vmem:[#allocation111_spill] sm:$0xff]  ;;  %v17155_v32 = vld [vmem:[#allocation148_spill] sm:$0xff] }
 0x8dc   :  { %v8010_v30 = vmul.f32 %v17002_v23, %v7846_v21  ;;  %v8011_v36 = vmul.f32 %v17003_v34, %v7847_v44  ;;  %v8012_v46 = vmul.f32 %v17004_v38, %v7848_v24  ;;  %v8013_v61 = vmul.f32 %v17005_v31, %v7849_v12  ;;  %v17156_v21 = vld [vmem:[#allocation120_spill] sm:$0xff] }
 0x8dd   :  { %v16048_v10 = vmax.f32 %v8212_v22, %v8170_v25  ;;  %v16050_v55 = vmax.f32 %v8227_v18, %v8171_v57  ;;  %v16052_v43 = vmax.f32 %v8242_v19, %v8172_v4  ;;  %v16054_v63 = vmax.f32 %v8257_v2, %v8173_v54  ;;  %v17157_v24 = vld [vmem:[#allocation132_spill] sm:$0xff]  ;;  %v17158_v25 = vld [vmem:[#allocation74_spill] sm:$0xff] }
 0x8de   :  { %v8174_v50 = vadd.f32 %v17007_v29, %v8010_v30  ;;  %v8175_v60 = vadd.f32 %v17008_v47, %v8011_v36  ;;  %v8176_v58 = vadd.f32 %v17009_v39, %v8012_v46  ;;  %v8177_v27 = vadd.f32 %v17010_v45, %v8013_v61  ;;  %v17159_v36 = vld [vmem:[#allocation86_spill] sm:$0xff]  ;;  %v17160_v61 = vld [vmem:[#allocation149_spill] sm:$0xff] }
 0x8df   :  { %v7708_v7 = vadd.f32 1e-05, %v16002_v33  ;;  %v7709_v3 = vadd.f32 1e-05, %v16004_v35  ;;  %v7454_v20 = vmul.f32 0.001953125, %v7410_v59  ;;  %v7487_v22 = vmul.f32 %v16006_v16, %v16006_v16  ;;  %v7420_v33 = vpop.xlane.xlu0 %7419 }
 0x8e0   :  { %v16064_v18 = vmax.f32 %v8272_v9, %v8174_v50  ;;  %v16066_v19 = vmax.f32 %v8287_v15, %v8175_v60  ;;  %v16068_v2 = vmax.f32 %v8302_v13, %v8176_v58  ;;  %v16070_v6 = vmax.f32 %v8317_v28, %v8177_v27  ;;  %v7104_v37 = vpop.xlane.xlu1 %7103  ;;  %v17161_v50 = vld [vmem:[#allocation150_spill] sm:$0xff]  ;;  %v17162_v58 = vld [vmem:[#allocation99_spill] sm:$0xff] }
 0x8e1   :  { %10916 = vrsqrt.f32 %v7708_v7  ;;  %v7518_v52 = vsub.f32 %v7454_v20, %v16010_v48  ;;  %v7455_v26 = vmul.f32 0.001953125, %v7415_v41  ;;  %v16073_v5 = vmul.f32 0.001953125, %v7099_v40 }
 0x8e2   :  { %10918 = vrsqrt.f32 %v7709_v3  ;;  %v17150_v35 = vlaneseq  ;;  %v11054_v51 = vmov -inf   ;;  %v7658_v48 = vsub.f32 %v17153_v49, %v15974_v11  ;;  %v17163_v3 = vld [vmem:[#allocation23_spill] sm:$0xff] }
 0x8e3   :  { %v7550_v1 = vmax.f32 %v7518_v52, 0.0  ;;  %v7519_v62 = vsub.f32 %v7455_v26, %v7487_v22  ;;  %v16084_v9 = vmul.f32 0.001953125, %v7104_v37  ;;  %v7488_v28 = vmul.f32 %v16073_v5, %v16073_v5  ;;  %v17164_v22 = vld [vmem:[#allocation25_spill] sm:$0xff] }
 0x8e4   :  { %vm16076_vm3 = vcmp.lt.s32.totalorder %v17150_v35, 512  ;;  %v7456_v59 = vmul.f32 0.001953125, %v7420_v33  ;;  %v7659_v42 = vsub.f32 %v17154_v8, %v15974_v11  ;;  %v7660_v53 = vsub.f32 %v17155_v32, %v15974_v11  ;;  %v7425_v30 = vpop.xlane.xlu1 %7424  ;;  %v17165_v52 = vld [vmem:[#allocation113_spill] sm:$0xff]  ;;  %v17166_v33 = vld [vmem:[#allocation22_spill] sm:$0xff] }
 0x8e5   :  { %91 = vst.msk [vmem:[#allocation2] sm:$0xf] %vm16076_vm3, %v11054_v51  ;;  %v7710_v15 = vadd.f32 1e-05, %v7550_v1  ;;  %v7551_v13 = vmax.f32 %v7519_v62, 0.0  ;;  %v7661_v44 = vsub.f32 %v17156_v21, %v15974_v11  ;;  %v7662_v12 = vsub.f32 %v17157_v24, %v15966_v0  ;;  %v17167_v62 = vld [vmem:[#allocation138_spill] sm:$0xff] }
 0x8e6   :  { %v7663_v57 = vsub.f32 %v17158_v25, %v15966_v0  ;;  %v7520_v54 = vsub.f32 %v7456_v59, %v7488_v28  ;;  %v7664_v46 = vsub.f32 %v17159_v36, %v15966_v0  ;;  %v7665_v40 = vsub.f32 %v17160_v61, %v15966_v0  ;;  %v17168_v51 = vld [vmem:[#allocation20_spill] sm:$0xff] }
 0x8e7   :  { %10920 = vrsqrt.f32 %v7710_v15  ;;  %v7711_v4 = vadd.f32 1e-05, %v7551_v13  ;;  %v7666_v60 = vsub.f32 %v17161_v50, %v16000_v14  ;;  %v16104_v11 = vmul.f32 0.001953125, %v7425_v30 }
 0x8e8   :  { %v7667_v27 = vsub.f32 %v17162_v58, %v16000_v14  ;;  %v7552_v41 = vmax.f32 %v7520_v54, 0.0  ;;  %v16110_v7 = vmul.f32 %v16084_v9, %v16084_v9  ;;  %v7668_v20 = vsub.f32 %v17163_v3, %v16000_v14 }
 0x8e9   :  { %10922 = vrsqrt.f32 %v7711_v4  ;;  %v7669_v0 = vsub.f32 %v17164_v22, %v16000_v14  ;;  %v7670_v26 = vsub.f32 %v17165_v52, %v16006_v16  ;;  %v7671_v35 = vsub.f32 %v17166_v33, %v16006_v16 }
 0x8ea   :  { %v7672_v37 = vsub.f32 %v17167_v62, %v16006_v16  ;;  %v7673_v49 = vsub.f32 %v17168_v51, %v16006_v16  ;;  %v16124_v15 = vadd.f32 1e-05, %v7552_v41  ;;  %v7521_v13 = vsub.f32 %v16104_v11, %v16110_v7 }
 0x8eb   :  { %v10917_v1 = vpop.eup %10916 }
 0x8ec   :  { %v10919_v28 = vpop.eup %10918  ;;  %v7850_v14 = vmul.f32 %v10917_v1, %v7658_v48  ;;  %v7851_v59 = vmul.f32 %v10917_v1, %v7659_v42  ;;  %v7852_v8 = vmul.f32 %v10917_v1, %v7660_v53  ;;  %v7853_v32 = vmul.f32 %v10917_v1, %v7661_v44 }
 0x8ed   :  { %v7854_v21 = vmul.f32 %v10919_v28, %v7662_v12  ;;  %v7855_v24 = vmul.f32 %v10919_v28, %v7663_v57  ;;  %v7856_v25 = vmul.f32 %v10919_v28, %v7664_v46  ;;  %v7857_v4 = vmul.f32 %v10919_v28, %v7665_v40 }
 0x8ee   :  { %v8014_v54 = vmul.f32 %v17002_v23, %v7850_v14  ;;  %v8015_v30 = vmul.f32 %v17003_v34, %v7851_v59  ;;  %v8016_v16 = vmul.f32 %v17004_v38, %v7852_v8  ;;  %v8017_v36 = vmul.f32 %v17005_v31, %v7853_v32 }
 0x8ef   :  { %v8018_v61 = vmul.f32 %v17002_v23, %v7854_v21  ;;  %v8019_v50 = vmul.f32 %v17003_v34, %v7855_v24  ;;  %v8020_v48 = vmul.f32 %v17004_v38, %v7856_v25  ;;  %v8021_v42 = vmul.f32 %v17005_v31, %v7857_v4 }
 0x8f0   :  { %v8178_v53 = vadd.f32 %v17007_v29, %v8014_v54  ;;  %v8179_v44 = vadd.f32 %v17008_v47, %v8015_v30  ;;  %v8180_v12 = vadd.f32 %v17009_v39, %v8016_v16  ;;  %v8181_v57 = vadd.f32 %v17010_v45, %v8017_v36 }
 0x8f1   :  { %v10921_v46 = vpop.eup %10920  ;;  %v8182_v40 = vadd.f32 %v17007_v29, %v8018_v61  ;;  %v8183_v58 = vadd.f32 %v17008_v47, %v8019_v50  ;;  %v8184_v41 = vadd.f32 %v17009_v39, %v8020_v48  ;;  %v8185_v3 = vadd.f32 %v17010_v45, %v8021_v42 }
 0x8f2   :  { %v8214_v22 = vmax.f32 %v16048_v10, %v8178_v53  ;;  %v8229_v52 = vmax.f32 %v16050_v55, %v8179_v44  ;;  %v8244_v33 = vmax.f32 %v16052_v43, %v8180_v12  ;;  %v8259_v1 = vmax.f32 %v16054_v63, %v8181_v57 }
 0x8f3   :  { %v10923_v62 = vpop.eup %10922  ;;  %v8274_v51 = vmax.f32 %v16064_v18, %v8182_v40  ;;  %v8289_v28 = vmax.f32 %v16066_v19, %v8183_v58  ;;  %v8304_v14 = vmax.f32 %v16068_v2, %v8184_v41  ;;  %v8319_v59 = vmax.f32 %v16070_v6, %v8185_v3  ;;  %v17170_v58 = vld [vmem:[#allocation105_spill] sm:$0xff]  ;;  %v17171_v3 = vld [vmem:[#allocation27_spill] sm:$0xff] }
 0x8f4   :  { %v7858_v8 = vmul.f32 %v10921_v46, %v7666_v60  ;;  %v7859_v32 = vmul.f32 %v10921_v46, %v7667_v27  ;;  %v7860_v21 = vmul.f32 %v10921_v46, %v7668_v20  ;;  %v7861_v24 = vmul.f32 %v10921_v46, %v7669_v0  ;;  %v17169_v46 = vld [vmem:[#allocation62_spill] sm:$0xff] }
 0x8f5   :  { %v7862_v10 = vmul.f32 %v10923_v62, %v7670_v26  ;;  %v7863_v25 = vmul.f32 %v10923_v62, %v7671_v35  ;;  %v7864_v55 = vmul.f32 %v10923_v62, %v7672_v37  ;;  %v7865_v4 = vmul.f32 %v10923_v62, %v7673_v49 }
 0x8f6   :  { %v8022_v43 = vmul.f32 %v17002_v23, %v7858_v8  ;;  %v8023_v63 = vmul.f32 %v17003_v34, %v7859_v32  ;;  %v8024_v18 = vmul.f32 %v17004_v38, %v7860_v21  ;;  %v8025_v19 = vmul.f32 %v17005_v31, %v7861_v24  ;;  %v17173_v8 = vld [vmem:[#allocation21_spill] sm:$0xff]  ;;  %v17174_v21 = vld [vmem:[#allocation24_spill] sm:$0xff] }
 0x8f7   :  { %v8026_v2 = vmul.f32 %v17002_v23, %v7862_v10  ;;  %v8027_v6 = vmul.f32 %v17003_v34, %v7863_v25  ;;  %v8028_v60 = vmul.f32 %v17004_v38, %v7864_v55  ;;  %v8029_v27 = vmul.f32 %v17005_v31, %v7865_v4  ;;  %v17175_v24 = vld [vmem:[#allocation28_spill] sm:$0xff]  ;;  %v17176_v25 = vld [vmem:[#allocation29_spill] sm:$0xff] }
 0x8f8   :  { %v8186_v20 = vadd.f32 %v17007_v29, %v8022_v43  ;;  %v8187_v0 = vadd.f32 %v17008_v47, %v8023_v63  ;;  %v8188_v26 = vadd.f32 %v17009_v39, %v8024_v18  ;;  %v8189_v35 = vadd.f32 %v17010_v45, %v8025_v19 }
 0x8f9   :  { %v8190_v37 = vadd.f32 %v17007_v29, %v8026_v2  ;;  %v8191_v49 = vadd.f32 %v17008_v47, %v8027_v6  ;;  %v8192_v54 = vadd.f32 %v17009_v39, %v8028_v60  ;;  %v8193_v30 = vadd.f32 %v17010_v45, %v8029_v27 }
 0x8fa   :  { %v8215_v16 = vmax.f32 %v8214_v22, %v8186_v20  ;;  %v8230_v36 = vmax.f32 %v8229_v52, %v8187_v0  ;;  %v8245_v61 = vmax.f32 %v8244_v33, %v8188_v26  ;;  %v8260_v50 = vmax.f32 %v8259_v1, %v8189_v35  ;;  %v17172_v52 = vld [vmem:[#allocation26_spill] sm:$0xff] }
 0x8fb   :  { %v8275_v48 = vmax.f32 %v8274_v51, %v8190_v37  ;;  %v8290_v42 = vmax.f32 %v8289_v28, %v8191_v49  ;;  %v8305_v53 = vmax.f32 %v8304_v14, %v8192_v54  ;;  %v8320_v44 = vmax.f32 %v8319_v59, %v8193_v30 }
 0x8fc   :  { %10924 = vrsqrt.f32 %v16124_v15  ;;  %v7553_v12 = vmax.f32 %v7521_v13, 0.0  ;;  %v7674_v40 = vsub.f32 %v17169_v46, %v16073_v5  ;;  %v7675_v41 = vsub.f32 %v17170_v58, %v16073_v5 }
 0x8fd   :  { %v7676_v22 = vsub.f32 %v17171_v3, %v16073_v5  ;;  %v7677_v33 = vsub.f32 %v17172_v52, %v16073_v5  ;;  %v7678_v32 = vsub.f32 %v17173_v8, %v16084_v9  ;;  %v7679_v5 = vsub.f32 %v17174_v21, %v16084_v9 }
 0x8fe   :  { %v7713_v57 = vadd.f32 1e-05, %v7553_v12  ;;  %v7680_v10 = vsub.f32 %v17175_v24, %v16084_v9  ;;  %v7681_v55 = vsub.f32 %v17176_v25, %v16084_v9  ;;  %v11055_v3 = vmov 1966171168  }
 0x900   :  { %10926 = vrsqrt.f32 %v7713_v57 }
 0x906   :  { %v10925_v1 = vpop.eup %10924 }
 0x907   :  { %v7866_v15 = vmul.f32 %v10925_v1, %v7674_v40  ;;  %v7867_v62 = vmul.f32 %v10925_v1, %v7675_v41  ;;  %v7868_v51 = vmul.f32 %v10925_v1, %v7676_v22  ;;  %v7869_v11 = vmul.f32 %v10925_v1, %v7677_v33 }
 0x909   :  { %v8030_v7 = vmul.f32 %v17002_v23, %v7866_v15  ;;  %v8031_v13 = vmul.f32 %v17003_v34, %v7867_v62  ;;  %v8032_v28 = vmul.f32 %v17004_v38, %v7868_v51  ;;  %v8033_v14 = vmul.f32 %v17005_v31, %v7869_v11 }
 0x90a   :  { %v10927_v59 = vpop.eup %10926 }
 0x90b   :  { %v8194_v4 = vadd.f32 %v17007_v29, %v8030_v7  ;;  %v8195_v43 = vadd.f32 %v17008_v47, %v8031_v13  ;;  %v8196_v63 = vadd.f32 %v17009_v39, %v8032_v28  ;;  %v8197_v18 = vadd.f32 %v17010_v45, %v8033_v14  ;;  %v17177_v28 = vld [vmem:[#allocation12_spill] sm:$0xff] }
 0x90c   :  { %v7870_v19 = vmul.f32 %v10927_v59, %v7678_v32  ;;  %v7871_v2 = vmul.f32 %v10927_v59, %v7679_v5  ;;  %v7872_v6 = vmul.f32 %v10927_v59, %v7680_v10  ;;  %v7873_v60 = vmul.f32 %v10927_v59, %v7681_v55 }
 0x90d   :  { %v8216_v27 = vmax.f32 %v8215_v16, %v8194_v4  ;;  %v8231_v20 = vmax.f32 %v8230_v36, %v8195_v43  ;;  %v8246_v0 = vmax.f32 %v8245_v61, %v8196_v63  ;;  %v8261_v26 = vmax.f32 %v8260_v50, %v8197_v18  ;;  %v8350_v4 = vld [vmem:[#allocation2] sm:$0xf] }
 0x90e   :  { %v8034_v35 = vmul.f32 %v17002_v23, %v7870_v19  ;;  %v8035_v9 = vmul.f32 %v17003_v34, %v7871_v2  ;;  %v8036_v37 = vmul.f32 %v17004_v38, %v7872_v6  ;;  %v8037_v49 = vmul.f32 %v17005_v31, %v7873_v60  ;;  %v17178_v19 = vld [vmem:[#allocation13_spill] sm:$0xff]  ;;  %v17179_v6 = vld [vmem:[#allocation15_spill] sm:$0xff] }
 0x910   :  { %v8198_v54 = vadd.f32 %v17007_v29, %v8034_v35  ;;  %v8199_v30 = vadd.f32 %v17008_v47, %v8035_v9  ;;  %v8200_v12 = vadd.f32 %v17009_v39, %v8036_v37  ;;  %v8201_v57 = vadd.f32 %v17010_v45, %v8037_v49 }
 0x911   :  { %v8358_v29 = vunpack.c.l.s4 %v11055_v3 }
 0x912   :  { %v8276_v16 = vmax.f32 %v8275_v48, %v8198_v54  ;;  %v8291_v36 = vmax.f32 %v8290_v42, %v8199_v30  ;;  %v8306_v61 = vmax.f32 %v8305_v53, %v8200_v12  ;;  %v8321_v50 = vmax.f32 %v8320_v44, %v8201_v57  ;;  %v16218_v30 = vld [vmem:[%s16307_s9] sm:$0x7] }
 0x913   :  { %v8359_v53 = vunpack.c.0.s8 %v8358_v29 }
 0x914   :  { %v8322_v46 = vmax.f32 %v8216_v27, %v8276_v16  ;;  %v8329_v23 = vmax.f32 %v8231_v20, %v8291_v36  ;;  %v8336_v40 = vmax.f32 %v8246_v0, %v8306_v61  ;;  %v8343_v34 = vmax.f32 %v8261_v26, %v8321_v50  ;;  %v17180_v27 = vld [vmem:[#allocation14_spill] sm:$0xff]  ;;  %v17181_v0 = vld [vmem:[#allocation17_spill] sm:$0xff] }
 0x915   :  { %v8362_v14 = vsub.s32 %v8359_v53, %v17177_v28  ;;  %v9833_v53 = vld [vmem:[%s16308_s10 + $0x30] sm:$0xff]  }
 0x916   :  { %v8323_v58 = vrot.slane %v8322_v46, 4  ;;  %v8330_v38 = vrot.slane %v8329_v23, 4  ;;  %v8337_v41 = vrot.slane %v8336_v40, 4  ;;  %v8344_v31 = vrot.slane %v8343_v34, 4 }
 0x918   :  { %v8324_v22 = vmax.f32 %v8322_v46, %v8323_v58  ;;  %v8331_v47 = vmax.f32 %v8329_v23, %v8330_v38  ;;  %v8338_v52 = vmax.f32 %v8336_v40, %v8337_v41  ;;  %v8345_v39 = vmax.f32 %v8343_v34, %v8344_v31 }
 0x91a   :  { %v8325_v33 = vrot.slane %v8324_v22, 2  ;;  %v8332_v45 = vrot.slane %v8331_v47, 2  ;;  %v8339_v48 = vrot.slane %v8338_v52, 2  ;;  %v8346_v42 = vrot.slane %v8345_v39, 2 }
 0x91c   :  { %v8326_v44 = vmax.f32 %v8324_v22, %v8325_v33  ;;  %v8333_v1 = vmax.f32 %v8331_v47, %v8332_v45  ;;  %v8340_v15 = vmax.f32 %v8338_v52, %v8339_v48  ;;  %v8347_v62 = vmax.f32 %v8345_v39, %v8346_v42  ;;  %v9827_v52 = vld [vmem:[%s16308_s10] sm:$0xff]   ;;  %v9828_v39 = vld [vmem:[%s16308_s10 + $0x8] sm:$0xff]   ;;  %v9829_v33 = vld [vmem:[%s16308_s10 + $0x10] sm:$0xff]  }
 0x91d   :  { %v9830_v45 = vld [vmem:[%s16308_s10 + $0x18] sm:$0xff]   ;;  %v9831_v48 = vld [vmem:[%s16308_s10 + $0x20] sm:$0xff]   ;;  %v9832_v42 = vld [vmem:[%s16308_s10 + $0x28] sm:$0xff]  }
 0x91e   :  { %v8327_v51 = vrot.slane %v8326_v44, 1  ;;  %v8334_v11 = vrot.slane %v8333_v1, 1  ;;  %v8341_v7 = vrot.slane %v8340_v15, 1  ;;  %v8348_v13 = vrot.slane %v8347_v62, 1 }
 0x920   :  { %v8328_v59 = vmax.f32 %v8326_v44, %v8327_v51  ;;  %v8335_v8 = vmax.f32 %v8333_v1, %v8334_v11  ;;  %v8342_v32 = vmax.f32 %v8340_v15, %v8341_v7  ;;  %v8349_v21 = vmax.f32 %v8347_v62, %v8348_v13  ;;  %v9834_v44 = vld [vmem:[%s16308_s10 + $0x38] sm:$0xff]  }
 0x922   :  { %v8355_v5 = vcombine.low %v8328_v59, %v8335_v8  ;;  %v8356_v24 = vcombine.low %v8342_v32, %v8349_v21  ;;  %v8783_v32 = vrot.slane %v16218_v30, 2 }
 0x924   :  { %v8363_v10 = vrot.slane %v8355_v5, %v8362_v14  ;;  %v8370_v25 = vrot.slane %v8356_v24, %v8362_v14 }
 0x926   :  { %v8371_v55 = vcombine.low %v8363_v10, %v8370_v25 }
 0x928   :  { %v8378_v43 = vrot.slane %v8371_v55, %v8362_v14  ;;  %v8780_v14 = vrot.slane %v16218_v30, 1 }
 0x92a   :  { %v8380_v63 = vmax.f32 %v8350_v4, %v8378_v43 }
 0x92c   :  { %8385 = vst.msk [vmem:[#allocation2] sm:$0xf] %vm16076_vm3, %v8380_v63 }
 0x933   :  { %v8389_v18 = vld [vmem:[#allocation2] sm:$0xf] }
 0x934   :  { %v8401_v2 = vrot.slane %v8389_v18, %v17178_v19  ;;  %v8409_v60 = vrot.slane %v8389_v18, %v17179_v6  ;;  %v8397_v20 = vrot.slane %v8389_v18, %v17180_v27  ;;  %v8405_v26 = vrot.slane %v8389_v18, %v17181_v0  ;;  %v8391_v18 = vld [vmem:[%s16309_s11] sm:$0x7] }
 0x936   :  { %v8415_v35 = vpack.c.bf16 %v8401_v2, %v8401_v2  ;;  %v8417_v9 = vpack.c.bf16 %v8409_v60, %v8409_v60  ;;  %v8414_v37 = vpack.c.bf16 %v8397_v20, %v8397_v20  ;;  %v8416_v49 = vpack.c.bf16 %v8405_v26, %v8405_v26 }
 0x938   :  { %8706 = vmatprep.mubr.bf16.mxu0 %v8415_v35  ;;  %8746 = vmatprep.mubr.bf16.mxu1 %v8417_v9 }
 0x939   :  { %8707 = vmatmul.mubr.bf16.vlgmr.msra.gmra.mrb[208].mxu0 %v8414_v37  ;;  %8747 = vmatmul.mubr.bf16.vlgmr.msra.gmra.mrb[184].mxu1 %v8416_v49 }
 0x93a   :  { %9649 = vmatprep.mubr.msk.bf16.mxu0 %vm11052_vm0, %v17133_v56  ;;  %9661 = vmatprep.mubr.msk.bf16.mxu1 %vm11052_vm0, %v17133_v56 }
 0x93b   :  { %9634 = vmatpush3.bf16.msra.mxu0 %v9827_v52 }
 0x93c   :  { %9635 = vmatprep.subr.bf16.mxu0 %v17133_v56 }
 0x93f   :  { %9636 = vmatpush3.bf16.msra.mxu0 %v9828_v39 }
 0x940   :  { %9637 = vmatprep.subr.bf16.mxu0 %v17133_v56 }
 0x943   :  { %9638 = vmatpush3.bf16.msra.mxu0 %v9829_v33 }
 0x944   :  { %9639 = vmatprep.subr.bf16.mxu0 %v17133_v56 }
 0x947   :  { %9640 = vmatpush3.bf16.msra.mxu0 %v9830_v45 }
 0x948   :  { %9641 = vmatprep.subr.bf16.mxu0 %v17133_v56 }
 0x94b   :  { %9642 = vmatpush3.bf16.msra.mxu0 %v9831_v48 }
 0x94c   :  { %9643 = vmatprep.subr.bf16.mxu0 %v17133_v56 }
 0x94f   :  { %9644 = vmatpush3.bf16.msra.mxu0 %v9832_v42  ;;  %v8392_v42 = vld [vmem:[%s16311_s13] sm:$0x7] }
 0x950   :  { %9645 = vmatprep.subr.bf16.mxu0 %v17133_v56 }
 0x953   :  { %9646 = vmatpush3.bf16.msra.mxu0 %v9833_v53 }
 0x954   :  { %9647 = vmatprep.subr.bf16.mxu0 %v17133_v56 }
 0x957   :  { %9648 = vmatpush3.bf16.msra.mxu0 %v9834_v44 }
 0xa0c   :  { %v9577_v17 = vpop.f32.mrb[208].mxu0  ;;  %v9599_v54 = vpop.f32.mrb[184].mxu1 }
 0xa0d   :  { %v9578_v12 = vpop.f32.mrb[209].mxu0  ;;  %v9600_v57 = vpop.f32.mrb[185].mxu1 }
 0xa0e   :  { %v9579_v16 = vadd.f32 %v9578_v12, %v9577_v17  ;;  %v9601_v36 = vadd.f32 %v9600_v57, %v9599_v54  ;;  %v9580_v61 = vpop.f32.mrb[210].mxu0  ;;  %v9602_v50 = vpop.f32.mrb[186].mxu1  ;;  %v9835_v54 = vld [vmem:[%s16310_s12] sm:$0xff]   ;;  %v9837_v12 = vld [vmem:[%s16310_s12 + $0x10] sm:$0xff]   ;;  %v9838_v57 = vld [vmem:[%s16310_s12 + $0x18] sm:$0xff]  }
 0xa0f   :  { %v9581_v46 = vpop.f32.mrb[211].mxu0  ;;  %v9603_v23 = vpop.f32.mrb[187].mxu1  ;;  %9654 = vmatpush3.bf16.msra.mxu1 %v9835_v54 }
 0xa10   :  { %v8709_v40 = vadd.f32 %v9579_v16, %v16218_v30  ;;  %v9836_v30 = vld [vmem:[%s16310_s12 + $0x8] sm:$0xff]   ;;  %9655 = vmatprep.subr.bf16.mxu1 %v17133_v56 }
 0xa12   :  { %v8749_v34 = vadd.f32 %v9601_v36, %v8709_v40 }
 0xa13   :  { %9656 = vmatpush3.bf16.msra.mxu1 %v9836_v30 }
 0xa14   :  { %v9534_v58 = vmul.f32 -1.442695, %v8749_v34  ;;  %9657 = vmatprep.subr.bf16.mxu1 %v17133_v56 }
 0xa16   :  { %10928 = vpow2.f32 %v9534_v58  ;;  %v8923_v58 = vrot.slane %v8391_v18, 1 }
 0xa17   :  { %9658 = vmatpush3.bf16.msra.mxu1 %v9837_v12 }
 0xa18   :  { %9659 = vmatprep.subr.bf16.mxu1 %v17133_v56 }
 0xa1b   :  { %9660 = vmatpush3.bf16.msra.mxu1 %v9838_v57 }
 0xa1c   :  { %9665 = vmatprep.subr.bf16.mxu1 %v17133_v56 }
 0xa20   :  { %v10929_v38 = vpop.eup %10928 }
 0xa21   :  { %v8757_v41 = vadd.f32 1.0, %v10929_v38 }
 0xa23   :  { %10930 = vrcp.f32 %v8757_v41 }
 0xa2d   :  { %v10931_v31 = vpop.eup %10930 }
 0xa2e   :  { %v8760_v3 = vmul.f32 %v10931_v31, %v8749_v34  ;;  %v8926_v31 = vrot.slane %v8391_v18, 2 }
 0xa30   :  { %v8762_v29 = vsel %vm8761_vm4, %v8760_v3, 0.0  ;;  %v8767_v22 = vmul.f32 %v8760_v3, %v8760_v3 }
 0xa31   :  { %8763 = vadd.xlane.f32.xlu0 %v8762_v29 }
 0xa32   :  { %v8768_v47 = vsel %vm8761_vm4, %v8767_v22, 0.0 }
 0xa33   :  { %8769 = vadd.xlane.f32.xlu1 %v8768_v47 }
 0xabe   :  { %v8764_v1 = vpop.xlane.xlu0 %8763 }
 0xabf   :  { %v8766_v15 = vmul.f32 0.0078125, %v8764_v1 }
 0xac0   :  { %v8770_v62 = vpop.xlane.xlu1 %8769 }
 0xac1   :  { %v8772_v51 = vmul.f32 %v8766_v15, %v8766_v15  ;;  %v8771_v11 = vmul.f32 0.0078125, %v8770_v62  ;;  %v8775_v59 = vsub.f32 %v8760_v3, %v8766_v15 }
 0xac3   :  { %v8773_v7 = vsub.f32 %v8771_v11, %v8772_v51 }
 0xac5   :  { %v8774_v13 = vmax.f32 %v8773_v7, 0.0 }
 0xac7   :  { %v8776_v28 = vadd.f32 1e-05, %v8774_v13 }
 0xac9   :  { %10932 = vrsqrt.f32 %v8776_v28 }
 0xad3   :  { %v10933_v8 = vpop.eup %10932 }
 0xad4   :  { %v8778_v21 = vmul.f32 %v10933_v8, %v8775_v59  ;;  %v9839_v8 = vld [vmem:[%s16312_s14] sm:$0xff]  }
 0xad6   :  { %v8782_v5 = vmul.f32 %v8780_v14, %v8778_v21 }
 0xad8   :  { %v8785_v24 = vadd.f32 %v8783_v32, %v8782_v5 }
 0xada   :  { %v9535_v10 = vmul.f32 -1.442695, %v8785_v24 }
 0xadc   :  { %10934 = vpow2.f32 %v9535_v10 }
 0xae6   :  { %v10935_v25 = vpop.eup %10934 }
 0xae7   :  { %v8789_v55 = vadd.f32 1.0, %v10935_v25 }
 0xae9   :  { %10936 = vrcp.f32 %v8789_v55 }
 0xaf3   :  { %v10937_v4 = vpop.eup %10936 }
 0xaf4   :  { %v8792_v43 = vmul.f32 %v10937_v4, %v8785_v24 }
 0xaf6   :  { %v8793_v63 = vpack.c.bf16 %v8792_v43, %v8792_v43  ;;  %v9038_v43 = vrot.slane %v8392_v42, 1 }
 0xaf8   :  { %9650 = vmatmul.mubr.bf16.vlgmr.msra.gmra.mrb[212].mxu0 %v8793_v63 }
 0xbcb   :  { %v8892_v19 = vpop.f32.mrb[212].mxu0 }
 0xbcc   :  { %v8893_v2 = vadd.f32 %v8892_v19, %v8391_v18  ;;  %v9651_v6 = vpop.f32.mrb[213].mxu0  ;;  %v9041_v19 = vrot.slane %v8392_v42, 2 }
 0xbcd   :  { %v8895_v60 = vpop.f32.mrb[214].mxu0 }
 0xbce   :  { %v9544_v27 = vmul.f32 -1.442695, %v8893_v2  ;;  %v9652_v20 = vpop.f32.mrb[215].mxu0 }
 0xbd0   :  { %10938 = vpow2.f32 %v9544_v27 }
 0xbda   :  { %v10939_v0 = vpop.eup %10938 }
 0xbdb   :  { %v8901_v26 = vadd.f32 1.0, %v10939_v0 }
 0xbdd   :  { %10940 = vrcp.f32 %v8901_v26 }
 0xbe7   :  { %v10941_v35 = vpop.eup %10940 }
 0xbe8   :  { %v8904_v9 = vmul.f32 %v10941_v35, %v8893_v2 }
 0xbea   :  { %v8906_v37 = vsel %vm8905_vm5, %v8904_v9, 0.0  ;;  %v8910_v49 = vmul.f32 %v8904_v9, %v8904_v9 }
 0xbeb   :  { %8907 = vadd.xlane.f32.xlu0 %v8906_v37  ;;  %v9051_v37 = vld [vmem:[%s16313_s15] sm:$0x1]  ;;  %s11017_s15 = scalar_lea.vmem %s9126_s3, 16 }
 0xbec   :  { %v8911_v17 = vsel %vm8905_vm5, %v8910_v49, 0.0  ;;  %p11018_p2 = scmp.ne.s32.totalorder %s9126_s3, %s11017_s15  ;;  %p11023_p4 = scmp.lt.s32.totalorder %s11021_s30, %s11017_s15 }
 0xbed   :  { %8912 = vadd.xlane.f32.xlu1 %v8911_v17 }
 0xbee   :  { %p11024_p5 = por %p11023_p4, %p11022_p3 }
 0xbf0   :  { %p11025_p6 = pnand %p11024_p5, %p11018_p2 }
 0xc78   :  { %v8908_v16 = vpop.xlane.xlu0 %8907 }
 0xc79   :  { %v8909_v36 = vmul.f32 0.015625, %v8908_v16 }
 0xc7a   :  { %v8913_v61 = vpop.xlane.xlu1 %8912 }
 0xc7b   :  { %v8915_v50 = vmul.f32 %v8909_v36, %v8909_v36  ;;  %v8914_v46 = vmul.f32 0.015625, %v8913_v61  ;;  %v8918_v38 = vsub.f32 %v8904_v9, %v8909_v36 }
 0xc7d   :  { %v8916_v23 = vsub.f32 %v8914_v46, %v8915_v50 }
 0xc7f   :  { %v8917_v40 = vmax.f32 %v8916_v23, 0.0 }
 0xc81   :  { %v8919_v34 = vadd.f32 1e-05, %v8917_v40 }
 0xc83   :  { %10942 = vrsqrt.f32 %v8919_v34 }
 0xc8d   :  { %v10943_v41 = vpop.eup %10942 }
 0xc8e   :  { %v8921_v3 = vmul.f32 %v10943_v41, %v8918_v38 }
 0xc90   :  { %v8925_v29 = vmul.f32 %v8923_v58, %v8921_v3 }
 0xc92   :  { %v8928_v22 = vadd.f32 %v8926_v31, %v8925_v29 }
 0xc94   :  { %v9545_v47 = vmul.f32 -1.442695, %v8928_v22 }
 0xc96   :  { %10944 = vpow2.f32 %v9545_v47 }
 0xca0   :  { %v10945_v52 = vpop.eup %10944 }
 0xca1   :  { %v8932_v39 = vadd.f32 1.0, %v10945_v52 }
 0xca3   :  { %10946 = vrcp.f32 %v8932_v39 }
 0xcad   :  { %v10947_v33 = vpop.eup %10946 }
 0xcae   :  { %v8935_v45 = vmul.f32 %v10947_v33, %v8928_v22 }
 0xcb0   :  { %v8936_v48 = vpack.c.bf16 %v8935_v45, %v8935_v45 }
 0xcb2   :  { %9662 = vmatmul.mubr.msk.bf16.vlgmr.msra.gmra.mrb[188].mxu1 %vm723_vm2, %v8936_v48 }
 0xcb3   :  { %9667 = vmatprep.mubr.msk.bf16.mxu1 %vm11052_vm0, %v17133_v56  ;;  %9666 = vmatpush3.bf16.msra.mxu1 %v9839_v8 }
 0xd85   :  { %v9006_v53 = vpop.f32.mrb[188].mxu1 }
 0xd86   :  { %v9007_v44 = vadd.f32 %v9006_v53, %v8392_v42  ;;  %v9663_v1 = vpop.f32.mrb[189].mxu1 }
 0xd87   :  { %v9009_v15 = vpop.f32.mrb[190].mxu1 }
 0xd88   :  { %v9551_v62 = vmul.f32 -1.442695, %v9007_v44  ;;  %v9664_v51 = vpop.f32.mrb[191].mxu1 }
 0xd8a   :  { %10948 = vpow2.f32 %v9551_v62 }
 0xd94   :  { %v10949_v11 = vpop.eup %10948 }
 0xd95   :  { %v9015_v7 = vadd.f32 1.0, %v10949_v11 }
 0xd97   :  { %10950 = vrcp.f32 %v9015_v7 }
 0xda1   :  { %v10951_v13 = vpop.eup %10950 }
 0xda2   :  { %v9018_v28 = vmul.f32 %v10951_v13, %v9007_v44 }
 0xda4   :  { %v9020_v14 = vsel %vm9019_vm6, %v9018_v28, 0.0  ;;  %v9025_v59 = vmul.f32 %v9018_v28, %v9018_v28 }
 0xda5   :  { %9021 = vadd.xlane.f32.xlu0 %v9020_v14 }
 0xda6   :  { %v9026_v56 = vsel %vm9019_vm6, %v9025_v59, 0.0 }
 0xda7   :  { %9027 = vadd.xlane.f32.xlu1 %v9026_v56 }
 0xe32   :  { %v9022_v32 = vpop.xlane.xlu0 %9021 }
 0xe33   :  { %v9024_v21 = vmul.f32 0.0625, %v9022_v32 }
 0xe34   :  { %v9028_v5 = vpop.xlane.xlu1 %9027 }
 0xe35   :  { %v9030_v24 = vmul.f32 %v9024_v21, %v9024_v21  ;;  %v9029_v10 = vmul.f32 0.0625, %v9028_v5  ;;  %v9033_v63 = vsub.f32 %v9018_v28, %v9024_v21 }
 0xe37   :  { %v9031_v25 = vsub.f32 %v9029_v10, %v9030_v24 }
 0xe39   :  { %v9032_v55 = vmax.f32 %v9031_v25, 0.0 }
 0xe3b   :  { %v9034_v4 = vadd.f32 1e-05, %v9032_v55 }
 0xe3d   :  { %10952 = vrsqrt.f32 %v9034_v4 }
 0xe47   :  { %v10953_v18 = vpop.eup %10952 }
 0xe48   :  { %v9036_v2 = vmul.f32 %v10953_v18, %v9033_v63 }
 0xe4a   :  { %v9040_v6 = vmul.f32 %v9038_v43, %v9036_v2 }
 0xe4c   :  { %v9043_v60 = vadd.f32 %v9041_v19, %v9040_v6 }
 0xe4e   :  { %v9552_v27 = vmul.f32 -1.442695, %v9043_v60 }
 0xe50   :  { %10954 = vpow2.f32 %v9552_v27 }
 0xe5a   :  { %v10955_v20 = vpop.eup %10954 }
 0xe5b   :  { %v9047_v0 = vadd.f32 1.0, %v10955_v20 }
 0xe5d   :  { %10956 = vrcp.f32 %v9047_v0 }
 0xe67   :  { %v10957_v26 = vpop.eup %10956 }
 0xe68   :  { %v9050_v35 = vmul.f32 %v10957_v26, %v9043_v60 }
 0xe6a   :  { %v9052_v9 = vpack.c.bf16 %v9050_v35, %v9050_v35 }
 0xe6c   :  { %9668 = vmatmul.mubr.msk.bf16.vlgmr.msra.gmra.mrb[192].mxu1 %vm127_vm1, %v9052_v9 }
 0xf3f   :  { %v9098_v49 = vpop.f32.mrb[192].mxu1 }
 0xf40   :  { %v9099_v17 = vadd.f32 %v9098_v49, %v9051_v37  ;;  %v9669_v54 = vpop.f32.mrb[193].mxu1 }
 0xf41   :  { %v9101_v30 = vpop.f32.mrb[194].mxu1 }
 0xf42   :  { %v9555_v12 = vmul.f32 -1.442695, %v9099_v17  ;;  %v9670_v57 = vpop.f32.mrb[195].mxu1 }
 0xf44   :  { %10958 = vpow2.f32 %v9555_v12 }
 0xf4e   :  { %v10959_v16 = vpop.eup %10958 }
 0xf4f   :  { %v9107_v36 = vadd.f32 1.0, %v10959_v16 }
 0xf51   :  { %10960 = vrcp.f32 %v9107_v36 }
 0xf5b   :  { %v10961_v61 = vpop.eup %10960 }
 0xf5c   :  { %v9110_v50 = vmul.f32 %v10961_v61, %v9099_v17 }
 0xf5e   :  { %v9556_v46 = vmul.f32 -1.442695, %v9110_v50 }
 0xf60   :  { %10962 = vpow2.f32 %v9556_v46 }
 0xf6a   :  { %v10963_v23 = vpop.eup %10962 }
 0xf6b   :  { %v9114_v40 = vadd.f32 1.0, %v10963_v23 }
 0xf6d   :  { %10964 = vrcp.f32 %v9114_v40 }
 0xf77   :  { %v10965_v34 = vpop.eup %10964 }
 0xf78   :  { %9118 = vst.msk [vmem:[#allocation8] sm:$0x1] %vm9117_vm7, %v10965_v34 }
 0xf79   :  { %11028 = shalt.err (!%p11025_p6)
}
 0xf7a   :  { %s11029_s22 = scalar_lea.hbm %s16314_s16, 16 }
 0xf7b   :  { %p11030_p7 = scmp.ne.s32.totalorder %s16314_s16, %s11029_s22  ;;  %p11033_p8 = scmp.lt.u32.totalorder %s11029_s22, %s16314_s16 }
 0xf7d   :  { %p11035_p9 = pnand %p11033_p8, %p11030_p7 }
 0xf7f   :  { %11038 = shalt.err (!%p11035_p9)
}
 0xf80   :  { %9128 = dma.vmem_to_hbm [thread:$0]  %s9126_s3, 16, %s16314_s16, [#allocation5]  }
 0xf81   :  { %11043 = dma.done.wait [#allocation5], 16  }
 0xf82   :  { %11044 = vsyncadd [#allocation5], 4294967280 }
 0xf83   :  { %9132 = vsyncpa [#allocation4], 1 }
 0xf84   :  { %9133 = vsyncpa [#allocation7], 1 }
 0xf85   :  { %9134 = vsyncpa [#allocation5], 1 }

</bundles_post_ra>
